<compile_context>
chip_gen: v5e
topology: v5e:2x2
jax: 0.10.0
libtpu: 0.0.40
codegen_flags: <defaults>
</compile_context>

<pallas_src>
import numpy as np
import jax
import jax.numpy as jnp
from jax import lax
from jax.experimental import pallas as pl
from jax.experimental.pallas import tpu as pltpu

# ---------------- problem sizes (small, consistent with the module) ---------
B = 16           # batch (single grid step -> block == full batch)
DATA_DIM = 4     # original parity data dims (gathered back out at the end)
AUG_DIM = 4      # ANODE augmentation dims
D = DATA_DIM + AUG_DIM
HIDDEN = 32      # odefunc hidden width
K = DATA_DIM     # gather width (indices per row)
T0, TN = 0.0, 1.0
N_STEPS = 20     # fixed RK4 steps over [T0, TN]

LANE = 128
# bf16 weight-slab row layout (all starts are multiples of the 16-row bf16 tile)
W2_R0, W31_R0, W3_R0 = 0, 32, 64
WSLAB_ROWS = 96
# f32 slab row layout (pre-broadcast biases + derived z0 + x)
Z0_R0, B2_R0, B31_R0, B3_R0, X_R0 = 0, 16, 32, 48, 64
FSLAB_ROWS = 80


def _elu(v):
    # nn.ELU(alpha=1.0).
    # TODO(synk): jnp.expm1 would match torch's expm1 path exactly and drop one
    # dependent subtract, but its Pallas-TPU lowering is not guaranteed across
    # jax versions; exp(v)-1 is kept for portability.
    return jnp.where(v > 0, v, jnp.exp(v) - 1.0)


def _derived_operands(x, w1, b1, w2, b2, w3, b3):
    """Everything the integrator needs, with all casts / broadcasts / weight
    compositions done up front (shared by the kernel wrapper and the matched
    reference so the arithmetic is identical)."""
    hi = lax.Precision.HIGHEST
    w31 = jnp.dot(w3, w1, precision=hi)        # [H, H] f32  (w3 @ w1)
    b31 = jnp.dot(b3, w1, precision=hi)        # [1, H] f32  (b3 @ w1)
    z0 = jnp.dot(x, w1, precision=hi) + b1     # [B, H] f32  (x @ w1 + b1)
    return dict(
        z0=z0,
        w2b=w2.astype(jnp.bfloat16),
        w31b=w31.astype(jnp.bfloat16),
        w3b=w3.astype(jnp.bfloat16),
        b2b=jnp.broadcast_to(b2, (B, HIDDEN)),
        b31b=jnp.broadcast_to(b31, (B, HIDDEN)),
        b3b=jnp.broadcast_to(b3, (B, D)),
    )


def _integrate_and_reconstruct(x, z0, w2b, w31b, w3b, b2b, b31b, b3b):
    """Fixed-step RK4 of the 3-layer ELU odefunc over [T0, TN], carried in
    layer-1 pre-activation space (z = s @ w1 + b1), returning s(TN)."""
    dt = (TN - T0) / N_STEPS
    half_dt, sixth_dt = 0.5 * dt, dt / 6.0
    half_dt_b31 = half_dt * b31b          # hoisted: reused 2x per step
    dt_b31 = dt * b31b                    # hoisted: reused 2x per step

    # TODO(synk): review suggested pinning w2b/w31b in MXU staging registers
    # via pltpu.matmul_push_rhs/acc_lhs/pop; left as jnp.dot until a bundle
    # dump shows Mosaic re-pushing the loop-invariant RHS per dot.
    def eval_h2(z):                       # [B,H] f32 -> [B,H] f32
        h1 = _elu(z)
        return _elu(jnp.dot(h1.astype(jnp.bfloat16), w2b,
                            preferred_element_type=jnp.float32) + b2b)

    def d31(h2):                          # [B,H] f32 -> [B,H] f32 (h2 @ w31)
        return jnp.dot(h2.astype(jnp.bfloat16), w31b,
                       preferred_element_type=jnp.float32)

    def rk4_step(_, carry):
        z, acc = carry
        zp_h = z + half_dt_b31            # off the matmul chain
        zp_f = z + dt_b31                 # off the matmul chain
        h2_1 = eval_h2(z);                   d1 = d31(h2_1)
        h2_2 = eval_h2(zp_h + half_dt * d1); d2 = d31(h2_2)
        h2_3 = eval_h2(zp_h + half_dt * d2); d3 = d31(h2_3)
        h2_4 = eval_h2(zp_f + dt * d3);      d4 = d31(h2_4)
        # z update reuses d1..d3: only d4's dot is on the critical path and
        # `partial` can issue while that matmul is in flight.
        partial = zp_f + sixth_dt * (d1 + 2.0 * (d2 + d3))
        z_new = partial + sixth_dt * d4
        # RK4-weighted h2 sum; mapped through w3 once at the very end.
        acc_new = acc + sixth_dt * ((h2_1 + h2_4) + 2.0 * (h2_2 + h2_3))
        return z_new, acc_new

    acc0 = jnp.zeros(z0.shape, jnp.float32)
    # Fully unrolled: the whole dependent matmul chain is visible to the
    # scheduler (ELU / combine VPU+EUP work hides under adjacent MXU work).
    _, acc = lax.fori_loop(0, N_STEPS, rk4_step, (z0, acc0), unroll=True)

    # s(TN) = s(0) + acc @ w3 + (TN - T0) * b3   (single w3 application)
    return x + jnp.dot(acc.astype(jnp.bfloat16), w3b,
                       preferred_element_type=jnp.float32) + (TN - T0) * b3b


def ode_block_kernel(idx_ref, w_ref, f_ref, out_ref):
    # Static slices of the pre-packed slabs (all casts, broadcasts and the
    # w31 / b31 / z0 precomputation already happened in the wrapper).
    w2b = w_ref[W2_R0:W2_R0 + HIDDEN, 0:HIDDEN]     # [H, H] bf16
    w31b = w_ref[W31_R0:W31_R0 + HIDDEN, 0:HIDDEN]  # [H, H] bf16
    w3b = w_ref[W3_R0:W3_R0 + HIDDEN, 0:D]          # [H, D] bf16
    z0 = f_ref[Z0_R0:Z0_R0 + B, 0:HIDDEN]           # [B, H] f32
    b2b = f_ref[B2_R0:B2_R0 + B, 0:HIDDEN]          # [B, H] f32
    b31b = f_ref[B31_R0:B31_R0 + B, 0:HIDDEN]       # [B, H] f32
    b3b = f_ref[B3_R0:B3_R0 + B, 0:D]               # [B, D] f32
    x = f_ref[X_R0:X_R0 + B, 0:D]                   # [B, D] f32

    s_fin = _integrate_and_reconstruct(x, z0, w2b, w31b, w3b, b2b, b31b, b3b)

    # out[1].gather(1, indices): gathered[b, k] = s_fin[b, idx[b, k]].
    # (Out-of-range indices yield 0 here, whereas torch.gather would raise.)
    idx = idx_ref[...]                               # [B, K] int32
    d_iota = lax.broadcasted_iota(jnp.int32, (B, D), 1)
    cols = []
    for k in range(K):                               # K=4 static iterations
        sel = jnp.where(idx[:, k:k + 1] == d_iota, s_fin, 0.0)   # [B, D]
        cols.append(jnp.sum(sel, axis=1, keepdims=True))         # [B, 1]
    out_ref[...] = jnp.concatenate(cols, axis=1)     # [B, K]


def _forward_impl(indices, x, w1, b1, w2, b2, w3, b3):
    ops = _derived_operands(x, w1, b1, w2, b2, w3, b3)

    # One lane-dense bf16 weight slab + one lane-dense f32 slab (2 DMAs for
    # all parameters + derived tensors, instead of 8 ragged tiny DMAs).
    wslab = jnp.zeros((WSLAB_ROWS, LANE), jnp.bfloat16)
    wslab = wslab.at[W2_R0:W2_R0 + HIDDEN, :HIDDEN].set(ops["w2b"])
    wslab = wslab.at[W31_R0:W31_R0 + HIDDEN, :HIDDEN].set(ops["w31b"])
    wslab = wslab.at[W3_R0:W3_R0 + HIDDEN, :D].set(ops["w3b"])

    fslab = jnp.zeros((FSLAB_ROWS, LANE), jnp.float32)
    fslab = fslab.at[Z0_R0:Z0_R0 + B, :HIDDEN].set(ops["z0"])
    fslab = fslab.at[B2_R0:B2_R0 + B, :HIDDEN].set(ops["b2b"])
    fslab = fslab.at[B31_R0:B31_R0 + B, :HIDDEN].set(ops["b31b"])
    fslab = fslab.at[B3_R0:B3_R0 + B, :D].set(ops["b3b"])
    fslab = fslab.at[X_R0:X_R0 + B, :D].set(x)

    # Single grid step: the whole (tiny) problem lives in VMEM at once; no
    # batch tiling, no megacore split (both would only replicate the serial
    # latency-bound matmul chain).
    return pl.pallas_call(
        ode_block_kernel,
        out_shape=jax.ShapeDtypeStruct((B, K), jnp.float32),
        grid=(1,),
        in_specs=[
            pl.BlockSpec((B, K), lambda i: (0, 0)),               # indices
            pl.BlockSpec((WSLAB_ROWS, LANE), lambda i: (0, 0)),   # bf16 slab
            pl.BlockSpec((FSLAB_ROWS, LANE), lambda i: (0, 0)),   # f32 slab
        ],
        out_specs=pl.BlockSpec((B, K), lambda i: (0, 0)),
        compiler_params=pltpu.CompilerParams(
            dimension_semantics=("arbitrary",)),
    )(indices, wslab, fslab)


ode_block_forward = jax.jit(_forward_impl)


def reference_matched(indices, x, w1, b1, w2, b2, w3, b3):
    """Pure-JAX mirror of the kernel's exact (re-associated, bf16-operand)
    arithmetic — tight correctness check for the Pallas implementation."""
    ops = _derived_operands(x, w1, b1, w2, b2, w3, b3)
    s_fin = _integrate_and_reconstruct(x, **ops)
    return jnp.take_along_axis(s_fin, indices, axis=1)


def reference_f32(indices, x, w1, b1, w2, b2, w3, b3):
    """Plain f32 (HIGHEST precision) textbook RK4 — loose sanity check."""
    hi = lax.Precision.HIGHEST

    def odefunc(s):
        h = _elu(jnp.dot(s, w1, precision=hi) + b1)
        h = _elu(jnp.dot(h, w2, precision=hi) + b2)
        return jnp.dot(h, w3, precision=hi) + b3

    dt = (TN - T0) / N_STEPS
    s = x
    for _ in range(N_STEPS):
        k1 = odefunc(s)
        k2 = odefunc(s + 0.5 * dt * k1)
        k3 = odefunc(s + 0.5 * dt * k2)
        k4 = odefunc(s + dt * k3)
        s = s + (dt / 6.0) * (k1 + 2.0 * k2 + 2.0 * k3 + k4)
    return jnp.take_along_axis(s, indices, axis=1)


def init_linear(key, fan_in, fan_out):
    # PyTorch nn.Linear default: U(-1/sqrt(fan_in), 1/sqrt(fan_in)); weight
    # returned pre-transposed to [in, out] so y = x @ W + b hits the MXU.
    kw, kb = jax.random.split(key)
    bound = 1.0 / np.sqrt(fan_in)
    w = jax.random.uniform(kw, (fan_in, fan_out), jnp.float32, -bound, bound)
    b = jax.random.uniform(kb, (1, fan_out), jnp.float32, -bound, bound)
    return w, b


if __name__ == "__main__":
    root = jax.random.PRNGKey(0)
    kx, k1, k2, k3 = jax.random.split(root, 4)

    # Augmented state: original DATA_DIM coords + AUG_DIM zero-augmented coords.
    x_data = jax.random.normal(kx, (B, DATA_DIM), jnp.float32)
    x = jnp.concatenate([x_data, jnp.zeros((B, AUG_DIM), jnp.float32)], axis=1)

    # indices: select the original data coordinates back out (per-row gather).
    indices = jnp.tile(jnp.arange(DATA_DIM, dtype=jnp.int32)[None, :], (B, 1))

    w1, b1 = init_linear(k1, D, HIDDEN)
    w2, b2 = init_linear(k2, HIDDEN, HIDDEN)
    w3, b3 = init_linear(k3, HIDDEN, D)

    out = ode_block_forward(indices, x, w1, b1, w2, b2, w3, b3)
    out = jax.block_until_ready(out)

    # Tight check: identical (re-associated, bf16-operand) arithmetic.
    ref_m = jax.jit(reference_matched)(indices, x, w1, b1, w2, b2, w3, b3)
    np.testing.assert_allclose(np.asarray(out), np.asarray(ref_m),
                               rtol=1e-3, atol=1e-3)

    # Loose sanity check against plain f32 RK4 (covers bf16 + re-association
    # rounding drift over 80 serial MLP evaluations).
    ref_f = jax.jit(reference_f32)(indices, x, w1, b1, w2, b2, w3, b3)
    np.testing.assert_allclose(np.asarray(out), np.asarray(ref_f),
                               rtol=5e-2, atol=5e-2)

    print("KERNEL_OK")
</pallas_src>

<mosaic_0001>
module attributes {stable_mosaic.version = 11 : i64} {
  func.func @ode_block_kernel(%arg0: i32, %arg1: memref<16x4xi32, #tpu.memory_space<vmem>>, %arg2: memref<96x128xbf16, #tpu.memory_space<vmem>>, %arg3: memref<80x128xf32, #tpu.memory_space<vmem>>, %arg4: memref<16x4xf32, #tpu.memory_space<vmem>>) attributes {dimension_semantics = [#tpu.dimension_semantics<arbitrary>], iteration_bounds = array<i64: 1>, scalar_prefetch = 0 : i64, scratch_operands = 0 : i64, tpu.core_type = #tpu.core_type<tc>, window_params = [{pipeline_mode = #tpu.pipeline_mode<synchronous>, transform_indices = @transform_0, window_bounds = array<i64: 16, 4>}, {pipeline_mode = #tpu.pipeline_mode<synchronous>, transform_indices = @transform_1, window_bounds = array<i64: 96, 128>}, {pipeline_mode = #tpu.pipeline_mode<synchronous>, transform_indices = @transform_2, window_bounds = array<i64: 80, 128>}, {pipeline_mode = #tpu.pipeline_mode<synchronous>, transform_indices = @transform_3, window_bounds = array<i64: 16, 4>}]} {
    %c0 = arith.constant 0 : index
    %c0_0 = arith.constant 0 : index
    %0 = vector.load %arg2[%c0, %c0_0] : memref<96x128xbf16, #tpu.memory_space<vmem>>, vector<32x32xbf16>
    %c32 = arith.constant 32 : index
    %c0_1 = arith.constant 0 : index
    %1 = vector.load %arg2[%c32, %c0_1] : memref<96x128xbf16, #tpu.memory_space<vmem>>, vector<32x32xbf16>
    %c64 = arith.constant 64 : index
    %c0_2 = arith.constant 0 : index
    %2 = vector.load %arg2[%c64, %c0_2] : memref<96x128xbf16, #tpu.memory_space<vmem>>, vector<32x8xbf16>
    %c0_3 = arith.constant 0 : index
    %c0_4 = arith.constant 0 : index
    %3 = vector.load %arg3[%c0_3, %c0_4] : memref<80x128xf32, #tpu.memory_space<vmem>>, vector<16x32xf32>
    %c16 = arith.constant 16 : index
    %c0_5 = arith.constant 0 : index
    %4 = vector.load %arg3[%c16, %c0_5] : memref<80x128xf32, #tpu.memory_space<vmem>>, vector<16x32xf32>
    %c32_6 = arith.constant 32 : index
    %c0_7 = arith.constant 0 : index
    %5 = vector.load %arg3[%c32_6, %c0_7] : memref<80x128xf32, #tpu.memory_space<vmem>>, vector<16x32xf32>
    %c48 = arith.constant 48 : index
    %c0_8 = arith.constant 0 : index
    %6 = vector.load %arg3[%c48, %c0_8] : memref<80x128xf32, #tpu.memory_space<vmem>>, vector<16x8xf32>
    %c64_9 = arith.constant 64 : index
    %c0_10 = arith.constant 0 : index
    %7 = vector.load %arg3[%c64_9, %c0_10] : memref<80x128xf32, #tpu.memory_space<vmem>>, vector<16x8xf32>
    %cst = arith.constant 2.500000e-02 : f32
    %8 = vector.broadcast %cst : f32 to vector<16x32xf32>
    %9 = arith.mulf %8, %5 : vector<16x32xf32>
    %cst_11 = arith.constant 5.000000e-02 : f32
    %10 = vector.broadcast %cst_11 : f32 to vector<16x32xf32>
    %11 = arith.mulf %10, %5 : vector<16x32xf32>
    %cst_12 = arith.constant 0.000000e+00 : f32
    %12 = vector.broadcast %cst_12 : f32 to vector<16x32xf32>
    %c0_i32 = arith.constant 0 : i32
    %13 = arith.addf %3, %9 : vector<16x32xf32>
    %14 = arith.addf %3, %11 : vector<16x32xf32>
    %cst_13 = arith.constant 0.000000e+00 : f32
    %15 = vector.broadcast %cst_13 : f32 to vector<16x32xf32>
    %16 = arith.cmpf ogt, %3, %15 : vector<16x32xf32>
    %17 = math.exp %3 : vector<16x32xf32>
    %cst_14 = arith.constant 1.000000e+00 : f32
    %18 = vector.broadcast %cst_14 : f32 to vector<16x32xf32>
    %19 = arith.subf %17, %18 : vector<16x32xf32>
    %20 = arith.select %16, %3, %19 : vector<16x32xi1>, vector<16x32xf32>
    %21 = arith.truncf %20 : vector<16x32xf32> to vector<16x32xbf16>
    %cst_15 = arith.constant dense<0.000000e+00> : vector<16x32xf32>
    %22 = tpu.matmul %21, %0, %cst_15 {dimension_numbers = #tpu.dot_dimension_numbers<[1], [0], [0], [1], [0, 0, 1, 1], [], []>} : vector<16x32xbf16>, vector<32x32xbf16>, vector<16x32xf32> -> vector<16x32xf32>
    %23 = arith.addf %22, %4 : vector<16x32xf32>
    %cst_16 = arith.constant 0.000000e+00 : f32
    %24 = vector.broadcast %cst_16 : f32 to vector<16x32xf32>
    %25 = arith.cmpf ogt, %23, %24 : vector<16x32xf32>
    %26 = math.exp %23 : vector<16x32xf32>
    %cst_17 = arith.constant 1.000000e+00 : f32
    %27 = vector.broadcast %cst_17 : f32 to vector<16x32xf32>
    %28 = arith.subf %26, %27 : vector<16x32xf32>
    %29 = arith.select %25, %23, %28 : vector<16x32xi1>, vector<16x32xf32>
    %30 = arith.truncf %29 : vector<16x32xf32> to vector<16x32xbf16>
    %cst_18 = arith.constant dense<0.000000e+00> : vector<16x32xf32>
    %31 = tpu.matmul %30, %1, %cst_18 {dimension_numbers = #tpu.dot_dimension_numbers<[1], [0], [0], [1], [0, 0, 1, 1], [], []>} : vector<16x32xbf16>, vector<32x32xbf16>, vector<16x32xf32> -> vector<16x32xf32>
    %cst_19 = arith.constant 2.500000e-02 : f32
    %32 = vector.broadcast %cst_19 : f32 to vector<16x32xf32>
    %33 = arith.mulf %32, %31 : vector<16x32xf32>
    %34 = arith.addf %13, %33 : vector<16x32xf32>
    %cst_20 = arith.constant 0.000000e+00 : f32
    %35 = vector.broadcast %cst_20 : f32 to vector<16x32xf32>
    %36 = arith.cmpf ogt, %34, %35 : vector<16x32xf32>
    %37 = math.exp %34 : vector<16x32xf32>
    %cst_21 = arith.constant 1.000000e+00 : f32
    %38 = vector.broadcast %cst_21 : f32 to vector<16x32xf32>
    %39 = arith.subf %37, %38 : vector<16x32xf32>
    %40 = arith.select %36, %34, %39 : vector<16x32xi1>, vector<16x32xf32>
    %41 = arith.truncf %40 : vector<16x32xf32> to vector<16x32xbf16>
    %cst_22 = arith.constant dense<0.000000e+00> : vector<16x32xf32>
    %42 = tpu.matmul %41, %0, %cst_22 {dimension_numbers = #tpu.dot_dimension_numbers<[1], [0], [0], [1], [0, 0, 1, 1], [], []>} : vector<16x32xbf16>, vector<32x32xbf16>, vector<16x32xf32> -> vector<16x32xf32>
    %43 = arith.addf %42, %4 : vector<16x32xf32>
    %cst_23 = arith.constant 0.000000e+00 : f32
    %44 = vector.broadcast %cst_23 : f32 to vector<16x32xf32>
    %45 = arith.cmpf ogt, %43, %44 : vector<16x32xf32>
    %46 = math.exp %43 : vector<16x32xf32>
    %cst_24 = arith.constant 1.000000e+00 : f32
    %47 = vector.broadcast %cst_24 : f32 to vector<16x32xf32>
    %48 = arith.subf %46, %47 : vector<16x32xf32>
    %49 = arith.select %45, %43, %48 : vector<16x32xi1>, vector<16x32xf32>
    %50 = arith.truncf %49 : vector<16x32xf32> to vector<16x32xbf16>
    %cst_25 = arith.constant dense<0.000000e+00> : vector<16x32xf32>
    %51 = tpu.matmul %50, %1, %cst_25 {dimension_numbers = #tpu.dot_dimension_numbers<[1], [0], [0], [1], [0, 0, 1, 1], [], []>} : vector<16x32xbf16>, vector<32x32xbf16>, vector<16x32xf32> -> vector<16x32xf32>
    %cst_26 = arith.constant 2.500000e-02 : f32
    %52 = vector.broadcast %cst_26 : f32 to vector<16x32xf32>
    %53 = arith.mulf %52, %51 : vector<16x32xf32>
    %54 = arith.addf %13, %53 : vector<16x32xf32>
    %cst_27 = arith.constant 0.000000e+00 : f32
    %55 = vector.broadcast %cst_27 : f32 to vector<16x32xf32>
    %56 = arith.cmpf ogt, %54, %55 : vector<16x32xf32>
    %57 = math.exp %54 : vector<16x32xf32>
    %cst_28 = arith.constant 1.000000e+00 : f32
    %58 = vector.broadcast %cst_28 : f32 to vector<16x32xf32>
    %59 = arith.subf %57, %58 : vector<16x32xf32>
    %60 = arith.select %56, %54, %59 : vector<16x32xi1>, vector<16x32xf32>
    %61 = arith.truncf %60 : vector<16x32xf32> to vector<16x32xbf16>
    %cst_29 = arith.constant dense<0.000000e+00> : vector<16x32xf32>
    %62 = tpu.matmul %61, %0, %cst_29 {dimension_numbers = #tpu.dot_dimension_numbers<[1], [0], [0], [1], [0, 0, 1, 1], [], []>} : vector<16x32xbf16>, vector<32x32xbf16>, vector<16x32xf32> -> vector<16x32xf32>
    %63 = arith.addf %62, %4 : vector<16x32xf32>
    %cst_30 = arith.constant 0.000000e+00 : f32
    %64 = vector.broadcast %cst_30 : f32 to vector<16x32xf32>
    %65 = arith.cmpf ogt, %63, %64 : vector<16x32xf32>
    %66 = math.exp %63 : vector<16x32xf32>
    %cst_31 = arith.constant 1.000000e+00 : f32
    %67 = vector.broadcast %cst_31 : f32 to vector<16x32xf32>
    %68 = arith.subf %66, %67 : vector<16x32xf32>
    %69 = arith.select %65, %63, %68 : vector<16x32xi1>, vector<16x32xf32>
    %70 = arith.truncf %69 : vector<16x32xf32> to vector<16x32xbf16>
    %cst_32 = arith.constant dense<0.000000e+00> : vector<16x32xf32>
    %71 = tpu.matmul %70, %1, %cst_32 {dimension_numbers = #tpu.dot_dimension_numbers<[1], [0], [0], [1], [0, 0, 1, 1], [], []>} : vector<16x32xbf16>, vector<32x32xbf16>, vector<16x32xf32> -> vector<16x32xf32>
    %cst_33 = arith.constant 5.000000e-02 : f32
    %72 = vector.broadcast %cst_33 : f32 to vector<16x32xf32>
    %73 = arith.mulf %72, %71 : vector<16x32xf32>
    %74 = arith.addf %14, %73 : vector<16x32xf32>
    %cst_34 = arith.constant 0.000000e+00 : f32
    %75 = vector.broadcast %cst_34 : f32 to vector<16x32xf32>
    %76 = arith.cmpf ogt, %74, %75 : vector<16x32xf32>
    %77 = math.exp %74 : vector<16x32xf32>
    %cst_35 = arith.constant 1.000000e+00 : f32
    %78 = vector.broadcast %cst_35 : f32 to vector<16x32xf32>
    %79 = arith.subf %77, %78 : vector<16x32xf32>
    %80 = arith.select %76, %74, %79 : vector<16x32xi1>, vector<16x32xf32>
    %81 = arith.truncf %80 : vector<16x32xf32> to vector<16x32xbf16>
    %cst_36 = arith.constant dense<0.000000e+00> : vector<16x32xf32>
    %82 = tpu.matmul %81, %0, %cst_36 {dimension_numbers = #tpu.dot_dimension_numbers<[1], [0], [0], [1], [0, 0, 1, 1], [], []>} : vector<16x32xbf16>, vector<32x32xbf16>, vector<16x32xf32> -> vector<16x32xf32>
    %83 = arith.addf %82, %4 : vector<16x32xf32>
    %cst_37 = arith.constant 0.000000e+00 : f32
    %84 = vector.broadcast %cst_37 : f32 to vector<16x32xf32>
    %85 = arith.cmpf ogt, %83, %84 : vector<16x32xf32>
    %86 = math.exp %83 : vector<16x32xf32>
    %cst_38 = arith.constant 1.000000e+00 : f32
    %87 = vector.broadcast %cst_38 : f32 to vector<16x32xf32>
    %88 = arith.subf %86, %87 : vector<16x32xf32>
    %89 = arith.select %85, %83, %88 : vector<16x32xi1>, vector<16x32xf32>
    %90 = arith.truncf %89 : vector<16x32xf32> to vector<16x32xbf16>
    %cst_39 = arith.constant dense<0.000000e+00> : vector<16x32xf32>
    %91 = tpu.matmul %90, %1, %cst_39 {dimension_numbers = #tpu.dot_dimension_numbers<[1], [0], [0], [1], [0, 0, 1, 1], [], []>} : vector<16x32xbf16>, vector<32x32xbf16>, vector<16x32xf32> -> vector<16x32xf32>
    %92 = arith.addf %51, %71 : vector<16x32xf32>
    %cst_40 = arith.constant 2.000000e+00 : f32
    %93 = vector.broadcast %cst_40 : f32 to vector<16x32xf32>
    %94 = arith.mulf %93, %92 : vector<16x32xf32>
    %95 = arith.addf %31, %94 : vector<16x32xf32>
    %cst_41 = arith.constant 0.00833333377 : f32
    %96 = vector.broadcast %cst_41 : f32 to vector<16x32xf32>
    %97 = arith.mulf %96, %95 : vector<16x32xf32>
    %98 = arith.addf %14, %97 : vector<16x32xf32>
    %cst_42 = arith.constant 0.00833333377 : f32
    %99 = vector.broadcast %cst_42 : f32 to vector<16x32xf32>
    %100 = arith.mulf %99, %91 : vector<16x32xf32>
    %101 = arith.addf %98, %100 : vector<16x32xf32>
    %102 = arith.addf %29, %89 : vector<16x32xf32>
    %103 = arith.addf %49, %69 : vector<16x32xf32>
    %cst_43 = arith.constant 2.000000e+00 : f32
    %104 = vector.broadcast %cst_43 : f32 to vector<16x32xf32>
    %105 = arith.mulf %104, %103 : vector<16x32xf32>
    %106 = arith.addf %102, %105 : vector<16x32xf32>
    %cst_44 = arith.constant 0.00833333377 : f32
    %107 = vector.broadcast %cst_44 : f32 to vector<16x32xf32>
    %108 = arith.mulf %107, %106 : vector<16x32xf32>
    %109 = arith.addf %12, %108 : vector<16x32xf32>
    %c1_i32 = arith.constant 1 : i32
    %110 = arith.addf %101, %9 : vector<16x32xf32>
    %111 = arith.addf %101, %11 : vector<16x32xf32>
    %cst_45 = arith.constant 0.000000e+00 : f32
    %112 = vector.broadcast %cst_45 : f32 to vector<16x32xf32>
    %113 = arith.cmpf ogt, %101, %112 : vector<16x32xf32>
    %114 = math.exp %101 : vector<16x32xf32>
    %cst_46 = arith.constant 1.000000e+00 : f32
    %115 = vector.broadcast %cst_46 : f32 to vector<16x32xf32>
    %116 = arith.subf %114, %115 : vector<16x32xf32>
    %117 = arith.select %113, %101, %116 : vector<16x32xi1>, vector<16x32xf32>
    %118 = arith.truncf %117 : vector<16x32xf32> to vector<16x32xbf16>
    %cst_47 = arith.constant dense<0.000000e+00> : vector<16x32xf32>
    %119 = tpu.matmul %118, %0, %cst_47 {dimension_numbers = #tpu.dot_dimension_numbers<[1], [0], [0], [1], [0, 0, 1, 1], [], []>} : vector<16x32xbf16>, vector<32x32xbf16>, vector<16x32xf32> -> vector<16x32xf32>
    %120 = arith.addf %119, %4 : vector<16x32xf32>
    %cst_48 = arith.constant 0.000000e+00 : f32
    %121 = vector.broadcast %cst_48 : f32 to vector<16x32xf32>
    %122 = arith.cmpf ogt, %120, %121 : vector<16x32xf32>
    %123 = math.exp %120 : vector<16x32xf32>
    %cst_49 = arith.constant 1.000000e+00 : f32
    %124 = vector.broadcast %cst_49 : f32 to vector<16x32xf32>
    %125 = arith.subf %123, %124 : vector<16x32xf32>
    %126 = arith.select %122, %120, %125 : vector<16x32xi1>, vector<16x32xf32>
    %127 = arith.truncf %126 : vector<16x32xf32> to vector<16x32xbf16>
    %cst_50 = arith.constant dense<0.000000e+00> : vector<16x32xf32>
    %128 = tpu.matmul %127, %1, %cst_50 {dimension_numbers = #tpu.dot_dimension_numbers<[1], [0], [0], [1], [0, 0, 1, 1], [], []>} : vector<16x32xbf16>, vector<32x32xbf16>, vector<16x32xf32> -> vector<16x32xf32>
    %cst_51 = arith.constant 2.500000e-02 : f32
    %129 = vector.broadcast %cst_51 : f32 to vector<16x32xf32>
    %130 = arith.mulf %129, %128 : vector<16x32xf32>
    %131 = arith.addf %110, %130 : vector<16x32xf32>
    %cst_52 = arith.constant 0.000000e+00 : f32
    %132 = vector.broadcast %cst_52 : f32 to vector<16x32xf32>
    %133 = arith.cmpf ogt, %131, %132 : vector<16x32xf32>
    %134 = math.exp %131 : vector<16x32xf32>
    %cst_53 = arith.constant 1.000000e+00 : f32
    %135 = vector.broadcast %cst_53 : f32 to vector<16x32xf32>
    %136 = arith.subf %134, %135 : vector<16x32xf32>
    %137 = arith.select %133, %131, %136 : vector<16x32xi1>, vector<16x32xf32>
    %138 = arith.truncf %137 : vector<16x32xf32> to vector<16x32xbf16>
    %cst_54 = arith.constant dense<0.000000e+00> : vector<16x32xf32>
    %139 = tpu.matmul %138, %0, %cst_54 {dimension_numbers = #tpu.dot_dimension_numbers<[1], [0], [0], [1], [0, 0, 1, 1], [], []>} : vector<16x32xbf16>, vector<32x32xbf16>, vector<16x32xf32> -> vector<16x32xf32>
    %140 = arith.addf %139, %4 : vector<16x32xf32>
    %cst_55 = arith.constant 0.000000e+00 : f32
    %141 = vector.broadcast %cst_55 : f32 to vector<16x32xf32>
    %142 = arith.cmpf ogt, %140, %141 : vector<16x32xf32>
    %143 = math.exp %140 : vector<16x32xf32>
    %cst_56 = arith.constant 1.000000e+00 : f32
    %144 = vector.broadcast %cst_56 : f32 to vector<16x32xf32>
    %145 = arith.subf %143, %144 : vector<16x32xf32>
    %146 = arith.select %142, %140, %145 : vector<16x32xi1>, vector<16x32xf32>
    %147 = arith.truncf %146 : vector<16x32xf32> to vector<16x32xbf16>
    %cst_57 = arith.constant dense<0.000000e+00> : vector<16x32xf32>
    %148 = tpu.matmul %147, %1, %cst_57 {dimension_numbers = #tpu.dot_dimension_numbers<[1], [0], [0], [1], [0, 0, 1, 1], [], []>} : vector<16x32xbf16>, vector<32x32xbf16>, vector<16x32xf32> -> vector<16x32xf32>
    %cst_58 = arith.constant 2.500000e-02 : f32
    %149 = vector.broadcast %cst_58 : f32 to vector<16x32xf32>
    %150 = arith.mulf %149, %148 : vector<16x32xf32>
    %151 = arith.addf %110, %150 : vector<16x32xf32>
    %cst_59 = arith.constant 0.000000e+00 : f32
    %152 = vector.broadcast %cst_59 : f32 to vector<16x32xf32>
    %153 = arith.cmpf ogt, %151, %152 : vector<16x32xf32>
    %154 = math.exp %151 : vector<16x32xf32>
    %cst_60 = arith.constant 1.000000e+00 : f32
    %155 = vector.broadcast %cst_60 : f32 to vector<16x32xf32>
    %156 = arith.subf %154, %155 : vector<16x32xf32>
    %157 = arith.select %153, %151, %156 : vector<16x32xi1>, vector<16x32xf32>
    %158 = arith.truncf %157 : vector<16x32xf32> to vector<16x32xbf16>
    %cst_61 = arith.constant dense<0.000000e+00> : vector<16x32xf32>
    %159 = tpu.matmul %158, %0, %cst_61 {dimension_numbers = #tpu.dot_dimension_numbers<[1], [0], [0], [1], [0, 0, 1, 1], [], []>} : vector<16x32xbf16>, vector<32x32xbf16>, vector<16x32xf32> -> vector<16x32xf32>
    %160 = arith.addf %159, %4 : vector<16x32xf32>
    %cst_62 = arith.constant 0.000000e+00 : f32
    %161 = vector.broadcast %cst_62 : f32 to vector<16x32xf32>
    %162 = arith.cmpf ogt, %160, %161 : vector<16x32xf32>
    %163 = math.exp %160 : vector<16x32xf32>
    %cst_63 = arith.constant 1.000000e+00 : f32
    %164 = vector.broadcast %cst_63 : f32 to vector<16x32xf32>
    %165 = arith.subf %163, %164 : vector<16x32xf32>
    %166 = arith.select %162, %160, %165 : vector<16x32xi1>, vector<16x32xf32>
    %167 = arith.truncf %166 : vector<16x32xf32> to vector<16x32xbf16>
    %cst_64 = arith.constant dense<0.000000e+00> : vector<16x32xf32>
    %168 = tpu.matmul %167, %1, %cst_64 {dimension_numbers = #tpu.dot_dimension_numbers<[1], [0], [0], [1], [0, 0, 1, 1], [], []>} : vector<16x32xbf16>, vector<32x32xbf16>, vector<16x32xf32> -> vector<16x32xf32>
    %cst_65 = arith.constant 5.000000e-02 : f32
    %169 = vector.broadcast %cst_65 : f32 to vector<16x32xf32>
    %170 = arith.mulf %169, %168 : vector<16x32xf32>
    %171 = arith.addf %111, %170 : vector<16x32xf32>
    %cst_66 = arith.constant 0.000000e+00 : f32
    %172 = vector.broadcast %cst_66 : f32 to vector<16x32xf32>
    %173 = arith.cmpf ogt, %171, %172 : vector<16x32xf32>
    %174 = math.exp %171 : vector<16x32xf32>
    %cst_67 = arith.constant 1.000000e+00 : f32
    %175 = vector.broadcast %cst_67 : f32 to vector<16x32xf32>
    %176 = arith.subf %174, %175 : vector<16x32xf32>
    %177 = arith.select %173, %171, %176 : vector<16x32xi1>, vector<16x32xf32>
    %178 = arith.truncf %177 : vector<16x32xf32> to vector<16x32xbf16>
    %cst_68 = arith.constant dense<0.000000e+00> : vector<16x32xf32>
    %179 = tpu.matmul %178, %0, %cst_68 {dimension_numbers = #tpu.dot_dimension_numbers<[1], [0], [0], [1], [0, 0, 1, 1], [], []>} : vector<16x32xbf16>, vector<32x32xbf16>, vector<16x32xf32> -> vector<16x32xf32>
    %180 = arith.addf %179, %4 : vector<16x32xf32>
    %cst_69 = arith.constant 0.000000e+00 : f32
    %181 = vector.broadcast %cst_69 : f32 to vector<16x32xf32>
    %182 = arith.cmpf ogt, %180, %181 : vector<16x32xf32>
    %183 = math.exp %180 : vector<16x32xf32>
    %cst_70 = arith.constant 1.000000e+00 : f32
    %184 = vector.broadcast %cst_70 : f32 to vector<16x32xf32>
    %185 = arith.subf %183, %184 : vector<16x32xf32>
    %186 = arith.select %182, %180, %185 : vector<16x32xi1>, vector<16x32xf32>
    %187 = arith.truncf %186 : vector<16x32xf32> to vector<16x32xbf16>
    %cst_71 = arith.constant dense<0.000000e+00> : vector<16x32xf32>
    %188 = tpu.matmul %187, %1, %cst_71 {dimension_numbers = #tpu.dot_dimension_numbers<[1], [0], [0], [1], [0, 0, 1, 1], [], []>} : vector<16x32xbf16>, vector<32x32xbf16>, vector<16x32xf32> -> vector<16x32xf32>
    %189 = arith.addf %148, %168 : vector<16x32xf32>
    %cst_72 = arith.constant 2.000000e+00 : f32
    %190 = vector.broadcast %cst_72 : f32 to vector<16x32xf32>
    %191 = arith.mulf %190, %189 : vector<16x32xf32>
    %192 = arith.addf %128, %191 : vector<16x32xf32>
    %cst_73 = arith.constant 0.00833333377 : f32
    %193 = vector.broadcast %cst_73 : f32 to vector<16x32xf32>
    %194 = arith.mulf %193, %192 : vector<16x32xf32>
    %195 = arith.addf %111, %194 : vector<16x32xf32>
    %cst_74 = arith.constant 0.00833333377 : f32
    %196 = vector.broadcast %cst_74 : f32 to vector<16x32xf32>
    %197 = arith.mulf %196, %188 : vector<16x32xf32>
    %198 = arith.addf %195, %197 : vector<16x32xf32>
    %199 = arith.addf %126, %186 : vector<16x32xf32>
    %200 = arith.addf %146, %166 : vector<16x32xf32>
    %cst_75 = arith.constant 2.000000e+00 : f32
    %201 = vector.broadcast %cst_75 : f32 to vector<16x32xf32>
    %202 = arith.mulf %201, %200 : vector<16x32xf32>
    %203 = arith.addf %199, %202 : vector<16x32xf32>
    %cst_76 = arith.constant 0.00833333377 : f32
    %204 = vector.broadcast %cst_76 : f32 to vector<16x32xf32>
    %205 = arith.mulf %204, %203 : vector<16x32xf32>
    %206 = arith.addf %109, %205 : vector<16x32xf32>
    %c2_i32 = arith.constant 2 : i32
    %207 = arith.addf %198, %9 : vector<16x32xf32>
    %208 = arith.addf %198, %11 : vector<16x32xf32>
    %cst_77 = arith.constant 0.000000e+00 : f32
    %209 = vector.broadcast %cst_77 : f32 to vector<16x32xf32>
    %210 = arith.cmpf ogt, %198, %209 : vector<16x32xf32>
    %211 = math.exp %198 : vector<16x32xf32>
    %cst_78 = arith.constant 1.000000e+00 : f32
    %212 = vector.broadcast %cst_78 : f32 to vector<16x32xf32>
    %213 = arith.subf %211, %212 : vector<16x32xf32>
    %214 = arith.select %210, %198, %213 : vector<16x32xi1>, vector<16x32xf32>
    %215 = arith.truncf %214 : vector<16x32xf32> to vector<16x32xbf16>
    %cst_79 = arith.constant dense<0.000000e+00> : vector<16x32xf32>
    %216 = tpu.matmul %215, %0, %cst_79 {dimension_numbers = #tpu.dot_dimension_numbers<[1], [0], [0], [1], [0, 0, 1, 1], [], []>} : vector<16x32xbf16>, vector<32x32xbf16>, vector<16x32xf32> -> vector<16x32xf32>
    %217 = arith.addf %216, %4 : vector<16x32xf32>
    %cst_80 = arith.constant 0.000000e+00 : f32
    %218 = vector.broadcast %cst_80 : f32 to vector<16x32xf32>
    %219 = arith.cmpf ogt, %217, %218 : vector<16x32xf32>
    %220 = math.exp %217 : vector<16x32xf32>
    %cst_81 = arith.constant 1.000000e+00 : f32
    %221 = vector.broadcast %cst_81 : f32 to vector<16x32xf32>
    %222 = arith.subf %220, %221 : vector<16x32xf32>
    %223 = arith.select %219, %217, %222 : vector<16x32xi1>, vector<16x32xf32>
    %224 = arith.truncf %223 : vector<16x32xf32> to vector<16x32xbf16>
    %cst_82 = arith.constant dense<0.000000e+00> : vector<16x32xf32>
    %225 = tpu.matmul %224, %1, %cst_82 {dimension_numbers = #tpu.dot_dimension_numbers<[1], [0], [0], [1], [0, 0, 1, 1], [], []>} : vector<16x32xbf16>, vector<32x32xbf16>, vector<16x32xf32> -> vector<16x32xf32>
    %cst_83 = arith.constant 2.500000e-02 : f32
    %226 = vector.broadcast %cst_83 : f32 to vector<16x32xf32>
    %227 = arith.mulf %226, %225 : vector<16x32xf32>
    %228 = arith.addf %207, %227 : vector<16x32xf32>
    %cst_84 = arith.constant 0.000000e+00 : f32
    %229 = vector.broadcast %cst_84 : f32 to vector<16x32xf32>
    %230 = arith.cmpf ogt, %228, %229 : vector<16x32xf32>
    %231 = math.exp %228 : vector<16x32xf32>
    %cst_85 = arith.constant 1.000000e+00 : f32
    %232 = vector.broadcast %cst_85 : f32 to vector<16x32xf32>
    %233 = arith.subf %231, %232 : vector<16x32xf32>
    %234 = arith.select %230, %228, %233 : vector<16x32xi1>, vector<16x32xf32>
    %235 = arith.truncf %234 : vector<16x32xf32> to vector<16x32xbf16>
    %cst_86 = arith.constant dense<0.000000e+00> : vector<16x32xf32>
    %236 = tpu.matmul %235, %0, %cst_86 {dimension_numbers = #tpu.dot_dimension_numbers<[1], [0], [0], [1], [0, 0, 1, 1], [], []>} : vector<16x32xbf16>, vector<32x32xbf16>, vector<16x32xf32> -> vector<16x32xf32>
    %237 = arith.addf %236, %4 : vector<16x32xf32>
    %cst_87 = arith.constant 0.000000e+00 : f32
    %238 = vector.broadcast %cst_87 : f32 to vector<16x32xf32>
    %239 = arith.cmpf ogt, %237, %238 : vector<16x32xf32>
    %240 = math.exp %237 : vector<16x32xf32>
    %cst_88 = arith.constant 1.000000e+00 : f32
    %241 = vector.broadcast %cst_88 : f32 to vector<16x32xf32>
    %242 = arith.subf %240, %241 : vector<16x32xf32>
    %243 = arith.select %239, %237, %242 : vector<16x32xi1>, vector<16x32xf32>
    %244 = arith.truncf %243 : vector<16x32xf32> to vector<16x32xbf16>
    %cst_89 = arith.constant dense<0.000000e+00> : vector<16x32xf32>
    %245 = tpu.matmul %244, %1, %cst_89 {dimension_numbers = #tpu.dot_dimension_numbers<[1], [0], [0], [1], [0, 0, 1, 1], [], []>} : vector<16x32xbf16>, vector<32x32xbf16>, vector<16x32xf32> -> vector<16x32xf32>
    %cst_90 = arith.constant 2.500000e-02 : f32
    %246 = vector.broadcast %cst_90 : f32 to vector<16x32xf32>
    %247 = arith.mulf %246, %245 : vector<16x32xf32>
    %248 = arith.addf %207, %247 : vector<16x32xf32>
    %cst_91 = arith.constant 0.000000e+00 : f32
    %249 = vector.broadcast %cst_91 : f32 to vector<16x32xf32>
    %250 = arith.cmpf ogt, %248, %249 : vector<16x32xf32>
    %251 = math.exp %248 : vector<16x32xf32>
    %cst_92 = arith.constant 1.000000e+00 : f32
    %252 = vector.broadcast %cst_92 : f32 to vector<16x32xf32>
    %253 = arith.subf %251, %252 : vector<16x32xf32>
    %254 = arith.select %250, %248, %253 : vector<16x32xi1>, vector<16x32xf32>
    %255 = arith.truncf %254 : vector<16x32xf32> to vector<16x32xbf16>
    %cst_93 = arith.constant dense<0.000000e+00> : vector<16x32xf32>
    %256 = tpu.matmul %255, %0, %cst_93 {dimension_numbers = #tpu.dot_dimension_numbers<[1], [0], [0], [1], [0, 0, 1, 1], [], []>} : vector<16x32xbf16>, vector<32x32xbf16>, vector<16x32xf32> -> vector<16x32xf32>
    %257 = arith.addf %256, %4 : vector<16x32xf32>
    %cst_94 = arith.constant 0.000000e+00 : f32
    %258 = vector.broadcast %cst_94 : f32 to vector<16x32xf32>
    %259 = arith.cmpf ogt, %257, %258 : vector<16x32xf32>
    %260 = math.exp %257 : vector<16x32xf32>
    %cst_95 = arith.constant 1.000000e+00 : f32
    %261 = vector.broadcast %cst_95 : f32 to vector<16x32xf32>
    %262 = arith.subf %260, %261 : vector<16x32xf32>
    %263 = arith.select %259, %257, %262 : vector<16x32xi1>, vector<16x32xf32>
    %264 = arith.truncf %263 : vector<16x32xf32> to vector<16x32xbf16>
    %cst_96 = arith.constant dense<0.000000e+00> : vector<16x32xf32>
    %265 = tpu.matmul %264, %1, %cst_96 {dimension_numbers = #tpu.dot_dimension_numbers<[1], [0], [0], [1], [0, 0, 1, 1], [], []>} : vector<16x32xbf16>, vector<32x32xbf16>, vector<16x32xf32> -> vector<16x32xf32>
    %cst_97 = arith.constant 5.000000e-02 : f32
    %266 = vector.broadcast %cst_97 : f32 to vector<16x32xf32>
    %267 = arith.mulf %266, %265 : vector<16x32xf32>
    %268 = arith.addf %208, %267 : vector<16x32xf32>
    %cst_98 = arith.constant 0.000000e+00 : f32
    %269 = vector.broadcast %cst_98 : f32 to vector<16x32xf32>
    %270 = arith.cmpf ogt, %268, %269 : vector<16x32xf32>
    %271 = math.exp %268 : vector<16x32xf32>
    %cst_99 = arith.constant 1.000000e+00 : f32
    %272 = vector.broadcast %cst_99 : f32 to vector<16x32xf32>
    %273 = arith.subf %271, %272 : vector<16x32xf32>
    %274 = arith.select %270, %268, %273 : vector<16x32xi1>, vector<16x32xf32>
    %275 = arith.truncf %274 : vector<16x32xf32> to vector<16x32xbf16>
    %cst_100 = arith.constant dense<0.000000e+00> : vector<16x32xf32>
    %276 = tpu.matmul %275, %0, %cst_100 {dimension_numbers = #tpu.dot_dimension_numbers<[1], [0], [0], [1], [0, 0, 1, 1], [], []>} : vector<16x32xbf16>, vector<32x32xbf16>, vector<16x32xf32> -> vector<16x32xf32>
    %277 = arith.addf %276, %4 : vector<16x32xf32>
    %cst_101 = arith.constant 0.000000e+00 : f32
    %278 = vector.broadcast %cst_101 : f32 to vector<16x32xf32>
    %279 = arith.cmpf ogt, %277, %278 : vector<16x32xf32>
    %280 = math.exp %277 : vector<16x32xf32>
    %cst_102 = arith.constant 1.000000e+00 : f32
    %281 = vector.broadcast %cst_102 : f32 to vector<16x32xf32>
    %282 = arith.subf %280, %281 : vector<16x32xf32>
    %283 = arith.select %279, %277, %282 : vector<16x32xi1>, vector<16x32xf32>
    %284 = arith.truncf %283 : vector<16x32xf32> to vector<16x32xbf16>
    %cst_103 = arith.constant dense<0.000000e+00> : vector<16x32xf32>
    %285 = tpu.matmul %284, %1, %cst_103 {dimension_numbers = #tpu.dot_dimension_numbers<[1], [0], [0], [1], [0, 0, 1, 1], [], []>} : vector<16x32xbf16>, vector<32x32xbf16>, vector<16x32xf32> -> vector<16x32xf32>
    %286 = arith.addf %245, %265 : vector<16x32xf32>
    %cst_104 = arith.constant 2.000000e+00 : f32
    %287 = vector.broadcast %cst_104 : f32 to vector<16x32xf32>
    %288 = arith.mulf %287, %286 : vector<16x32xf32>
    %289 = arith.addf %225, %288 : vector<16x32xf32>
    %cst_105 = arith.constant 0.00833333377 : f32
    %290 = vector.broadcast %cst_105 : f32 to vector<16x32xf32>
    %291 = arith.mulf %290, %289 : vector<16x32xf32>
    %292 = arith.addf %208, %291 : vector<16x32xf32>
    %cst_106 = arith.constant 0.00833333377 : f32
    %293 = vector.broadcast %cst_106 : f32 to vector<16x32xf32>
    %294 = arith.mulf %293, %285 : vector<16x32xf32>
    %295 = arith.addf %292, %294 : vector<16x32xf32>
    %296 = arith.addf %223, %283 : vector<16x32xf32>
    %297 = arith.addf %243, %263 : vector<16x32xf32>
    %cst_107 = arith.constant 2.000000e+00 : f32
    %298 = vector.broadcast %cst_107 : f32 to vector<16x32xf32>
    %299 = arith.mulf %298, %297 : vector<16x32xf32>
    %300 = arith.addf %296, %299 : vector<16x32xf32>
    %cst_108 = arith.constant 0.00833333377 : f32
    %301 = vector.broadcast %cst_108 : f32 to vector<16x32xf32>
    %302 = arith.mulf %301, %300 : vector<16x32xf32>
    %303 = arith.addf %206, %302 : vector<16x32xf32>
    %c3_i32 = arith.constant 3 : i32
    %304 = arith.addf %295, %9 : vector<16x32xf32>
    %305 = arith.addf %295, %11 : vector<16x32xf32>
    %cst_109 = arith.constant 0.000000e+00 : f32
    %306 = vector.broadcast %cst_109 : f32 to vector<16x32xf32>
    %307 = arith.cmpf ogt, %295, %306 : vector<16x32xf32>
    %308 = math.exp %295 : vector<16x32xf32>
    %cst_110 = arith.constant 1.000000e+00 : f32
    %309 = vector.broadcast %cst_110 : f32 to vector<16x32xf32>
    %310 = arith.subf %308, %309 : vector<16x32xf32>
    %311 = arith.select %307, %295, %310 : vector<16x32xi1>, vector<16x32xf32>
    %312 = arith.truncf %311 : vector<16x32xf32> to vector<16x32xbf16>
    %cst_111 = arith.constant dense<0.000000e+00> : vector<16x32xf32>
    %313 = tpu.matmul %312, %0, %cst_111 {dimension_numbers = #tpu.dot_dimension_numbers<[1], [0], [0], [1], [0, 0, 1, 1], [], []>} : vector<16x32xbf16>, vector<32x32xbf16>, vector<16x32xf32> -> vector<16x32xf32>
    %314 = arith.addf %313, %4 : vector<16x32xf32>
    %cst_112 = arith.constant 0.000000e+00 : f32
    %315 = vector.broadcast %cst_112 : f32 to vector<16x32xf32>
    %316 = arith.cmpf ogt, %314, %315 : vector<16x32xf32>
    %317 = math.exp %314 : vector<16x32xf32>
    %cst_113 = arith.constant 1.000000e+00 : f32
    %318 = vector.broadcast %cst_113 : f32 to vector<16x32xf32>
    %319 = arith.subf %317, %318 : vector<16x32xf32>
    %320 = arith.select %316, %314, %319 : vector<16x32xi1>, vector<16x32xf32>
    %321 = arith.truncf %320 : vector<16x32xf32> to vector<16x32xbf16>
    %cst_114 = arith.constant dense<0.000000e+00> : vector<16x32xf32>
    %322 = tpu.matmul %321, %1, %cst_114 {dimension_numbers = #tpu.dot_dimension_numbers<[1], [0], [0], [1], [0, 0, 1, 1], [], []>} : vector<16x32xbf16>, vector<32x32xbf16>, vector<16x32xf32> -> vector<16x32xf32>
    %cst_115 = arith.constant 2.500000e-02 : f32
    %323 = vector.broadcast %cst_115 : f32 to vector<16x32xf32>
    %324 = arith.mulf %323, %322 : vector<16x32xf32>
    %325 = arith.addf %304, %324 : vector<16x32xf32>
    %cst_116 = arith.constant 0.000000e+00 : f32
    %326 = vector.broadcast %cst_116 : f32 to vector<16x32xf32>
    %327 = arith.cmpf ogt, %325, %326 : vector<16x32xf32>
    %328 = math.exp %325 : vector<16x32xf32>
    %cst_117 = arith.constant 1.000000e+00 : f32
    %329 = vector.broadcast %cst_117 : f32 to vector<16x32xf32>
    %330 = arith.subf %328, %329 : vector<16x32xf32>
    %331 = arith.select %327, %325, %330 : vector<16x32xi1>, vector<16x32xf32>
    %332 = arith.truncf %331 : vector<16x32xf32> to vector<16x32xbf16>
    %cst_118 = arith.constant dense<0.000000e+00> : vector<16x32xf32>
    %333 = tpu.matmul %332, %0, %cst_118 {dimension_numbers = #tpu.dot_dimension_numbers<[1], [0], [0], [1], [0, 0, 1, 1], [], []>} : vector<16x32xbf16>, vector<32x32xbf16>, vector<16x32xf32> -> vector<16x32xf32>
    %334 = arith.addf %333, %4 : vector<16x32xf32>
    %cst_119 = arith.constant 0.000000e+00 : f32
    %335 = vector.broadcast %cst_119 : f32 to vector<16x32xf32>
    %336 = arith.cmpf ogt, %334, %335 : vector<16x32xf32>
    %337 = math.exp %334 : vector<16x32xf32>
    %cst_120 = arith.constant 1.000000e+00 : f32
    %338 = vector.broadcast %cst_120 : f32 to vector<16x32xf32>
    %339 = arith.subf %337, %338 : vector<16x32xf32>
    %340 = arith.select %336, %334, %339 : vector<16x32xi1>, vector<16x32xf32>
    %341 = arith.truncf %340 : vector<16x32xf32> to vector<16x32xbf16>
    %cst_121 = arith.constant dense<0.000000e+00> : vector<16x32xf32>
    %342 = tpu.matmul %341, %1, %cst_121 {dimension_numbers = #tpu.dot_dimension_numbers<[1], [0], [0], [1], [0, 0, 1, 1], [], []>} : vector<16x32xbf16>, vector<32x32xbf16>, vector<16x32xf32> -> vector<16x32xf32>
    %cst_122 = arith.constant 2.500000e-02 : f32
    %343 = vector.broadcast %cst_122 : f32 to vector<16x32xf32>
    %344 = arith.mulf %343, %342 : vector<16x32xf32>
    %345 = arith.addf %304, %344 : vector<16x32xf32>
    %cst_123 = arith.constant 0.000000e+00 : f32
    %346 = vector.broadcast %cst_123 : f32 to vector<16x32xf32>
    %347 = arith.cmpf ogt, %345, %346 : vector<16x32xf32>
    %348 = math.exp %345 : vector<16x32xf32>
    %cst_124 = arith.constant 1.000000e+00 : f32
    %349 = vector.broadcast %cst_124 : f32 to vector<16x32xf32>
    %350 = arith.subf %348, %349 : vector<16x32xf32>
    %351 = arith.select %347, %345, %350 : vector<16x32xi1>, vector<16x32xf32>
    %352 = arith.truncf %351 : vector<16x32xf32> to vector<16x32xbf16>
    %cst_125 = arith.constant dense<0.000000e+00> : vector<16x32xf32>
    %353 = tpu.matmul %352, %0, %cst_125 {dimension_numbers = #tpu.dot_dimension_numbers<[1], [0], [0], [1], [0, 0, 1, 1], [], []>} : vector<16x32xbf16>, vector<32x32xbf16>, vector<16x32xf32> -> vector<16x32xf32>
    %354 = arith.addf %353, %4 : vector<16x32xf32>
    %cst_126 = arith.constant 0.000000e+00 : f32
    %355 = vector.broadcast %cst_126 : f32 to vector<16x32xf32>
    %356 = arith.cmpf ogt, %354, %355 : vector<16x32xf32>
    %357 = math.exp %354 : vector<16x32xf32>
    %cst_127 = arith.constant 1.000000e+00 : f32
    %358 = vector.broadcast %cst_127 : f32 to vector<16x32xf32>
    %359 = arith.subf %357, %358 : vector<16x32xf32>
    %360 = arith.select %356, %354, %359 : vector<16x32xi1>, vector<16x32xf32>
    %361 = arith.truncf %360 : vector<16x32xf32> to vector<16x32xbf16>
    %cst_128 = arith.constant dense<0.000000e+00> : vector<16x32xf32>
    %362 = tpu.matmul %361, %1, %cst_128 {dimension_numbers = #tpu.dot_dimension_numbers<[1], [0], [0], [1], [0, 0, 1, 1], [], []>} : vector<16x32xbf16>, vector<32x32xbf16>, vector<16x32xf32> -> vector<16x32xf32>
    %cst_129 = arith.constant 5.000000e-02 : f32
    %363 = vector.broadcast %cst_129 : f32 to vector<16x32xf32>
    %364 = arith.mulf %363, %362 : vector<16x32xf32>
    %365 = arith.addf %305, %364 : vector<16x32xf32>
    %cst_130 = arith.constant 0.000000e+00 : f32
    %366 = vector.broadcast %cst_130 : f32 to vector<16x32xf32>
    %367 = arith.cmpf ogt, %365, %366 : vector<16x32xf32>
    %368 = math.exp %365 : vector<16x32xf32>
    %cst_131 = arith.constant 1.000000e+00 : f32
    %369 = vector.broadcast %cst_131 : f32 to vector<16x32xf32>
    %370 = arith.subf %368, %369 : vector<16x32xf32>
    %371 = arith.select %367, %365, %370 : vector<16x32xi1>, vector<16x32xf32>
    %372 = arith.truncf %371 : vector<16x32xf32> to vector<16x32xbf16>
    %cst_132 = arith.constant dense<0.000000e+00> : vector<16x32xf32>
    %373 = tpu.matmul %372, %0, %cst_132 {dimension_numbers = #tpu.dot_dimension_numbers<[1], [0], [0], [1], [0, 0, 1, 1], [], []>} : vector<16x32xbf16>, vector<32x32xbf16>, vector<16x32xf32> -> vector<16x32xf32>
    %374 = arith.addf %373, %4 : vector<16x32xf32>
    %cst_133 = arith.constant 0.000000e+00 : f32
    %375 = vector.broadcast %cst_133 : f32 to vector<16x32xf32>
    %376 = arith.cmpf ogt, %374, %375 : vector<16x32xf32>
    %377 = math.exp %374 : vector<16x32xf32>
    %cst_134 = arith.constant 1.000000e+00 : f32
    %378 = vector.broadcast %cst_134 : f32 to vector<16x32xf32>
    %379 = arith.subf %377, %378 : vector<16x32xf32>
    %380 = arith.select %376, %374, %379 : vector<16x32xi1>, vector<16x32xf32>
    %381 = arith.truncf %380 : vector<16x32xf32> to vector<16x32xbf16>
    %cst_135 = arith.constant dense<0.000000e+00> : vector<16x32xf32>
    %382 = tpu.matmul %381, %1, %cst_135 {dimension_numbers = #tpu.dot_dimension_numbers<[1], [0], [0], [1], [0, 0, 1, 1], [], []>} : vector<16x32xbf16>, vector<32x32xbf16>, vector<16x32xf32> -> vector<16x32xf32>
    %383 = arith.addf %342, %362 : vector<16x32xf32>
    %cst_136 = arith.constant 2.000000e+00 : f32
    %384 = vector.broadcast %cst_136 : f32 to vector<16x32xf32>
    %385 = arith.mulf %384, %383 : vector<16x32xf32>
    %386 = arith.addf %322, %385 : vector<16x32xf32>
    %cst_137 = arith.constant 0.00833333377 : f32
    %387 = vector.broadcast %cst_137 : f32 to vector<16x32xf32>
    %388 = arith.mulf %387, %386 : vector<16x32xf32>
    %389 = arith.addf %305, %388 : vector<16x32xf32>
    %cst_138 = arith.constant 0.00833333377 : f32
    %390 = vector.broadcast %cst_138 : f32 to vector<16x32xf32>
    %391 = arith.mulf %390, %382 : vector<16x32xf32>
    %392 = arith.addf %389, %391 : vector<16x32xf32>
    %393 = arith.addf %320, %380 : vector<16x32xf32>
    %394 = arith.addf %340, %360 : vector<16x32xf32>
    %cst_139 = arith.constant 2.000000e+00 : f32
    %395 = vector.broadcast %cst_139 : f32 to vector<16x32xf32>
    %396 = arith.mulf %395, %394 : vector<16x32xf32>
    %397 = arith.addf %393, %396 : vector<16x32xf32>
    %cst_140 = arith.constant 0.00833333377 : f32
    %398 = vector.broadcast %cst_140 : f32 to vector<16x32xf32>
    %399 = arith.mulf %398, %397 : vector<16x32xf32>
    %400 = arith.addf %303, %399 : vector<16x32xf32>
    %c4_i32 = arith.constant 4 : i32
    %401 = arith.addf %392, %9 : vector<16x32xf32>
    %402 = arith.addf %392, %11 : vector<16x32xf32>
    %cst_141 = arith.constant 0.000000e+00 : f32
    %403 = vector.broadcast %cst_141 : f32 to vector<16x32xf32>
    %404 = arith.cmpf ogt, %392, %403 : vector<16x32xf32>
    %405 = math.exp %392 : vector<16x32xf32>
    %cst_142 = arith.constant 1.000000e+00 : f32
    %406 = vector.broadcast %cst_142 : f32 to vector<16x32xf32>
    %407 = arith.subf %405, %406 : vector<16x32xf32>
    %408 = arith.select %404, %392, %407 : vector<16x32xi1>, vector<16x32xf32>
    %409 = arith.truncf %408 : vector<16x32xf32> to vector<16x32xbf16>
    %cst_143 = arith.constant dense<0.000000e+00> : vector<16x32xf32>
    %410 = tpu.matmul %409, %0, %cst_143 {dimension_numbers = #tpu.dot_dimension_numbers<[1], [0], [0], [1], [0, 0, 1, 1], [], []>} : vector<16x32xbf16>, vector<32x32xbf16>, vector<16x32xf32> -> vector<16x32xf32>
    %411 = arith.addf %410, %4 : vector<16x32xf32>
    %cst_144 = arith.constant 0.000000e+00 : f32
    %412 = vector.broadcast %cst_144 : f32 to vector<16x32xf32>
    %413 = arith.cmpf ogt, %411, %412 : vector<16x32xf32>
    %414 = math.exp %411 : vector<16x32xf32>
    %cst_145 = arith.constant 1.000000e+00 : f32
    %415 = vector.broadcast %cst_145 : f32 to vector<16x32xf32>
    %416 = arith.subf %414, %415 : vector<16x32xf32>
    %417 = arith.select %413, %411, %416 : vector<16x32xi1>, vector<16x32xf32>
    %418 = arith.truncf %417 : vector<16x32xf32> to vector<16x32xbf16>
    %cst_146 = arith.constant dense<0.000000e+00> : vector<16x32xf32>
    %419 = tpu.matmul %418, %1, %cst_146 {dimension_numbers = #tpu.dot_dimension_numbers<[1], [0], [0], [1], [0, 0, 1, 1], [], []>} : vector<16x32xbf16>, vector<32x32xbf16>, vector<16x32xf32> -> vector<16x32xf32>
    %cst_147 = arith.constant 2.500000e-02 : f32
    %420 = vector.broadcast %cst_147 : f32 to vector<16x32xf32>
    %421 = arith.mulf %420, %419 : vector<16x32xf32>
    %422 = arith.addf %401, %421 : vector<16x32xf32>
    %cst_148 = arith.constant 0.000000e+00 : f32
    %423 = vector.broadcast %cst_148 : f32 to vector<16x32xf32>
    %424 = arith.cmpf ogt, %422, %423 : vector<16x32xf32>
    %425 = math.exp %422 : vector<16x32xf32>
    %cst_149 = arith.constant 1.000000e+00 : f32
    %426 = vector.broadcast %cst_149 : f32 to vector<16x32xf32>
    %427 = arith.subf %425, %426 : vector<16x32xf32>
    %428 = arith.select %424, %422, %427 : vector<16x32xi1>, vector<16x32xf32>
    %429 = arith.truncf %428 : vector<16x32xf32> to vector<16x32xbf16>
    %cst_150 = arith.constant dense<0.000000e+00> : vector<16x32xf32>
    %430 = tpu.matmul %429, %0, %cst_150 {dimension_numbers = #tpu.dot_dimension_numbers<[1], [0], [0], [1], [0, 0, 1, 1], [], []>} : vector<16x32xbf16>, vector<32x32xbf16>, vector<16x32xf32> -> vector<16x32xf32>
    %431 = arith.addf %430, %4 : vector<16x32xf32>
    %cst_151 = arith.constant 0.000000e+00 : f32
    %432 = vector.broadcast %cst_151 : f32 to vector<16x32xf32>
    %433 = arith.cmpf ogt, %431, %432 : vector<16x32xf32>
    %434 = math.exp %431 : vector<16x32xf32>
    %cst_152 = arith.constant 1.000000e+00 : f32
    %435 = vector.broadcast %cst_152 : f32 to vector<16x32xf32>
    %436 = arith.subf %434, %435 : vector<16x32xf32>
    %437 = arith.select %433, %431, %436 : vector<16x32xi1>, vector<16x32xf32>
    %438 = arith.truncf %437 : vector<16x32xf32> to vector<16x32xbf16>
    %cst_153 = arith.constant dense<0.000000e+00> : vector<16x32xf32>
    %439 = tpu.matmul %438, %1, %cst_153 {dimension_numbers = #tpu.dot_dimension_numbers<[1], [0], [0], [1], [0, 0, 1, 1], [], []>} : vector<16x32xbf16>, vector<32x32xbf16>, vector<16x32xf32> -> vector<16x32xf32>
    %cst_154 = arith.constant 2.500000e-02 : f32
    %440 = vector.broadcast %cst_154 : f32 to vector<16x32xf32>
    %441 = arith.mulf %440, %439 : vector<16x32xf32>
    %442 = arith.addf %401, %441 : vector<16x32xf32>
    %cst_155 = arith.constant 0.000000e+00 : f32
    %443 = vector.broadcast %cst_155 : f32 to vector<16x32xf32>
    %444 = arith.cmpf ogt, %442, %443 : vector<16x32xf32>
    %445 = math.exp %442 : vector<16x32xf32>
    %cst_156 = arith.constant 1.000000e+00 : f32
    %446 = vector.broadcast %cst_156 : f32 to vector<16x32xf32>
    %447 = arith.subf %445, %446 : vector<16x32xf32>
    %448 = arith.select %444, %442, %447 : vector<16x32xi1>, vector<16x32xf32>
    %449 = arith.truncf %448 : vector<16x32xf32> to vector<16x32xbf16>
    %cst_157 = arith.constant dense<0.000000e+00> : vector<16x32xf32>
    %450 = tpu.matmul %449, %0, %cst_157 {dimension_numbers = #tpu.dot_dimension_numbers<[1], [0], [0], [1], [0, 0, 1, 1], [], []>} : vector<16x32xbf16>, vector<32x32xbf16>, vector<16x32xf32> -> vector<16x32xf32>
    %451 = arith.addf %450, %4 : vector<16x32xf32>
    %cst_158 = arith.constant 0.000000e+00 : f32
    %452 = vector.broadcast %cst_158 : f32 to vector<16x32xf32>
    %453 = arith.cmpf ogt, %451, %452 : vector<16x32xf32>
    %454 = math.exp %451 : vector<16x32xf32>
    %cst_159 = arith.constant 1.000000e+00 : f32
    %455 = vector.broadcast %cst_159 : f32 to vector<16x32xf32>
    %456 = arith.subf %454, %455 : vector<16x32xf32>
    %457 = arith.select %453, %451, %456 : vector<16x32xi1>, vector<16x32xf32>
    %458 = arith.truncf %457 : vector<16x32xf32> to vector<16x32xbf16>
    %cst_160 = arith.constant dense<0.000000e+00> : vector<16x32xf32>
    %459 = tpu.matmul %458, %1, %cst_160 {dimension_numbers = #tpu.dot_dimension_numbers<[1], [0], [0], [1], [0, 0, 1, 1], [], []>} : vector<16x32xbf16>, vector<32x32xbf16>, vector<16x32xf32> -> vector<16x32xf32>
    %cst_161 = arith.constant 5.000000e-02 : f32
    %460 = vector.broadcast %cst_161 : f32 to vector<16x32xf32>
    %461 = arith.mulf %460, %459 : vector<16x32xf32>
    %462 = arith.addf %402, %461 : vector<16x32xf32>
    %cst_162 = arith.constant 0.000000e+00 : f32
    %463 = vector.broadcast %cst_162 : f32 to vector<16x32xf32>
    %464 = arith.cmpf ogt, %462, %463 : vector<16x32xf32>
    %465 = math.exp %462 : vector<16x32xf32>
    %cst_163 = arith.constant 1.000000e+00 : f32
    %466 = vector.broadcast %cst_163 : f32 to vector<16x32xf32>
    %467 = arith.subf %465, %466 : vector<16x32xf32>
    %468 = arith.select %464, %462, %467 : vector<16x32xi1>, vector<16x32xf32>
    %469 = arith.truncf %468 : vector<16x32xf32> to vector<16x32xbf16>
    %cst_164 = arith.constant dense<0.000000e+00> : vector<16x32xf32>
    %470 = tpu.matmul %469, %0, %cst_164 {dimension_numbers = #tpu.dot_dimension_numbers<[1], [0], [0], [1], [0, 0, 1, 1], [], []>} : vector<16x32xbf16>, vector<32x32xbf16>, vector<16x32xf32> -> vector<16x32xf32>
    %471 = arith.addf %470, %4 : vector<16x32xf32>
    %cst_165 = arith.constant 0.000000e+00 : f32
    %472 = vector.broadcast %cst_165 : f32 to vector<16x32xf32>
    %473 = arith.cmpf ogt, %471, %472 : vector<16x32xf32>
    %474 = math.exp %471 : vector<16x32xf32>
    %cst_166 = arith.constant 1.000000e+00 : f32
    %475 = vector.broadcast %cst_166 : f32 to vector<16x32xf32>
    %476 = arith.subf %474, %475 : vector<16x32xf32>
    %477 = arith.select %473, %471, %476 : vector<16x32xi1>, vector<16x32xf32>
    %478 = arith.truncf %477 : vector<16x32xf32> to vector<16x32xbf16>
    %cst_167 = arith.constant dense<0.000000e+00> : vector<16x32xf32>
    %479 = tpu.matmul %478, %1, %cst_167 {dimension_numbers = #tpu.dot_dimension_numbers<[1], [0], [0], [1], [0, 0, 1, 1], [], []>} : vector<16x32xbf16>, vector<32x32xbf16>, vector<16x32xf32> -> vector<16x32xf32>
    %480 = arith.addf %439, %459 : vector<16x32xf32>
    %cst_168 = arith.constant 2.000000e+00 : f32
    %481 = vector.broadcast %cst_168 : f32 to vector<16x32xf32>
    %482 = arith.mulf %481, %480 : vector<16x32xf32>
    %483 = arith.addf %419, %482 : vector<16x32xf32>
    %cst_169 = arith.constant 0.00833333377 : f32
    %484 = vector.broadcast %cst_169 : f32 to vector<16x32xf32>
    %485 = arith.mulf %484, %483 : vector<16x32xf32>
    %486 = arith.addf %402, %485 : vector<16x32xf32>
    %cst_170 = arith.constant 0.00833333377 : f32
    %487 = vector.broadcast %cst_170 : f32 to vector<16x32xf32>
    %488 = arith.mulf %487, %479 : vector<16x32xf32>
    %489 = arith.addf %486, %488 : vector<16x32xf32>
    %490 = arith.addf %417, %477 : vector<16x32xf32>
    %491 = arith.addf %437, %457 : vector<16x32xf32>
    %cst_171 = arith.constant 2.000000e+00 : f32
    %492 = vector.broadcast %cst_171 : f32 to vector<16x32xf32>
    %493 = arith.mulf %492, %491 : vector<16x32xf32>
    %494 = arith.addf %490, %493 : vector<16x32xf32>
    %cst_172 = arith.constant 0.00833333377 : f32
    %495 = vector.broadcast %cst_172 : f32 to vector<16x32xf32>
    %496 = arith.mulf %495, %494 : vector<16x32xf32>
    %497 = arith.addf %400, %496 : vector<16x32xf32>
    %c5_i32 = arith.constant 5 : i32
    %498 = arith.addf %489, %9 : vector<16x32xf32>
    %499 = arith.addf %489, %11 : vector<16x32xf32>
    %cst_173 = arith.constant 0.000000e+00 : f32
    %500 = vector.broadcast %cst_173 : f32 to vector<16x32xf32>
    %501 = arith.cmpf ogt, %489, %500 : vector<16x32xf32>
    %502 = math.exp %489 : vector<16x32xf32>
    %cst_174 = arith.constant 1.000000e+00 : f32
    %503 = vector.broadcast %cst_174 : f32 to vector<16x32xf32>
    %504 = arith.subf %502, %503 : vector<16x32xf32>
    %505 = arith.select %501, %489, %504 : vector<16x32xi1>, vector<16x32xf32>
    %506 = arith.truncf %505 : vector<16x32xf32> to vector<16x32xbf16>
    %cst_175 = arith.constant dense<0.000000e+00> : vector<16x32xf32>
    %507 = tpu.matmul %506, %0, %cst_175 {dimension_numbers = #tpu.dot_dimension_numbers<[1], [0], [0], [1], [0, 0, 1, 1], [], []>} : vector<16x32xbf16>, vector<32x32xbf16>, vector<16x32xf32> -> vector<16x32xf32>
    %508 = arith.addf %507, %4 : vector<16x32xf32>
    %cst_176 = arith.constant 0.000000e+00 : f32
    %509 = vector.broadcast %cst_176 : f32 to vector<16x32xf32>
    %510 = arith.cmpf ogt, %508, %509 : vector<16x32xf32>
    %511 = math.exp %508 : vector<16x32xf32>
    %cst_177 = arith.constant 1.000000e+00 : f32
    %512 = vector.broadcast %cst_177 : f32 to vector<16x32xf32>
    %513 = arith.subf %511, %512 : vector<16x32xf32>
    %514 = arith.select %510, %508, %513 : vector<16x32xi1>, vector<16x32xf32>
    %515 = arith.truncf %514 : vector<16x32xf32> to vector<16x32xbf16>
    %cst_178 = arith.constant dense<0.000000e+00> : vector<16x32xf32>
    %516 = tpu.matmul %515, %1, %cst_178 {dimension_numbers = #tpu.dot_dimension_numbers<[1], [0], [0], [1], [0, 0, 1, 1], [], []>} : vector<16x32xbf16>, vector<32x32xbf16>, vector<16x32xf32> -> vector<16x32xf32>
    %cst_179 = arith.constant 2.500000e-02 : f32
    %517 = vector.broadcast %cst_179 : f32 to vector<16x32xf32>
    %518 = arith.mulf %517, %516 : vector<16x32xf32>
    %519 = arith.addf %498, %518 : vector<16x32xf32>
    %cst_180 = arith.constant 0.000000e+00 : f32
    %520 = vector.broadcast %cst_180 : f32 to vector<16x32xf32>
    %521 = arith.cmpf ogt, %519, %520 : vector<16x32xf32>
    %522 = math.exp %519 : vector<16x32xf32>
    %cst_181 = arith.constant 1.000000e+00 : f32
    %523 = vector.broadcast %cst_181 : f32 to vector<16x32xf32>
    %524 = arith.subf %522, %523 : vector<16x32xf32>
    %525 = arith.select %521, %519, %524 : vector<16x32xi1>, vector<16x32xf32>
    %526 = arith.truncf %525 : vector<16x32xf32> to vector<16x32xbf16>
    %cst_182 = arith.constant dense<0.000000e+00> : vector<16x32xf32>
    %527 = tpu.matmul %526, %0, %cst_182 {dimension_numbers = #tpu.dot_dimension_numbers<[1], [0], [0], [1], [0, 0, 1, 1], [], []>} : vector<16x32xbf16>, vector<32x32xbf16>, vector<16x32xf32> -> vector<16x32xf32>
    %528 = arith.addf %527, %4 : vector<16x32xf32>
    %cst_183 = arith.constant 0.000000e+00 : f32
    %529 = vector.broadcast %cst_183 : f32 to vector<16x32xf32>
    %530 = arith.cmpf ogt, %528, %529 : vector<16x32xf32>
    %531 = math.exp %528 : vector<16x32xf32>
    %cst_184 = arith.constant 1.000000e+00 : f32
    %532 = vector.broadcast %cst_184 : f32 to vector<16x32xf32>
    %533 = arith.subf %531, %532 : vector<16x32xf32>
    %534 = arith.select %530, %528, %533 : vector<16x32xi1>, vector<16x32xf32>
    %535 = arith.truncf %534 : vector<16x32xf32> to vector<16x32xbf16>
    %cst_185 = arith.constant dense<0.000000e+00> : vector<16x32xf32>
    %536 = tpu.matmul %535, %1, %cst_185 {dimension_numbers = #tpu.dot_dimension_numbers<[1], [0], [0], [1], [0, 0, 1, 1], [], []>} : vector<16x32xbf16>, vector<32x32xbf16>, vector<16x32xf32> -> vector<16x32xf32>
    %cst_186 = arith.constant 2.500000e-02 : f32
    %537 = vector.broadcast %cst_186 : f32 to vector<16x32xf32>
    %538 = arith.mulf %537, %536 : vector<16x32xf32>
    %539 = arith.addf %498, %538 : vector<16x32xf32>
    %cst_187 = arith.constant 0.000000e+00 : f32
    %540 = vector.broadcast %cst_187 : f32 to vector<16x32xf32>
    %541 = arith.cmpf ogt, %539, %540 : vector<16x32xf32>
    %542 = math.exp %539 : vector<16x32xf32>
    %cst_188 = arith.constant 1.000000e+00 : f32
    %543 = vector.broadcast %cst_188 : f32 to vector<16x32xf32>
    %544 = arith.subf %542, %543 : vector<16x32xf32>
    %545 = arith.select %541, %539, %544 : vector<16x32xi1>, vector<16x32xf32>
    %546 = arith.truncf %545 : vector<16x32xf32> to vector<16x32xbf16>
    %cst_189 = arith.constant dense<0.000000e+00> : vector<16x32xf32>
    %547 = tpu.matmul %546, %0, %cst_189 {dimension_numbers = #tpu.dot_dimension_numbers<[1], [0], [0], [1], [0, 0, 1, 1], [], []>} : vector<16x32xbf16>, vector<32x32xbf16>, vector<16x32xf32> -> vector<16x32xf32>
    %548 = arith.addf %547, %4 : vector<16x32xf32>
    %cst_190 = arith.constant 0.000000e+00 : f32
    %549 = vector.broadcast %cst_190 : f32 to vector<16x32xf32>
    %550 = arith.cmpf ogt, %548, %549 : vector<16x32xf32>
    %551 = math.exp %548 : vector<16x32xf32>
    %cst_191 = arith.constant 1.000000e+00 : f32
    %552 = vector.broadcast %cst_191 : f32 to vector<16x32xf32>
    %553 = arith.subf %551, %552 : vector<16x32xf32>
    %554 = arith.select %550, %548, %553 : vector<16x32xi1>, vector<16x32xf32>
    %555 = arith.truncf %554 : vector<16x32xf32> to vector<16x32xbf16>
    %cst_192 = arith.constant dense<0.000000e+00> : vector<16x32xf32>
    %556 = tpu.matmul %555, %1, %cst_192 {dimension_numbers = #tpu.dot_dimension_numbers<[1], [0], [0], [1], [0, 0, 1, 1], [], []>} : vector<16x32xbf16>, vector<32x32xbf16>, vector<16x32xf32> -> vector<16x32xf32>
    %cst_193 = arith.constant 5.000000e-02 : f32
    %557 = vector.broadcast %cst_193 : f32 to vector<16x32xf32>
    %558 = arith.mulf %557, %556 : vector<16x32xf32>
    %559 = arith.addf %499, %558 : vector<16x32xf32>
    %cst_194 = arith.constant 0.000000e+00 : f32
    %560 = vector.broadcast %cst_194 : f32 to vector<16x32xf32>
    %561 = arith.cmpf ogt, %559, %560 : vector<16x32xf32>
    %562 = math.exp %559 : vector<16x32xf32>
    %cst_195 = arith.constant 1.000000e+00 : f32
    %563 = vector.broadcast %cst_195 : f32 to vector<16x32xf32>
    %564 = arith.subf %562, %563 : vector<16x32xf32>
    %565 = arith.select %561, %559, %564 : vector<16x32xi1>, vector<16x32xf32>
    %566 = arith.truncf %565 : vector<16x32xf32> to vector<16x32xbf16>
    %cst_196 = arith.constant dense<0.000000e+00> : vector<16x32xf32>
    %567 = tpu.matmul %566, %0, %cst_196 {dimension_numbers = #tpu.dot_dimension_numbers<[1], [0], [0], [1], [0, 0, 1, 1], [], []>} : vector<16x32xbf16>, vector<32x32xbf16>, vector<16x32xf32> -> vector<16x32xf32>
    %568 = arith.addf %567, %4 : vector<16x32xf32>
    %cst_197 = arith.constant 0.000000e+00 : f32
    %569 = vector.broadcast %cst_197 : f32 to vector<16x32xf32>
    %570 = arith.cmpf ogt, %568, %569 : vector<16x32xf32>
    %571 = math.exp %568 : vector<16x32xf32>
    %cst_198 = arith.constant 1.000000e+00 : f32
    %572 = vector.broadcast %cst_198 : f32 to vector<16x32xf32>
    %573 = arith.subf %571, %572 : vector<16x32xf32>
    %574 = arith.select %570, %568, %573 : vector<16x32xi1>, vector<16x32xf32>
    %575 = arith.truncf %574 : vector<16x32xf32> to vector<16x32xbf16>
    %cst_199 = arith.constant dense<0.000000e+00> : vector<16x32xf32>
    %576 = tpu.matmul %575, %1, %cst_199 {dimension_numbers = #tpu.dot_dimension_numbers<[1], [0], [0], [1], [0, 0, 1, 1], [], []>} : vector<16x32xbf16>, vector<32x32xbf16>, vector<16x32xf32> -> vector<16x32xf32>
    %577 = arith.addf %536, %556 : vector<16x32xf32>
    %cst_200 = arith.constant 2.000000e+00 : f32
    %578 = vector.broadcast %cst_200 : f32 to vector<16x32xf32>
    %579 = arith.mulf %578, %577 : vector<16x32xf32>
    %580 = arith.addf %516, %579 : vector<16x32xf32>
    %cst_201 = arith.constant 0.00833333377 : f32
    %581 = vector.broadcast %cst_201 : f32 to vector<16x32xf32>
    %582 = arith.mulf %581, %580 : vector<16x32xf32>
    %583 = arith.addf %499, %582 : vector<16x32xf32>
    %cst_202 = arith.constant 0.00833333377 : f32
    %584 = vector.broadcast %cst_202 : f32 to vector<16x32xf32>
    %585 = arith.mulf %584, %576 : vector<16x32xf32>
    %586 = arith.addf %583, %585 : vector<16x32xf32>
    %587 = arith.addf %514, %574 : vector<16x32xf32>
    %588 = arith.addf %534, %554 : vector<16x32xf32>
    %cst_203 = arith.constant 2.000000e+00 : f32
    %589 = vector.broadcast %cst_203 : f32 to vector<16x32xf32>
    %590 = arith.mulf %589, %588 : vector<16x32xf32>
    %591 = arith.addf %587, %590 : vector<16x32xf32>
    %cst_204 = arith.constant 0.00833333377 : f32
    %592 = vector.broadcast %cst_204 : f32 to vector<16x32xf32>
    %593 = arith.mulf %592, %591 : vector<16x32xf32>
    %594 = arith.addf %497, %593 : vector<16x32xf32>
    %c6_i32 = arith.constant 6 : i32
    %595 = arith.addf %586, %9 : vector<16x32xf32>
    %596 = arith.addf %586, %11 : vector<16x32xf32>
    %cst_205 = arith.constant 0.000000e+00 : f32
    %597 = vector.broadcast %cst_205 : f32 to vector<16x32xf32>
    %598 = arith.cmpf ogt, %586, %597 : vector<16x32xf32>
    %599 = math.exp %586 : vector<16x32xf32>
    %cst_206 = arith.constant 1.000000e+00 : f32
    %600 = vector.broadcast %cst_206 : f32 to vector<16x32xf32>
    %601 = arith.subf %599, %600 : vector<16x32xf32>
    %602 = arith.select %598, %586, %601 : vector<16x32xi1>, vector<16x32xf32>
    %603 = arith.truncf %602 : vector<16x32xf32> to vector<16x32xbf16>
    %cst_207 = arith.constant dense<0.000000e+00> : vector<16x32xf32>
    %604 = tpu.matmul %603, %0, %cst_207 {dimension_numbers = #tpu.dot_dimension_numbers<[1], [0], [0], [1], [0, 0, 1, 1], [], []>} : vector<16x32xbf16>, vector<32x32xbf16>, vector<16x32xf32> -> vector<16x32xf32>
    %605 = arith.addf %604, %4 : vector<16x32xf32>
    %cst_208 = arith.constant 0.000000e+00 : f32
    %606 = vector.broadcast %cst_208 : f32 to vector<16x32xf32>
    %607 = arith.cmpf ogt, %605, %606 : vector<16x32xf32>
    %608 = math.exp %605 : vector<16x32xf32>
    %cst_209 = arith.constant 1.000000e+00 : f32
    %609 = vector.broadcast %cst_209 : f32 to vector<16x32xf32>
    %610 = arith.subf %608, %609 : vector<16x32xf32>
    %611 = arith.select %607, %605, %610 : vector<16x32xi1>, vector<16x32xf32>
    %612 = arith.truncf %611 : vector<16x32xf32> to vector<16x32xbf16>
    %cst_210 = arith.constant dense<0.000000e+00> : vector<16x32xf32>
    %613 = tpu.matmul %612, %1, %cst_210 {dimension_numbers = #tpu.dot_dimension_numbers<[1], [0], [0], [1], [0, 0, 1, 1], [], []>} : vector<16x32xbf16>, vector<32x32xbf16>, vector<16x32xf32> -> vector<16x32xf32>
    %cst_211 = arith.constant 2.500000e-02 : f32
    %614 = vector.broadcast %cst_211 : f32 to vector<16x32xf32>
    %615 = arith.mulf %614, %613 : vector<16x32xf32>
    %616 = arith.addf %595, %615 : vector<16x32xf32>
    %cst_212 = arith.constant 0.000000e+00 : f32
    %617 = vector.broadcast %cst_212 : f32 to vector<16x32xf32>
    %618 = arith.cmpf ogt, %616, %617 : vector<16x32xf32>
    %619 = math.exp %616 : vector<16x32xf32>
    %cst_213 = arith.constant 1.000000e+00 : f32
    %620 = vector.broadcast %cst_213 : f32 to vector<16x32xf32>
    %621 = arith.subf %619, %620 : vector<16x32xf32>
    %622 = arith.select %618, %616, %621 : vector<16x32xi1>, vector<16x32xf32>
    %623 = arith.truncf %622 : vector<16x32xf32> to vector<16x32xbf16>
    %cst_214 = arith.constant dense<0.000000e+00> : vector<16x32xf32>
    %624 = tpu.matmul %623, %0, %cst_214 {dimension_numbers = #tpu.dot_dimension_numbers<[1], [0], [0], [1], [0, 0, 1, 1], [], []>} : vector<16x32xbf16>, vector<32x32xbf16>, vector<16x32xf32> -> vector<16x32xf32>
    %625 = arith.addf %624, %4 : vector<16x32xf32>
    %cst_215 = arith.constant 0.000000e+00 : f32
    %626 = vector.broadcast %cst_215 : f32 to vector<16x32xf32>
    %627 = arith.cmpf ogt, %625, %626 : vector<16x32xf32>
    %628 = math.exp %625 : vector<16x32xf32>
    %cst_216 = arith.constant 1.000000e+00 : f32
    %629 = vector.broadcast %cst_216 : f32 to vector<16x32xf32>
    %630 = arith.subf %628, %629 : vector<16x32xf32>
    %631 = arith.select %627, %625, %630 : vector<16x32xi1>, vector<16x32xf32>
    %632 = arith.truncf %631 : vector<16x32xf32> to vector<16x32xbf16>
    %cst_217 = arith.constant dense<0.000000e+00> : vector<16x32xf32>
    %633 = tpu.matmul %632, %1, %cst_217 {dimension_numbers = #tpu.dot_dimension_numbers<[1], [0], [0], [1], [0, 0, 1, 1], [], []>} : vector<16x32xbf16>, vector<32x32xbf16>, vector<16x32xf32> -> vector<16x32xf32>
    %cst_218 = arith.constant 2.500000e-02 : f32
    %634 = vector.broadcast %cst_218 : f32 to vector<16x32xf32>
    %635 = arith.mulf %634, %633 : vector<16x32xf32>
    %636 = arith.addf %595, %635 : vector<16x32xf32>
    %cst_219 = arith.constant 0.000000e+00 : f32
    %637 = vector.broadcast %cst_219 : f32 to vector<16x32xf32>
    %638 = arith.cmpf ogt, %636, %637 : vector<16x32xf32>
    %639 = math.exp %636 : vector<16x32xf32>
    %cst_220 = arith.constant 1.000000e+00 : f32
    %640 = vector.broadcast %cst_220 : f32 to vector<16x32xf32>
    %641 = arith.subf %639, %640 : vector<16x32xf32>
    %642 = arith.select %638, %636, %641 : vector<16x32xi1>, vector<16x32xf32>
    %643 = arith.truncf %642 : vector<16x32xf32> to vector<16x32xbf16>
    %cst_221 = arith.constant dense<0.000000e+00> : vector<16x32xf32>
    %644 = tpu.matmul %643, %0, %cst_221 {dimension_numbers = #tpu.dot_dimension_numbers<[1], [0], [0], [1], [0, 0, 1, 1], [], []>} : vector<16x32xbf16>, vector<32x32xbf16>, vector<16x32xf32> -> vector<16x32xf32>
    %645 = arith.addf %644, %4 : vector<16x32xf32>
    %cst_222 = arith.constant 0.000000e+00 : f32
    %646 = vector.broadcast %cst_222 : f32 to vector<16x32xf32>
    %647 = arith.cmpf ogt, %645, %646 : vector<16x32xf32>
    %648 = math.exp %645 : vector<16x32xf32>
    %cst_223 = arith.constant 1.000000e+00 : f32
    %649 = vector.broadcast %cst_223 : f32 to vector<16x32xf32>
    %650 = arith.subf %648, %649 : vector<16x32xf32>
    %651 = arith.select %647, %645, %650 : vector<16x32xi1>, vector<16x32xf32>
    %652 = arith.truncf %651 : vector<16x32xf32> to vector<16x32xbf16>
    %cst_224 = arith.constant dense<0.000000e+00> : vector<16x32xf32>
    %653 = tpu.matmul %652, %1, %cst_224 {dimension_numbers = #tpu.dot_dimension_numbers<[1], [0], [0], [1], [0, 0, 1, 1], [], []>} : vector<16x32xbf16>, vector<32x32xbf16>, vector<16x32xf32> -> vector<16x32xf32>
    %cst_225 = arith.constant 5.000000e-02 : f32
    %654 = vector.broadcast %cst_225 : f32 to vector<16x32xf32>
    %655 = arith.mulf %654, %653 : vector<16x32xf32>
    %656 = arith.addf %596, %655 : vector<16x32xf32>
    %cst_226 = arith.constant 0.000000e+00 : f32
    %657 = vector.broadcast %cst_226 : f32 to vector<16x32xf32>
    %658 = arith.cmpf ogt, %656, %657 : vector<16x32xf32>
    %659 = math.exp %656 : vector<16x32xf32>
    %cst_227 = arith.constant 1.000000e+00 : f32
    %660 = vector.broadcast %cst_227 : f32 to vector<16x32xf32>
    %661 = arith.subf %659, %660 : vector<16x32xf32>
    %662 = arith.select %658, %656, %661 : vector<16x32xi1>, vector<16x32xf32>
    %663 = arith.truncf %662 : vector<16x32xf32> to vector<16x32xbf16>
    %cst_228 = arith.constant dense<0.000000e+00> : vector<16x32xf32>
    %664 = tpu.matmul %663, %0, %cst_228 {dimension_numbers = #tpu.dot_dimension_numbers<[1], [0], [0], [1], [0, 0, 1, 1], [], []>} : vector<16x32xbf16>, vector<32x32xbf16>, vector<16x32xf32> -> vector<16x32xf32>
    %665 = arith.addf %664, %4 : vector<16x32xf32>
    %cst_229 = arith.constant 0.000000e+00 : f32
    %666 = vector.broadcast %cst_229 : f32 to vector<16x32xf32>
    %667 = arith.cmpf ogt, %665, %666 : vector<16x32xf32>
    %668 = math.exp %665 : vector<16x32xf32>
    %cst_230 = arith.constant 1.000000e+00 : f32
    %669 = vector.broadcast %cst_230 : f32 to vector<16x32xf32>
    %670 = arith.subf %668, %669 : vector<16x32xf32>
    %671 = arith.select %667, %665, %670 : vector<16x32xi1>, vector<16x32xf32>
    %672 = arith.truncf %671 : vector<16x32xf32> to vector<16x32xbf16>
    %cst_231 = arith.constant dense<0.000000e+00> : vector<16x32xf32>
    %673 = tpu.matmul %672, %1, %cst_231 {dimension_numbers = #tpu.dot_dimension_numbers<[1], [0], [0], [1], [0, 0, 1, 1], [], []>} : vector<16x32xbf16>, vector<32x32xbf16>, vector<16x32xf32> -> vector<16x32xf32>
    %674 = arith.addf %633, %653 : vector<16x32xf32>
    %cst_232 = arith.constant 2.000000e+00 : f32
    %675 = vector.broadcast %cst_232 : f32 to vector<16x32xf32>
    %676 = arith.mulf %675, %674 : vector<16x32xf32>
    %677 = arith.addf %613, %676 : vector<16x32xf32>
    %cst_233 = arith.constant 0.00833333377 : f32
    %678 = vector.broadcast %cst_233 : f32 to vector<16x32xf32>
    %679 = arith.mulf %678, %677 : vector<16x32xf32>
    %680 = arith.addf %596, %679 : vector<16x32xf32>
    %cst_234 = arith.constant 0.00833333377 : f32
    %681 = vector.broadcast %cst_234 : f32 to vector<16x32xf32>
    %682 = arith.mulf %681, %673 : vector<16x32xf32>
    %683 = arith.addf %680, %682 : vector<16x32xf32>
    %684 = arith.addf %611, %671 : vector<16x32xf32>
    %685 = arith.addf %631, %651 : vector<16x32xf32>
    %cst_235 = arith.constant 2.000000e+00 : f32
    %686 = vector.broadcast %cst_235 : f32 to vector<16x32xf32>
    %687 = arith.mulf %686, %685 : vector<16x32xf32>
    %688 = arith.addf %684, %687 : vector<16x32xf32>
    %cst_236 = arith.constant 0.00833333377 : f32
    %689 = vector.broadcast %cst_236 : f32 to vector<16x32xf32>
    %690 = arith.mulf %689, %688 : vector<16x32xf32>
    %691 = arith.addf %594, %690 : vector<16x32xf32>
    %c7_i32 = arith.constant 7 : i32
    %692 = arith.addf %683, %9 : vector<16x32xf32>
    %693 = arith.addf %683, %11 : vector<16x32xf32>
    %cst_237 = arith.constant 0.000000e+00 : f32
    %694 = vector.broadcast %cst_237 : f32 to vector<16x32xf32>
    %695 = arith.cmpf ogt, %683, %694 : vector<16x32xf32>
    %696 = math.exp %683 : vector<16x32xf32>
    %cst_238 = arith.constant 1.000000e+00 : f32
    %697 = vector.broadcast %cst_238 : f32 to vector<16x32xf32>
    %698 = arith.subf %696, %697 : vector<16x32xf32>
    %699 = arith.select %695, %683, %698 : vector<16x32xi1>, vector<16x32xf32>
    %700 = arith.truncf %699 : vector<16x32xf32> to vector<16x32xbf16>
    %cst_239 = arith.constant dense<0.000000e+00> : vector<16x32xf32>
    %701 = tpu.matmul %700, %0, %cst_239 {dimension_numbers = #tpu.dot_dimension_numbers<[1], [0], [0], [1], [0, 0, 1, 1], [], []>} : vector<16x32xbf16>, vector<32x32xbf16>, vector<16x32xf32> -> vector<16x32xf32>
    %702 = arith.addf %701, %4 : vector<16x32xf32>
    %cst_240 = arith.constant 0.000000e+00 : f32
    %703 = vector.broadcast %cst_240 : f32 to vector<16x32xf32>
    %704 = arith.cmpf ogt, %702, %703 : vector<16x32xf32>
    %705 = math.exp %702 : vector<16x32xf32>
    %cst_241 = arith.constant 1.000000e+00 : f32
    %706 = vector.broadcast %cst_241 : f32 to vector<16x32xf32>
    %707 = arith.subf %705, %706 : vector<16x32xf32>
    %708 = arith.select %704, %702, %707 : vector<16x32xi1>, vector<16x32xf32>
    %709 = arith.truncf %708 : vector<16x32xf32> to vector<16x32xbf16>
    %cst_242 = arith.constant dense<0.000000e+00> : vector<16x32xf32>
    %710 = tpu.matmul %709, %1, %cst_242 {dimension_numbers = #tpu.dot_dimension_numbers<[1], [0], [0], [1], [0, 0, 1, 1], [], []>} : vector<16x32xbf16>, vector<32x32xbf16>, vector<16x32xf32> -> vector<16x32xf32>
    %cst_243 = arith.constant 2.500000e-02 : f32
    %711 = vector.broadcast %cst_243 : f32 to vector<16x32xf32>
    %712 = arith.mulf %711, %710 : vector<16x32xf32>
    %713 = arith.addf %692, %712 : vector<16x32xf32>
    %cst_244 = arith.constant 0.000000e+00 : f32
    %714 = vector.broadcast %cst_244 : f32 to vector<16x32xf32>
    %715 = arith.cmpf ogt, %713, %714 : vector<16x32xf32>
    %716 = math.exp %713 : vector<16x32xf32>
    %cst_245 = arith.constant 1.000000e+00 : f32
    %717 = vector.broadcast %cst_245 : f32 to vector<16x32xf32>
    %718 = arith.subf %716, %717 : vector<16x32xf32>
    %719 = arith.select %715, %713, %718 : vector<16x32xi1>, vector<16x32xf32>
    %720 = arith.truncf %719 : vector<16x32xf32> to vector<16x32xbf16>
    %cst_246 = arith.constant dense<0.000000e+00> : vector<16x32xf32>
    %721 = tpu.matmul %720, %0, %cst_246 {dimension_numbers = #tpu.dot_dimension_numbers<[1], [0], [0], [1], [0, 0, 1, 1], [], []>} : vector<16x32xbf16>, vector<32x32xbf16>, vector<16x32xf32> -> vector<16x32xf32>
    %722 = arith.addf %721, %4 : vector<16x32xf32>
    %cst_247 = arith.constant 0.000000e+00 : f32
    %723 = vector.broadcast %cst_247 : f32 to vector<16x32xf32>
    %724 = arith.cmpf ogt, %722, %723 : vector<16x32xf32>
    %725 = math.exp %722 : vector<16x32xf32>
    %cst_248 = arith.constant 1.000000e+00 : f32
    %726 = vector.broadcast %cst_248 : f32 to vector<16x32xf32>
    %727 = arith.subf %725, %726 : vector<16x32xf32>
    %728 = arith.select %724, %722, %727 : vector<16x32xi1>, vector<16x32xf32>
    %729 = arith.truncf %728 : vector<16x32xf32> to vector<16x32xbf16>
    %cst_249 = arith.constant dense<0.000000e+00> : vector<16x32xf32>
    %730 = tpu.matmul %729, %1, %cst_249 {dimension_numbers = #tpu.dot_dimension_numbers<[1], [0], [0], [1], [0, 0, 1, 1], [], []>} : vector<16x32xbf16>, vector<32x32xbf16>, vector<16x32xf32> -> vector<16x32xf32>
    %cst_250 = arith.constant 2.500000e-02 : f32
    %731 = vector.broadcast %cst_250 : f32 to vector<16x32xf32>
    %732 = arith.mulf %731, %730 : vector<16x32xf32>
    %733 = arith.addf %692, %732 : vector<16x32xf32>
    %cst_251 = arith.constant 0.000000e+00 : f32
    %734 = vector.broadcast %cst_251 : f32 to vector<16x32xf32>
    %735 = arith.cmpf ogt, %733, %734 : vector<16x32xf32>
    %736 = math.exp %733 : vector<16x32xf32>
    %cst_252 = arith.constant 1.000000e+00 : f32
    %737 = vector.broadcast %cst_252 : f32 to vector<16x32xf32>
    %738 = arith.subf %736, %737 : vector<16x32xf32>
    %739 = arith.select %735, %733, %738 : vector<16x32xi1>, vector<16x32xf32>
    %740 = arith.truncf %739 : vector<16x32xf32> to vector<16x32xbf16>
    %cst_253 = arith.constant dense<0.000000e+00> : vector<16x32xf32>
    %741 = tpu.matmul %740, %0, %cst_253 {dimension_numbers = #tpu.dot_dimension_numbers<[1], [0], [0], [1], [0, 0, 1, 1], [], []>} : vector<16x32xbf16>, vector<32x32xbf16>, vector<16x32xf32> -> vector<16x32xf32>
    %742 = arith.addf %741, %4 : vector<16x32xf32>
    %cst_254 = arith.constant 0.000000e+00 : f32
    %743 = vector.broadcast %cst_254 : f32 to vector<16x32xf32>
    %744 = arith.cmpf ogt, %742, %743 : vector<16x32xf32>
    %745 = math.exp %742 : vector<16x32xf32>
    %cst_255 = arith.constant 1.000000e+00 : f32
    %746 = vector.broadcast %cst_255 : f32 to vector<16x32xf32>
    %747 = arith.subf %745, %746 : vector<16x32xf32>
    %748 = arith.select %744, %742, %747 : vector<16x32xi1>, vector<16x32xf32>
    %749 = arith.truncf %748 : vector<16x32xf32> to vector<16x32xbf16>
    %cst_256 = arith.constant dense<0.000000e+00> : vector<16x32xf32>
    %750 = tpu.matmul %749, %1, %cst_256 {dimension_numbers = #tpu.dot_dimension_numbers<[1], [0], [0], [1], [0, 0, 1, 1], [], []>} : vector<16x32xbf16>, vector<32x32xbf16>, vector<16x32xf32> -> vector<16x32xf32>
    %cst_257 = arith.constant 5.000000e-02 : f32
    %751 = vector.broadcast %cst_257 : f32 to vector<16x32xf32>
    %752 = arith.mulf %751, %750 : vector<16x32xf32>
    %753 = arith.addf %693, %752 : vector<16x32xf32>
    %cst_258 = arith.constant 0.000000e+00 : f32
    %754 = vector.broadcast %cst_258 : f32 to vector<16x32xf32>
    %755 = arith.cmpf ogt, %753, %754 : vector<16x32xf32>
    %756 = math.exp %753 : vector<16x32xf32>
    %cst_259 = arith.constant 1.000000e+00 : f32
    %757 = vector.broadcast %cst_259 : f32 to vector<16x32xf32>
    %758 = arith.subf %756, %757 : vector<16x32xf32>
    %759 = arith.select %755, %753, %758 : vector<16x32xi1>, vector<16x32xf32>
    %760 = arith.truncf %759 : vector<16x32xf32> to vector<16x32xbf16>
    %cst_260 = arith.constant dense<0.000000e+00> : vector<16x32xf32>
    %761 = tpu.matmul %760, %0, %cst_260 {dimension_numbers = #tpu.dot_dimension_numbers<[1], [0], [0], [1], [0, 0, 1, 1], [], []>} : vector<16x32xbf16>, vector<32x32xbf16>, vector<16x32xf32> -> vector<16x32xf32>
    %762 = arith.addf %761, %4 : vector<16x32xf32>
    %cst_261 = arith.constant 0.000000e+00 : f32
    %763 = vector.broadcast %cst_261 : f32 to vector<16x32xf32>
    %764 = arith.cmpf ogt, %762, %763 : vector<16x32xf32>
    %765 = math.exp %762 : vector<16x32xf32>
    %cst_262 = arith.constant 1.000000e+00 : f32
    %766 = vector.broadcast %cst_262 : f32 to vector<16x32xf32>
    %767 = arith.subf %765, %766 : vector<16x32xf32>
    %768 = arith.select %764, %762, %767 : vector<16x32xi1>, vector<16x32xf32>
    %769 = arith.truncf %768 : vector<16x32xf32> to vector<16x32xbf16>
    %cst_263 = arith.constant dense<0.000000e+00> : vector<16x32xf32>
    %770 = tpu.matmul %769, %1, %cst_263 {dimension_numbers = #tpu.dot_dimension_numbers<[1], [0], [0], [1], [0, 0, 1, 1], [], []>} : vector<16x32xbf16>, vector<32x32xbf16>, vector<16x32xf32> -> vector<16x32xf32>
    %771 = arith.addf %730, %750 : vector<16x32xf32>
    %cst_264 = arith.constant 2.000000e+00 : f32
    %772 = vector.broadcast %cst_264 : f32 to vector<16x32xf32>
    %773 = arith.mulf %772, %771 : vector<16x32xf32>
    %774 = arith.addf %710, %773 : vector<16x32xf32>
    %cst_265 = arith.constant 0.00833333377 : f32
    %775 = vector.broadcast %cst_265 : f32 to vector<16x32xf32>
    %776 = arith.mulf %775, %774 : vector<16x32xf32>
    %777 = arith.addf %693, %776 : vector<16x32xf32>
    %cst_266 = arith.constant 0.00833333377 : f32
    %778 = vector.broadcast %cst_266 : f32 to vector<16x32xf32>
    %779 = arith.mulf %778, %770 : vector<16x32xf32>
    %780 = arith.addf %777, %779 : vector<16x32xf32>
    %781 = arith.addf %708, %768 : vector<16x32xf32>
    %782 = arith.addf %728, %748 : vector<16x32xf32>
    %cst_267 = arith.constant 2.000000e+00 : f32
    %783 = vector.broadcast %cst_267 : f32 to vector<16x32xf32>
    %784 = arith.mulf %783, %782 : vector<16x32xf32>
    %785 = arith.addf %781, %784 : vector<16x32xf32>
    %cst_268 = arith.constant 0.00833333377 : f32
    %786 = vector.broadcast %cst_268 : f32 to vector<16x32xf32>
    %787 = arith.mulf %786, %785 : vector<16x32xf32>
    %788 = arith.addf %691, %787 : vector<16x32xf32>
    %c8_i32 = arith.constant 8 : i32
    %789 = arith.addf %780, %9 : vector<16x32xf32>
    %790 = arith.addf %780, %11 : vector<16x32xf32>
    %cst_269 = arith.constant 0.000000e+00 : f32
    %791 = vector.broadcast %cst_269 : f32 to vector<16x32xf32>
    %792 = arith.cmpf ogt, %780, %791 : vector<16x32xf32>
    %793 = math.exp %780 : vector<16x32xf32>
    %cst_270 = arith.constant 1.000000e+00 : f32
    %794 = vector.broadcast %cst_270 : f32 to vector<16x32xf32>
    %795 = arith.subf %793, %794 : vector<16x32xf32>
    %796 = arith.select %792, %780, %795 : vector<16x32xi1>, vector<16x32xf32>
    %797 = arith.truncf %796 : vector<16x32xf32> to vector<16x32xbf16>
    %cst_271 = arith.constant dense<0.000000e+00> : vector<16x32xf32>
    %798 = tpu.matmul %797, %0, %cst_271 {dimension_numbers = #tpu.dot_dimension_numbers<[1], [0], [0], [1], [0, 0, 1, 1], [], []>} : vector<16x32xbf16>, vector<32x32xbf16>, vector<16x32xf32> -> vector<16x32xf32>
    %799 = arith.addf %798, %4 : vector<16x32xf32>
    %cst_272 = arith.constant 0.000000e+00 : f32
    %800 = vector.broadcast %cst_272 : f32 to vector<16x32xf32>
    %801 = arith.cmpf ogt, %799, %800 : vector<16x32xf32>
    %802 = math.exp %799 : vector<16x32xf32>
    %cst_273 = arith.constant 1.000000e+00 : f32
    %803 = vector.broadcast %cst_273 : f32 to vector<16x32xf32>
    %804 = arith.subf %802, %803 : vector<16x32xf32>
    %805 = arith.select %801, %799, %804 : vector<16x32xi1>, vector<16x32xf32>
    %806 = arith.truncf %805 : vector<16x32xf32> to vector<16x32xbf16>
    %cst_274 = arith.constant dense<0.000000e+00> : vector<16x32xf32>
    %807 = tpu.matmul %806, %1, %cst_274 {dimension_numbers = #tpu.dot_dimension_numbers<[1], [0], [0], [1], [0, 0, 1, 1], [], []>} : vector<16x32xbf16>, vector<32x32xbf16>, vector<16x32xf32> -> vector<16x32xf32>
    %cst_275 = arith.constant 2.500000e-02 : f32
    %808 = vector.broadcast %cst_275 : f32 to vector<16x32xf32>
    %809 = arith.mulf %808, %807 : vector<16x32xf32>
    %810 = arith.addf %789, %809 : vector<16x32xf32>
    %cst_276 = arith.constant 0.000000e+00 : f32
    %811 = vector.broadcast %cst_276 : f32 to vector<16x32xf32>
    %812 = arith.cmpf ogt, %810, %811 : vector<16x32xf32>
    %813 = math.exp %810 : vector<16x32xf32>
    %cst_277 = arith.constant 1.000000e+00 : f32
    %814 = vector.broadcast %cst_277 : f32 to vector<16x32xf32>
    %815 = arith.subf %813, %814 : vector<16x32xf32>
    %816 = arith.select %812, %810, %815 : vector<16x32xi1>, vector<16x32xf32>
    %817 = arith.truncf %816 : vector<16x32xf32> to vector<16x32xbf16>
    %cst_278 = arith.constant dense<0.000000e+00> : vector<16x32xf32>
    %818 = tpu.matmul %817, %0, %cst_278 {dimension_numbers = #tpu.dot_dimension_numbers<[1], [0], [0], [1], [0, 0, 1, 1], [], []>} : vector<16x32xbf16>, vector<32x32xbf16>, vector<16x32xf32> -> vector<16x32xf32>
    %819 = arith.addf %818, %4 : vector<16x32xf32>
    %cst_279 = arith.constant 0.000000e+00 : f32
    %820 = vector.broadcast %cst_279 : f32 to vector<16x32xf32>
    %821 = arith.cmpf ogt, %819, %820 : vector<16x32xf32>
    %822 = math.exp %819 : vector<16x32xf32>
    %cst_280 = arith.constant 1.000000e+00 : f32
    %823 = vector.broadcast %cst_280 : f32 to vector<16x32xf32>
    %824 = arith.subf %822, %823 : vector<16x32xf32>
    %825 = arith.select %821, %819, %824 : vector<16x32xi1>, vector<16x32xf32>
    %826 = arith.truncf %825 : vector<16x32xf32> to vector<16x32xbf16>
    %cst_281 = arith.constant dense<0.000000e+00> : vector<16x32xf32>
    %827 = tpu.matmul %826, %1, %cst_281 {dimension_numbers = #tpu.dot_dimension_numbers<[1], [0], [0], [1], [0, 0, 1, 1], [], []>} : vector<16x32xbf16>, vector<32x32xbf16>, vector<16x32xf32> -> vector<16x32xf32>
    %cst_282 = arith.constant 2.500000e-02 : f32
    %828 = vector.broadcast %cst_282 : f32 to vector<16x32xf32>
    %829 = arith.mulf %828, %827 : vector<16x32xf32>
    %830 = arith.addf %789, %829 : vector<16x32xf32>
    %cst_283 = arith.constant 0.000000e+00 : f32
    %831 = vector.broadcast %cst_283 : f32 to vector<16x32xf32>
    %832 = arith.cmpf ogt, %830, %831 : vector<16x32xf32>
    %833 = math.exp %830 : vector<16x32xf32>
    %cst_284 = arith.constant 1.000000e+00 : f32
    %834 = vector.broadcast %cst_284 : f32 to vector<16x32xf32>
    %835 = arith.subf %833, %834 : vector<16x32xf32>
    %836 = arith.select %832, %830, %835 : vector<16x32xi1>, vector<16x32xf32>
    %837 = arith.truncf %836 : vector<16x32xf32> to vector<16x32xbf16>
    %cst_285 = arith.constant dense<0.000000e+00> : vector<16x32xf32>
    %838 = tpu.matmul %837, %0, %cst_285 {dimension_numbers = #tpu.dot_dimension_numbers<[1], [0], [0], [1], [0, 0, 1, 1], [], []>} : vector<16x32xbf16>, vector<32x32xbf16>, vector<16x32xf32> -> vector<16x32xf32>
    %839 = arith.addf %838, %4 : vector<16x32xf32>
    %cst_286 = arith.constant 0.000000e+00 : f32
    %840 = vector.broadcast %cst_286 : f32 to vector<16x32xf32>
    %841 = arith.cmpf ogt, %839, %840 : vector<16x32xf32>
    %842 = math.exp %839 : vector<16x32xf32>
    %cst_287 = arith.constant 1.000000e+00 : f32
    %843 = vector.broadcast %cst_287 : f32 to vector<16x32xf32>
    %844 = arith.subf %842, %843 : vector<16x32xf32>
    %845 = arith.select %841, %839, %844 : vector<16x32xi1>, vector<16x32xf32>
    %846 = arith.truncf %845 : vector<16x32xf32> to vector<16x32xbf16>
    %cst_288 = arith.constant dense<0.000000e+00> : vector<16x32xf32>
    %847 = tpu.matmul %846, %1, %cst_288 {dimension_numbers = #tpu.dot_dimension_numbers<[1], [0], [0], [1], [0, 0, 1, 1], [], []>} : vector<16x32xbf16>, vector<32x32xbf16>, vector<16x32xf32> -> vector<16x32xf32>
    %cst_289 = arith.constant 5.000000e-02 : f32
    %848 = vector.broadcast %cst_289 : f32 to vector<16x32xf32>
    %849 = arith.mulf %848, %847 : vector<16x32xf32>
    %850 = arith.addf %790, %849 : vector<16x32xf32>
    %cst_290 = arith.constant 0.000000e+00 : f32
    %851 = vector.broadcast %cst_290 : f32 to vector<16x32xf32>
    %852 = arith.cmpf ogt, %850, %851 : vector<16x32xf32>
    %853 = math.exp %850 : vector<16x32xf32>
    %cst_291 = arith.constant 1.000000e+00 : f32
    %854 = vector.broadcast %cst_291 : f32 to vector<16x32xf32>
    %855 = arith.subf %853, %854 : vector<16x32xf32>
    %856 = arith.select %852, %850, %855 : vector<16x32xi1>, vector<16x32xf32>
    %857 = arith.truncf %856 : vector<16x32xf32> to vector<16x32xbf16>
    %cst_292 = arith.constant dense<0.000000e+00> : vector<16x32xf32>
    %858 = tpu.matmul %857, %0, %cst_292 {dimension_numbers = #tpu.dot_dimension_numbers<[1], [0], [0], [1], [0, 0, 1, 1], [], []>} : vector<16x32xbf16>, vector<32x32xbf16>, vector<16x32xf32> -> vector<16x32xf32>
    %859 = arith.addf %858, %4 : vector<16x32xf32>
    %cst_293 = arith.constant 0.000000e+00 : f32
    %860 = vector.broadcast %cst_293 : f32 to vector<16x32xf32>
    %861 = arith.cmpf ogt, %859, %860 : vector<16x32xf32>
    %862 = math.exp %859 : vector<16x32xf32>
    %cst_294 = arith.constant 1.000000e+00 : f32
    %863 = vector.broadcast %cst_294 : f32 to vector<16x32xf32>
    %864 = arith.subf %862, %863 : vector<16x32xf32>
    %865 = arith.select %861, %859, %864 : vector<16x32xi1>, vector<16x32xf32>
    %866 = arith.truncf %865 : vector<16x32xf32> to vector<16x32xbf16>
    %cst_295 = arith.constant dense<0.000000e+00> : vector<16x32xf32>
    %867 = tpu.matmul %866, %1, %cst_295 {dimension_numbers = #tpu.dot_dimension_numbers<[1], [0], [0], [1], [0, 0, 1, 1], [], []>} : vector<16x32xbf16>, vector<32x32xbf16>, vector<16x32xf32> -> vector<16x32xf32>
    %868 = arith.addf %827, %847 : vector<16x32xf32>
    %cst_296 = arith.constant 2.000000e+00 : f32
    %869 = vector.broadcast %cst_296 : f32 to vector<16x32xf32>
    %870 = arith.mulf %869, %868 : vector<16x32xf32>
    %871 = arith.addf %807, %870 : vector<16x32xf32>
    %cst_297 = arith.constant 0.00833333377 : f32
    %872 = vector.broadcast %cst_297 : f32 to vector<16x32xf32>
    %873 = arith.mulf %872, %871 : vector<16x32xf32>
    %874 = arith.addf %790, %873 : vector<16x32xf32>
    %cst_298 = arith.constant 0.00833333377 : f32
    %875 = vector.broadcast %cst_298 : f32 to vector<16x32xf32>
    %876 = arith.mulf %875, %867 : vector<16x32xf32>
    %877 = arith.addf %874, %876 : vector<16x32xf32>
    %878 = arith.addf %805, %865 : vector<16x32xf32>
    %879 = arith.addf %825, %845 : vector<16x32xf32>
    %cst_299 = arith.constant 2.000000e+00 : f32
    %880 = vector.broadcast %cst_299 : f32 to vector<16x32xf32>
    %881 = arith.mulf %880, %879 : vector<16x32xf32>
    %882 = arith.addf %878, %881 : vector<16x32xf32>
    %cst_300 = arith.constant 0.00833333377 : f32
    %883 = vector.broadcast %cst_300 : f32 to vector<16x32xf32>
    %884 = arith.mulf %883, %882 : vector<16x32xf32>
    %885 = arith.addf %788, %884 : vector<16x32xf32>
    %c9_i32 = arith.constant 9 : i32
    %886 = arith.addf %877, %9 : vector<16x32xf32>
    %887 = arith.addf %877, %11 : vector<16x32xf32>
    %cst_301 = arith.constant 0.000000e+00 : f32
    %888 = vector.broadcast %cst_301 : f32 to vector<16x32xf32>
    %889 = arith.cmpf ogt, %877, %888 : vector<16x32xf32>
    %890 = math.exp %877 : vector<16x32xf32>
    %cst_302 = arith.constant 1.000000e+00 : f32
    %891 = vector.broadcast %cst_302 : f32 to vector<16x32xf32>
    %892 = arith.subf %890, %891 : vector<16x32xf32>
    %893 = arith.select %889, %877, %892 : vector<16x32xi1>, vector<16x32xf32>
    %894 = arith.truncf %893 : vector<16x32xf32> to vector<16x32xbf16>
    %cst_303 = arith.constant dense<0.000000e+00> : vector<16x32xf32>
    %895 = tpu.matmul %894, %0, %cst_303 {dimension_numbers = #tpu.dot_dimension_numbers<[1], [0], [0], [1], [0, 0, 1, 1], [], []>} : vector<16x32xbf16>, vector<32x32xbf16>, vector<16x32xf32> -> vector<16x32xf32>
    %896 = arith.addf %895, %4 : vector<16x32xf32>
    %cst_304 = arith.constant 0.000000e+00 : f32
    %897 = vector.broadcast %cst_304 : f32 to vector<16x32xf32>
    %898 = arith.cmpf ogt, %896, %897 : vector<16x32xf32>
    %899 = math.exp %896 : vector<16x32xf32>
    %cst_305 = arith.constant 1.000000e+00 : f32
    %900 = vector.broadcast %cst_305 : f32 to vector<16x32xf32>
    %901 = arith.subf %899, %900 : vector<16x32xf32>
    %902 = arith.select %898, %896, %901 : vector<16x32xi1>, vector<16x32xf32>
    %903 = arith.truncf %902 : vector<16x32xf32> to vector<16x32xbf16>
    %cst_306 = arith.constant dense<0.000000e+00> : vector<16x32xf32>
    %904 = tpu.matmul %903, %1, %cst_306 {dimension_numbers = #tpu.dot_dimension_numbers<[1], [0], [0], [1], [0, 0, 1, 1], [], []>} : vector<16x32xbf16>, vector<32x32xbf16>, vector<16x32xf32> -> vector<16x32xf32>
    %cst_307 = arith.constant 2.500000e-02 : f32
    %905 = vector.broadcast %cst_307 : f32 to vector<16x32xf32>
    %906 = arith.mulf %905, %904 : vector<16x32xf32>
    %907 = arith.addf %886, %906 : vector<16x32xf32>
    %cst_308 = arith.constant 0.000000e+00 : f32
    %908 = vector.broadcast %cst_308 : f32 to vector<16x32xf32>
    %909 = arith.cmpf ogt, %907, %908 : vector<16x32xf32>
    %910 = math.exp %907 : vector<16x32xf32>
    %cst_309 = arith.constant 1.000000e+00 : f32
    %911 = vector.broadcast %cst_309 : f32 to vector<16x32xf32>
    %912 = arith.subf %910, %911 : vector<16x32xf32>
    %913 = arith.select %909, %907, %912 : vector<16x32xi1>, vector<16x32xf32>
    %914 = arith.truncf %913 : vector<16x32xf32> to vector<16x32xbf16>
    %cst_310 = arith.constant dense<0.000000e+00> : vector<16x32xf32>
    %915 = tpu.matmul %914, %0, %cst_310 {dimension_numbers = #tpu.dot_dimension_numbers<[1], [0], [0], [1], [0, 0, 1, 1], [], []>} : vector<16x32xbf16>, vector<32x32xbf16>, vector<16x32xf32> -> vector<16x32xf32>
    %916 = arith.addf %915, %4 : vector<16x32xf32>
    %cst_311 = arith.constant 0.000000e+00 : f32
    %917 = vector.broadcast %cst_311 : f32 to vector<16x32xf32>
    %918 = arith.cmpf ogt, %916, %917 : vector<16x32xf32>
    %919 = math.exp %916 : vector<16x32xf32>
    %cst_312 = arith.constant 1.000000e+00 : f32
    %920 = vector.broadcast %cst_312 : f32 to vector<16x32xf32>
    %921 = arith.subf %919, %920 : vector<16x32xf32>
    %922 = arith.select %918, %916, %921 : vector<16x32xi1>, vector<16x32xf32>
    %923 = arith.truncf %922 : vector<16x32xf32> to vector<16x32xbf16>
    %cst_313 = arith.constant dense<0.000000e+00> : vector<16x32xf32>
    %924 = tpu.matmul %923, %1, %cst_313 {dimension_numbers = #tpu.dot_dimension_numbers<[1], [0], [0], [1], [0, 0, 1, 1], [], []>} : vector<16x32xbf16>, vector<32x32xbf16>, vector<16x32xf32> -> vector<16x32xf32>
    %cst_314 = arith.constant 2.500000e-02 : f32
    %925 = vector.broadcast %cst_314 : f32 to vector<16x32xf32>
    %926 = arith.mulf %925, %924 : vector<16x32xf32>
    %927 = arith.addf %886, %926 : vector<16x32xf32>
    %cst_315 = arith.constant 0.000000e+00 : f32
    %928 = vector.broadcast %cst_315 : f32 to vector<16x32xf32>
    %929 = arith.cmpf ogt, %927, %928 : vector<16x32xf32>
    %930 = math.exp %927 : vector<16x32xf32>
    %cst_316 = arith.constant 1.000000e+00 : f32
    %931 = vector.broadcast %cst_316 : f32 to vector<16x32xf32>
    %932 = arith.subf %930, %931 : vector<16x32xf32>
    %933 = arith.select %929, %927, %932 : vector<16x32xi1>, vector<16x32xf32>
    %934 = arith.truncf %933 : vector<16x32xf32> to vector<16x32xbf16>
    %cst_317 = arith.constant dense<0.000000e+00> : vector<16x32xf32>
    %935 = tpu.matmul %934, %0, %cst_317 {dimension_numbers = #tpu.dot_dimension_numbers<[1], [0], [0], [1], [0, 0, 1, 1], [], []>} : vector<16x32xbf16>, vector<32x32xbf16>, vector<16x32xf32> -> vector<16x32xf32>
    %936 = arith.addf %935, %4 : vector<16x32xf32>
    %cst_318 = arith.constant 0.000000e+00 : f32
    %937 = vector.broadcast %cst_318 : f32 to vector<16x32xf32>
    %938 = arith.cmpf ogt, %936, %937 : vector<16x32xf32>
    %939 = math.exp %936 : vector<16x32xf32>
    %cst_319 = arith.constant 1.000000e+00 : f32
    %940 = vector.broadcast %cst_319 : f32 to vector<16x32xf32>
    %941 = arith.subf %939, %940 : vector<16x32xf32>
    %942 = arith.select %938, %936, %941 : vector<16x32xi1>, vector<16x32xf32>
    %943 = arith.truncf %942 : vector<16x32xf32> to vector<16x32xbf16>
    %cst_320 = arith.constant dense<0.000000e+00> : vector<16x32xf32>
    %944 = tpu.matmul %943, %1, %cst_320 {dimension_numbers = #tpu.dot_dimension_numbers<[1], [0], [0], [1], [0, 0, 1, 1], [], []>} : vector<16x32xbf16>, vector<32x32xbf16>, vector<16x32xf32> -> vector<16x32xf32>
    %cst_321 = arith.constant 5.000000e-02 : f32
    %945 = vector.broadcast %cst_321 : f32 to vector<16x32xf32>
    %946 = arith.mulf %945, %944 : vector<16x32xf32>
    %947 = arith.addf %887, %946 : vector<16x32xf32>
    %cst_322 = arith.constant 0.000000e+00 : f32
    %948 = vector.broadcast %cst_322 : f32 to vector<16x32xf32>
    %949 = arith.cmpf ogt, %947, %948 : vector<16x32xf32>
    %950 = math.exp %947 : vector<16x32xf32>
    %cst_323 = arith.constant 1.000000e+00 : f32
    %951 = vector.broadcast %cst_323 : f32 to vector<16x32xf32>
    %952 = arith.subf %950, %951 : vector<16x32xf32>
    %953 = arith.select %949, %947, %952 : vector<16x32xi1>, vector<16x32xf32>
    %954 = arith.truncf %953 : vector<16x32xf32> to vector<16x32xbf16>
    %cst_324 = arith.constant dense<0.000000e+00> : vector<16x32xf32>
    %955 = tpu.matmul %954, %0, %cst_324 {dimension_numbers = #tpu.dot_dimension_numbers<[1], [0], [0], [1], [0, 0, 1, 1], [], []>} : vector<16x32xbf16>, vector<32x32xbf16>, vector<16x32xf32> -> vector<16x32xf32>
    %956 = arith.addf %955, %4 : vector<16x32xf32>
    %cst_325 = arith.constant 0.000000e+00 : f32
    %957 = vector.broadcast %cst_325 : f32 to vector<16x32xf32>
    %958 = arith.cmpf ogt, %956, %957 : vector<16x32xf32>
    %959 = math.exp %956 : vector<16x32xf32>
    %cst_326 = arith.constant 1.000000e+00 : f32
    %960 = vector.broadcast %cst_326 : f32 to vector<16x32xf32>
    %961 = arith.subf %959, %960 : vector<16x32xf32>
    %962 = arith.select %958, %956, %961 : vector<16x32xi1>, vector<16x32xf32>
    %963 = arith.truncf %962 : vector<16x32xf32> to vector<16x32xbf16>
    %cst_327 = arith.constant dense<0.000000e+00> : vector<16x32xf32>
    %964 = tpu.matmul %963, %1, %cst_327 {dimension_numbers = #tpu.dot_dimension_numbers<[1], [0], [0], [1], [0, 0, 1, 1], [], []>} : vector<16x32xbf16>, vector<32x32xbf16>, vector<16x32xf32> -> vector<16x32xf32>
    %965 = arith.addf %924, %944 : vector<16x32xf32>
    %cst_328 = arith.constant 2.000000e+00 : f32
    %966 = vector.broadcast %cst_328 : f32 to vector<16x32xf32>
    %967 = arith.mulf %966, %965 : vector<16x32xf32>
    %968 = arith.addf %904, %967 : vector<16x32xf32>
    %cst_329 = arith.constant 0.00833333377 : f32
    %969 = vector.broadcast %cst_329 : f32 to vector<16x32xf32>
    %970 = arith.mulf %969, %968 : vector<16x32xf32>
    %971 = arith.addf %887, %970 : vector<16x32xf32>
    %cst_330 = arith.constant 0.00833333377 : f32
    %972 = vector.broadcast %cst_330 : f32 to vector<16x32xf32>
    %973 = arith.mulf %972, %964 : vector<16x32xf32>
    %974 = arith.addf %971, %973 : vector<16x32xf32>
    %975 = arith.addf %902, %962 : vector<16x32xf32>
    %976 = arith.addf %922, %942 : vector<16x32xf32>
    %cst_331 = arith.constant 2.000000e+00 : f32
    %977 = vector.broadcast %cst_331 : f32 to vector<16x32xf32>
    %978 = arith.mulf %977, %976 : vector<16x32xf32>
    %979 = arith.addf %975, %978 : vector<16x32xf32>
    %cst_332 = arith.constant 0.00833333377 : f32
    %980 = vector.broadcast %cst_332 : f32 to vector<16x32xf32>
    %981 = arith.mulf %980, %979 : vector<16x32xf32>
    %982 = arith.addf %885, %981 : vector<16x32xf32>
    %c10_i32 = arith.constant 10 : i32
    %983 = arith.addf %974, %9 : vector<16x32xf32>
    %984 = arith.addf %974, %11 : vector<16x32xf32>
    %cst_333 = arith.constant 0.000000e+00 : f32
    %985 = vector.broadcast %cst_333 : f32 to vector<16x32xf32>
    %986 = arith.cmpf ogt, %974, %985 : vector<16x32xf32>
    %987 = math.exp %974 : vector<16x32xf32>
    %cst_334 = arith.constant 1.000000e+00 : f32
    %988 = vector.broadcast %cst_334 : f32 to vector<16x32xf32>
    %989 = arith.subf %987, %988 : vector<16x32xf32>
    %990 = arith.select %986, %974, %989 : vector<16x32xi1>, vector<16x32xf32>
    %991 = arith.truncf %990 : vector<16x32xf32> to vector<16x32xbf16>
    %cst_335 = arith.constant dense<0.000000e+00> : vector<16x32xf32>
    %992 = tpu.matmul %991, %0, %cst_335 {dimension_numbers = #tpu.dot_dimension_numbers<[1], [0], [0], [1], [0, 0, 1, 1], [], []>} : vector<16x32xbf16>, vector<32x32xbf16>, vector<16x32xf32> -> vector<16x32xf32>
    %993 = arith.addf %992, %4 : vector<16x32xf32>
    %cst_336 = arith.constant 0.000000e+00 : f32
    %994 = vector.broadcast %cst_336 : f32 to vector<16x32xf32>
    %995 = arith.cmpf ogt, %993, %994 : vector<16x32xf32>
    %996 = math.exp %993 : vector<16x32xf32>
    %cst_337 = arith.constant 1.000000e+00 : f32
    %997 = vector.broadcast %cst_337 : f32 to vector<16x32xf32>
    %998 = arith.subf %996, %997 : vector<16x32xf32>
    %999 = arith.select %995, %993, %998 : vector<16x32xi1>, vector<16x32xf32>
    %1000 = arith.truncf %999 : vector<16x32xf32> to vector<16x32xbf16>
    %cst_338 = arith.constant dense<0.000000e+00> : vector<16x32xf32>
    %1001 = tpu.matmul %1000, %1, %cst_338 {dimension_numbers = #tpu.dot_dimension_numbers<[1], [0], [0], [1], [0, 0, 1, 1], [], []>} : vector<16x32xbf16>, vector<32x32xbf16>, vector<16x32xf32> -> vector<16x32xf32>
    %cst_339 = arith.constant 2.500000e-02 : f32
    %1002 = vector.broadcast %cst_339 : f32 to vector<16x32xf32>
    %1003 = arith.mulf %1002, %1001 : vector<16x32xf32>
    %1004 = arith.addf %983, %1003 : vector<16x32xf32>
    %cst_340 = arith.constant 0.000000e+00 : f32
    %1005 = vector.broadcast %cst_340 : f32 to vector<16x32xf32>
    %1006 = arith.cmpf ogt, %1004, %1005 : vector<16x32xf32>
    %1007 = math.exp %1004 : vector<16x32xf32>
    %cst_341 = arith.constant 1.000000e+00 : f32
    %1008 = vector.broadcast %cst_341 : f32 to vector<16x32xf32>
    %1009 = arith.subf %1007, %1008 : vector<16x32xf32>
    %1010 = arith.select %1006, %1004, %1009 : vector<16x32xi1>, vector<16x32xf32>
    %1011 = arith.truncf %1010 : vector<16x32xf32> to vector<16x32xbf16>
    %cst_342 = arith.constant dense<0.000000e+00> : vector<16x32xf32>
    %1012 = tpu.matmul %1011, %0, %cst_342 {dimension_numbers = #tpu.dot_dimension_numbers<[1], [0], [0], [1], [0, 0, 1, 1], [], []>} : vector<16x32xbf16>, vector<32x32xbf16>, vector<16x32xf32> -> vector<16x32xf32>
    %1013 = arith.addf %1012, %4 : vector<16x32xf32>
    %cst_343 = arith.constant 0.000000e+00 : f32
    %1014 = vector.broadcast %cst_343 : f32 to vector<16x32xf32>
    %1015 = arith.cmpf ogt, %1013, %1014 : vector<16x32xf32>
    %1016 = math.exp %1013 : vector<16x32xf32>
    %cst_344 = arith.constant 1.000000e+00 : f32
    %1017 = vector.broadcast %cst_344 : f32 to vector<16x32xf32>
    %1018 = arith.subf %1016, %1017 : vector<16x32xf32>
    %1019 = arith.select %1015, %1013, %1018 : vector<16x32xi1>, vector<16x32xf32>
    %1020 = arith.truncf %1019 : vector<16x32xf32> to vector<16x32xbf16>
    %cst_345 = arith.constant dense<0.000000e+00> : vector<16x32xf32>
    %1021 = tpu.matmul %1020, %1, %cst_345 {dimension_numbers = #tpu.dot_dimension_numbers<[1], [0], [0], [1], [0, 0, 1, 1], [], []>} : vector<16x32xbf16>, vector<32x32xbf16>, vector<16x32xf32> -> vector<16x32xf32>
    %cst_346 = arith.constant 2.500000e-02 : f32
    %1022 = vector.broadcast %cst_346 : f32 to vector<16x32xf32>
    %1023 = arith.mulf %1022, %1021 : vector<16x32xf32>
    %1024 = arith.addf %983, %1023 : vector<16x32xf32>
    %cst_347 = arith.constant 0.000000e+00 : f32
    %1025 = vector.broadcast %cst_347 : f32 to vector<16x32xf32>
    %1026 = arith.cmpf ogt, %1024, %1025 : vector<16x32xf32>
    %1027 = math.exp %1024 : vector<16x32xf32>
    %cst_348 = arith.constant 1.000000e+00 : f32
    %1028 = vector.broadcast %cst_348 : f32 to vector<16x32xf32>
    %1029 = arith.subf %1027, %1028 : vector<16x32xf32>
    %1030 = arith.select %1026, %1024, %1029 : vector<16x32xi1>, vector<16x32xf32>
    %1031 = arith.truncf %1030 : vector<16x32xf32> to vector<16x32xbf16>
    %cst_349 = arith.constant dense<0.000000e+00> : vector<16x32xf32>
    %1032 = tpu.matmul %1031, %0, %cst_349 {dimension_numbers = #tpu.dot_dimension_numbers<[1], [0], [0], [1], [0, 0, 1, 1], [], []>} : vector<16x32xbf16>, vector<32x32xbf16>, vector<16x32xf32> -> vector<16x32xf32>
    %1033 = arith.addf %1032, %4 : vector<16x32xf32>
    %cst_350 = arith.constant 0.000000e+00 : f32
    %1034 = vector.broadcast %cst_350 : f32 to vector<16x32xf32>
    %1035 = arith.cmpf ogt, %1033, %1034 : vector<16x32xf32>
    %1036 = math.exp %1033 : vector<16x32xf32>
    %cst_351 = arith.constant 1.000000e+00 : f32
    %1037 = vector.broadcast %cst_351 : f32 to vector<16x32xf32>
    %1038 = arith.subf %1036, %1037 : vector<16x32xf32>
    %1039 = arith.select %1035, %1033, %1038 : vector<16x32xi1>, vector<16x32xf32>
    %1040 = arith.truncf %1039 : vector<16x32xf32> to vector<16x32xbf16>
    %cst_352 = arith.constant dense<0.000000e+00> : vector<16x32xf32>
    %1041 = tpu.matmul %1040, %1, %cst_352 {dimension_numbers = #tpu.dot_dimension_numbers<[1], [0], [0], [1], [0, 0, 1, 1], [], []>} : vector<16x32xbf16>, vector<32x32xbf16>, vector<16x32xf32> -> vector<16x32xf32>
    %cst_353 = arith.constant 5.000000e-02 : f32
    %1042 = vector.broadcast %cst_353 : f32 to vector<16x32xf32>
    %1043 = arith.mulf %1042, %1041 : vector<16x32xf32>
    %1044 = arith.addf %984, %1043 : vector<16x32xf32>
    %cst_354 = arith.constant 0.000000e+00 : f32
    %1045 = vector.broadcast %cst_354 : f32 to vector<16x32xf32>
    %1046 = arith.cmpf ogt, %1044, %1045 : vector<16x32xf32>
    %1047 = math.exp %1044 : vector<16x32xf32>
    %cst_355 = arith.constant 1.000000e+00 : f32
    %1048 = vector.broadcast %cst_355 : f32 to vector<16x32xf32>
    %1049 = arith.subf %1047, %1048 : vector<16x32xf32>
    %1050 = arith.select %1046, %1044, %1049 : vector<16x32xi1>, vector<16x32xf32>
    %1051 = arith.truncf %1050 : vector<16x32xf32> to vector<16x32xbf16>
    %cst_356 = arith.constant dense<0.000000e+00> : vector<16x32xf32>
    %1052 = tpu.matmul %1051, %0, %cst_356 {dimension_numbers = #tpu.dot_dimension_numbers<[1], [0], [0], [1], [0, 0, 1, 1], [], []>} : vector<16x32xbf16>, vector<32x32xbf16>, vector<16x32xf32> -> vector<16x32xf32>
    %1053 = arith.addf %1052, %4 : vector<16x32xf32>
    %cst_357 = arith.constant 0.000000e+00 : f32
    %1054 = vector.broadcast %cst_357 : f32 to vector<16x32xf32>
    %1055 = arith.cmpf ogt, %1053, %1054 : vector<16x32xf32>
    %1056 = math.exp %1053 : vector<16x32xf32>
    %cst_358 = arith.constant 1.000000e+00 : f32
    %1057 = vector.broadcast %cst_358 : f32 to vector<16x32xf32>
    %1058 = arith.subf %1056, %1057 : vector<16x32xf32>
    %1059 = arith.select %1055, %1053, %1058 : vector<16x32xi1>, vector<16x32xf32>
    %1060 = arith.truncf %1059 : vector<16x32xf32> to vector<16x32xbf16>
    %cst_359 = arith.constant dense<0.000000e+00> : vector<16x32xf32>
    %1061 = tpu.matmul %1060, %1, %cst_359 {dimension_numbers = #tpu.dot_dimension_numbers<[1], [0], [0], [1], [0, 0, 1, 1], [], []>} : vector<16x32xbf16>, vector<32x32xbf16>, vector<16x32xf32> -> vector<16x32xf32>
    %1062 = arith.addf %1021, %1041 : vector<16x32xf32>
    %cst_360 = arith.constant 2.000000e+00 : f32
    %1063 = vector.broadcast %cst_360 : f32 to vector<16x32xf32>
    %1064 = arith.mulf %1063, %1062 : vector<16x32xf32>
    %1065 = arith.addf %1001, %1064 : vector<16x32xf32>
    %cst_361 = arith.constant 0.00833333377 : f32
    %1066 = vector.broadcast %cst_361 : f32 to vector<16x32xf32>
    %1067 = arith.mulf %1066, %1065 : vector<16x32xf32>
    %1068 = arith.addf %984, %1067 : vector<16x32xf32>
    %cst_362 = arith.constant 0.00833333377 : f32
    %1069 = vector.broadcast %cst_362 : f32 to vector<16x32xf32>
    %1070 = arith.mulf %1069, %1061 : vector<16x32xf32>
    %1071 = arith.addf %1068, %1070 : vector<16x32xf32>
    %1072 = arith.addf %999, %1059 : vector<16x32xf32>
    %1073 = arith.addf %1019, %1039 : vector<16x32xf32>
    %cst_363 = arith.constant 2.000000e+00 : f32
    %1074 = vector.broadcast %cst_363 : f32 to vector<16x32xf32>
    %1075 = arith.mulf %1074, %1073 : vector<16x32xf32>
    %1076 = arith.addf %1072, %1075 : vector<16x32xf32>
    %cst_364 = arith.constant 0.00833333377 : f32
    %1077 = vector.broadcast %cst_364 : f32 to vector<16x32xf32>
    %1078 = arith.mulf %1077, %1076 : vector<16x32xf32>
    %1079 = arith.addf %982, %1078 : vector<16x32xf32>
    %c11_i32 = arith.constant 11 : i32
    %1080 = arith.addf %1071, %9 : vector<16x32xf32>
    %1081 = arith.addf %1071, %11 : vector<16x32xf32>
    %cst_365 = arith.constant 0.000000e+00 : f32
    %1082 = vector.broadcast %cst_365 : f32 to vector<16x32xf32>
    %1083 = arith.cmpf ogt, %1071, %1082 : vector<16x32xf32>
    %1084 = math.exp %1071 : vector<16x32xf32>
    %cst_366 = arith.constant 1.000000e+00 : f32
    %1085 = vector.broadcast %cst_366 : f32 to vector<16x32xf32>
    %1086 = arith.subf %1084, %1085 : vector<16x32xf32>
    %1087 = arith.select %1083, %1071, %1086 : vector<16x32xi1>, vector<16x32xf32>
    %1088 = arith.truncf %1087 : vector<16x32xf32> to vector<16x32xbf16>
    %cst_367 = arith.constant dense<0.000000e+00> : vector<16x32xf32>
    %1089 = tpu.matmul %1088, %0, %cst_367 {dimension_numbers = #tpu.dot_dimension_numbers<[1], [0], [0], [1], [0, 0, 1, 1], [], []>} : vector<16x32xbf16>, vector<32x32xbf16>, vector<16x32xf32> -> vector<16x32xf32>
    %1090 = arith.addf %1089, %4 : vector<16x32xf32>
    %cst_368 = arith.constant 0.000000e+00 : f32
    %1091 = vector.broadcast %cst_368 : f32 to vector<16x32xf32>
    %1092 = arith.cmpf ogt, %1090, %1091 : vector<16x32xf32>
    %1093 = math.exp %1090 : vector<16x32xf32>
    %cst_369 = arith.constant 1.000000e+00 : f32
    %1094 = vector.broadcast %cst_369 : f32 to vector<16x32xf32>
    %1095 = arith.subf %1093, %1094 : vector<16x32xf32>
    %1096 = arith.select %1092, %1090, %1095 : vector<16x32xi1>, vector<16x32xf32>
    %1097 = arith.truncf %1096 : vector<16x32xf32> to vector<16x32xbf16>
    %cst_370 = arith.constant dense<0.000000e+00> : vector<16x32xf32>
    %1098 = tpu.matmul %1097, %1, %cst_370 {dimension_numbers = #tpu.dot_dimension_numbers<[1], [0], [0], [1], [0, 0, 1, 1], [], []>} : vector<16x32xbf16>, vector<32x32xbf16>, vector<16x32xf32> -> vector<16x32xf32>
    %cst_371 = arith.constant 2.500000e-02 : f32
    %1099 = vector.broadcast %cst_371 : f32 to vector<16x32xf32>
    %1100 = arith.mulf %1099, %1098 : vector<16x32xf32>
    %1101 = arith.addf %1080, %1100 : vector<16x32xf32>
    %cst_372 = arith.constant 0.000000e+00 : f32
    %1102 = vector.broadcast %cst_372 : f32 to vector<16x32xf32>
    %1103 = arith.cmpf ogt, %1101, %1102 : vector<16x32xf32>
    %1104 = math.exp %1101 : vector<16x32xf32>
    %cst_373 = arith.constant 1.000000e+00 : f32
    %1105 = vector.broadcast %cst_373 : f32 to vector<16x32xf32>
    %1106 = arith.subf %1104, %1105 : vector<16x32xf32>
    %1107 = arith.select %1103, %1101, %1106 : vector<16x32xi1>, vector<16x32xf32>
    %1108 = arith.truncf %1107 : vector<16x32xf32> to vector<16x32xbf16>
    %cst_374 = arith.constant dense<0.000000e+00> : vector<16x32xf32>
    %1109 = tpu.matmul %1108, %0, %cst_374 {dimension_numbers = #tpu.dot_dimension_numbers<[1], [0], [0], [1], [0, 0, 1, 1], [], []>} : vector<16x32xbf16>, vector<32x32xbf16>, vector<16x32xf32> -> vector<16x32xf32>
    %1110 = arith.addf %1109, %4 : vector<16x32xf32>
    %cst_375 = arith.constant 0.000000e+00 : f32
    %1111 = vector.broadcast %cst_375 : f32 to vector<16x32xf32>
    %1112 = arith.cmpf ogt, %1110, %1111 : vector<16x32xf32>
    %1113 = math.exp %1110 : vector<16x32xf32>
    %cst_376 = arith.constant 1.000000e+00 : f32
    %1114 = vector.broadcast %cst_376 : f32 to vector<16x32xf32>
    %1115 = arith.subf %1113, %1114 : vector<16x32xf32>
    %1116 = arith.select %1112, %1110, %1115 : vector<16x32xi1>, vector<16x32xf32>
    %1117 = arith.truncf %1116 : vector<16x32xf32> to vector<16x32xbf16>
    %cst_377 = arith.constant dense<0.000000e+00> : vector<16x32xf32>
    %1118 = tpu.matmul %1117, %1, %cst_377 {dimension_numbers = #tpu.dot_dimension_numbers<[1], [0], [0], [1], [0, 0, 1, 1], [], []>} : vector<16x32xbf16>, vector<32x32xbf16>, vector<16x32xf32> -> vector<16x32xf32>
    %cst_378 = arith.constant 2.500000e-02 : f32
    %1119 = vector.broadcast %cst_378 : f32 to vector<16x32xf32>
    %1120 = arith.mulf %1119, %1118 : vector<16x32xf32>
    %1121 = arith.addf %1080, %1120 : vector<16x32xf32>
    %cst_379 = arith.constant 0.000000e+00 : f32
    %1122 = vector.broadcast %cst_379 : f32 to vector<16x32xf32>
    %1123 = arith.cmpf ogt, %1121, %1122 : vector<16x32xf32>
    %1124 = math.exp %1121 : vector<16x32xf32>
    %cst_380 = arith.constant 1.000000e+00 : f32
    %1125 = vector.broadcast %cst_380 : f32 to vector<16x32xf32>
    %1126 = arith.subf %1124, %1125 : vector<16x32xf32>
    %1127 = arith.select %1123, %1121, %1126 : vector<16x32xi1>, vector<16x32xf32>
    %1128 = arith.truncf %1127 : vector<16x32xf32> to vector<16x32xbf16>
    %cst_381 = arith.constant dense<0.000000e+00> : vector<16x32xf32>
    %1129 = tpu.matmul %1128, %0, %cst_381 {dimension_numbers = #tpu.dot_dimension_numbers<[1], [0], [0], [1], [0, 0, 1, 1], [], []>} : vector<16x32xbf16>, vector<32x32xbf16>, vector<16x32xf32> -> vector<16x32xf32>
    %1130 = arith.addf %1129, %4 : vector<16x32xf32>
    %cst_382 = arith.constant 0.000000e+00 : f32
    %1131 = vector.broadcast %cst_382 : f32 to vector<16x32xf32>
    %1132 = arith.cmpf ogt, %1130, %1131 : vector<16x32xf32>
    %1133 = math.exp %1130 : vector<16x32xf32>
    %cst_383 = arith.constant 1.000000e+00 : f32
    %1134 = vector.broadcast %cst_383 : f32 to vector<16x32xf32>
    %1135 = arith.subf %1133, %1134 : vector<16x32xf32>
    %1136 = arith.select %1132, %1130, %1135 : vector<16x32xi1>, vector<16x32xf32>
    %1137 = arith.truncf %1136 : vector<16x32xf32> to vector<16x32xbf16>
    %cst_384 = arith.constant dense<0.000000e+00> : vector<16x32xf32>
    %1138 = tpu.matmul %1137, %1, %cst_384 {dimension_numbers = #tpu.dot_dimension_numbers<[1], [0], [0], [1], [0, 0, 1, 1], [], []>} : vector<16x32xbf16>, vector<32x32xbf16>, vector<16x32xf32> -> vector<16x32xf32>
    %cst_385 = arith.constant 5.000000e-02 : f32
    %1139 = vector.broadcast %cst_385 : f32 to vector<16x32xf32>
    %1140 = arith.mulf %1139, %1138 : vector<16x32xf32>
    %1141 = arith.addf %1081, %1140 : vector<16x32xf32>
    %cst_386 = arith.constant 0.000000e+00 : f32
    %1142 = vector.broadcast %cst_386 : f32 to vector<16x32xf32>
    %1143 = arith.cmpf ogt, %1141, %1142 : vector<16x32xf32>
    %1144 = math.exp %1141 : vector<16x32xf32>
    %cst_387 = arith.constant 1.000000e+00 : f32
    %1145 = vector.broadcast %cst_387 : f32 to vector<16x32xf32>
    %1146 = arith.subf %1144, %1145 : vector<16x32xf32>
    %1147 = arith.select %1143, %1141, %1146 : vector<16x32xi1>, vector<16x32xf32>
    %1148 = arith.truncf %1147 : vector<16x32xf32> to vector<16x32xbf16>
    %cst_388 = arith.constant dense<0.000000e+00> : vector<16x32xf32>
    %1149 = tpu.matmul %1148, %0, %cst_388 {dimension_numbers = #tpu.dot_dimension_numbers<[1], [0], [0], [1], [0, 0, 1, 1], [], []>} : vector<16x32xbf16>, vector<32x32xbf16>, vector<16x32xf32> -> vector<16x32xf32>
    %1150 = arith.addf %1149, %4 : vector<16x32xf32>
    %cst_389 = arith.constant 0.000000e+00 : f32
    %1151 = vector.broadcast %cst_389 : f32 to vector<16x32xf32>
    %1152 = arith.cmpf ogt, %1150, %1151 : vector<16x32xf32>
    %1153 = math.exp %1150 : vector<16x32xf32>
    %cst_390 = arith.constant 1.000000e+00 : f32
    %1154 = vector.broadcast %cst_390 : f32 to vector<16x32xf32>
    %1155 = arith.subf %1153, %1154 : vector<16x32xf32>
    %1156 = arith.select %1152, %1150, %1155 : vector<16x32xi1>, vector<16x32xf32>
    %1157 = arith.truncf %1156 : vector<16x32xf32> to vector<16x32xbf16>
    %cst_391 = arith.constant dense<0.000000e+00> : vector<16x32xf32>
    %1158 = tpu.matmul %1157, %1, %cst_391 {dimension_numbers = #tpu.dot_dimension_numbers<[1], [0], [0], [1], [0, 0, 1, 1], [], []>} : vector<16x32xbf16>, vector<32x32xbf16>, vector<16x32xf32> -> vector<16x32xf32>
    %1159 = arith.addf %1118, %1138 : vector<16x32xf32>
    %cst_392 = arith.constant 2.000000e+00 : f32
    %1160 = vector.broadcast %cst_392 : f32 to vector<16x32xf32>
    %1161 = arith.mulf %1160, %1159 : vector<16x32xf32>
    %1162 = arith.addf %1098, %1161 : vector<16x32xf32>
    %cst_393 = arith.constant 0.00833333377 : f32
    %1163 = vector.broadcast %cst_393 : f32 to vector<16x32xf32>
    %1164 = arith.mulf %1163, %1162 : vector<16x32xf32>
    %1165 = arith.addf %1081, %1164 : vector<16x32xf32>
    %cst_394 = arith.constant 0.00833333377 : f32
    %1166 = vector.broadcast %cst_394 : f32 to vector<16x32xf32>
    %1167 = arith.mulf %1166, %1158 : vector<16x32xf32>
    %1168 = arith.addf %1165, %1167 : vector<16x32xf32>
    %1169 = arith.addf %1096, %1156 : vector<16x32xf32>
    %1170 = arith.addf %1116, %1136 : vector<16x32xf32>
    %cst_395 = arith.constant 2.000000e+00 : f32
    %1171 = vector.broadcast %cst_395 : f32 to vector<16x32xf32>
    %1172 = arith.mulf %1171, %1170 : vector<16x32xf32>
    %1173 = arith.addf %1169, %1172 : vector<16x32xf32>
    %cst_396 = arith.constant 0.00833333377 : f32
    %1174 = vector.broadcast %cst_396 : f32 to vector<16x32xf32>
    %1175 = arith.mulf %1174, %1173 : vector<16x32xf32>
    %1176 = arith.addf %1079, %1175 : vector<16x32xf32>
    %c12_i32 = arith.constant 12 : i32
    %1177 = arith.addf %1168, %9 : vector<16x32xf32>
    %1178 = arith.addf %1168, %11 : vector<16x32xf32>
    %cst_397 = arith.constant 0.000000e+00 : f32
    %1179 = vector.broadcast %cst_397 : f32 to vector<16x32xf32>
    %1180 = arith.cmpf ogt, %1168, %1179 : vector<16x32xf32>
    %1181 = math.exp %1168 : vector<16x32xf32>
    %cst_398 = arith.constant 1.000000e+00 : f32
    %1182 = vector.broadcast %cst_398 : f32 to vector<16x32xf32>
    %1183 = arith.subf %1181, %1182 : vector<16x32xf32>
    %1184 = arith.select %1180, %1168, %1183 : vector<16x32xi1>, vector<16x32xf32>
    %1185 = arith.truncf %1184 : vector<16x32xf32> to vector<16x32xbf16>
    %cst_399 = arith.constant dense<0.000000e+00> : vector<16x32xf32>
    %1186 = tpu.matmul %1185, %0, %cst_399 {dimension_numbers = #tpu.dot_dimension_numbers<[1], [0], [0], [1], [0, 0, 1, 1], [], []>} : vector<16x32xbf16>, vector<32x32xbf16>, vector<16x32xf32> -> vector<16x32xf32>
    %1187 = arith.addf %1186, %4 : vector<16x32xf32>
    %cst_400 = arith.constant 0.000000e+00 : f32
    %1188 = vector.broadcast %cst_400 : f32 to vector<16x32xf32>
    %1189 = arith.cmpf ogt, %1187, %1188 : vector<16x32xf32>
    %1190 = math.exp %1187 : vector<16x32xf32>
    %cst_401 = arith.constant 1.000000e+00 : f32
    %1191 = vector.broadcast %cst_401 : f32 to vector<16x32xf32>
    %1192 = arith.subf %1190, %1191 : vector<16x32xf32>
    %1193 = arith.select %1189, %1187, %1192 : vector<16x32xi1>, vector<16x32xf32>
    %1194 = arith.truncf %1193 : vector<16x32xf32> to vector<16x32xbf16>
    %cst_402 = arith.constant dense<0.000000e+00> : vector<16x32xf32>
    %1195 = tpu.matmul %1194, %1, %cst_402 {dimension_numbers = #tpu.dot_dimension_numbers<[1], [0], [0], [1], [0, 0, 1, 1], [], []>} : vector<16x32xbf16>, vector<32x32xbf16>, vector<16x32xf32> -> vector<16x32xf32>
    %cst_403 = arith.constant 2.500000e-02 : f32
    %1196 = vector.broadcast %cst_403 : f32 to vector<16x32xf32>
    %1197 = arith.mulf %1196, %1195 : vector<16x32xf32>
    %1198 = arith.addf %1177, %1197 : vector<16x32xf32>
    %cst_404 = arith.constant 0.000000e+00 : f32
    %1199 = vector.broadcast %cst_404 : f32 to vector<16x32xf32>
    %1200 = arith.cmpf ogt, %1198, %1199 : vector<16x32xf32>
    %1201 = math.exp %1198 : vector<16x32xf32>
    %cst_405 = arith.constant 1.000000e+00 : f32
    %1202 = vector.broadcast %cst_405 : f32 to vector<16x32xf32>
    %1203 = arith.subf %1201, %1202 : vector<16x32xf32>
    %1204 = arith.select %1200, %1198, %1203 : vector<16x32xi1>, vector<16x32xf32>
    %1205 = arith.truncf %1204 : vector<16x32xf32> to vector<16x32xbf16>
    %cst_406 = arith.constant dense<0.000000e+00> : vector<16x32xf32>
    %1206 = tpu.matmul %1205, %0, %cst_406 {dimension_numbers = #tpu.dot_dimension_numbers<[1], [0], [0], [1], [0, 0, 1, 1], [], []>} : vector<16x32xbf16>, vector<32x32xbf16>, vector<16x32xf32> -> vector<16x32xf32>
    %1207 = arith.addf %1206, %4 : vector<16x32xf32>
    %cst_407 = arith.constant 0.000000e+00 : f32
    %1208 = vector.broadcast %cst_407 : f32 to vector<16x32xf32>
    %1209 = arith.cmpf ogt, %1207, %1208 : vector<16x32xf32>
    %1210 = math.exp %1207 : vector<16x32xf32>
    %cst_408 = arith.constant 1.000000e+00 : f32
    %1211 = vector.broadcast %cst_408 : f32 to vector<16x32xf32>
    %1212 = arith.subf %1210, %1211 : vector<16x32xf32>
    %1213 = arith.select %1209, %1207, %1212 : vector<16x32xi1>, vector<16x32xf32>
    %1214 = arith.truncf %1213 : vector<16x32xf32> to vector<16x32xbf16>
    %cst_409 = arith.constant dense<0.000000e+00> : vector<16x32xf32>
    %1215 = tpu.matmul %1214, %1, %cst_409 {dimension_numbers = #tpu.dot_dimension_numbers<[1], [0], [0], [1], [0, 0, 1, 1], [], []>} : vector<16x32xbf16>, vector<32x32xbf16>, vector<16x32xf32> -> vector<16x32xf32>
    %cst_410 = arith.constant 2.500000e-02 : f32
    %1216 = vector.broadcast %cst_410 : f32 to vector<16x32xf32>
    %1217 = arith.mulf %1216, %1215 : vector<16x32xf32>
    %1218 = arith.addf %1177, %1217 : vector<16x32xf32>
    %cst_411 = arith.constant 0.000000e+00 : f32
    %1219 = vector.broadcast %cst_411 : f32 to vector<16x32xf32>
    %1220 = arith.cmpf ogt, %1218, %1219 : vector<16x32xf32>
    %1221 = math.exp %1218 : vector<16x32xf32>
    %cst_412 = arith.constant 1.000000e+00 : f32
    %1222 = vector.broadcast %cst_412 : f32 to vector<16x32xf32>
    %1223 = arith.subf %1221, %1222 : vector<16x32xf32>
    %1224 = arith.select %1220, %1218, %1223 : vector<16x32xi1>, vector<16x32xf32>
    %1225 = arith.truncf %1224 : vector<16x32xf32> to vector<16x32xbf16>
    %cst_413 = arith.constant dense<0.000000e+00> : vector<16x32xf32>
    %1226 = tpu.matmul %1225, %0, %cst_413 {dimension_numbers = #tpu.dot_dimension_numbers<[1], [0], [0], [1], [0, 0, 1, 1], [], []>} : vector<16x32xbf16>, vector<32x32xbf16>, vector<16x32xf32> -> vector<16x32xf32>
    %1227 = arith.addf %1226, %4 : vector<16x32xf32>
    %cst_414 = arith.constant 0.000000e+00 : f32
    %1228 = vector.broadcast %cst_414 : f32 to vector<16x32xf32>
    %1229 = arith.cmpf ogt, %1227, %1228 : vector<16x32xf32>
    %1230 = math.exp %1227 : vector<16x32xf32>
    %cst_415 = arith.constant 1.000000e+00 : f32
    %1231 = vector.broadcast %cst_415 : f32 to vector<16x32xf32>
    %1232 = arith.subf %1230, %1231 : vector<16x32xf32>
    %1233 = arith.select %1229, %1227, %1232 : vector<16x32xi1>, vector<16x32xf32>
    %1234 = arith.truncf %1233 : vector<16x32xf32> to vector<16x32xbf16>
    %cst_416 = arith.constant dense<0.000000e+00> : vector<16x32xf32>
    %1235 = tpu.matmul %1234, %1, %cst_416 {dimension_numbers = #tpu.dot_dimension_numbers<[1], [0], [0], [1], [0, 0, 1, 1], [], []>} : vector<16x32xbf16>, vector<32x32xbf16>, vector<16x32xf32> -> vector<16x32xf32>
    %cst_417 = arith.constant 5.000000e-02 : f32
    %1236 = vector.broadcast %cst_417 : f32 to vector<16x32xf32>
    %1237 = arith.mulf %1236, %1235 : vector<16x32xf32>
    %1238 = arith.addf %1178, %1237 : vector<16x32xf32>
    %cst_418 = arith.constant 0.000000e+00 : f32
    %1239 = vector.broadcast %cst_418 : f32 to vector<16x32xf32>
    %1240 = arith.cmpf ogt, %1238, %1239 : vector<16x32xf32>
    %1241 = math.exp %1238 : vector<16x32xf32>
    %cst_419 = arith.constant 1.000000e+00 : f32
    %1242 = vector.broadcast %cst_419 : f32 to vector<16x32xf32>
    %1243 = arith.subf %1241, %1242 : vector<16x32xf32>
    %1244 = arith.select %1240, %1238, %1243 : vector<16x32xi1>, vector<16x32xf32>
    %1245 = arith.truncf %1244 : vector<16x32xf32> to vector<16x32xbf16>
    %cst_420 = arith.constant dense<0.000000e+00> : vector<16x32xf32>
    %1246 = tpu.matmul %1245, %0, %cst_420 {dimension_numbers = #tpu.dot_dimension_numbers<[1], [0], [0], [1], [0, 0, 1, 1], [], []>} : vector<16x32xbf16>, vector<32x32xbf16>, vector<16x32xf32> -> vector<16x32xf32>
    %1247 = arith.addf %1246, %4 : vector<16x32xf32>
    %cst_421 = arith.constant 0.000000e+00 : f32
    %1248 = vector.broadcast %cst_421 : f32 to vector<16x32xf32>
    %1249 = arith.cmpf ogt, %1247, %1248 : vector<16x32xf32>
    %1250 = math.exp %1247 : vector<16x32xf32>
    %cst_422 = arith.constant 1.000000e+00 : f32
    %1251 = vector.broadcast %cst_422 : f32 to vector<16x32xf32>
    %1252 = arith.subf %1250, %1251 : vector<16x32xf32>
    %1253 = arith.select %1249, %1247, %1252 : vector<16x32xi1>, vector<16x32xf32>
    %1254 = arith.truncf %1253 : vector<16x32xf32> to vector<16x32xbf16>
    %cst_423 = arith.constant dense<0.000000e+00> : vector<16x32xf32>
    %1255 = tpu.matmul %1254, %1, %cst_423 {dimension_numbers = #tpu.dot_dimension_numbers<[1], [0], [0], [1], [0, 0, 1, 1], [], []>} : vector<16x32xbf16>, vector<32x32xbf16>, vector<16x32xf32> -> vector<16x32xf32>
    %1256 = arith.addf %1215, %1235 : vector<16x32xf32>
    %cst_424 = arith.constant 2.000000e+00 : f32
    %1257 = vector.broadcast %cst_424 : f32 to vector<16x32xf32>
    %1258 = arith.mulf %1257, %1256 : vector<16x32xf32>
    %1259 = arith.addf %1195, %1258 : vector<16x32xf32>
    %cst_425 = arith.constant 0.00833333377 : f32
    %1260 = vector.broadcast %cst_425 : f32 to vector<16x32xf32>
    %1261 = arith.mulf %1260, %1259 : vector<16x32xf32>
    %1262 = arith.addf %1178, %1261 : vector<16x32xf32>
    %cst_426 = arith.constant 0.00833333377 : f32
    %1263 = vector.broadcast %cst_426 : f32 to vector<16x32xf32>
    %1264 = arith.mulf %1263, %1255 : vector<16x32xf32>
    %1265 = arith.addf %1262, %1264 : vector<16x32xf32>
    %1266 = arith.addf %1193, %1253 : vector<16x32xf32>
    %1267 = arith.addf %1213, %1233 : vector<16x32xf32>
    %cst_427 = arith.constant 2.000000e+00 : f32
    %1268 = vector.broadcast %cst_427 : f32 to vector<16x32xf32>
    %1269 = arith.mulf %1268, %1267 : vector<16x32xf32>
    %1270 = arith.addf %1266, %1269 : vector<16x32xf32>
    %cst_428 = arith.constant 0.00833333377 : f32
    %1271 = vector.broadcast %cst_428 : f32 to vector<16x32xf32>
    %1272 = arith.mulf %1271, %1270 : vector<16x32xf32>
    %1273 = arith.addf %1176, %1272 : vector<16x32xf32>
    %c13_i32 = arith.constant 13 : i32
    %1274 = arith.addf %1265, %9 : vector<16x32xf32>
    %1275 = arith.addf %1265, %11 : vector<16x32xf32>
    %cst_429 = arith.constant 0.000000e+00 : f32
    %1276 = vector.broadcast %cst_429 : f32 to vector<16x32xf32>
    %1277 = arith.cmpf ogt, %1265, %1276 : vector<16x32xf32>
    %1278 = math.exp %1265 : vector<16x32xf32>
    %cst_430 = arith.constant 1.000000e+00 : f32
    %1279 = vector.broadcast %cst_430 : f32 to vector<16x32xf32>
    %1280 = arith.subf %1278, %1279 : vector<16x32xf32>
    %1281 = arith.select %1277, %1265, %1280 : vector<16x32xi1>, vector<16x32xf32>
    %1282 = arith.truncf %1281 : vector<16x32xf32> to vector<16x32xbf16>
    %cst_431 = arith.constant dense<0.000000e+00> : vector<16x32xf32>
    %1283 = tpu.matmul %1282, %0, %cst_431 {dimension_numbers = #tpu.dot_dimension_numbers<[1], [0], [0], [1], [0, 0, 1, 1], [], []>} : vector<16x32xbf16>, vector<32x32xbf16>, vector<16x32xf32> -> vector<16x32xf32>
    %1284 = arith.addf %1283, %4 : vector<16x32xf32>
    %cst_432 = arith.constant 0.000000e+00 : f32
    %1285 = vector.broadcast %cst_432 : f32 to vector<16x32xf32>
    %1286 = arith.cmpf ogt, %1284, %1285 : vector<16x32xf32>
    %1287 = math.exp %1284 : vector<16x32xf32>
    %cst_433 = arith.constant 1.000000e+00 : f32
    %1288 = vector.broadcast %cst_433 : f32 to vector<16x32xf32>
    %1289 = arith.subf %1287, %1288 : vector<16x32xf32>
    %1290 = arith.select %1286, %1284, %1289 : vector<16x32xi1>, vector<16x32xf32>
    %1291 = arith.truncf %1290 : vector<16x32xf32> to vector<16x32xbf16>
    %cst_434 = arith.constant dense<0.000000e+00> : vector<16x32xf32>
    %1292 = tpu.matmul %1291, %1, %cst_434 {dimension_numbers = #tpu.dot_dimension_numbers<[1], [0], [0], [1], [0, 0, 1, 1], [], []>} : vector<16x32xbf16>, vector<32x32xbf16>, vector<16x32xf32> -> vector<16x32xf32>
    %cst_435 = arith.constant 2.500000e-02 : f32
    %1293 = vector.broadcast %cst_435 : f32 to vector<16x32xf32>
    %1294 = arith.mulf %1293, %1292 : vector<16x32xf32>
    %1295 = arith.addf %1274, %1294 : vector<16x32xf32>
    %cst_436 = arith.constant 0.000000e+00 : f32
    %1296 = vector.broadcast %cst_436 : f32 to vector<16x32xf32>
    %1297 = arith.cmpf ogt, %1295, %1296 : vector<16x32xf32>
    %1298 = math.exp %1295 : vector<16x32xf32>
    %cst_437 = arith.constant 1.000000e+00 : f32
    %1299 = vector.broadcast %cst_437 : f32 to vector<16x32xf32>
    %1300 = arith.subf %1298, %1299 : vector<16x32xf32>
    %1301 = arith.select %1297, %1295, %1300 : vector<16x32xi1>, vector<16x32xf32>
    %1302 = arith.truncf %1301 : vector<16x32xf32> to vector<16x32xbf16>
    %cst_438 = arith.constant dense<0.000000e+00> : vector<16x32xf32>
    %1303 = tpu.matmul %1302, %0, %cst_438 {dimension_numbers = #tpu.dot_dimension_numbers<[1], [0], [0], [1], [0, 0, 1, 1], [], []>} : vector<16x32xbf16>, vector<32x32xbf16>, vector<16x32xf32> -> vector<16x32xf32>
    %1304 = arith.addf %1303, %4 : vector<16x32xf32>
    %cst_439 = arith.constant 0.000000e+00 : f32
    %1305 = vector.broadcast %cst_439 : f32 to vector<16x32xf32>
    %1306 = arith.cmpf ogt, %1304, %1305 : vector<16x32xf32>
    %1307 = math.exp %1304 : vector<16x32xf32>
    %cst_440 = arith.constant 1.000000e+00 : f32
    %1308 = vector.broadcast %cst_440 : f32 to vector<16x32xf32>
    %1309 = arith.subf %1307, %1308 : vector<16x32xf32>
    %1310 = arith.select %1306, %1304, %1309 : vector<16x32xi1>, vector<16x32xf32>
    %1311 = arith.truncf %1310 : vector<16x32xf32> to vector<16x32xbf16>
    %cst_441 = arith.constant dense<0.000000e+00> : vector<16x32xf32>
    %1312 = tpu.matmul %1311, %1, %cst_441 {dimension_numbers = #tpu.dot_dimension_numbers<[1], [0], [0], [1], [0, 0, 1, 1], [], []>} : vector<16x32xbf16>, vector<32x32xbf16>, vector<16x32xf32> -> vector<16x32xf32>
    %cst_442 = arith.constant 2.500000e-02 : f32
    %1313 = vector.broadcast %cst_442 : f32 to vector<16x32xf32>
    %1314 = arith.mulf %1313, %1312 : vector<16x32xf32>
    %1315 = arith.addf %1274, %1314 : vector<16x32xf32>
    %cst_443 = arith.constant 0.000000e+00 : f32
    %1316 = vector.broadcast %cst_443 : f32 to vector<16x32xf32>
    %1317 = arith.cmpf ogt, %1315, %1316 : vector<16x32xf32>
    %1318 = math.exp %1315 : vector<16x32xf32>
    %cst_444 = arith.constant 1.000000e+00 : f32
    %1319 = vector.broadcast %cst_444 : f32 to vector<16x32xf32>
    %1320 = arith.subf %1318, %1319 : vector<16x32xf32>
    %1321 = arith.select %1317, %1315, %1320 : vector<16x32xi1>, vector<16x32xf32>
    %1322 = arith.truncf %1321 : vector<16x32xf32> to vector<16x32xbf16>
    %cst_445 = arith.constant dense<0.000000e+00> : vector<16x32xf32>
    %1323 = tpu.matmul %1322, %0, %cst_445 {dimension_numbers = #tpu.dot_dimension_numbers<[1], [0], [0], [1], [0, 0, 1, 1], [], []>} : vector<16x32xbf16>, vector<32x32xbf16>, vector<16x32xf32> -> vector<16x32xf32>
    %1324 = arith.addf %1323, %4 : vector<16x32xf32>
    %cst_446 = arith.constant 0.000000e+00 : f32
    %1325 = vector.broadcast %cst_446 : f32 to vector<16x32xf32>
    %1326 = arith.cmpf ogt, %1324, %1325 : vector<16x32xf32>
    %1327 = math.exp %1324 : vector<16x32xf32>
    %cst_447 = arith.constant 1.000000e+00 : f32
    %1328 = vector.broadcast %cst_447 : f32 to vector<16x32xf32>
    %1329 = arith.subf %1327, %1328 : vector<16x32xf32>
    %1330 = arith.select %1326, %1324, %1329 : vector<16x32xi1>, vector<16x32xf32>
    %1331 = arith.truncf %1330 : vector<16x32xf32> to vector<16x32xbf16>
    %cst_448 = arith.constant dense<0.000000e+00> : vector<16x32xf32>
    %1332 = tpu.matmul %1331, %1, %cst_448 {dimension_numbers = #tpu.dot_dimension_numbers<[1], [0], [0], [1], [0, 0, 1, 1], [], []>} : vector<16x32xbf16>, vector<32x32xbf16>, vector<16x32xf32> -> vector<16x32xf32>
    %cst_449 = arith.constant 5.000000e-02 : f32
    %1333 = vector.broadcast %cst_449 : f32 to vector<16x32xf32>
    %1334 = arith.mulf %1333, %1332 : vector<16x32xf32>
    %1335 = arith.addf %1275, %1334 : vector<16x32xf32>
    %cst_450 = arith.constant 0.000000e+00 : f32
    %1336 = vector.broadcast %cst_450 : f32 to vector<16x32xf32>
    %1337 = arith.cmpf ogt, %1335, %1336 : vector<16x32xf32>
    %1338 = math.exp %1335 : vector<16x32xf32>
    %cst_451 = arith.constant 1.000000e+00 : f32
    %1339 = vector.broadcast %cst_451 : f32 to vector<16x32xf32>
    %1340 = arith.subf %1338, %1339 : vector<16x32xf32>
    %1341 = arith.select %1337, %1335, %1340 : vector<16x32xi1>, vector<16x32xf32>
    %1342 = arith.truncf %1341 : vector<16x32xf32> to vector<16x32xbf16>
    %cst_452 = arith.constant dense<0.000000e+00> : vector<16x32xf32>
    %1343 = tpu.matmul %1342, %0, %cst_452 {dimension_numbers = #tpu.dot_dimension_numbers<[1], [0], [0], [1], [0, 0, 1, 1], [], []>} : vector<16x32xbf16>, vector<32x32xbf16>, vector<16x32xf32> -> vector<16x32xf32>
    %1344 = arith.addf %1343, %4 : vector<16x32xf32>
    %cst_453 = arith.constant 0.000000e+00 : f32
    %1345 = vector.broadcast %cst_453 : f32 to vector<16x32xf32>
    %1346 = arith.cmpf ogt, %1344, %1345 : vector<16x32xf32>
    %1347 = math.exp %1344 : vector<16x32xf32>
    %cst_454 = arith.constant 1.000000e+00 : f32
    %1348 = vector.broadcast %cst_454 : f32 to vector<16x32xf32>
    %1349 = arith.subf %1347, %1348 : vector<16x32xf32>
    %1350 = arith.select %1346, %1344, %1349 : vector<16x32xi1>, vector<16x32xf32>
    %1351 = arith.truncf %1350 : vector<16x32xf32> to vector<16x32xbf16>
    %cst_455 = arith.constant dense<0.000000e+00> : vector<16x32xf32>
    %1352 = tpu.matmul %1351, %1, %cst_455 {dimension_numbers = #tpu.dot_dimension_numbers<[1], [0], [0], [1], [0, 0, 1, 1], [], []>} : vector<16x32xbf16>, vector<32x32xbf16>, vector<16x32xf32> -> vector<16x32xf32>
    %1353 = arith.addf %1312, %1332 : vector<16x32xf32>
    %cst_456 = arith.constant 2.000000e+00 : f32
    %1354 = vector.broadcast %cst_456 : f32 to vector<16x32xf32>
    %1355 = arith.mulf %1354, %1353 : vector<16x32xf32>
    %1356 = arith.addf %1292, %1355 : vector<16x32xf32>
    %cst_457 = arith.constant 0.00833333377 : f32
    %1357 = vector.broadcast %cst_457 : f32 to vector<16x32xf32>
    %1358 = arith.mulf %1357, %1356 : vector<16x32xf32>
    %1359 = arith.addf %1275, %1358 : vector<16x32xf32>
    %cst_458 = arith.constant 0.00833333377 : f32
    %1360 = vector.broadcast %cst_458 : f32 to vector<16x32xf32>
    %1361 = arith.mulf %1360, %1352 : vector<16x32xf32>
    %1362 = arith.addf %1359, %1361 : vector<16x32xf32>
    %1363 = arith.addf %1290, %1350 : vector<16x32xf32>
    %1364 = arith.addf %1310, %1330 : vector<16x32xf32>
    %cst_459 = arith.constant 2.000000e+00 : f32
    %1365 = vector.broadcast %cst_459 : f32 to vector<16x32xf32>
    %1366 = arith.mulf %1365, %1364 : vector<16x32xf32>
    %1367 = arith.addf %1363, %1366 : vector<16x32xf32>
    %cst_460 = arith.constant 0.00833333377 : f32
    %1368 = vector.broadcast %cst_460 : f32 to vector<16x32xf32>
    %1369 = arith.mulf %1368, %1367 : vector<16x32xf32>
    %1370 = arith.addf %1273, %1369 : vector<16x32xf32>
    %c14_i32 = arith.constant 14 : i32
    %1371 = arith.addf %1362, %9 : vector<16x32xf32>
    %1372 = arith.addf %1362, %11 : vector<16x32xf32>
    %cst_461 = arith.constant 0.000000e+00 : f32
    %1373 = vector.broadcast %cst_461 : f32 to vector<16x32xf32>
    %1374 = arith.cmpf ogt, %1362, %1373 : vector<16x32xf32>
    %1375 = math.exp %1362 : vector<16x32xf32>
    %cst_462 = arith.constant 1.000000e+00 : f32
    %1376 = vector.broadcast %cst_462 : f32 to vector<16x32xf32>
    %1377 = arith.subf %1375, %1376 : vector<16x32xf32>
    %1378 = arith.select %1374, %1362, %1377 : vector<16x32xi1>, vector<16x32xf32>
    %1379 = arith.truncf %1378 : vector<16x32xf32> to vector<16x32xbf16>
    %cst_463 = arith.constant dense<0.000000e+00> : vector<16x32xf32>
    %1380 = tpu.matmul %1379, %0, %cst_463 {dimension_numbers = #tpu.dot_dimension_numbers<[1], [0], [0], [1], [0, 0, 1, 1], [], []>} : vector<16x32xbf16>, vector<32x32xbf16>, vector<16x32xf32> -> vector<16x32xf32>
    %1381 = arith.addf %1380, %4 : vector<16x32xf32>
    %cst_464 = arith.constant 0.000000e+00 : f32
    %1382 = vector.broadcast %cst_464 : f32 to vector<16x32xf32>
    %1383 = arith.cmpf ogt, %1381, %1382 : vector<16x32xf32>
    %1384 = math.exp %1381 : vector<16x32xf32>
    %cst_465 = arith.constant 1.000000e+00 : f32
    %1385 = vector.broadcast %cst_465 : f32 to vector<16x32xf32>
    %1386 = arith.subf %1384, %1385 : vector<16x32xf32>
    %1387 = arith.select %1383, %1381, %1386 : vector<16x32xi1>, vector<16x32xf32>
    %1388 = arith.truncf %1387 : vector<16x32xf32> to vector<16x32xbf16>
    %cst_466 = arith.constant dense<0.000000e+00> : vector<16x32xf32>
    %1389 = tpu.matmul %1388, %1, %cst_466 {dimension_numbers = #tpu.dot_dimension_numbers<[1], [0], [0], [1], [0, 0, 1, 1], [], []>} : vector<16x32xbf16>, vector<32x32xbf16>, vector<16x32xf32> -> vector<16x32xf32>
    %cst_467 = arith.constant 2.500000e-02 : f32
    %1390 = vector.broadcast %cst_467 : f32 to vector<16x32xf32>
    %1391 = arith.mulf %1390, %1389 : vector<16x32xf32>
    %1392 = arith.addf %1371, %1391 : vector<16x32xf32>
    %cst_468 = arith.constant 0.000000e+00 : f32
    %1393 = vector.broadcast %cst_468 : f32 to vector<16x32xf32>
    %1394 = arith.cmpf ogt, %1392, %1393 : vector<16x32xf32>
    %1395 = math.exp %1392 : vector<16x32xf32>
    %cst_469 = arith.constant 1.000000e+00 : f32
    %1396 = vector.broadcast %cst_469 : f32 to vector<16x32xf32>
    %1397 = arith.subf %1395, %1396 : vector<16x32xf32>
    %1398 = arith.select %1394, %1392, %1397 : vector<16x32xi1>, vector<16x32xf32>
    %1399 = arith.truncf %1398 : vector<16x32xf32> to vector<16x32xbf16>
    %cst_470 = arith.constant dense<0.000000e+00> : vector<16x32xf32>
    %1400 = tpu.matmul %1399, %0, %cst_470 {dimension_numbers = #tpu.dot_dimension_numbers<[1], [0], [0], [1], [0, 0, 1, 1], [], []>} : vector<16x32xbf16>, vector<32x32xbf16>, vector<16x32xf32> -> vector<16x32xf32>
    %1401 = arith.addf %1400, %4 : vector<16x32xf32>
    %cst_471 = arith.constant 0.000000e+00 : f32
    %1402 = vector.broadcast %cst_471 : f32 to vector<16x32xf32>
    %1403 = arith.cmpf ogt, %1401, %1402 : vector<16x32xf32>
    %1404 = math.exp %1401 : vector<16x32xf32>
    %cst_472 = arith.constant 1.000000e+00 : f32
    %1405 = vector.broadcast %cst_472 : f32 to vector<16x32xf32>
    %1406 = arith.subf %1404, %1405 : vector<16x32xf32>
    %1407 = arith.select %1403, %1401, %1406 : vector<16x32xi1>, vector<16x32xf32>
    %1408 = arith.truncf %1407 : vector<16x32xf32> to vector<16x32xbf16>
    %cst_473 = arith.constant dense<0.000000e+00> : vector<16x32xf32>
    %1409 = tpu.matmul %1408, %1, %cst_473 {dimension_numbers = #tpu.dot_dimension_numbers<[1], [0], [0], [1], [0, 0, 1, 1], [], []>} : vector<16x32xbf16>, vector<32x32xbf16>, vector<16x32xf32> -> vector<16x32xf32>
    %cst_474 = arith.constant 2.500000e-02 : f32
    %1410 = vector.broadcast %cst_474 : f32 to vector<16x32xf32>
    %1411 = arith.mulf %1410, %1409 : vector<16x32xf32>
    %1412 = arith.addf %1371, %1411 : vector<16x32xf32>
    %cst_475 = arith.constant 0.000000e+00 : f32
    %1413 = vector.broadcast %cst_475 : f32 to vector<16x32xf32>
    %1414 = arith.cmpf ogt, %1412, %1413 : vector<16x32xf32>
    %1415 = math.exp %1412 : vector<16x32xf32>
    %cst_476 = arith.constant 1.000000e+00 : f32
    %1416 = vector.broadcast %cst_476 : f32 to vector<16x32xf32>
    %1417 = arith.subf %1415, %1416 : vector<16x32xf32>
    %1418 = arith.select %1414, %1412, %1417 : vector<16x32xi1>, vector<16x32xf32>
    %1419 = arith.truncf %1418 : vector<16x32xf32> to vector<16x32xbf16>
    %cst_477 = arith.constant dense<0.000000e+00> : vector<16x32xf32>
    %1420 = tpu.matmul %1419, %0, %cst_477 {dimension_numbers = #tpu.dot_dimension_numbers<[1], [0], [0], [1], [0, 0, 1, 1], [], []>} : vector<16x32xbf16>, vector<32x32xbf16>, vector<16x32xf32> -> vector<16x32xf32>
    %1421 = arith.addf %1420, %4 : vector<16x32xf32>
    %cst_478 = arith.constant 0.000000e+00 : f32
    %1422 = vector.broadcast %cst_478 : f32 to vector<16x32xf32>
    %1423 = arith.cmpf ogt, %1421, %1422 : vector<16x32xf32>
    %1424 = math.exp %1421 : vector<16x32xf32>
    %cst_479 = arith.constant 1.000000e+00 : f32
    %1425 = vector.broadcast %cst_479 : f32 to vector<16x32xf32>
    %1426 = arith.subf %1424, %1425 : vector<16x32xf32>
    %1427 = arith.select %1423, %1421, %1426 : vector<16x32xi1>, vector<16x32xf32>
    %1428 = arith.truncf %1427 : vector<16x32xf32> to vector<16x32xbf16>
    %cst_480 = arith.constant dense<0.000000e+00> : vector<16x32xf32>
    %1429 = tpu.matmul %1428, %1, %cst_480 {dimension_numbers = #tpu.dot_dimension_numbers<[1], [0], [0], [1], [0, 0, 1, 1], [], []>} : vector<16x32xbf16>, vector<32x32xbf16>, vector<16x32xf32> -> vector<16x32xf32>
    %cst_481 = arith.constant 5.000000e-02 : f32
    %1430 = vector.broadcast %cst_481 : f32 to vector<16x32xf32>
    %1431 = arith.mulf %1430, %1429 : vector<16x32xf32>
    %1432 = arith.addf %1372, %1431 : vector<16x32xf32>
    %cst_482 = arith.constant 0.000000e+00 : f32
    %1433 = vector.broadcast %cst_482 : f32 to vector<16x32xf32>
    %1434 = arith.cmpf ogt, %1432, %1433 : vector<16x32xf32>
    %1435 = math.exp %1432 : vector<16x32xf32>
    %cst_483 = arith.constant 1.000000e+00 : f32
    %1436 = vector.broadcast %cst_483 : f32 to vector<16x32xf32>
    %1437 = arith.subf %1435, %1436 : vector<16x32xf32>
    %1438 = arith.select %1434, %1432, %1437 : vector<16x32xi1>, vector<16x32xf32>
    %1439 = arith.truncf %1438 : vector<16x32xf32> to vector<16x32xbf16>
    %cst_484 = arith.constant dense<0.000000e+00> : vector<16x32xf32>
    %1440 = tpu.matmul %1439, %0, %cst_484 {dimension_numbers = #tpu.dot_dimension_numbers<[1], [0], [0], [1], [0, 0, 1, 1], [], []>} : vector<16x32xbf16>, vector<32x32xbf16>, vector<16x32xf32> -> vector<16x32xf32>
    %1441 = arith.addf %1440, %4 : vector<16x32xf32>
    %cst_485 = arith.constant 0.000000e+00 : f32
    %1442 = vector.broadcast %cst_485 : f32 to vector<16x32xf32>
    %1443 = arith.cmpf ogt, %1441, %1442 : vector<16x32xf32>
    %1444 = math.exp %1441 : vector<16x32xf32>
    %cst_486 = arith.constant 1.000000e+00 : f32
    %1445 = vector.broadcast %cst_486 : f32 to vector<16x32xf32>
    %1446 = arith.subf %1444, %1445 : vector<16x32xf32>
    %1447 = arith.select %1443, %1441, %1446 : vector<16x32xi1>, vector<16x32xf32>
    %1448 = arith.truncf %1447 : vector<16x32xf32> to vector<16x32xbf16>
    %cst_487 = arith.constant dense<0.000000e+00> : vector<16x32xf32>
    %1449 = tpu.matmul %1448, %1, %cst_487 {dimension_numbers = #tpu.dot_dimension_numbers<[1], [0], [0], [1], [0, 0, 1, 1], [], []>} : vector<16x32xbf16>, vector<32x32xbf16>, vector<16x32xf32> -> vector<16x32xf32>
    %1450 = arith.addf %1409, %1429 : vector<16x32xf32>
    %cst_488 = arith.constant 2.000000e+00 : f32
    %1451 = vector.broadcast %cst_488 : f32 to vector<16x32xf32>
    %1452 = arith.mulf %1451, %1450 : vector<16x32xf32>
    %1453 = arith.addf %1389, %1452 : vector<16x32xf32>
    %cst_489 = arith.constant 0.00833333377 : f32
    %1454 = vector.broadcast %cst_489 : f32 to vector<16x32xf32>
    %1455 = arith.mulf %1454, %1453 : vector<16x32xf32>
    %1456 = arith.addf %1372, %1455 : vector<16x32xf32>
    %cst_490 = arith.constant 0.00833333377 : f32
    %1457 = vector.broadcast %cst_490 : f32 to vector<16x32xf32>
    %1458 = arith.mulf %1457, %1449 : vector<16x32xf32>
    %1459 = arith.addf %1456, %1458 : vector<16x32xf32>
    %1460 = arith.addf %1387, %1447 : vector<16x32xf32>
    %1461 = arith.addf %1407, %1427 : vector<16x32xf32>
    %cst_491 = arith.constant 2.000000e+00 : f32
    %1462 = vector.broadcast %cst_491 : f32 to vector<16x32xf32>
    %1463 = arith.mulf %1462, %1461 : vector<16x32xf32>
    %1464 = arith.addf %1460, %1463 : vector<16x32xf32>
    %cst_492 = arith.constant 0.00833333377 : f32
    %1465 = vector.broadcast %cst_492 : f32 to vector<16x32xf32>
    %1466 = arith.mulf %1465, %1464 : vector<16x32xf32>
    %1467 = arith.addf %1370, %1466 : vector<16x32xf32>
    %c15_i32 = arith.constant 15 : i32
    %1468 = arith.addf %1459, %9 : vector<16x32xf32>
    %1469 = arith.addf %1459, %11 : vector<16x32xf32>
    %cst_493 = arith.constant 0.000000e+00 : f32
    %1470 = vector.broadcast %cst_493 : f32 to vector<16x32xf32>
    %1471 = arith.cmpf ogt, %1459, %1470 : vector<16x32xf32>
    %1472 = math.exp %1459 : vector<16x32xf32>
    %cst_494 = arith.constant 1.000000e+00 : f32
    %1473 = vector.broadcast %cst_494 : f32 to vector<16x32xf32>
    %1474 = arith.subf %1472, %1473 : vector<16x32xf32>
    %1475 = arith.select %1471, %1459, %1474 : vector<16x32xi1>, vector<16x32xf32>
    %1476 = arith.truncf %1475 : vector<16x32xf32> to vector<16x32xbf16>
    %cst_495 = arith.constant dense<0.000000e+00> : vector<16x32xf32>
    %1477 = tpu.matmul %1476, %0, %cst_495 {dimension_numbers = #tpu.dot_dimension_numbers<[1], [0], [0], [1], [0, 0, 1, 1], [], []>} : vector<16x32xbf16>, vector<32x32xbf16>, vector<16x32xf32> -> vector<16x32xf32>
    %1478 = arith.addf %1477, %4 : vector<16x32xf32>
    %cst_496 = arith.constant 0.000000e+00 : f32
    %1479 = vector.broadcast %cst_496 : f32 to vector<16x32xf32>
    %1480 = arith.cmpf ogt, %1478, %1479 : vector<16x32xf32>
    %1481 = math.exp %1478 : vector<16x32xf32>
    %cst_497 = arith.constant 1.000000e+00 : f32
    %1482 = vector.broadcast %cst_497 : f32 to vector<16x32xf32>
    %1483 = arith.subf %1481, %1482 : vector<16x32xf32>
    %1484 = arith.select %1480, %1478, %1483 : vector<16x32xi1>, vector<16x32xf32>
    %1485 = arith.truncf %1484 : vector<16x32xf32> to vector<16x32xbf16>
    %cst_498 = arith.constant dense<0.000000e+00> : vector<16x32xf32>
    %1486 = tpu.matmul %1485, %1, %cst_498 {dimension_numbers = #tpu.dot_dimension_numbers<[1], [0], [0], [1], [0, 0, 1, 1], [], []>} : vector<16x32xbf16>, vector<32x32xbf16>, vector<16x32xf32> -> vector<16x32xf32>
    %cst_499 = arith.constant 2.500000e-02 : f32
    %1487 = vector.broadcast %cst_499 : f32 to vector<16x32xf32>
    %1488 = arith.mulf %1487, %1486 : vector<16x32xf32>
    %1489 = arith.addf %1468, %1488 : vector<16x32xf32>
    %cst_500 = arith.constant 0.000000e+00 : f32
    %1490 = vector.broadcast %cst_500 : f32 to vector<16x32xf32>
    %1491 = arith.cmpf ogt, %1489, %1490 : vector<16x32xf32>
    %1492 = math.exp %1489 : vector<16x32xf32>
    %cst_501 = arith.constant 1.000000e+00 : f32
    %1493 = vector.broadcast %cst_501 : f32 to vector<16x32xf32>
    %1494 = arith.subf %1492, %1493 : vector<16x32xf32>
    %1495 = arith.select %1491, %1489, %1494 : vector<16x32xi1>, vector<16x32xf32>
    %1496 = arith.truncf %1495 : vector<16x32xf32> to vector<16x32xbf16>
    %cst_502 = arith.constant dense<0.000000e+00> : vector<16x32xf32>
    %1497 = tpu.matmul %1496, %0, %cst_502 {dimension_numbers = #tpu.dot_dimension_numbers<[1], [0], [0], [1], [0, 0, 1, 1], [], []>} : vector<16x32xbf16>, vector<32x32xbf16>, vector<16x32xf32> -> vector<16x32xf32>
    %1498 = arith.addf %1497, %4 : vector<16x32xf32>
    %cst_503 = arith.constant 0.000000e+00 : f32
    %1499 = vector.broadcast %cst_503 : f32 to vector<16x32xf32>
    %1500 = arith.cmpf ogt, %1498, %1499 : vector<16x32xf32>
    %1501 = math.exp %1498 : vector<16x32xf32>
    %cst_504 = arith.constant 1.000000e+00 : f32
    %1502 = vector.broadcast %cst_504 : f32 to vector<16x32xf32>
    %1503 = arith.subf %1501, %1502 : vector<16x32xf32>
    %1504 = arith.select %1500, %1498, %1503 : vector<16x32xi1>, vector<16x32xf32>
    %1505 = arith.truncf %1504 : vector<16x32xf32> to vector<16x32xbf16>
    %cst_505 = arith.constant dense<0.000000e+00> : vector<16x32xf32>
    %1506 = tpu.matmul %1505, %1, %cst_505 {dimension_numbers = #tpu.dot_dimension_numbers<[1], [0], [0], [1], [0, 0, 1, 1], [], []>} : vector<16x32xbf16>, vector<32x32xbf16>, vector<16x32xf32> -> vector<16x32xf32>
    %cst_506 = arith.constant 2.500000e-02 : f32
    %1507 = vector.broadcast %cst_506 : f32 to vector<16x32xf32>
    %1508 = arith.mulf %1507, %1506 : vector<16x32xf32>
    %1509 = arith.addf %1468, %1508 : vector<16x32xf32>
    %cst_507 = arith.constant 0.000000e+00 : f32
    %1510 = vector.broadcast %cst_507 : f32 to vector<16x32xf32>
    %1511 = arith.cmpf ogt, %1509, %1510 : vector<16x32xf32>
    %1512 = math.exp %1509 : vector<16x32xf32>
    %cst_508 = arith.constant 1.000000e+00 : f32
    %1513 = vector.broadcast %cst_508 : f32 to vector<16x32xf32>
    %1514 = arith.subf %1512, %1513 : vector<16x32xf32>
    %1515 = arith.select %1511, %1509, %1514 : vector<16x32xi1>, vector<16x32xf32>
    %1516 = arith.truncf %1515 : vector<16x32xf32> to vector<16x32xbf16>
    %cst_509 = arith.constant dense<0.000000e+00> : vector<16x32xf32>
    %1517 = tpu.matmul %1516, %0, %cst_509 {dimension_numbers = #tpu.dot_dimension_numbers<[1], [0], [0], [1], [0, 0, 1, 1], [], []>} : vector<16x32xbf16>, vector<32x32xbf16>, vector<16x32xf32> -> vector<16x32xf32>
    %1518 = arith.addf %1517, %4 : vector<16x32xf32>
    %cst_510 = arith.constant 0.000000e+00 : f32
    %1519 = vector.broadcast %cst_510 : f32 to vector<16x32xf32>
    %1520 = arith.cmpf ogt, %1518, %1519 : vector<16x32xf32>
    %1521 = math.exp %1518 : vector<16x32xf32>
    %cst_511 = arith.constant 1.000000e+00 : f32
    %1522 = vector.broadcast %cst_511 : f32 to vector<16x32xf32>
    %1523 = arith.subf %1521, %1522 : vector<16x32xf32>
    %1524 = arith.select %1520, %1518, %1523 : vector<16x32xi1>, vector<16x32xf32>
    %1525 = arith.truncf %1524 : vector<16x32xf32> to vector<16x32xbf16>
    %cst_512 = arith.constant dense<0.000000e+00> : vector<16x32xf32>
    %1526 = tpu.matmul %1525, %1, %cst_512 {dimension_numbers = #tpu.dot_dimension_numbers<[1], [0], [0], [1], [0, 0, 1, 1], [], []>} : vector<16x32xbf16>, vector<32x32xbf16>, vector<16x32xf32> -> vector<16x32xf32>
    %cst_513 = arith.constant 5.000000e-02 : f32
    %1527 = vector.broadcast %cst_513 : f32 to vector<16x32xf32>
    %1528 = arith.mulf %1527, %1526 : vector<16x32xf32>
    %1529 = arith.addf %1469, %1528 : vector<16x32xf32>
    %cst_514 = arith.constant 0.000000e+00 : f32
    %1530 = vector.broadcast %cst_514 : f32 to vector<16x32xf32>
    %1531 = arith.cmpf ogt, %1529, %1530 : vector<16x32xf32>
    %1532 = math.exp %1529 : vector<16x32xf32>
    %cst_515 = arith.constant 1.000000e+00 : f32
    %1533 = vector.broadcast %cst_515 : f32 to vector<16x32xf32>
    %1534 = arith.subf %1532, %1533 : vector<16x32xf32>
    %1535 = arith.select %1531, %1529, %1534 : vector<16x32xi1>, vector<16x32xf32>
    %1536 = arith.truncf %1535 : vector<16x32xf32> to vector<16x32xbf16>
    %cst_516 = arith.constant dense<0.000000e+00> : vector<16x32xf32>
    %1537 = tpu.matmul %1536, %0, %cst_516 {dimension_numbers = #tpu.dot_dimension_numbers<[1], [0], [0], [1], [0, 0, 1, 1], [], []>} : vector<16x32xbf16>, vector<32x32xbf16>, vector<16x32xf32> -> vector<16x32xf32>
    %1538 = arith.addf %1537, %4 : vector<16x32xf32>
    %cst_517 = arith.constant 0.000000e+00 : f32
    %1539 = vector.broadcast %cst_517 : f32 to vector<16x32xf32>
    %1540 = arith.cmpf ogt, %1538, %1539 : vector<16x32xf32>
    %1541 = math.exp %1538 : vector<16x32xf32>
    %cst_518 = arith.constant 1.000000e+00 : f32
    %1542 = vector.broadcast %cst_518 : f32 to vector<16x32xf32>
    %1543 = arith.subf %1541, %1542 : vector<16x32xf32>
    %1544 = arith.select %1540, %1538, %1543 : vector<16x32xi1>, vector<16x32xf32>
    %1545 = arith.truncf %1544 : vector<16x32xf32> to vector<16x32xbf16>
    %cst_519 = arith.constant dense<0.000000e+00> : vector<16x32xf32>
    %1546 = tpu.matmul %1545, %1, %cst_519 {dimension_numbers = #tpu.dot_dimension_numbers<[1], [0], [0], [1], [0, 0, 1, 1], [], []>} : vector<16x32xbf16>, vector<32x32xbf16>, vector<16x32xf32> -> vector<16x32xf32>
    %1547 = arith.addf %1506, %1526 : vector<16x32xf32>
    %cst_520 = arith.constant 2.000000e+00 : f32
    %1548 = vector.broadcast %cst_520 : f32 to vector<16x32xf32>
    %1549 = arith.mulf %1548, %1547 : vector<16x32xf32>
    %1550 = arith.addf %1486, %1549 : vector<16x32xf32>
    %cst_521 = arith.constant 0.00833333377 : f32
    %1551 = vector.broadcast %cst_521 : f32 to vector<16x32xf32>
    %1552 = arith.mulf %1551, %1550 : vector<16x32xf32>
    %1553 = arith.addf %1469, %1552 : vector<16x32xf32>
    %cst_522 = arith.constant 0.00833333377 : f32
    %1554 = vector.broadcast %cst_522 : f32 to vector<16x32xf32>
    %1555 = arith.mulf %1554, %1546 : vector<16x32xf32>
    %1556 = arith.addf %1553, %1555 : vector<16x32xf32>
    %1557 = arith.addf %1484, %1544 : vector<16x32xf32>
    %1558 = arith.addf %1504, %1524 : vector<16x32xf32>
    %cst_523 = arith.constant 2.000000e+00 : f32
    %1559 = vector.broadcast %cst_523 : f32 to vector<16x32xf32>
    %1560 = arith.mulf %1559, %1558 : vector<16x32xf32>
    %1561 = arith.addf %1557, %1560 : vector<16x32xf32>
    %cst_524 = arith.constant 0.00833333377 : f32
    %1562 = vector.broadcast %cst_524 : f32 to vector<16x32xf32>
    %1563 = arith.mulf %1562, %1561 : vector<16x32xf32>
    %1564 = arith.addf %1467, %1563 : vector<16x32xf32>
    %c16_i32 = arith.constant 16 : i32
    %1565 = arith.addf %1556, %9 : vector<16x32xf32>
    %1566 = arith.addf %1556, %11 : vector<16x32xf32>
    %cst_525 = arith.constant 0.000000e+00 : f32
    %1567 = vector.broadcast %cst_525 : f32 to vector<16x32xf32>
    %1568 = arith.cmpf ogt, %1556, %1567 : vector<16x32xf32>
    %1569 = math.exp %1556 : vector<16x32xf32>
    %cst_526 = arith.constant 1.000000e+00 : f32
    %1570 = vector.broadcast %cst_526 : f32 to vector<16x32xf32>
    %1571 = arith.subf %1569, %1570 : vector<16x32xf32>
    %1572 = arith.select %1568, %1556, %1571 : vector<16x32xi1>, vector<16x32xf32>
    %1573 = arith.truncf %1572 : vector<16x32xf32> to vector<16x32xbf16>
    %cst_527 = arith.constant dense<0.000000e+00> : vector<16x32xf32>
    %1574 = tpu.matmul %1573, %0, %cst_527 {dimension_numbers = #tpu.dot_dimension_numbers<[1], [0], [0], [1], [0, 0, 1, 1], [], []>} : vector<16x32xbf16>, vector<32x32xbf16>, vector<16x32xf32> -> vector<16x32xf32>
    %1575 = arith.addf %1574, %4 : vector<16x32xf32>
    %cst_528 = arith.constant 0.000000e+00 : f32
    %1576 = vector.broadcast %cst_528 : f32 to vector<16x32xf32>
    %1577 = arith.cmpf ogt, %1575, %1576 : vector<16x32xf32>
    %1578 = math.exp %1575 : vector<16x32xf32>
    %cst_529 = arith.constant 1.000000e+00 : f32
    %1579 = vector.broadcast %cst_529 : f32 to vector<16x32xf32>
    %1580 = arith.subf %1578, %1579 : vector<16x32xf32>
    %1581 = arith.select %1577, %1575, %1580 : vector<16x32xi1>, vector<16x32xf32>
    %1582 = arith.truncf %1581 : vector<16x32xf32> to vector<16x32xbf16>
    %cst_530 = arith.constant dense<0.000000e+00> : vector<16x32xf32>
    %1583 = tpu.matmul %1582, %1, %cst_530 {dimension_numbers = #tpu.dot_dimension_numbers<[1], [0], [0], [1], [0, 0, 1, 1], [], []>} : vector<16x32xbf16>, vector<32x32xbf16>, vector<16x32xf32> -> vector<16x32xf32>
    %cst_531 = arith.constant 2.500000e-02 : f32
    %1584 = vector.broadcast %cst_531 : f32 to vector<16x32xf32>
    %1585 = arith.mulf %1584, %1583 : vector<16x32xf32>
    %1586 = arith.addf %1565, %1585 : vector<16x32xf32>
    %cst_532 = arith.constant 0.000000e+00 : f32
    %1587 = vector.broadcast %cst_532 : f32 to vector<16x32xf32>
    %1588 = arith.cmpf ogt, %1586, %1587 : vector<16x32xf32>
    %1589 = math.exp %1586 : vector<16x32xf32>
    %cst_533 = arith.constant 1.000000e+00 : f32
    %1590 = vector.broadcast %cst_533 : f32 to vector<16x32xf32>
    %1591 = arith.subf %1589, %1590 : vector<16x32xf32>
    %1592 = arith.select %1588, %1586, %1591 : vector<16x32xi1>, vector<16x32xf32>
    %1593 = arith.truncf %1592 : vector<16x32xf32> to vector<16x32xbf16>
    %cst_534 = arith.constant dense<0.000000e+00> : vector<16x32xf32>
    %1594 = tpu.matmul %1593, %0, %cst_534 {dimension_numbers = #tpu.dot_dimension_numbers<[1], [0], [0], [1], [0, 0, 1, 1], [], []>} : vector<16x32xbf16>, vector<32x32xbf16>, vector<16x32xf32> -> vector<16x32xf32>
    %1595 = arith.addf %1594, %4 : vector<16x32xf32>
    %cst_535 = arith.constant 0.000000e+00 : f32
    %1596 = vector.broadcast %cst_535 : f32 to vector<16x32xf32>
    %1597 = arith.cmpf ogt, %1595, %1596 : vector<16x32xf32>
    %1598 = math.exp %1595 : vector<16x32xf32>
    %cst_536 = arith.constant 1.000000e+00 : f32
    %1599 = vector.broadcast %cst_536 : f32 to vector<16x32xf32>
    %1600 = arith.subf %1598, %1599 : vector<16x32xf32>
    %1601 = arith.select %1597, %1595, %1600 : vector<16x32xi1>, vector<16x32xf32>
    %1602 = arith.truncf %1601 : vector<16x32xf32> to vector<16x32xbf16>
    %cst_537 = arith.constant dense<0.000000e+00> : vector<16x32xf32>
    %1603 = tpu.matmul %1602, %1, %cst_537 {dimension_numbers = #tpu.dot_dimension_numbers<[1], [0], [0], [1], [0, 0, 1, 1], [], []>} : vector<16x32xbf16>, vector<32x32xbf16>, vector<16x32xf32> -> vector<16x32xf32>
    %cst_538 = arith.constant 2.500000e-02 : f32
    %1604 = vector.broadcast %cst_538 : f32 to vector<16x32xf32>
    %1605 = arith.mulf %1604, %1603 : vector<16x32xf32>
    %1606 = arith.addf %1565, %1605 : vector<16x32xf32>
    %cst_539 = arith.constant 0.000000e+00 : f32
    %1607 = vector.broadcast %cst_539 : f32 to vector<16x32xf32>
    %1608 = arith.cmpf ogt, %1606, %1607 : vector<16x32xf32>
    %1609 = math.exp %1606 : vector<16x32xf32>
    %cst_540 = arith.constant 1.000000e+00 : f32
    %1610 = vector.broadcast %cst_540 : f32 to vector<16x32xf32>
    %1611 = arith.subf %1609, %1610 : vector<16x32xf32>
    %1612 = arith.select %1608, %1606, %1611 : vector<16x32xi1>, vector<16x32xf32>
    %1613 = arith.truncf %1612 : vector<16x32xf32> to vector<16x32xbf16>
    %cst_541 = arith.constant dense<0.000000e+00> : vector<16x32xf32>
    %1614 = tpu.matmul %1613, %0, %cst_541 {dimension_numbers = #tpu.dot_dimension_numbers<[1], [0], [0], [1], [0, 0, 1, 1], [], []>} : vector<16x32xbf16>, vector<32x32xbf16>, vector<16x32xf32> -> vector<16x32xf32>
    %1615 = arith.addf %1614, %4 : vector<16x32xf32>
    %cst_542 = arith.constant 0.000000e+00 : f32
    %1616 = vector.broadcast %cst_542 : f32 to vector<16x32xf32>
    %1617 = arith.cmpf ogt, %1615, %1616 : vector<16x32xf32>
    %1618 = math.exp %1615 : vector<16x32xf32>
    %cst_543 = arith.constant 1.000000e+00 : f32
    %1619 = vector.broadcast %cst_543 : f32 to vector<16x32xf32>
    %1620 = arith.subf %1618, %1619 : vector<16x32xf32>
    %1621 = arith.select %1617, %1615, %1620 : vector<16x32xi1>, vector<16x32xf32>
    %1622 = arith.truncf %1621 : vector<16x32xf32> to vector<16x32xbf16>
    %cst_544 = arith.constant dense<0.000000e+00> : vector<16x32xf32>
    %1623 = tpu.matmul %1622, %1, %cst_544 {dimension_numbers = #tpu.dot_dimension_numbers<[1], [0], [0], [1], [0, 0, 1, 1], [], []>} : vector<16x32xbf16>, vector<32x32xbf16>, vector<16x32xf32> -> vector<16x32xf32>
    %cst_545 = arith.constant 5.000000e-02 : f32
    %1624 = vector.broadcast %cst_545 : f32 to vector<16x32xf32>
    %1625 = arith.mulf %1624, %1623 : vector<16x32xf32>
    %1626 = arith.addf %1566, %1625 : vector<16x32xf32>
    %cst_546 = arith.constant 0.000000e+00 : f32
    %1627 = vector.broadcast %cst_546 : f32 to vector<16x32xf32>
    %1628 = arith.cmpf ogt, %1626, %1627 : vector<16x32xf32>
    %1629 = math.exp %1626 : vector<16x32xf32>
    %cst_547 = arith.constant 1.000000e+00 : f32
    %1630 = vector.broadcast %cst_547 : f32 to vector<16x32xf32>
    %1631 = arith.subf %1629, %1630 : vector<16x32xf32>
    %1632 = arith.select %1628, %1626, %1631 : vector<16x32xi1>, vector<16x32xf32>
    %1633 = arith.truncf %1632 : vector<16x32xf32> to vector<16x32xbf16>
    %cst_548 = arith.constant dense<0.000000e+00> : vector<16x32xf32>
    %1634 = tpu.matmul %1633, %0, %cst_548 {dimension_numbers = #tpu.dot_dimension_numbers<[1], [0], [0], [1], [0, 0, 1, 1], [], []>} : vector<16x32xbf16>, vector<32x32xbf16>, vector<16x32xf32> -> vector<16x32xf32>
    %1635 = arith.addf %1634, %4 : vector<16x32xf32>
    %cst_549 = arith.constant 0.000000e+00 : f32
    %1636 = vector.broadcast %cst_549 : f32 to vector<16x32xf32>
    %1637 = arith.cmpf ogt, %1635, %1636 : vector<16x32xf32>
    %1638 = math.exp %1635 : vector<16x32xf32>
    %cst_550 = arith.constant 1.000000e+00 : f32
    %1639 = vector.broadcast %cst_550 : f32 to vector<16x32xf32>
    %1640 = arith.subf %1638, %1639 : vector<16x32xf32>
    %1641 = arith.select %1637, %1635, %1640 : vector<16x32xi1>, vector<16x32xf32>
    %1642 = arith.truncf %1641 : vector<16x32xf32> to vector<16x32xbf16>
    %cst_551 = arith.constant dense<0.000000e+00> : vector<16x32xf32>
    %1643 = tpu.matmul %1642, %1, %cst_551 {dimension_numbers = #tpu.dot_dimension_numbers<[1], [0], [0], [1], [0, 0, 1, 1], [], []>} : vector<16x32xbf16>, vector<32x32xbf16>, vector<16x32xf32> -> vector<16x32xf32>
    %1644 = arith.addf %1603, %1623 : vector<16x32xf32>
    %cst_552 = arith.constant 2.000000e+00 : f32
    %1645 = vector.broadcast %cst_552 : f32 to vector<16x32xf32>
    %1646 = arith.mulf %1645, %1644 : vector<16x32xf32>
    %1647 = arith.addf %1583, %1646 : vector<16x32xf32>
    %cst_553 = arith.constant 0.00833333377 : f32
    %1648 = vector.broadcast %cst_553 : f32 to vector<16x32xf32>
    %1649 = arith.mulf %1648, %1647 : vector<16x32xf32>
    %1650 = arith.addf %1566, %1649 : vector<16x32xf32>
    %cst_554 = arith.constant 0.00833333377 : f32
    %1651 = vector.broadcast %cst_554 : f32 to vector<16x32xf32>
    %1652 = arith.mulf %1651, %1643 : vector<16x32xf32>
    %1653 = arith.addf %1650, %1652 : vector<16x32xf32>
    %1654 = arith.addf %1581, %1641 : vector<16x32xf32>
    %1655 = arith.addf %1601, %1621 : vector<16x32xf32>
    %cst_555 = arith.constant 2.000000e+00 : f32
    %1656 = vector.broadcast %cst_555 : f32 to vector<16x32xf32>
    %1657 = arith.mulf %1656, %1655 : vector<16x32xf32>
    %1658 = arith.addf %1654, %1657 : vector<16x32xf32>
    %cst_556 = arith.constant 0.00833333377 : f32
    %1659 = vector.broadcast %cst_556 : f32 to vector<16x32xf32>
    %1660 = arith.mulf %1659, %1658 : vector<16x32xf32>
    %1661 = arith.addf %1564, %1660 : vector<16x32xf32>
    %c17_i32 = arith.constant 17 : i32
    %1662 = arith.addf %1653, %9 : vector<16x32xf32>
    %1663 = arith.addf %1653, %11 : vector<16x32xf32>
    %cst_557 = arith.constant 0.000000e+00 : f32
    %1664 = vector.broadcast %cst_557 : f32 to vector<16x32xf32>
    %1665 = arith.cmpf ogt, %1653, %1664 : vector<16x32xf32>
    %1666 = math.exp %1653 : vector<16x32xf32>
    %cst_558 = arith.constant 1.000000e+00 : f32
    %1667 = vector.broadcast %cst_558 : f32 to vector<16x32xf32>
    %1668 = arith.subf %1666, %1667 : vector<16x32xf32>
    %1669 = arith.select %1665, %1653, %1668 : vector<16x32xi1>, vector<16x32xf32>
    %1670 = arith.truncf %1669 : vector<16x32xf32> to vector<16x32xbf16>
    %cst_559 = arith.constant dense<0.000000e+00> : vector<16x32xf32>
    %1671 = tpu.matmul %1670, %0, %cst_559 {dimension_numbers = #tpu.dot_dimension_numbers<[1], [0], [0], [1], [0, 0, 1, 1], [], []>} : vector<16x32xbf16>, vector<32x32xbf16>, vector<16x32xf32> -> vector<16x32xf32>
    %1672 = arith.addf %1671, %4 : vector<16x32xf32>
    %cst_560 = arith.constant 0.000000e+00 : f32
    %1673 = vector.broadcast %cst_560 : f32 to vector<16x32xf32>
    %1674 = arith.cmpf ogt, %1672, %1673 : vector<16x32xf32>
    %1675 = math.exp %1672 : vector<16x32xf32>
    %cst_561 = arith.constant 1.000000e+00 : f32
    %1676 = vector.broadcast %cst_561 : f32 to vector<16x32xf32>
    %1677 = arith.subf %1675, %1676 : vector<16x32xf32>
    %1678 = arith.select %1674, %1672, %1677 : vector<16x32xi1>, vector<16x32xf32>
    %1679 = arith.truncf %1678 : vector<16x32xf32> to vector<16x32xbf16>
    %cst_562 = arith.constant dense<0.000000e+00> : vector<16x32xf32>
    %1680 = tpu.matmul %1679, %1, %cst_562 {dimension_numbers = #tpu.dot_dimension_numbers<[1], [0], [0], [1], [0, 0, 1, 1], [], []>} : vector<16x32xbf16>, vector<32x32xbf16>, vector<16x32xf32> -> vector<16x32xf32>
    %cst_563 = arith.constant 2.500000e-02 : f32
    %1681 = vector.broadcast %cst_563 : f32 to vector<16x32xf32>
    %1682 = arith.mulf %1681, %1680 : vector<16x32xf32>
    %1683 = arith.addf %1662, %1682 : vector<16x32xf32>
    %cst_564 = arith.constant 0.000000e+00 : f32
    %1684 = vector.broadcast %cst_564 : f32 to vector<16x32xf32>
    %1685 = arith.cmpf ogt, %1683, %1684 : vector<16x32xf32>
    %1686 = math.exp %1683 : vector<16x32xf32>
    %cst_565 = arith.constant 1.000000e+00 : f32
    %1687 = vector.broadcast %cst_565 : f32 to vector<16x32xf32>
    %1688 = arith.subf %1686, %1687 : vector<16x32xf32>
    %1689 = arith.select %1685, %1683, %1688 : vector<16x32xi1>, vector<16x32xf32>
    %1690 = arith.truncf %1689 : vector<16x32xf32> to vector<16x32xbf16>
    %cst_566 = arith.constant dense<0.000000e+00> : vector<16x32xf32>
    %1691 = tpu.matmul %1690, %0, %cst_566 {dimension_numbers = #tpu.dot_dimension_numbers<[1], [0], [0], [1], [0, 0, 1, 1], [], []>} : vector<16x32xbf16>, vector<32x32xbf16>, vector<16x32xf32> -> vector<16x32xf32>
    %1692 = arith.addf %1691, %4 : vector<16x32xf32>
    %cst_567 = arith.constant 0.000000e+00 : f32
    %1693 = vector.broadcast %cst_567 : f32 to vector<16x32xf32>
    %1694 = arith.cmpf ogt, %1692, %1693 : vector<16x32xf32>
    %1695 = math.exp %1692 : vector<16x32xf32>
    %cst_568 = arith.constant 1.000000e+00 : f32
    %1696 = vector.broadcast %cst_568 : f32 to vector<16x32xf32>
    %1697 = arith.subf %1695, %1696 : vector<16x32xf32>
    %1698 = arith.select %1694, %1692, %1697 : vector<16x32xi1>, vector<16x32xf32>
    %1699 = arith.truncf %1698 : vector<16x32xf32> to vector<16x32xbf16>
    %cst_569 = arith.constant dense<0.000000e+00> : vector<16x32xf32>
    %1700 = tpu.matmul %1699, %1, %cst_569 {dimension_numbers = #tpu.dot_dimension_numbers<[1], [0], [0], [1], [0, 0, 1, 1], [], []>} : vector<16x32xbf16>, vector<32x32xbf16>, vector<16x32xf32> -> vector<16x32xf32>
    %cst_570 = arith.constant 2.500000e-02 : f32
    %1701 = vector.broadcast %cst_570 : f32 to vector<16x32xf32>
    %1702 = arith.mulf %1701, %1700 : vector<16x32xf32>
    %1703 = arith.addf %1662, %1702 : vector<16x32xf32>
    %cst_571 = arith.constant 0.000000e+00 : f32
    %1704 = vector.broadcast %cst_571 : f32 to vector<16x32xf32>
    %1705 = arith.cmpf ogt, %1703, %1704 : vector<16x32xf32>
    %1706 = math.exp %1703 : vector<16x32xf32>
    %cst_572 = arith.constant 1.000000e+00 : f32
    %1707 = vector.broadcast %cst_572 : f32 to vector<16x32xf32>
    %1708 = arith.subf %1706, %1707 : vector<16x32xf32>
    %1709 = arith.select %1705, %1703, %1708 : vector<16x32xi1>, vector<16x32xf32>
    %1710 = arith.truncf %1709 : vector<16x32xf32> to vector<16x32xbf16>
    %cst_573 = arith.constant dense<0.000000e+00> : vector<16x32xf32>
    %1711 = tpu.matmul %1710, %0, %cst_573 {dimension_numbers = #tpu.dot_dimension_numbers<[1], [0], [0], [1], [0, 0, 1, 1], [], []>} : vector<16x32xbf16>, vector<32x32xbf16>, vector<16x32xf32> -> vector<16x32xf32>
    %1712 = arith.addf %1711, %4 : vector<16x32xf32>
    %cst_574 = arith.constant 0.000000e+00 : f32
    %1713 = vector.broadcast %cst_574 : f32 to vector<16x32xf32>
    %1714 = arith.cmpf ogt, %1712, %1713 : vector<16x32xf32>
    %1715 = math.exp %1712 : vector<16x32xf32>
    %cst_575 = arith.constant 1.000000e+00 : f32
    %1716 = vector.broadcast %cst_575 : f32 to vector<16x32xf32>
    %1717 = arith.subf %1715, %1716 : vector<16x32xf32>
    %1718 = arith.select %1714, %1712, %1717 : vector<16x32xi1>, vector<16x32xf32>
    %1719 = arith.truncf %1718 : vector<16x32xf32> to vector<16x32xbf16>
    %cst_576 = arith.constant dense<0.000000e+00> : vector<16x32xf32>
    %1720 = tpu.matmul %1719, %1, %cst_576 {dimension_numbers = #tpu.dot_dimension_numbers<[1], [0], [0], [1], [0, 0, 1, 1], [], []>} : vector<16x32xbf16>, vector<32x32xbf16>, vector<16x32xf32> -> vector<16x32xf32>
    %cst_577 = arith.constant 5.000000e-02 : f32
    %1721 = vector.broadcast %cst_577 : f32 to vector<16x32xf32>
    %1722 = arith.mulf %1721, %1720 : vector<16x32xf32>
    %1723 = arith.addf %1663, %1722 : vector<16x32xf32>
    %cst_578 = arith.constant 0.000000e+00 : f32
    %1724 = vector.broadcast %cst_578 : f32 to vector<16x32xf32>
    %1725 = arith.cmpf ogt, %1723, %1724 : vector<16x32xf32>
    %1726 = math.exp %1723 : vector<16x32xf32>
    %cst_579 = arith.constant 1.000000e+00 : f32
    %1727 = vector.broadcast %cst_579 : f32 to vector<16x32xf32>
    %1728 = arith.subf %1726, %1727 : vector<16x32xf32>
    %1729 = arith.select %1725, %1723, %1728 : vector<16x32xi1>, vector<16x32xf32>
    %1730 = arith.truncf %1729 : vector<16x32xf32> to vector<16x32xbf16>
    %cst_580 = arith.constant dense<0.000000e+00> : vector<16x32xf32>
    %1731 = tpu.matmul %1730, %0, %cst_580 {dimension_numbers = #tpu.dot_dimension_numbers<[1], [0], [0], [1], [0, 0, 1, 1], [], []>} : vector<16x32xbf16>, vector<32x32xbf16>, vector<16x32xf32> -> vector<16x32xf32>
    %1732 = arith.addf %1731, %4 : vector<16x32xf32>
    %cst_581 = arith.constant 0.000000e+00 : f32
    %1733 = vector.broadcast %cst_581 : f32 to vector<16x32xf32>
    %1734 = arith.cmpf ogt, %1732, %1733 : vector<16x32xf32>
    %1735 = math.exp %1732 : vector<16x32xf32>
    %cst_582 = arith.constant 1.000000e+00 : f32
    %1736 = vector.broadcast %cst_582 : f32 to vector<16x32xf32>
    %1737 = arith.subf %1735, %1736 : vector<16x32xf32>
    %1738 = arith.select %1734, %1732, %1737 : vector<16x32xi1>, vector<16x32xf32>
    %1739 = arith.truncf %1738 : vector<16x32xf32> to vector<16x32xbf16>
    %cst_583 = arith.constant dense<0.000000e+00> : vector<16x32xf32>
    %1740 = tpu.matmul %1739, %1, %cst_583 {dimension_numbers = #tpu.dot_dimension_numbers<[1], [0], [0], [1], [0, 0, 1, 1], [], []>} : vector<16x32xbf16>, vector<32x32xbf16>, vector<16x32xf32> -> vector<16x32xf32>
    %1741 = arith.addf %1700, %1720 : vector<16x32xf32>
    %cst_584 = arith.constant 2.000000e+00 : f32
    %1742 = vector.broadcast %cst_584 : f32 to vector<16x32xf32>
    %1743 = arith.mulf %1742, %1741 : vector<16x32xf32>
    %1744 = arith.addf %1680, %1743 : vector<16x32xf32>
    %cst_585 = arith.constant 0.00833333377 : f32
    %1745 = vector.broadcast %cst_585 : f32 to vector<16x32xf32>
    %1746 = arith.mulf %1745, %1744 : vector<16x32xf32>
    %1747 = arith.addf %1663, %1746 : vector<16x32xf32>
    %cst_586 = arith.constant 0.00833333377 : f32
    %1748 = vector.broadcast %cst_586 : f32 to vector<16x32xf32>
    %1749 = arith.mulf %1748, %1740 : vector<16x32xf32>
    %1750 = arith.addf %1747, %1749 : vector<16x32xf32>
    %1751 = arith.addf %1678, %1738 : vector<16x32xf32>
    %1752 = arith.addf %1698, %1718 : vector<16x32xf32>
    %cst_587 = arith.constant 2.000000e+00 : f32
    %1753 = vector.broadcast %cst_587 : f32 to vector<16x32xf32>
    %1754 = arith.mulf %1753, %1752 : vector<16x32xf32>
    %1755 = arith.addf %1751, %1754 : vector<16x32xf32>
    %cst_588 = arith.constant 0.00833333377 : f32
    %1756 = vector.broadcast %cst_588 : f32 to vector<16x32xf32>
    %1757 = arith.mulf %1756, %1755 : vector<16x32xf32>
    %1758 = arith.addf %1661, %1757 : vector<16x32xf32>
    %c18_i32 = arith.constant 18 : i32
    %1759 = arith.addf %1750, %9 : vector<16x32xf32>
    %1760 = arith.addf %1750, %11 : vector<16x32xf32>
    %cst_589 = arith.constant 0.000000e+00 : f32
    %1761 = vector.broadcast %cst_589 : f32 to vector<16x32xf32>
    %1762 = arith.cmpf ogt, %1750, %1761 : vector<16x32xf32>
    %1763 = math.exp %1750 : vector<16x32xf32>
    %cst_590 = arith.constant 1.000000e+00 : f32
    %1764 = vector.broadcast %cst_590 : f32 to vector<16x32xf32>
    %1765 = arith.subf %1763, %1764 : vector<16x32xf32>
    %1766 = arith.select %1762, %1750, %1765 : vector<16x32xi1>, vector<16x32xf32>
    %1767 = arith.truncf %1766 : vector<16x32xf32> to vector<16x32xbf16>
    %cst_591 = arith.constant dense<0.000000e+00> : vector<16x32xf32>
    %1768 = tpu.matmul %1767, %0, %cst_591 {dimension_numbers = #tpu.dot_dimension_numbers<[1], [0], [0], [1], [0, 0, 1, 1], [], []>} : vector<16x32xbf16>, vector<32x32xbf16>, vector<16x32xf32> -> vector<16x32xf32>
    %1769 = arith.addf %1768, %4 : vector<16x32xf32>
    %cst_592 = arith.constant 0.000000e+00 : f32
    %1770 = vector.broadcast %cst_592 : f32 to vector<16x32xf32>
    %1771 = arith.cmpf ogt, %1769, %1770 : vector<16x32xf32>
    %1772 = math.exp %1769 : vector<16x32xf32>
    %cst_593 = arith.constant 1.000000e+00 : f32
    %1773 = vector.broadcast %cst_593 : f32 to vector<16x32xf32>
    %1774 = arith.subf %1772, %1773 : vector<16x32xf32>
    %1775 = arith.select %1771, %1769, %1774 : vector<16x32xi1>, vector<16x32xf32>
    %1776 = arith.truncf %1775 : vector<16x32xf32> to vector<16x32xbf16>
    %cst_594 = arith.constant dense<0.000000e+00> : vector<16x32xf32>
    %1777 = tpu.matmul %1776, %1, %cst_594 {dimension_numbers = #tpu.dot_dimension_numbers<[1], [0], [0], [1], [0, 0, 1, 1], [], []>} : vector<16x32xbf16>, vector<32x32xbf16>, vector<16x32xf32> -> vector<16x32xf32>
    %cst_595 = arith.constant 2.500000e-02 : f32
    %1778 = vector.broadcast %cst_595 : f32 to vector<16x32xf32>
    %1779 = arith.mulf %1778, %1777 : vector<16x32xf32>
    %1780 = arith.addf %1759, %1779 : vector<16x32xf32>
    %cst_596 = arith.constant 0.000000e+00 : f32
    %1781 = vector.broadcast %cst_596 : f32 to vector<16x32xf32>
    %1782 = arith.cmpf ogt, %1780, %1781 : vector<16x32xf32>
    %1783 = math.exp %1780 : vector<16x32xf32>
    %cst_597 = arith.constant 1.000000e+00 : f32
    %1784 = vector.broadcast %cst_597 : f32 to vector<16x32xf32>
    %1785 = arith.subf %1783, %1784 : vector<16x32xf32>
    %1786 = arith.select %1782, %1780, %1785 : vector<16x32xi1>, vector<16x32xf32>
    %1787 = arith.truncf %1786 : vector<16x32xf32> to vector<16x32xbf16>
    %cst_598 = arith.constant dense<0.000000e+00> : vector<16x32xf32>
    %1788 = tpu.matmul %1787, %0, %cst_598 {dimension_numbers = #tpu.dot_dimension_numbers<[1], [0], [0], [1], [0, 0, 1, 1], [], []>} : vector<16x32xbf16>, vector<32x32xbf16>, vector<16x32xf32> -> vector<16x32xf32>
    %1789 = arith.addf %1788, %4 : vector<16x32xf32>
    %cst_599 = arith.constant 0.000000e+00 : f32
    %1790 = vector.broadcast %cst_599 : f32 to vector<16x32xf32>
    %1791 = arith.cmpf ogt, %1789, %1790 : vector<16x32xf32>
    %1792 = math.exp %1789 : vector<16x32xf32>
    %cst_600 = arith.constant 1.000000e+00 : f32
    %1793 = vector.broadcast %cst_600 : f32 to vector<16x32xf32>
    %1794 = arith.subf %1792, %1793 : vector<16x32xf32>
    %1795 = arith.select %1791, %1789, %1794 : vector<16x32xi1>, vector<16x32xf32>
    %1796 = arith.truncf %1795 : vector<16x32xf32> to vector<16x32xbf16>
    %cst_601 = arith.constant dense<0.000000e+00> : vector<16x32xf32>
    %1797 = tpu.matmul %1796, %1, %cst_601 {dimension_numbers = #tpu.dot_dimension_numbers<[1], [0], [0], [1], [0, 0, 1, 1], [], []>} : vector<16x32xbf16>, vector<32x32xbf16>, vector<16x32xf32> -> vector<16x32xf32>
    %cst_602 = arith.constant 2.500000e-02 : f32
    %1798 = vector.broadcast %cst_602 : f32 to vector<16x32xf32>
    %1799 = arith.mulf %1798, %1797 : vector<16x32xf32>
    %1800 = arith.addf %1759, %1799 : vector<16x32xf32>
    %cst_603 = arith.constant 0.000000e+00 : f32
    %1801 = vector.broadcast %cst_603 : f32 to vector<16x32xf32>
    %1802 = arith.cmpf ogt, %1800, %1801 : vector<16x32xf32>
    %1803 = math.exp %1800 : vector<16x32xf32>
    %cst_604 = arith.constant 1.000000e+00 : f32
    %1804 = vector.broadcast %cst_604 : f32 to vector<16x32xf32>
    %1805 = arith.subf %1803, %1804 : vector<16x32xf32>
    %1806 = arith.select %1802, %1800, %1805 : vector<16x32xi1>, vector<16x32xf32>
    %1807 = arith.truncf %1806 : vector<16x32xf32> to vector<16x32xbf16>
    %cst_605 = arith.constant dense<0.000000e+00> : vector<16x32xf32>
    %1808 = tpu.matmul %1807, %0, %cst_605 {dimension_numbers = #tpu.dot_dimension_numbers<[1], [0], [0], [1], [0, 0, 1, 1], [], []>} : vector<16x32xbf16>, vector<32x32xbf16>, vector<16x32xf32> -> vector<16x32xf32>
    %1809 = arith.addf %1808, %4 : vector<16x32xf32>
    %cst_606 = arith.constant 0.000000e+00 : f32
    %1810 = vector.broadcast %cst_606 : f32 to vector<16x32xf32>
    %1811 = arith.cmpf ogt, %1809, %1810 : vector<16x32xf32>
    %1812 = math.exp %1809 : vector<16x32xf32>
    %cst_607 = arith.constant 1.000000e+00 : f32
    %1813 = vector.broadcast %cst_607 : f32 to vector<16x32xf32>
    %1814 = arith.subf %1812, %1813 : vector<16x32xf32>
    %1815 = arith.select %1811, %1809, %1814 : vector<16x32xi1>, vector<16x32xf32>
    %1816 = arith.truncf %1815 : vector<16x32xf32> to vector<16x32xbf16>
    %cst_608 = arith.constant dense<0.000000e+00> : vector<16x32xf32>
    %1817 = tpu.matmul %1816, %1, %cst_608 {dimension_numbers = #tpu.dot_dimension_numbers<[1], [0], [0], [1], [0, 0, 1, 1], [], []>} : vector<16x32xbf16>, vector<32x32xbf16>, vector<16x32xf32> -> vector<16x32xf32>
    %cst_609 = arith.constant 5.000000e-02 : f32
    %1818 = vector.broadcast %cst_609 : f32 to vector<16x32xf32>
    %1819 = arith.mulf %1818, %1817 : vector<16x32xf32>
    %1820 = arith.addf %1760, %1819 : vector<16x32xf32>
    %cst_610 = arith.constant 0.000000e+00 : f32
    %1821 = vector.broadcast %cst_610 : f32 to vector<16x32xf32>
    %1822 = arith.cmpf ogt, %1820, %1821 : vector<16x32xf32>
    %1823 = math.exp %1820 : vector<16x32xf32>
    %cst_611 = arith.constant 1.000000e+00 : f32
    %1824 = vector.broadcast %cst_611 : f32 to vector<16x32xf32>
    %1825 = arith.subf %1823, %1824 : vector<16x32xf32>
    %1826 = arith.select %1822, %1820, %1825 : vector<16x32xi1>, vector<16x32xf32>
    %1827 = arith.truncf %1826 : vector<16x32xf32> to vector<16x32xbf16>
    %cst_612 = arith.constant dense<0.000000e+00> : vector<16x32xf32>
    %1828 = tpu.matmul %1827, %0, %cst_612 {dimension_numbers = #tpu.dot_dimension_numbers<[1], [0], [0], [1], [0, 0, 1, 1], [], []>} : vector<16x32xbf16>, vector<32x32xbf16>, vector<16x32xf32> -> vector<16x32xf32>
    %1829 = arith.addf %1828, %4 : vector<16x32xf32>
    %cst_613 = arith.constant 0.000000e+00 : f32
    %1830 = vector.broadcast %cst_613 : f32 to vector<16x32xf32>
    %1831 = arith.cmpf ogt, %1829, %1830 : vector<16x32xf32>
    %1832 = math.exp %1829 : vector<16x32xf32>
    %cst_614 = arith.constant 1.000000e+00 : f32
    %1833 = vector.broadcast %cst_614 : f32 to vector<16x32xf32>
    %1834 = arith.subf %1832, %1833 : vector<16x32xf32>
    %1835 = arith.select %1831, %1829, %1834 : vector<16x32xi1>, vector<16x32xf32>
    %1836 = arith.truncf %1835 : vector<16x32xf32> to vector<16x32xbf16>
    %cst_615 = arith.constant dense<0.000000e+00> : vector<16x32xf32>
    %1837 = tpu.matmul %1836, %1, %cst_615 {dimension_numbers = #tpu.dot_dimension_numbers<[1], [0], [0], [1], [0, 0, 1, 1], [], []>} : vector<16x32xbf16>, vector<32x32xbf16>, vector<16x32xf32> -> vector<16x32xf32>
    %1838 = arith.addf %1797, %1817 : vector<16x32xf32>
    %cst_616 = arith.constant 2.000000e+00 : f32
    %1839 = vector.broadcast %cst_616 : f32 to vector<16x32xf32>
    %1840 = arith.mulf %1839, %1838 : vector<16x32xf32>
    %1841 = arith.addf %1777, %1840 : vector<16x32xf32>
    %cst_617 = arith.constant 0.00833333377 : f32
    %1842 = vector.broadcast %cst_617 : f32 to vector<16x32xf32>
    %1843 = arith.mulf %1842, %1841 : vector<16x32xf32>
    %1844 = arith.addf %1760, %1843 : vector<16x32xf32>
    %cst_618 = arith.constant 0.00833333377 : f32
    %1845 = vector.broadcast %cst_618 : f32 to vector<16x32xf32>
    %1846 = arith.mulf %1845, %1837 : vector<16x32xf32>
    %1847 = arith.addf %1844, %1846 : vector<16x32xf32>
    %1848 = arith.addf %1775, %1835 : vector<16x32xf32>
    %1849 = arith.addf %1795, %1815 : vector<16x32xf32>
    %cst_619 = arith.constant 2.000000e+00 : f32
    %1850 = vector.broadcast %cst_619 : f32 to vector<16x32xf32>
    %1851 = arith.mulf %1850, %1849 : vector<16x32xf32>
    %1852 = arith.addf %1848, %1851 : vector<16x32xf32>
    %cst_620 = arith.constant 0.00833333377 : f32
    %1853 = vector.broadcast %cst_620 : f32 to vector<16x32xf32>
    %1854 = arith.mulf %1853, %1852 : vector<16x32xf32>
    %1855 = arith.addf %1758, %1854 : vector<16x32xf32>
    %c19_i32 = arith.constant 19 : i32
    %1856 = arith.addf %1847, %9 : vector<16x32xf32>
    %1857 = arith.addf %1847, %11 : vector<16x32xf32>
    %cst_621 = arith.constant 0.000000e+00 : f32
    %1858 = vector.broadcast %cst_621 : f32 to vector<16x32xf32>
    %1859 = arith.cmpf ogt, %1847, %1858 : vector<16x32xf32>
    %1860 = math.exp %1847 : vector<16x32xf32>
    %cst_622 = arith.constant 1.000000e+00 : f32
    %1861 = vector.broadcast %cst_622 : f32 to vector<16x32xf32>
    %1862 = arith.subf %1860, %1861 : vector<16x32xf32>
    %1863 = arith.select %1859, %1847, %1862 : vector<16x32xi1>, vector<16x32xf32>
    %1864 = arith.truncf %1863 : vector<16x32xf32> to vector<16x32xbf16>
    %cst_623 = arith.constant dense<0.000000e+00> : vector<16x32xf32>
    %1865 = tpu.matmul %1864, %0, %cst_623 {dimension_numbers = #tpu.dot_dimension_numbers<[1], [0], [0], [1], [0, 0, 1, 1], [], []>} : vector<16x32xbf16>, vector<32x32xbf16>, vector<16x32xf32> -> vector<16x32xf32>
    %1866 = arith.addf %1865, %4 : vector<16x32xf32>
    %cst_624 = arith.constant 0.000000e+00 : f32
    %1867 = vector.broadcast %cst_624 : f32 to vector<16x32xf32>
    %1868 = arith.cmpf ogt, %1866, %1867 : vector<16x32xf32>
    %1869 = math.exp %1866 : vector<16x32xf32>
    %cst_625 = arith.constant 1.000000e+00 : f32
    %1870 = vector.broadcast %cst_625 : f32 to vector<16x32xf32>
    %1871 = arith.subf %1869, %1870 : vector<16x32xf32>
    %1872 = arith.select %1868, %1866, %1871 : vector<16x32xi1>, vector<16x32xf32>
    %1873 = arith.truncf %1872 : vector<16x32xf32> to vector<16x32xbf16>
    %cst_626 = arith.constant dense<0.000000e+00> : vector<16x32xf32>
    %1874 = tpu.matmul %1873, %1, %cst_626 {dimension_numbers = #tpu.dot_dimension_numbers<[1], [0], [0], [1], [0, 0, 1, 1], [], []>} : vector<16x32xbf16>, vector<32x32xbf16>, vector<16x32xf32> -> vector<16x32xf32>
    %cst_627 = arith.constant 2.500000e-02 : f32
    %1875 = vector.broadcast %cst_627 : f32 to vector<16x32xf32>
    %1876 = arith.mulf %1875, %1874 : vector<16x32xf32>
    %1877 = arith.addf %1856, %1876 : vector<16x32xf32>
    %cst_628 = arith.constant 0.000000e+00 : f32
    %1878 = vector.broadcast %cst_628 : f32 to vector<16x32xf32>
    %1879 = arith.cmpf ogt, %1877, %1878 : vector<16x32xf32>
    %1880 = math.exp %1877 : vector<16x32xf32>
    %cst_629 = arith.constant 1.000000e+00 : f32
    %1881 = vector.broadcast %cst_629 : f32 to vector<16x32xf32>
    %1882 = arith.subf %1880, %1881 : vector<16x32xf32>
    %1883 = arith.select %1879, %1877, %1882 : vector<16x32xi1>, vector<16x32xf32>
    %1884 = arith.truncf %1883 : vector<16x32xf32> to vector<16x32xbf16>
    %cst_630 = arith.constant dense<0.000000e+00> : vector<16x32xf32>
    %1885 = tpu.matmul %1884, %0, %cst_630 {dimension_numbers = #tpu.dot_dimension_numbers<[1], [0], [0], [1], [0, 0, 1, 1], [], []>} : vector<16x32xbf16>, vector<32x32xbf16>, vector<16x32xf32> -> vector<16x32xf32>
    %1886 = arith.addf %1885, %4 : vector<16x32xf32>
    %cst_631 = arith.constant 0.000000e+00 : f32
    %1887 = vector.broadcast %cst_631 : f32 to vector<16x32xf32>
    %1888 = arith.cmpf ogt, %1886, %1887 : vector<16x32xf32>
    %1889 = math.exp %1886 : vector<16x32xf32>
    %cst_632 = arith.constant 1.000000e+00 : f32
    %1890 = vector.broadcast %cst_632 : f32 to vector<16x32xf32>
    %1891 = arith.subf %1889, %1890 : vector<16x32xf32>
    %1892 = arith.select %1888, %1886, %1891 : vector<16x32xi1>, vector<16x32xf32>
    %1893 = arith.truncf %1892 : vector<16x32xf32> to vector<16x32xbf16>
    %cst_633 = arith.constant dense<0.000000e+00> : vector<16x32xf32>
    %1894 = tpu.matmul %1893, %1, %cst_633 {dimension_numbers = #tpu.dot_dimension_numbers<[1], [0], [0], [1], [0, 0, 1, 1], [], []>} : vector<16x32xbf16>, vector<32x32xbf16>, vector<16x32xf32> -> vector<16x32xf32>
    %cst_634 = arith.constant 2.500000e-02 : f32
    %1895 = vector.broadcast %cst_634 : f32 to vector<16x32xf32>
    %1896 = arith.mulf %1895, %1894 : vector<16x32xf32>
    %1897 = arith.addf %1856, %1896 : vector<16x32xf32>
    %cst_635 = arith.constant 0.000000e+00 : f32
    %1898 = vector.broadcast %cst_635 : f32 to vector<16x32xf32>
    %1899 = arith.cmpf ogt, %1897, %1898 : vector<16x32xf32>
    %1900 = math.exp %1897 : vector<16x32xf32>
    %cst_636 = arith.constant 1.000000e+00 : f32
    %1901 = vector.broadcast %cst_636 : f32 to vector<16x32xf32>
    %1902 = arith.subf %1900, %1901 : vector<16x32xf32>
    %1903 = arith.select %1899, %1897, %1902 : vector<16x32xi1>, vector<16x32xf32>
    %1904 = arith.truncf %1903 : vector<16x32xf32> to vector<16x32xbf16>
    %cst_637 = arith.constant dense<0.000000e+00> : vector<16x32xf32>
    %1905 = tpu.matmul %1904, %0, %cst_637 {dimension_numbers = #tpu.dot_dimension_numbers<[1], [0], [0], [1], [0, 0, 1, 1], [], []>} : vector<16x32xbf16>, vector<32x32xbf16>, vector<16x32xf32> -> vector<16x32xf32>
    %1906 = arith.addf %1905, %4 : vector<16x32xf32>
    %cst_638 = arith.constant 0.000000e+00 : f32
    %1907 = vector.broadcast %cst_638 : f32 to vector<16x32xf32>
    %1908 = arith.cmpf ogt, %1906, %1907 : vector<16x32xf32>
    %1909 = math.exp %1906 : vector<16x32xf32>
    %cst_639 = arith.constant 1.000000e+00 : f32
    %1910 = vector.broadcast %cst_639 : f32 to vector<16x32xf32>
    %1911 = arith.subf %1909, %1910 : vector<16x32xf32>
    %1912 = arith.select %1908, %1906, %1911 : vector<16x32xi1>, vector<16x32xf32>
    %1913 = arith.truncf %1912 : vector<16x32xf32> to vector<16x32xbf16>
    %cst_640 = arith.constant dense<0.000000e+00> : vector<16x32xf32>
    %1914 = tpu.matmul %1913, %1, %cst_640 {dimension_numbers = #tpu.dot_dimension_numbers<[1], [0], [0], [1], [0, 0, 1, 1], [], []>} : vector<16x32xbf16>, vector<32x32xbf16>, vector<16x32xf32> -> vector<16x32xf32>
    %cst_641 = arith.constant 5.000000e-02 : f32
    %1915 = vector.broadcast %cst_641 : f32 to vector<16x32xf32>
    %1916 = arith.mulf %1915, %1914 : vector<16x32xf32>
    %1917 = arith.addf %1857, %1916 : vector<16x32xf32>
    %cst_642 = arith.constant 0.000000e+00 : f32
    %1918 = vector.broadcast %cst_642 : f32 to vector<16x32xf32>
    %1919 = arith.cmpf ogt, %1917, %1918 : vector<16x32xf32>
    %1920 = math.exp %1917 : vector<16x32xf32>
    %cst_643 = arith.constant 1.000000e+00 : f32
    %1921 = vector.broadcast %cst_643 : f32 to vector<16x32xf32>
    %1922 = arith.subf %1920, %1921 : vector<16x32xf32>
    %1923 = arith.select %1919, %1917, %1922 : vector<16x32xi1>, vector<16x32xf32>
    %1924 = arith.truncf %1923 : vector<16x32xf32> to vector<16x32xbf16>
    %cst_644 = arith.constant dense<0.000000e+00> : vector<16x32xf32>
    %1925 = tpu.matmul %1924, %0, %cst_644 {dimension_numbers = #tpu.dot_dimension_numbers<[1], [0], [0], [1], [0, 0, 1, 1], [], []>} : vector<16x32xbf16>, vector<32x32xbf16>, vector<16x32xf32> -> vector<16x32xf32>
    %1926 = arith.addf %1925, %4 : vector<16x32xf32>
    %cst_645 = arith.constant 0.000000e+00 : f32
    %1927 = vector.broadcast %cst_645 : f32 to vector<16x32xf32>
    %1928 = arith.cmpf ogt, %1926, %1927 : vector<16x32xf32>
    %1929 = math.exp %1926 : vector<16x32xf32>
    %cst_646 = arith.constant 1.000000e+00 : f32
    %1930 = vector.broadcast %cst_646 : f32 to vector<16x32xf32>
    %1931 = arith.subf %1929, %1930 : vector<16x32xf32>
    %1932 = arith.select %1928, %1926, %1931 : vector<16x32xi1>, vector<16x32xf32>
    %1933 = arith.truncf %1932 : vector<16x32xf32> to vector<16x32xbf16>
    %cst_647 = arith.constant dense<0.000000e+00> : vector<16x32xf32>
    %1934 = tpu.matmul %1933, %1, %cst_647 {dimension_numbers = #tpu.dot_dimension_numbers<[1], [0], [0], [1], [0, 0, 1, 1], [], []>} : vector<16x32xbf16>, vector<32x32xbf16>, vector<16x32xf32> -> vector<16x32xf32>
    %1935 = arith.addf %1894, %1914 : vector<16x32xf32>
    %cst_648 = arith.constant 2.000000e+00 : f32
    %1936 = vector.broadcast %cst_648 : f32 to vector<16x32xf32>
    %1937 = arith.mulf %1936, %1935 : vector<16x32xf32>
    %1938 = arith.addf %1874, %1937 : vector<16x32xf32>
    %cst_649 = arith.constant 0.00833333377 : f32
    %1939 = vector.broadcast %cst_649 : f32 to vector<16x32xf32>
    %1940 = arith.mulf %1939, %1938 : vector<16x32xf32>
    %1941 = arith.addf %1857, %1940 : vector<16x32xf32>
    %cst_650 = arith.constant 0.00833333377 : f32
    %1942 = vector.broadcast %cst_650 : f32 to vector<16x32xf32>
    %1943 = arith.mulf %1942, %1934 : vector<16x32xf32>
    %1944 = arith.addf %1941, %1943 : vector<16x32xf32>
    %1945 = arith.addf %1872, %1932 : vector<16x32xf32>
    %1946 = arith.addf %1892, %1912 : vector<16x32xf32>
    %cst_651 = arith.constant 2.000000e+00 : f32
    %1947 = vector.broadcast %cst_651 : f32 to vector<16x32xf32>
    %1948 = arith.mulf %1947, %1946 : vector<16x32xf32>
    %1949 = arith.addf %1945, %1948 : vector<16x32xf32>
    %cst_652 = arith.constant 0.00833333377 : f32
    %1950 = vector.broadcast %cst_652 : f32 to vector<16x32xf32>
    %1951 = arith.mulf %1950, %1949 : vector<16x32xf32>
    %1952 = arith.addf %1855, %1951 : vector<16x32xf32>
    %1953 = arith.truncf %1952 : vector<16x32xf32> to vector<16x32xbf16>
    %cst_653 = arith.constant dense<0.000000e+00> : vector<16x8xf32>
    %1954 = tpu.matmul %1953, %2, %cst_653 {dimension_numbers = #tpu.dot_dimension_numbers<[1], [0], [0], [1], [0, 0, 1, 1], [], []>} : vector<16x32xbf16>, vector<32x8xbf16>, vector<16x8xf32> -> vector<16x8xf32>
    %1955 = arith.addf %7, %1954 : vector<16x8xf32>
    %cst_654 = arith.constant 1.000000e+00 : f32
    %1956 = vector.broadcast %cst_654 : f32 to vector<16x8xf32>
    %1957 = arith.mulf %1956, %6 : vector<16x8xf32>
    %1958 = arith.addf %1955, %1957 : vector<16x8xf32>
    %c0_655 = arith.constant 0 : index
    %c0_656 = arith.constant 0 : index
    %1959 = vector.load %arg1[%c0_655, %c0_656] : memref<16x4xi32, #tpu.memory_space<vmem>>, vector<16x4xi32>
    %1960 = tpu.iota {dimensions = array<i32: 1>} : vector<16x8xi32>
    %1961 = vector.extract_strided_slice %1959 {offsets = [0, 0], sizes = [16, 1], strides = [1, 1]} : vector<16x4xi32> to vector<16x1xi32>
    %1962 = vector.broadcast %1961 : vector<16x1xi32> to vector<16x8xi32>
    %1963 = arith.cmpi eq, %1962, %1960 : vector<16x8xi32>
    %cst_657 = arith.constant 0.000000e+00 : f32
    %1964 = vector.broadcast %cst_657 : f32 to vector<16x8xf32>
    %1965 = arith.select %1963, %1958, %1964 : vector<16x8xi1>, vector<16x8xf32>
    %cst_658 = arith.constant dense<0.000000e+00> : vector<16xf32>
    %1966 = vector.multi_reduction <add>, %1965, %cst_658 [1] : vector<16x8xf32> to vector<16xf32>
    %1967 = vector.shape_cast %1966 : vector<16xf32> to vector<16x1xf32>
    %1968 = vector.extract_strided_slice %1959 {offsets = [0, 1], sizes = [16, 1], strides = [1, 1]} : vector<16x4xi32> to vector<16x1xi32>
    %1969 = vector.broadcast %1968 : vector<16x1xi32> to vector<16x8xi32>
    %1970 = arith.cmpi eq, %1969, %1960 : vector<16x8xi32>
    %cst_659 = arith.constant 0.000000e+00 : f32
    %1971 = vector.broadcast %cst_659 : f32 to vector<16x8xf32>
    %1972 = arith.select %1970, %1958, %1971 : vector<16x8xi1>, vector<16x8xf32>
    %cst_660 = arith.constant dense<0.000000e+00> : vector<16xf32>
    %1973 = vector.multi_reduction <add>, %1972, %cst_660 [1] : vector<16x8xf32> to vector<16xf32>
    %1974 = vector.shape_cast %1973 : vector<16xf32> to vector<16x1xf32>
    %1975 = vector.extract_strided_slice %1959 {offsets = [0, 2], sizes = [16, 1], strides = [1, 1]} : vector<16x4xi32> to vector<16x1xi32>
    %1976 = vector.broadcast %1975 : vector<16x1xi32> to vector<16x8xi32>
    %1977 = arith.cmpi eq, %1976, %1960 : vector<16x8xi32>
    %cst_661 = arith.constant 0.000000e+00 : f32
    %1978 = vector.broadcast %cst_661 : f32 to vector<16x8xf32>
    %1979 = arith.select %1977, %1958, %1978 : vector<16x8xi1>, vector<16x8xf32>
    %cst_662 = arith.constant dense<0.000000e+00> : vector<16xf32>
    %1980 = vector.multi_reduction <add>, %1979, %cst_662 [1] : vector<16x8xf32> to vector<16xf32>
    %1981 = vector.shape_cast %1980 : vector<16xf32> to vector<16x1xf32>
    %1982 = vector.extract_strided_slice %1959 {offsets = [0, 3], sizes = [16, 1], strides = [1, 1]} : vector<16x4xi32> to vector<16x1xi32>
    %1983 = vector.broadcast %1982 : vector<16x1xi32> to vector<16x8xi32>
    %1984 = arith.cmpi eq, %1983, %1960 : vector<16x8xi32>
    %cst_663 = arith.constant 0.000000e+00 : f32
    %1985 = vector.broadcast %cst_663 : f32 to vector<16x8xf32>
    %1986 = arith.select %1984, %1958, %1985 : vector<16x8xi1>, vector<16x8xf32>
    %cst_664 = arith.constant dense<0.000000e+00> : vector<16xf32>
    %1987 = vector.multi_reduction <add>, %1986, %cst_664 [1] : vector<16x8xf32> to vector<16xf32>
    %1988 = vector.shape_cast %1987 : vector<16xf32> to vector<16x1xf32>
    %1989 = tpu.concatenate %1967, %1974, %1981, %1988 in 1 : vector<16x1xf32>, vector<16x1xf32>, vector<16x1xf32>, vector<16x1xf32> -> vector<16x4xf32>
    %c0_665 = arith.constant 0 : index
    %c0_666 = arith.constant 0 : index
    %1990 = vector.load %arg4[%c0_665, %c0_666] : memref<16x4xf32, #tpu.memory_space<vmem>>, vector<16x4xf32>
    tpu.vector_store %arg4[%c0_665, %c0_666], %1989 {strides = array<i32>} : memref<16x4xf32, #tpu.memory_space<vmem>>, vector<16x4xf32>,
    return
  }
  func.func @transform_0(%arg0: i32) -> (i32, i32) {
    %c0_i32 = arith.constant 0 : i32
    %c0_i32_0 = arith.constant 0 : i32
    %c0_i32_1 = arith.constant 0 : i32
    return %c0_i32, %c0_i32_0 : i32, i32
  }
  func.func @transform_1(%arg0: i32) -> (i32, i32) {
    %c0_i32 = arith.constant 0 : i32
    %c0_i32_0 = arith.constant 0 : i32
    %c0_i32_1 = arith.constant 0 : i32
    return %c0_i32, %c0_i32_0 : i32, i32
  }
  func.func @transform_2(%arg0: i32) -> (i32, i32) {
    %c0_i32 = arith.constant 0 : i32
    %c0_i32_0 = arith.constant 0 : i32
    %c0_i32_1 = arith.constant 0 : i32
    return %c0_i32, %c0_i32_0 : i32, i32
  }
  func.func @transform_3(%arg0: i32) -> (i32, i32) {
    %c0_i32 = arith.constant 0 : i32
    %c0_i32_0 = arith.constant 0 : i32
    %c0_i32_1 = arith.constant 0 : i32
    return %c0_i32, %c0_i32_0 : i32, i32
  }
}

</mosaic_0001>

<bundles_post_ra>
// kernel: _forward_impl.1
= control target key start
LH: loop header
LB: loop body
LE: loop exit
PB: predicated region body
PF: predicated region fallthrough
CT: control target
= control target key end

     0   :  { %vm68_vm2 = vcmask 261120   ;;  %s8649_s1 = inlined_call_operand.vmem [shape: bf16[96,128], index: 1, kind: input, shape index: {}]   ;;  %s8650_s2 = inlined_call_operand.vmem [shape: f32[80,128], index: 2, kind: input, shape index: {}]   ;;  %s8651_s0 = inlined_call_operand.vmem [shape: s32[16,4], index: 0, kind: input, shape index: {}]   ;;  %s8652_s3 = inlined_call_operand.vmem [shape: f32[16,4], index: 3, kind: output, shape index: {}]  }
   0x1   :  { %v6698_v0 = vld [vmem:[%s8649_s1 + $0x8] sm:$0xff]  ;;  %v6703_v1 = vld [vmem:[%s8650_s2] sm:$0xff]  ;;  %v6735_v13 = vld [vmem:[%s8649_s1 + $0x18] sm:$0xff] }
   0x2   :  { %v6708_v2 = vld [vmem:[%s8650_s2 + $0x8] sm:$0xff]  ;;  %v47_v3 = vmul.f32 1.442695, %v6703_v1  ;;  %78 = vmatpush.bf16.msra.mxu0 %v6698_v0  ;;  %v6715_v4 = vld [vmem:[%s8649_s1] sm:$0xff]  ;;  %150 = vmatpush.bf16.msra.mxu2 %v6698_v0  ;;  %vm45_vm0 = vcmp.gt.f32.partialorder %v6703_v1, 0.0  ;;  %v6742_v14 = vld [vmem:[%s8649_s1 + $0x10] sm:$0xff] }
   0x3   :  { %v49_v5 = vmul.f32 1.442695, %v6708_v2  ;;  %vm46_vm1 = vcmp.gt.f32.partialorder %v6708_v2, 0.0  ;;  %118 = vmatpush.bf16.msra.mxu1 %v6735_v13  ;;  %178 = vmatpush.bf16.msra.mxu3 %v6735_v13  ;;  %v6753_v15 = vld [vmem:[%s8650_s2 + $0x10] sm:$0xff]  ;;  %v6759_v19 = vld [vmem:[%s8650_s2 + $0x18] sm:$0xff]  ;;  %v6774_v30 = vld [vmem:[%s8650_s2 + $0x20] sm:$0xff] }
   0x4   :  { %5993 = vpow2.f32 %v47_v3  ;;  %v6777_v31 = vmul.f32 0.025, %v6774_v30  ;;  %v6784_v33 = vld [vmem:[%s8650_s2 + $0x28] sm:$0xff] }
   0x5   :  { %5995 = vpow2.f32 %v49_v5  ;;  %v6790_v36 = vmul.f32 0.025, %v6784_v33 }
   0x6   :  { %79 = vmatpush.bf16.msra.mxu0 %v6715_v4  ;;  %151 = vmatpush.bf16.msra.mxu2 %v6715_v4  ;;  %v41_v32 = vadd.f32 %v6777_v31, %v6703_v1 }
   0x7   :  { %119 = vmatpush.bf16.msra.mxu1 %v6742_v14  ;;  %179 = vmatpush.bf16.msra.mxu3 %v6742_v14  ;;  %v42_v39 = vadd.f32 %v6790_v36, %v6708_v2 }
   0xa   :  { %210 = vmatpush.bf16.msrb.mxu0 %v6698_v0  ;;  %270 = vmatpush.bf16.msrb.mxu2 %v6698_v0  ;;  %v5994_v6 = vpop.eup %5993 }
   0xb   :  { %v5996_v7 = vpop.eup %5995  ;;  %v5473_v8 = vadd.f32 -1.0, %v5994_v6  ;;  %238 = vmatpush.bf16.msrb.mxu1 %v6735_v13  ;;  %298 = vmatpush.bf16.msrb.mxu3 %v6735_v13 }
   0xc   :  { %v5474_v9 = vadd.f32 -1.0, %v5996_v7 }
   0xd   :  { %v53_v10 = vsel %vm45_vm0, %v6703_v1, %v5473_v8 }
   0xe   :  { %211 = vmatpush.bf16.msrb.mxu0 %v6715_v4  ;;  %271 = vmatpush.bf16.msrb.mxu2 %v6715_v4  ;;  %v54_v11 = vsel %vm46_vm1, %v6708_v2, %v5474_v9 }
   0xf   :  { %v55_v12 = vpack.c.bf16 %v54_v11, %v53_v10  ;;  %239 = vmatpush.bf16.msrb.mxu1 %v6742_v14  ;;  %299 = vmatpush.bf16.msrb.mxu3 %v6742_v14 }
  0x11   :  { %5483 = vmatmul.msk.bf16.vlgmr.msra.gmra.mxu0 %vm68_vm2, %v55_v12 }
  0x12   :  { %356 = vmatpush.bf16.msra.mxu0 %v6698_v0 }
  0x16   :  { %357 = vmatpush.bf16.msra.mxu0 %v6715_v4 }
  0x8e   :  { %v81_v16 = vpop.f32.mrf.mxu0 }
  0x8f   :  { %v82_v17 = vadd.f32 %v81_v16, %v6753_v15 }
  0x91   :  { %v88_v18 = vmul.f32 1.442695, %v82_v17  ;;  %vm86_vm3 = vcmp.gt.f32.partialorder %v82_v17, 0.0 }
  0x93   :  { %5997 = vpow2.f32 %v88_v18 }
  0x96   :  { %v83_v20 = vpop.f32.mrf.mxu0 }
  0x97   :  { %v84_v21 = vadd.f32 %v83_v20, %v6759_v19 }
  0x99   :  { %v90_v22 = vmul.f32 1.442695, %v84_v21  ;;  %v5998_v23 = vpop.eup %5997  ;;  %vm87_vm4 = vcmp.gt.f32.partialorder %v84_v21, 0.0 }
  0x9a   :  { %v5484_v24 = vadd.f32 -1.0, %v5998_v23 }
  0x9b   :  { %5999 = vpow2.f32 %v90_v22 }
  0x9c   :  { %v6762_v27 = vsel %vm86_vm3, %v82_v17, %v5484_v24 }
  0xa1   :  { %v6000_v25 = vpop.eup %5999 }
  0xa2   :  { %v5485_v26 = vadd.f32 -1.0, %v6000_v25 }
  0xa4   :  { %v6764_v28 = vsel %vm87_vm4, %v84_v21, %v5485_v26 }
  0xa5   :  { %v96_v29 = vpack.c.bf16 %v6764_v28, %v6762_v27 }
  0xa7   :  { %5494 = vmatmul.msk.bf16.vlgmr.msra.gmra.mxu1 %vm68_vm2, %v96_v29 }
  0xa8   :  { %384 = vmatpush.bf16.msra.mxu1 %v6735_v13 }
  0xac   :  { %385 = vmatpush.bf16.msra.mxu1 %v6742_v14 }
 0x124   :  { %v6786_v34 = vpop.f32.mrf.mxu1 }
 0x125   :  { %v126_v35 = vmul.f32 0.025, %v6786_v34 }
 0x127   :  { %v128_v37 = vadd.f32 %v126_v35, %v41_v32 }
 0x129   :  { %v132_v38 = vmul.f32 1.442695, %v128_v37  ;;  %vm130_vm5 = vcmp.gt.f32.partialorder %v128_v37, 0.0 }
 0x12b   :  { %6001 = vpow2.f32 %v132_v38 }
 0x12c   :  { %v6794_v40 = vpop.f32.mrf.mxu1 }
 0x12d   :  { %v127_v41 = vmul.f32 0.025, %v6794_v40 }
 0x12f   :  { %v129_v42 = vadd.f32 %v127_v41, %v42_v39 }
 0x131   :  { %v134_v43 = vmul.f32 1.442695, %v129_v42  ;;  %v6002_v44 = vpop.eup %6001  ;;  %vm131_vm6 = vcmp.gt.f32.partialorder %v129_v42, 0.0 }
 0x132   :  { %v5495_v45 = vadd.f32 -1.0, %v6002_v44  ;;  %v6823_v44 = vmul.f32 0.05, %v6774_v30 }
 0x133   :  { %6003 = vpow2.f32 %v134_v43 }
 0x134   :  { %v138_v48 = vsel %vm130_vm5, %v128_v37, %v5495_v45  ;;  %v43_v45 = vadd.f32 %v6823_v44, %v6703_v1 }
 0x139   :  { %v6004_v46 = vpop.eup %6003 }
 0x13a   :  { %v5496_v47 = vadd.f32 -1.0, %v6004_v46 }
 0x13c   :  { %v139_v49 = vsel %vm131_vm6, %v129_v42, %v5496_v47 }
 0x13d   :  { %v140_v50 = vpack.c.bf16 %v139_v49, %v138_v48  ;;  %v6828_v49 = vmul.f32 0.05, %v6784_v33 }
 0x13f   :  { %5497 = vmatmul.msk.bf16.vlgmr.msra.gmra.mxu2 %vm68_vm2, %v140_v50 }
 0x140   :  { %416 = vmatpush.bf16.msra.mxu2 %v6698_v0 }
 0x144   :  { %417 = vmatpush.bf16.msra.mxu2 %v6715_v4 }
 0x1c2   :  { %v153_v51 = vpop.f32.mrf.mxu2 }
 0x1c3   :  { %v154_v52 = vadd.f32 %v153_v51, %v6753_v15 }
 0x1c5   :  { %v160_v53 = vmul.f32 1.442695, %v154_v52  ;;  %vm158_vm7 = vcmp.gt.f32.partialorder %v154_v52, 0.0 }
 0x1c7   :  { %6005 = vpow2.f32 %v160_v53 }
 0x1ca   :  { %v155_v54 = vpop.f32.mrf.mxu2 }
 0x1cb   :  { %v156_v55 = vadd.f32 %v155_v54, %v6759_v19 }
 0x1cd   :  { %v162_v56 = vmul.f32 1.442695, %v156_v55  ;;  %v6006_v57 = vpop.eup %6005  ;;  %vm159_vm8 = vcmp.gt.f32.partialorder %v156_v55, 0.0 }
 0x1ce   :  { %v5498_v58 = vadd.f32 -1.0, %v6006_v57 }
 0x1cf   :  { %6007 = vpow2.f32 %v162_v56 }
 0x1d0   :  { %v6802_v61 = vsel %vm158_vm7, %v154_v52, %v5498_v58 }
 0x1d5   :  { %v6008_v59 = vpop.eup %6007 }
 0x1d6   :  { %v5499_v60 = vadd.f32 -1.0, %v6008_v59 }
 0x1d8   :  { %v6804_v62 = vsel %vm159_vm8, %v156_v55, %v5499_v60  ;;  %v44_v55 = vadd.f32 %v6828_v49, %v6708_v2 }
 0x1d9   :  { %v168_v63 = vpack.c.bf16 %v6804_v62, %v6802_v61 }
 0x1db   :  { %5500 = vmatmul.msk.bf16.vlgmr.msra.gmra.mxu3 %vm68_vm2, %v168_v63 }
 0x1dc   :  { %444 = vmatpush.bf16.msra.mxu3 %v6735_v13 }
 0x1e0   :  { %445 = vmatpush.bf16.msra.mxu3 %v6742_v14 }
 0x25e   :  { %v181_v3 = vpop.f32.mrf.mxu3 }
 0x25f   :  { %v186_v5 = vmul.f32 0.025, %v181_v3 }
 0x261   :  { %v188_v6 = vadd.f32 %v186_v5, %v41_v32 }
 0x263   :  { %v192_v7 = vmul.f32 1.442695, %v188_v6  ;;  %vm190_vm9 = vcmp.gt.f32.partialorder %v188_v6, 0.0 }
 0x265   :  { %6009 = vpow2.f32 %v192_v7 }
 0x266   :  { %v6811_v8 = vpop.f32.mrf.mxu3 }
 0x267   :  { %v187_v9 = vmul.f32 0.025, %v6811_v8 }
 0x269   :  { %v189_v10 = vadd.f32 %v187_v9, %v42_v39 }
 0x26b   :  { %v194_v11 = vmul.f32 1.442695, %v189_v10  ;;  %v6010_v12 = vpop.eup %6009  ;;  %vm191_vm10 = vcmp.gt.f32.partialorder %v189_v10, 0.0 }
 0x26c   :  { %v5501_v16 = vadd.f32 -1.0, %v6010_v12 }
 0x26d   :  { %6011 = vpow2.f32 %v194_v11 }
 0x26e   :  { %v198_v20 = vsel %vm190_vm9, %v188_v6, %v5501_v16 }
 0x273   :  { %v6012_v17 = vpop.eup %6011 }
 0x274   :  { %v5502_v18 = vadd.f32 -1.0, %v6012_v17 }
 0x276   :  { %v199_v21 = vsel %vm191_vm10, %v189_v10, %v5502_v18 }
 0x277   :  { %v200_v22 = vpack.c.bf16 %v199_v21, %v198_v20 }
 0x279   :  { %5503 = vmatmul.msk.bf16.vlgmr.msrb.gmra.mxu0 %vm68_vm2, %v200_v22 }
 0x27a   :  { %476 = vmatpush.bf16.msrb.mxu0 %v6698_v0 }
 0x27e   :  { %477 = vmatpush.bf16.msrb.mxu0 %v6715_v4 }
 0x2f6   :  { %v213_v23 = vpop.f32.mrf.mxu0 }
 0x2f7   :  { %v214_v24 = vadd.f32 %v213_v23, %v6753_v15 }
 0x2f9   :  { %v220_v25 = vmul.f32 1.442695, %v214_v24  ;;  %vm218_vm11 = vcmp.gt.f32.partialorder %v214_v24, 0.0 }
 0x2fb   :  { %6013 = vpow2.f32 %v220_v25 }
 0x2fe   :  { %v215_v26 = vpop.f32.mrf.mxu0 }
 0x2ff   :  { %v216_v29 = vadd.f32 %v215_v26, %v6759_v19 }
 0x301   :  { %v222_v32 = vmul.f32 1.442695, %v216_v29  ;;  %v6014_v35 = vpop.eup %6013  ;;  %vm219_vm12 = vcmp.gt.f32.partialorder %v216_v29, 0.0 }
 0x302   :  { %v5504_v37 = vadd.f32 -1.0, %v6014_v35 }
 0x303   :  { %6015 = vpow2.f32 %v222_v32 }
 0x304   :  { %v226_v41 = vsel %vm218_vm11, %v214_v24, %v5504_v37 }
 0x305   :  { %v322_v12 = vadd.f32 %v226_v41, %v6802_v61 }
 0x307   :  { %v324_v20 = vmul.f32 2.0, %v322_v12 }
 0x309   :  { %v6016_v38 = vpop.eup %6015 }
 0x30a   :  { %v5505_v39 = vadd.f32 -1.0, %v6016_v38 }
 0x30c   :  { %v227_v42 = vsel %vm219_vm12, %v216_v29, %v5505_v39 }
 0x30d   :  { %v228_v43 = vpack.c.bf16 %v227_v42, %v226_v41  ;;  %v323_v24 = vadd.f32 %v227_v42, %v6804_v62 }
 0x30f   :  { %5506 = vmatmul.msk.bf16.vlgmr.msrb.gmra.mxu1 %vm68_vm2, %v228_v43  ;;  %v325_v29 = vmul.f32 2.0, %v323_v24 }
 0x310   :  { %504 = vmatpush.bf16.msrb.mxu1 %v6735_v13 }
 0x314   :  { %505 = vmatpush.bf16.msrb.mxu1 %v6742_v14 }
 0x38c   :  { %v241_v46 = vpop.f32.mrf.mxu1 }
 0x38d   :  { %v246_v47 = vmul.f32 0.05, %v241_v46  ;;  %v306_v48 = vadd.f32 %v241_v46, %v181_v3 }
 0x38f   :  { %v248_v50 = vadd.f32 %v246_v47, %v43_v45  ;;  %v308_v51 = vmul.f32 2.0, %v306_v48 }
 0x391   :  { %v310_v52 = vadd.f32 %v308_v51, %v6786_v34  ;;  %v252_v53 = vmul.f32 1.442695, %v248_v50  ;;  %vm250_vm13 = vcmp.gt.f32.partialorder %v248_v50, 0.0 }
 0x393   :  { %v312_v54 = vmul.f32 0.008333334, %v310_v52  ;;  %6017 = vpow2.f32 %v252_v53 }
 0x394   :  { %v243_v30 = vpop.f32.mrf.mxu1 }
 0x395   :  { %v247_v56 = vmul.f32 0.05, %v243_v30  ;;  %v314_v57 = vadd.f32 %v312_v54, %v43_v45 }
 0x397   :  { %v249_v1 = vadd.f32 %v247_v56, %v44_v55 }
 0x399   :  { %v254_v58 = vmul.f32 1.442695, %v249_v1  ;;  %v6018_v59 = vpop.eup %6017  ;;  %vm251_vm14 = vcmp.gt.f32.partialorder %v249_v1, 0.0 }
 0x39a   :  { %v5507_v60 = vadd.f32 -1.0, %v6018_v59 }
 0x39b   :  { %6019 = vpow2.f32 %v254_v58 }
 0x39c   :  { %v258_v3 = vsel %vm250_vm13, %v248_v50, %v5507_v60 }
 0x3a1   :  { %v6020_v33 = vpop.eup %6019 }
 0x3a2   :  { %v5508_v63 = vadd.f32 -1.0, %v6020_v33 }
 0x3a4   :  { %v259_v34 = vsel %vm251_vm14, %v249_v1, %v5508_v63 }
 0x3a5   :  { %v260_v5 = vpack.c.bf16 %v259_v34, %v258_v3 }
 0x3a7   :  { %5509 = vmatmul.msk.bf16.vlgmr.msrb.gmra.mxu2 %vm68_vm2, %v260_v5 }
 0x3a8   :  { %536 = vmatpush.bf16.msrb.mxu2 %v6698_v0 }
 0x3ac   :  { %537 = vmatpush.bf16.msrb.mxu2 %v6715_v4 }
 0x42a   :  { %v273_v2 = vpop.f32.mrf.mxu2 }
 0x42b   :  { %v274_v6 = vadd.f32 %v273_v2, %v6753_v15 }
 0x42d   :  { %v280_v7 = vmul.f32 1.442695, %v274_v6  ;;  %vm278_vm15 = vcmp.gt.f32.partialorder %v274_v6, 0.0 }
 0x42f   :  { %6021 = vpow2.f32 %v280_v7 }
 0x432   :  { %v275_v9 = vpop.f32.mrf.mxu2 }
 0x433   :  { %v276_v10 = vadd.f32 %v275_v9, %v6759_v19 }
 0x435   :  { %v6022_v11 = vpop.eup %6021  ;;  %v282_v16 = vmul.f32 1.442695, %v276_v10  ;;  %vm279_vm0 = vcmp.gt.f32.partialorder %v276_v10, 0.0 }
 0x436   :  { %v5510_v17 = vadd.f32 -1.0, %v6022_v11 }
 0x437   :  { %6023 = vpow2.f32 %v282_v16 }
 0x438   :  { %v286_v18 = vsel %vm278_vm15, %v274_v6, %v5510_v17 }
 0x439   :  { %v320_v21 = vadd.f32 %v286_v18, %v6762_v27  ;;  %v307_v27 = vadd.f32 %v243_v30, %v6811_v8 }
 0x43b   :  { %v6840_v22 = vadd.f32 %v324_v20, %v320_v21  ;;  %v309_v37 = vmul.f32 2.0, %v307_v27 }
 0x43d   :  { %v6024_v23 = vpop.eup %6023  ;;  %v311_v62 = vadd.f32 %v309_v37, %v6794_v40 }
 0x43e   :  { %v5511_v25 = vadd.f32 -1.0, %v6024_v23 }
 0x43f   :  { %v313_v42 = vmul.f32 0.008333334, %v311_v62 }
 0x440   :  { %v287_v26 = vsel %vm279_vm0, %v276_v10, %v5511_v25 }
 0x441   :  { %v288_v32 = vpack.c.bf16 %v287_v26, %v286_v18  ;;  %v321_v61 = vadd.f32 %v287_v26, %v6764_v28  ;;  %v315_v45 = vadd.f32 %v313_v42, %v44_v55 }
 0x443   :  { %v6844_v35 = vadd.f32 %v325_v29, %v321_v61  ;;  %5512 = vmatmul.msk.bf16.vlgmr.msrb.gmra.mxu3 %vm68_vm2, %v288_v32 }
 0x444   :  { %564 = vmatpush.bf16.msrb.mxu3 %v6735_v13 }
 0x448   :  { %565 = vmatpush.bf16.msrb.mxu3 %v6742_v14 }
 0x4c6   :  { %v301_v38 = vpop.f32.mrf.mxu3 }
 0x4c7   :  { %v316_v39 = vmul.f32 0.008333334, %v301_v38 }
 0x4c9   :  { %v6851_v41 = vadd.f32 %v316_v39, %v314_v57 }
 0x4cb   :  { %v338_v28 = vmul.f32 1.442695, %v6851_v41  ;;  %vm336_vm1 = vcmp.gt.f32.partialorder %v6851_v41, 0.0  ;;  %v332_v6 = vadd.f32 %v6851_v41, %v6777_v31 }
 0x4cd   :  { %6025 = vpow2.f32 %v338_v28 }
 0x4ce   :  { %v303_v43 = vpop.f32.mrf.mxu3 }
 0x4cf   :  { %v317_v46 = vmul.f32 0.008333334, %v303_v43 }
 0x4d1   :  { %v6854_v47 = vadd.f32 %v317_v46, %v315_v45 }
 0x4d3   :  { %v340_v48 = vmul.f32 1.442695, %v6854_v47  ;;  %v6026_v8 = vpop.eup %6025  ;;  %vm337_vm3 = vcmp.gt.f32.partialorder %v6854_v47, 0.0  ;;  %v333_v12 = vadd.f32 %v6854_v47, %v6790_v36 }
 0x4d4   :  { %v5513_v50 = vadd.f32 -1.0, %v6026_v8 }
 0x4d5   :  { %6027 = vpow2.f32 %v340_v48 }
 0x4d6   :  { %v344_v40 = vsel %vm336_vm1, %v6851_v41, %v5513_v50 }
 0x4db   :  { %v6028_v51 = vpop.eup %6027 }
 0x4dc   :  { %v5514_v52 = vadd.f32 -1.0, %v6028_v51 }
 0x4de   :  { %v345_v53 = vsel %vm337_vm3, %v6854_v47, %v5514_v52 }
 0x4df   :  { %v346_v54 = vpack.c.bf16 %v345_v53, %v344_v40 }
 0x4e1   :  { %5515 = vmatmul.msk.bf16.vlgmr.msra.gmra.mxu0 %vm68_vm2, %v346_v54 }
 0x4e2   :  { %622 = vmatpush.bf16.msra.mxu0 %v6698_v0 }
 0x4e6   :  { %623 = vmatpush.bf16.msra.mxu0 %v6715_v4 }
 0x55e   :  { %v359_v55 = vpop.f32.mrf.mxu0 }
 0x55f   :  { %v360_v30 = vadd.f32 %v359_v55, %v6753_v15 }
 0x561   :  { %v366_v56 = vmul.f32 1.442695, %v360_v30  ;;  %vm364_vm4 = vcmp.gt.f32.partialorder %v360_v30, 0.0 }
 0x563   :  { %6029 = vpow2.f32 %v366_v56 }
 0x566   :  { %v361_v57 = vpop.f32.mrf.mxu0 }
 0x567   :  { %v362_v1 = vadd.f32 %v361_v57, %v6759_v19 }
 0x569   :  { %v368_v58 = vmul.f32 1.442695, %v362_v1  ;;  %v6030_v59 = vpop.eup %6029  ;;  %vm365_vm5 = vcmp.gt.f32.partialorder %v362_v1, 0.0 }
 0x56a   :  { %v5516_v60 = vadd.f32 -1.0, %v6030_v59 }
 0x56b   :  { %6031 = vpow2.f32 %v368_v58 }
 0x56c   :  { %v6866_v3 = vsel %vm364_vm4, %v360_v30, %v5516_v60 }
 0x571   :  { %v6032_v33 = vpop.eup %6031 }
 0x572   :  { %v5517_v63 = vadd.f32 -1.0, %v6032_v33 }
 0x574   :  { %v6868_v34 = vsel %vm365_vm5, %v362_v1, %v5517_v63 }
 0x575   :  { %v374_v5 = vpack.c.bf16 %v6868_v34, %v6866_v3 }
 0x577   :  { %5518 = vmatmul.msk.bf16.vlgmr.msra.gmra.mxu1 %vm68_vm2, %v374_v5 }
 0x578   :  { %650 = vmatpush.bf16.msra.mxu1 %v6735_v13 }
 0x57c   :  { %651 = vmatpush.bf16.msra.mxu1 %v6742_v14 }
 0x5f4   :  { %v6875_v2 = vpop.f32.mrf.mxu1 }
 0x5f5   :  { %v392_v7 = vmul.f32 0.025, %v6875_v2 }
 0x5f7   :  { %v394_v9 = vadd.f32 %v392_v7, %v332_v6 }
 0x5f9   :  { %v398_v10 = vmul.f32 1.442695, %v394_v9  ;;  %vm396_vm6 = vcmp.gt.f32.partialorder %v394_v9, 0.0 }
 0x5fb   :  { %6033 = vpow2.f32 %v398_v10 }
 0x5fc   :  { %v6880_v11 = vpop.f32.mrf.mxu1 }
 0x5fd   :  { %v393_v16 = vmul.f32 0.025, %v6880_v11 }
 0x5ff   :  { %v395_v17 = vadd.f32 %v393_v16, %v333_v12 }
 0x601   :  { %v400_v18 = vmul.f32 1.442695, %v395_v17  ;;  %v6034_v20 = vpop.eup %6033  ;;  %vm397_vm7 = vcmp.gt.f32.partialorder %v395_v17, 0.0 }
 0x602   :  { %v5519_v21 = vadd.f32 -1.0, %v6034_v20 }
 0x603   :  { %6035 = vpow2.f32 %v400_v18 }
 0x604   :  { %v404_v25 = vsel %vm396_vm6, %v394_v9, %v5519_v21 }
 0x609   :  { %v6036_v23 = vpop.eup %6035 }
 0x60a   :  { %v5520_v24 = vadd.f32 -1.0, %v6036_v23 }
 0x60c   :  { %v405_v26 = vsel %vm397_vm7, %v395_v17, %v5520_v24  ;;  %v334_v24 = vadd.f32 %v6851_v41, %v6823_v44 }
 0x60d   :  { %v406_v29 = vpack.c.bf16 %v405_v26, %v404_v25 }
 0x60f   :  { %5521 = vmatmul.msk.bf16.vlgmr.msra.gmra.mxu2 %vm68_vm2, %v406_v29 }
 0x610   :  { %682 = vmatpush.bf16.msra.mxu2 %v6698_v0 }
 0x614   :  { %683 = vmatpush.bf16.msra.mxu2 %v6715_v4 }
 0x692   :  { %v419_v32 = vpop.f32.mrf.mxu2 }
 0x693   :  { %v420_v61 = vadd.f32 %v419_v32, %v6753_v15 }
 0x695   :  { %v426_v27 = vmul.f32 1.442695, %v420_v61  ;;  %vm424_vm8 = vcmp.gt.f32.partialorder %v420_v61, 0.0 }
 0x697   :  { %6037 = vpow2.f32 %v426_v27 }
 0x69a   :  { %v421_v37 = vpop.f32.mrf.mxu2 }
 0x69b   :  { %v422_v38 = vadd.f32 %v421_v37, %v6759_v19 }
 0x69d   :  { %v428_v62 = vmul.f32 1.442695, %v422_v38  ;;  %v6038_v39 = vpop.eup %6037  ;;  %vm425_vm9 = vcmp.gt.f32.partialorder %v422_v38, 0.0 }
 0x69e   :  { %v5522_v42 = vadd.f32 -1.0, %v6038_v39 }
 0x69f   :  { %6039 = vpow2.f32 %v428_v62  ;;  %v335_v62 = vadd.f32 %v6854_v47, %v6828_v49 }
 0x6a0   :  { %v6890_v45 = vsel %vm424_vm8, %v420_v61, %v5522_v42 }
 0x6a5   :  { %v6040_v28 = vpop.eup %6039 }
 0x6a6   :  { %v5523_v43 = vadd.f32 -1.0, %v6040_v28 }
 0x6a8   :  { %v6892_v46 = vsel %vm425_vm9, %v422_v38, %v5523_v43 }
 0x6a9   :  { %v434_v48 = vpack.c.bf16 %v6892_v46, %v6890_v45 }
 0x6ab   :  { %5524 = vmatmul.msk.bf16.vlgmr.msra.gmra.mxu3 %vm68_vm2, %v434_v48 }
 0x6ac   :  { %710 = vmatpush.bf16.msra.mxu3 %v6735_v13 }
 0x6b0   :  { %711 = vmatpush.bf16.msra.mxu3 %v6742_v14 }
 0x72e   :  { %v447_v8 = vpop.f32.mrf.mxu3 }
 0x72f   :  { %v452_v50 = vmul.f32 0.025, %v447_v8 }
 0x731   :  { %v454_v51 = vadd.f32 %v452_v50, %v332_v6 }
 0x733   :  { %v458_v52 = vmul.f32 1.442695, %v454_v51  ;;  %vm456_vm10 = vcmp.gt.f32.partialorder %v454_v51, 0.0 }
 0x735   :  { %6041 = vpow2.f32 %v458_v52 }
 0x736   :  { %v6899_v40 = vpop.f32.mrf.mxu3 }
 0x737   :  { %v453_v53 = vmul.f32 0.025, %v6899_v40 }
 0x739   :  { %v455_v54 = vadd.f32 %v453_v53, %v333_v12 }
 0x73b   :  { %v460_v55 = vmul.f32 1.442695, %v455_v54  ;;  %v6042_v30 = vpop.eup %6041  ;;  %vm457_vm11 = vcmp.gt.f32.partialorder %v455_v54, 0.0 }
 0x73c   :  { %v5525_v56 = vadd.f32 -1.0, %v6042_v30 }
 0x73d   :  { %6043 = vpow2.f32 %v460_v55 }
 0x73e   :  { %v464_v58 = vsel %vm456_vm10, %v454_v51, %v5525_v56 }
 0x743   :  { %v6044_v57 = vpop.eup %6043 }
 0x744   :  { %v5526_v1 = vadd.f32 -1.0, %v6044_v57 }
 0x746   :  { %v465_v59 = vsel %vm457_vm11, %v455_v54, %v5526_v1 }
 0x747   :  { %v466_v60 = vpack.c.bf16 %v465_v59, %v464_v58 }
 0x749   :  { %5527 = vmatmul.msk.bf16.vlgmr.msrb.gmra.mxu0 %vm68_vm2, %v466_v60 }
 0x74a   :  { %742 = vmatpush.bf16.msrb.mxu0 %v6698_v0 }
 0x74e   :  { %743 = vmatpush.bf16.msrb.mxu0 %v6715_v4 }
 0x7c6   :  { %v479_v33 = vpop.f32.mrf.mxu0 }
 0x7c7   :  { %v480_v63 = vadd.f32 %v479_v33, %v6753_v15 }
 0x7c9   :  { %v486_v5 = vmul.f32 1.442695, %v480_v63  ;;  %vm484_vm12 = vcmp.gt.f32.partialorder %v480_v63, 0.0 }
 0x7cb   :  { %6045 = vpow2.f32 %v486_v5 }
 0x7ce   :  { %v481_v6 = vpop.f32.mrf.mxu0 }
 0x7cf   :  { %v482_v7 = vadd.f32 %v481_v6, %v6759_v19  ;;  %v328_v6 = vmul.f32 0.008333334, %v6840_v22 }
 0x7d1   :  { %v488_v9 = vmul.f32 1.442695, %v482_v7  ;;  %v6046_v10 = vpop.eup %6045  ;;  %vm485_vm13 = vcmp.gt.f32.partialorder %v482_v7, 0.0 }
 0x7d2   :  { %v5528_v12 = vadd.f32 -1.0, %v6046_v10 }
 0x7d3   :  { %6047 = vpow2.f32 %v488_v9 }
 0x7d4   :  { %v492_v18 = vsel %vm484_vm12, %v480_v63, %v5528_v12 }
 0x7d5   :  { %v588_v57 = vadd.f32 %v492_v18, %v6890_v45 }
 0x7d7   :  { %v590_v60 = vmul.f32 2.0, %v588_v57 }
 0x7d9   :  { %v6048_v16 = vpop.eup %6047 }
 0x7da   :  { %v5529_v17 = vadd.f32 -1.0, %v6048_v16 }
 0x7dc   :  { %v493_v20 = vsel %vm485_vm13, %v482_v7, %v5529_v17 }
 0x7dd   :  { %v494_v21 = vpack.c.bf16 %v493_v20, %v492_v18  ;;  %v589_v7 = vadd.f32 %v493_v20, %v6892_v46 }
 0x7df   :  { %5530 = vmatmul.msk.bf16.vlgmr.msrb.gmra.mxu1 %vm68_vm2, %v494_v21  ;;  %v591_v16 = vmul.f32 2.0, %v589_v7 }
 0x7e0   :  { %770 = vmatpush.bf16.msrb.mxu1 %v6735_v13 }
 0x7e4   :  { %771 = vmatpush.bf16.msrb.mxu1 %v6742_v14 }
 0x85c   :  { %v507_v23 = vpop.f32.mrf.mxu1 }
 0x85d   :  { %v512_v25 = vmul.f32 0.05, %v507_v23  ;;  %v572_v26 = vadd.f32 %v507_v23, %v447_v8 }
 0x85f   :  { %v514_v29 = vadd.f32 %v512_v25, %v334_v24  ;;  %v574_v32 = vmul.f32 2.0, %v572_v26 }
 0x861   :  { %v576_v61 = vadd.f32 %v574_v32, %v6875_v2  ;;  %v518_v27 = vmul.f32 1.442695, %v514_v29  ;;  %vm516_vm14 = vcmp.gt.f32.partialorder %v514_v29, 0.0 }
 0x863   :  { %v578_v37 = vmul.f32 0.008333334, %v576_v61  ;;  %6049 = vpow2.f32 %v518_v27 }
 0x864   :  { %v509_v38 = vpop.f32.mrf.mxu1 }
 0x865   :  { %v513_v39 = vmul.f32 0.05, %v509_v38  ;;  %v580_v42 = vadd.f32 %v578_v37, %v334_v24  ;;  %v573_v46 = vadd.f32 %v509_v38, %v6899_v40 }
 0x867   :  { %v515_v28 = vadd.f32 %v513_v39, %v335_v62  ;;  %v575_v20 = vmul.f32 2.0, %v573_v46 }
 0x869   :  { %v520_v43 = vmul.f32 1.442695, %v515_v28  ;;  %v6050_v48 = vpop.eup %6049  ;;  %vm517_vm15 = vcmp.gt.f32.partialorder %v515_v28, 0.0  ;;  %v577_v25 = vadd.f32 %v575_v20, %v6880_v11 }
 0x86a   :  { %v5531_v41 = vadd.f32 -1.0, %v6050_v48 }
 0x86b   :  { %6051 = vpow2.f32 %v520_v43 }
 0x86c   :  { %v524_v51 = vsel %vm516_vm14, %v514_v29, %v5531_v41  ;;  %v579_v29 = vmul.f32 0.008333334, %v577_v25 }
 0x86e   :  { %v581_v27 = vadd.f32 %v579_v29, %v335_v62 }
 0x871   :  { %v6052_v50 = vpop.eup %6051 }
 0x872   :  { %v5532_v8 = vadd.f32 -1.0, %v6052_v50 }
 0x874   :  { %v525_v2 = vsel %vm517_vm15, %v515_v28, %v5532_v8 }
 0x875   :  { %v526_v52 = vpack.c.bf16 %v525_v2, %v524_v51 }
 0x877   :  { %5533 = vmatmul.msk.bf16.vlgmr.msrb.gmra.mxu2 %vm68_vm2, %v526_v52 }
 0x878   :  { %802 = vmatpush.bf16.msrb.mxu2 %v6698_v0 }
 0x87c   :  { %803 = vmatpush.bf16.msrb.mxu2 %v6715_v4 }
 0x8fa   :  { %v539_v47 = vpop.f32.mrf.mxu2 }
 0x8fb   :  { %v540_v53 = vadd.f32 %v539_v47, %v6753_v15 }
 0x8fd   :  { %v546_v54 = vmul.f32 1.442695, %v540_v53  ;;  %vm544_vm0 = vcmp.gt.f32.partialorder %v540_v53, 0.0 }
 0x8ff   :  { %6053 = vpow2.f32 %v546_v54 }
 0x902   :  { %v541_v55 = vpop.f32.mrf.mxu2 }
 0x903   :  { %v542_v30 = vadd.f32 %v541_v55, %v6759_v19 }
 0x905   :  { %v6054_v56 = vpop.eup %6053  ;;  %v548_v1 = vmul.f32 1.442695, %v542_v30  ;;  %vm545_vm1 = vcmp.gt.f32.partialorder %v542_v30, 0.0 }
 0x906   :  { %v5534_v58 = vadd.f32 -1.0, %v6054_v56 }
 0x907   :  { %6055 = vpow2.f32 %v548_v1 }
 0x908   :  { %v552_v59 = vsel %vm544_vm0, %v540_v53, %v5534_v58 }
 0x909   :  { %v586_v33 = vadd.f32 %v552_v59, %v6866_v3  ;;  %v329_v3 = vmul.f32 0.008333334, %v6844_v35 }
 0x90b   :  { %v592_v63 = vadd.f32 %v590_v60, %v586_v33 }
 0x90d   :  { %v6056_v5 = vpop.eup %6055  ;;  %v594_v9 = vmul.f32 0.008333334, %v592_v63 }
 0x90e   :  { %v5535_v10 = vadd.f32 -1.0, %v6056_v5 }
 0x90f   :  { %v6924_v12 = vadd.f32 %v594_v9, %v328_v6 }
 0x910   :  { %v553_v45 = vsel %vm545_vm1, %v542_v30, %v5535_v10 }
 0x911   :  { %v554_v17 = vpack.c.bf16 %v553_v45, %v552_v59  ;;  %v587_v18 = vadd.f32 %v553_v45, %v6868_v34 }
 0x913   :  { %v593_v21 = vadd.f32 %v591_v16, %v587_v18  ;;  %5536 = vmatmul.msk.bf16.vlgmr.msrb.gmra.mxu3 %vm68_vm2, %v554_v17 }
 0x914   :  { %830 = vmatpush.bf16.msrb.mxu3 %v6735_v13 }
 0x915   :  { %v595_v22 = vmul.f32 0.008333334, %v593_v21 }
 0x917   :  { %v6930_v23 = vadd.f32 %v595_v22, %v329_v3 }
 0x918   :  { %831 = vmatpush.bf16.msrb.mxu3 %v6742_v14 }
 0x996   :  { %v567_v24 = vpop.f32.mrf.mxu3 }
 0x997   :  { %v582_v26 = vmul.f32 0.008333334, %v567_v24 }
 0x999   :  { %v6935_v34 = vadd.f32 %v582_v26, %v580_v42 }
 0x99b   :  { %v604_v32 = vmul.f32 1.442695, %v6935_v34  ;;  %vm602_vm3 = vcmp.gt.f32.partialorder %v6935_v34, 0.0  ;;  %v598_v1 = vadd.f32 %v6935_v34, %v6777_v31 }
 0x99d   :  { %6057 = vpow2.f32 %v604_v32 }
 0x99e   :  { %v569_v61 = vpop.f32.mrf.mxu3 }
 0x99f   :  { %v583_v35 = vmul.f32 0.008333334, %v569_v61 }
 0x9a1   :  { %v6938_v37 = vadd.f32 %v583_v35, %v581_v27 }
 0x9a3   :  { %v606_v39 = vmul.f32 1.442695, %v6938_v37  ;;  %v6058_v40 = vpop.eup %6057  ;;  %vm603_vm4 = vcmp.gt.f32.partialorder %v6938_v37, 0.0  ;;  %v599_v63 = vadd.f32 %v6938_v37, %v6790_v36 }
 0x9a4   :  { %v5537_v38 = vadd.f32 -1.0, %v6058_v40 }
 0x9a5   :  { %6059 = vpow2.f32 %v606_v39 }
 0x9a6   :  { %v610_v11 = vsel %vm602_vm3, %v6935_v34, %v5537_v38 }
 0x9ab   :  { %v6060_v28 = vpop.eup %6059 }
 0x9ac   :  { %v5538_v43 = vadd.f32 -1.0, %v6060_v28 }
 0x9ae   :  { %v611_v42 = vsel %vm603_vm4, %v6938_v37, %v5538_v43 }
 0x9af   :  { %v612_v62 = vpack.c.bf16 %v611_v42, %v610_v11 }
 0x9b1   :  { %5539 = vmatmul.msk.bf16.vlgmr.msra.gmra.mxu0 %vm68_vm2, %v612_v62 }
 0x9b2   :  { %888 = vmatpush.bf16.msra.mxu0 %v6698_v0 }
 0x9b6   :  { %889 = vmatpush.bf16.msra.mxu0 %v6715_v4 }
 0xa2e   :  { %v625_v48 = vpop.f32.mrf.mxu0 }
 0xa2f   :  { %v626_v41 = vadd.f32 %v625_v48, %v6753_v15 }
 0xa31   :  { %v632_v50 = vmul.f32 1.442695, %v626_v41  ;;  %vm630_vm5 = vcmp.gt.f32.partialorder %v626_v41, 0.0 }
 0xa33   :  { %6061 = vpow2.f32 %v632_v50 }
 0xa36   :  { %v627_v8 = vpop.f32.mrf.mxu0 }
 0xa37   :  { %v628_v51 = vadd.f32 %v627_v8, %v6759_v19 }
 0xa39   :  { %v634_v2 = vmul.f32 1.442695, %v628_v51  ;;  %v6062_v52 = vpop.eup %6061  ;;  %vm631_vm6 = vcmp.gt.f32.partialorder %v628_v51, 0.0 }
 0xa3a   :  { %v5540_v47 = vadd.f32 -1.0, %v6062_v52  ;;  %v6990_v52 = vld [vmem:[%s8649_s1 + $0x8] sm:$0xff] }
 0xa3b   :  { %6063 = vpow2.f32 %v634_v2 }
 0xa3c   :  { %v6950_v55 = vsel %vm630_vm5, %v626_v41, %v5540_v47  ;;  %v6996_v47 = vld [vmem:[%s8649_s1] sm:$0xff] }
 0xa41   :  { %v6064_v53 = vpop.eup %6063 }
 0xa42   :  { %v5541_v54 = vadd.f32 -1.0, %v6064_v53 }
 0xa44   :  { %v6952_v30 = vsel %vm631_vm6, %v628_v51, %v5541_v54 }
 0xa45   :  { %v640_v56 = vpack.c.bf16 %v6952_v30, %v6950_v55 }
 0xa47   :  { %5542 = vmatmul.msk.bf16.vlgmr.msra.gmra.mxu1 %vm68_vm2, %v640_v56 }
 0xa48   :  { %916 = vmatpush.bf16.msra.mxu1 %v6735_v13 }
 0xa4c   :  { %917 = vmatpush.bf16.msra.mxu1 %v6742_v14 }
 0xac4   :  { %v6959_v57 = vpop.f32.mrf.mxu1 }
 0xac5   :  { %v658_v58 = vmul.f32 0.025, %v6959_v57 }
 0xac7   :  { %v660_v59 = vadd.f32 %v658_v58, %v598_v1 }
 0xac9   :  { %v664_v60 = vmul.f32 1.442695, %v660_v59  ;;  %vm662_vm7 = vcmp.gt.f32.partialorder %v660_v59, 0.0 }
 0xacb   :  { %6065 = vpow2.f32 %v664_v60 }
 0xacc   :  { %v6964_v33 = vpop.f32.mrf.mxu1 }
 0xacd   :  { %v659_v5 = vmul.f32 0.025, %v6964_v33 }
 0xacf   :  { %v661_v6 = vadd.f32 %v659_v5, %v599_v63 }
 0xad1   :  { %v666_v7 = vmul.f32 1.442695, %v661_v6  ;;  %v6066_v9 = vpop.eup %6065  ;;  %vm663_vm8 = vcmp.gt.f32.partialorder %v661_v6, 0.0 }
 0xad2   :  { %v5543_v10 = vadd.f32 -1.0, %v6066_v9 }
 0xad3   :  { %6067 = vpow2.f32 %v666_v7 }
 0xad4   :  { %v670_v17 = vsel %vm662_vm7, %v660_v59, %v5543_v10 }
 0xad9   :  { %v6068_v45 = vpop.eup %6067 }
 0xada   :  { %v5544_v16 = vadd.f32 -1.0, %v6068_v45 }
 0xadc   :  { %v671_v18 = vsel %vm663_vm8, %v661_v6, %v5544_v16 }
 0xadd   :  { %v672_v21 = vpack.c.bf16 %v671_v18, %v670_v17 }
 0xadf   :  { %5545 = vmatmul.msk.bf16.vlgmr.msra.gmra.mxu2 %vm68_vm2, %v672_v21 }
 0xae0   :  { %948 = vmatpush.bf16.msra.mxu2 %v6698_v0 }
 0xae4   :  { %949 = vmatpush.bf16.msra.mxu2 %v6715_v4 }
 0xb62   :  { %v685_v3 = vpop.f32.mrf.mxu2 }
 0xb63   :  { %v686_v22 = vadd.f32 %v685_v3, %v6753_v15 }
 0xb65   :  { %v692_v46 = vmul.f32 1.442695, %v686_v22  ;;  %vm690_vm9 = vcmp.gt.f32.partialorder %v686_v22, 0.0 }
 0xb67   :  { %6069 = vpow2.f32 %v692_v46 }
 0xb6a   :  { %v687_v20 = vpop.f32.mrf.mxu2 }
 0xb6b   :  { %v688_v24 = vadd.f32 %v687_v20, %v6759_v19  ;;  %v7009_v20 = vadd.f32 %v6938_v37, %v6828_v49 }
 0xb6d   :  { %v694_v25 = vmul.f32 1.442695, %v688_v24  ;;  %v6070_v26 = vpop.eup %6069  ;;  %vm691_vm10 = vcmp.gt.f32.partialorder %v688_v24, 0.0 }
 0xb6e   :  { %v5546_v29 = vadd.f32 -1.0, %v6070_v26 }
 0xb6f   :  { %6071 = vpow2.f32 %v694_v25 }
 0xb70   :  { %v6974_v27 = vsel %vm690_vm9, %v686_v22, %v5546_v29 }
 0xb75   :  { %v6072_v32 = vpop.eup %6071 }
 0xb76   :  { %v5547_v61 = vadd.f32 -1.0, %v6072_v32 }
 0xb78   :  { %v6976_v0 = vsel %vm691_vm10, %v688_v24, %v5547_v61 }
 0xb79   :  { %v700_v4 = vpack.c.bf16 %v6976_v0, %v6974_v27 }
 0xb7b   :  { %5548 = vmatmul.msk.bf16.vlgmr.msra.gmra.mxu3 %vm68_vm2, %v700_v4 }
 0xb7c   :  { %976 = vmatpush.bf16.msra.mxu3 %v6735_v13 }
 0xb80   :  { %977 = vmatpush.bf16.msra.mxu3 %v6742_v14 }
 0xbfe   :  { %v713_v35 = vpop.f32.mrf.mxu3 }
 0xbff   :  { %v718_v39 = vmul.f32 0.025, %v713_v35 }
 0xc01   :  { %v720_v40 = vadd.f32 %v718_v39, %v598_v1 }
 0xc03   :  { %v724_v38 = vmul.f32 1.442695, %v720_v40  ;;  %vm722_vm11 = vcmp.gt.f32.partialorder %v720_v40, 0.0 }
 0xc05   :  { %6073 = vpow2.f32 %v724_v38 }
 0xc06   :  { %v6983_v28 = vpop.f32.mrf.mxu3 }
 0xc07   :  { %v719_v43 = vmul.f32 0.025, %v6983_v28 }
 0xc09   :  { %v721_v11 = vadd.f32 %v719_v43, %v599_v63  ;;  %v7024_v43 = vld [vmem:[%s8650_s2 + $0x18] sm:$0xff] }
 0xc0b   :  { %v726_v42 = vmul.f32 1.442695, %v721_v11  ;;  %v6074_v62 = vpop.eup %6073  ;;  %vm723_vm12 = vcmp.gt.f32.partialorder %v721_v11, 0.0 }
 0xc0c   :  { %v5549_v48 = vadd.f32 -1.0, %v6074_v62 }
 0xc0d   :  { %6075 = vpow2.f32 %v726_v42 }
 0xc0e   :  { %v730_v8 = vsel %vm722_vm11, %v720_v40, %v5549_v48 }
 0xc13   :  { %v6076_v41 = vpop.eup %6075 }
 0xc14   :  { %v5550_v50 = vadd.f32 -1.0, %v6076_v41 }
 0xc16   :  { %v731_v51 = vsel %vm723_vm12, %v721_v11, %v5550_v50 }
 0xc17   :  { %v732_v2 = vpack.c.bf16 %v731_v51, %v730_v8 }
 0xc19   :  { %5551 = vmatmul.msk.bf16.vlgmr.msrb.gmra.mxu0 %vm68_vm2, %v732_v2 }
 0xc1a   :  { %1008 = vmatpush.bf16.msrb.mxu0 %v6990_v52 }
 0xc1e   :  { %1009 = vmatpush.bf16.msrb.mxu0 %v6996_v47 }
 0xc96   :  { %v745_v53 = vpop.f32.mrf.mxu0 }
 0xc97   :  { %v746_v54 = vadd.f32 %v745_v53, %v6753_v15 }
 0xc99   :  { %v752_v56 = vmul.f32 1.442695, %v746_v54  ;;  %vm750_vm13 = vcmp.gt.f32.partialorder %v746_v54, 0.0 }
 0xc9b   :  { %6077 = vpow2.f32 %v752_v56 }
 0xc9e   :  { %v747_v1 = vpop.f32.mrf.mxu0 }
 0xc9f   :  { %v748_v58 = vadd.f32 %v747_v1, %v6759_v19  ;;  %v600_v19 = vadd.f32 %v6935_v34, %v6823_v44 }
 0xca1   :  { %v754_v59 = vmul.f32 1.442695, %v748_v58  ;;  %v6078_v60 = vpop.eup %6077  ;;  %vm751_vm14 = vcmp.gt.f32.partialorder %v748_v58, 0.0 }
 0xca2   :  { %v5552_v63 = vadd.f32 -1.0, %v6078_v60 }
 0xca3   :  { %6079 = vpow2.f32 %v754_v59 }
 0xca4   :  { %v758_v7 = vsel %vm750_vm13, %v746_v54, %v5552_v63 }
 0xca5   :  { %v854_v62 = vadd.f32 %v758_v7, %v6974_v27 }
 0xca7   :  { %v856_v8 = vmul.f32 2.0, %v854_v62 }
 0xca9   :  { %v6080_v5 = vpop.eup %6079 }
 0xcaa   :  { %v5553_v6 = vadd.f32 -1.0, %v6080_v5 }
 0xcac   :  { %v759_v9 = vsel %vm751_vm14, %v748_v58, %v5553_v6  ;;  %v7047_v6 = vld [vmem:[%s8649_s1 + $0x10] sm:$0xff] }
 0xcad   :  { %v760_v10 = vpack.c.bf16 %v759_v9, %v758_v7  ;;  %v855_v54 = vadd.f32 %v759_v9, %v6976_v0 }
 0xcaf   :  { %5554 = vmatmul.msk.bf16.vlgmr.msrb.gmra.mxu1 %vm68_vm2, %v760_v10  ;;  %v857_v27 = vmul.f32 2.0, %v855_v54 }
 0xcb0   :  { %1036 = vmatpush.bf16.msrb.mxu1 %v6735_v13 }
 0xcb4   :  { %1037 = vmatpush.bf16.msrb.mxu1 %v6742_v14 }
 0xd2c   :  { %v773_v15 = vpop.f32.mrf.mxu1 }
 0xd2d   :  { %v778_v45 = vmul.f32 0.05, %v773_v15  ;;  %v838_v16 = vadd.f32 %v773_v15, %v713_v35  ;;  %v7018_v35 = vld [vmem:[%s8650_s2 + $0x10] sm:$0xff] }
 0xd2f   :  { %v780_v17 = vadd.f32 %v778_v45, %v600_v19  ;;  %v840_v18 = vmul.f32 2.0, %v838_v16 }
 0xd31   :  { %v842_v21 = vadd.f32 %v840_v18, %v6959_v57  ;;  %v784_v3 = vmul.f32 1.442695, %v780_v17  ;;  %vm782_vm15 = vcmp.gt.f32.partialorder %v780_v17, 0.0 }
 0xd33   :  { %v844_v22 = vmul.f32 0.008333334, %v842_v21  ;;  %6081 = vpow2.f32 %v784_v3 }
 0xd34   :  { %v775_v46 = vpop.f32.mrf.mxu1 }
 0xd35   :  { %v779_v13 = vmul.f32 0.05, %v775_v46  ;;  %v846_v24 = vadd.f32 %v844_v22, %v600_v19 }
 0xd37   :  { %v781_v14 = vadd.f32 %v779_v13, %v7009_v20 }
 0xd39   :  { %v786_v25 = vmul.f32 1.442695, %v781_v14  ;;  %v6082_v34 = vpop.eup %6081  ;;  %vm783_vm0 = vcmp.gt.f32.partialorder %v781_v14, 0.0 }
 0xd3a   :  { %v5555_v26 = vadd.f32 -1.0, %v6082_v34 }
 0xd3b   :  { %6083 = vpow2.f32 %v786_v25 }
 0xd3c   :  { %v790_v57 = vsel %vm782_vm15, %v780_v17, %v5555_v26 }
 0xd41   :  { %v6084_v29 = vpop.eup %6083 }
 0xd42   :  { %v5556_v32 = vadd.f32 -1.0, %v6084_v29 }
 0xd44   :  { %v791_v61 = vsel %vm783_vm0, %v781_v14, %v5556_v32 }
 0xd45   :  { %v792_v4 = vpack.c.bf16 %v791_v61, %v790_v57 }
 0xd47   :  { %5557 = vmatmul.msk.bf16.vlgmr.msrb.gmra.mxu2 %vm68_vm2, %v792_v4 }
 0xd48   :  { %1068 = vmatpush.bf16.msrb.mxu2 %v6990_v52 }
 0xd4c   :  { %1069 = vmatpush.bf16.msrb.mxu2 %v6996_v47 }
 0xdca   :  { %v805_v37 = vpop.f32.mrf.mxu2 }
 0xdcb   :  { %v806_v39 = vadd.f32 %v7018_v35, %v805_v37 }
 0xdcd   :  { %v812_v40 = vmul.f32 1.442695, %v806_v39  ;;  %vm810_vm1 = vcmp.gt.f32.partialorder %v806_v39, 0.0 }
 0xdcf   :  { %6085 = vpow2.f32 %v812_v40 }
 0xdd2   :  { %v807_v38 = vpop.f32.mrf.mxu2 }
 0xdd3   :  { %v808_v11 = vadd.f32 %v7024_v43, %v807_v38 }
 0xdd5   :  { %v6086_v42 = vpop.eup %6085  ;;  %v814_v48 = vmul.f32 1.442695, %v808_v11  ;;  %vm811_vm3 = vcmp.gt.f32.partialorder %v808_v11, 0.0 }
 0xdd6   :  { %v5558_v41 = vadd.f32 -1.0, %v6086_v42 }
 0xdd7   :  { %6087 = vpow2.f32 %v814_v48 }
 0xdd8   :  { %v818_v50 = vsel %vm810_vm1, %v806_v39, %v5558_v41 }
 0xdd9   :  { %v852_v51 = vadd.f32 %v818_v50, %v6950_v55  ;;  %v7038_v55 = vld [vmem:[%s8649_s1 + $0x18] sm:$0xff] }
 0xddb   :  { %v858_v2 = vadd.f32 %v856_v8, %v852_v51 }
 0xddd   :  { %v6088_v53 = vpop.eup %6087  ;;  %v860_v56 = vmul.f32 0.008333334, %v858_v2 }
 0xdde   :  { %v5559_v1 = vadd.f32 -1.0, %v6088_v53 }
 0xddf   :  { %v7031_v58 = vadd.f32 %v860_v56, %v6924_v12 }
 0xde0   :  { %v819_v59 = vsel %vm811_vm3, %v808_v11, %v5559_v1 }
 0xde1   :  { %v820_v60 = vpack.c.bf16 %v819_v59, %v818_v50  ;;  %v853_v63 = vadd.f32 %v819_v59, %v6952_v30  ;;  %v839_v30 = vadd.f32 %v775_v46, %v6983_v28 }
 0xde3   :  { %v859_v5 = vadd.f32 %v857_v27, %v853_v63  ;;  %5560 = vmatmul.msk.bf16.vlgmr.msrb.gmra.mxu3 %vm68_vm2, %v820_v60  ;;  %v841_v7 = vmul.f32 2.0, %v839_v30 }
 0xde4   :  { %1096 = vmatpush.bf16.msrb.mxu3 %v7038_v55 }
 0xde5   :  { %v861_v0 = vmul.f32 0.008333334, %v859_v5  ;;  %v843_v10 = vadd.f32 %v841_v7, %v6964_v33 }
 0xde7   :  { %v7042_v12 = vadd.f32 %v861_v0, %v6930_v23  ;;  %v845_v45 = vmul.f32 0.008333334, %v843_v10 }
 0xde8   :  { %1097 = vmatpush.bf16.msrb.mxu3 %v7047_v6 }
 0xde9   :  { %v847_v17 = vadd.f32 %v845_v45, %v7009_v20 }
 0xe66   :  { %v833_v9 = vpop.f32.mrf.mxu3 }
 0xe67   :  { %v848_v15 = vmul.f32 0.008333334, %v833_v9 }
 0xe69   :  { %v7052_v19 = vadd.f32 %v848_v15, %v846_v24 }
 0xe6b   :  { %v870_v23 = vmul.f32 1.442695, %v7052_v19  ;;  %vm868_vm4 = vcmp.gt.f32.partialorder %v7052_v19, 0.0  ;;  %v864_v42 = vadd.f32 %v7052_v19, %v6777_v31 }
 0xe6d   :  { %6089 = vpow2.f32 %v870_v23 }
 0xe6e   :  { %v835_v16 = vpop.f32.mrf.mxu3 }
 0xe6f   :  { %v849_v18 = vmul.f32 0.008333334, %v835_v16 }
 0xe71   :  { %v7056_v21 = vadd.f32 %v849_v18, %v847_v17 }
 0xe73   :  { %v872_v3 = vmul.f32 1.442695, %v7056_v21  ;;  %v6090_v28 = vpop.eup %6089  ;;  %vm869_vm5 = vcmp.gt.f32.partialorder %v7056_v21, 0.0  ;;  %v865_v8 = vadd.f32 %v7056_v21, %v6790_v36 }
 0xe74   :  { %v5561_v22 = vadd.f32 -1.0, %v6090_v28 }
 0xe75   :  { %6091 = vpow2.f32 %v872_v3 }
 0xe76   :  { %v876_v13 = vsel %vm868_vm4, %v7052_v19, %v5561_v22 }
 0xe7b   :  { %v6092_v46 = vpop.eup %6091 }
 0xe7c   :  { %v5562_v33 = vadd.f32 -1.0, %v6092_v46 }
 0xe7e   :  { %v877_v24 = vsel %vm869_vm5, %v7056_v21, %v5562_v33 }
 0xe7f   :  { %v878_v20 = vpack.c.bf16 %v877_v24, %v876_v13 }
 0xe81   :  { %5563 = vmatmul.msk.bf16.vlgmr.msra.gmra.mxu0 %vm68_vm2, %v878_v20 }
 0xe82   :  { %1154 = vmatpush.bf16.msra.mxu0 %v6990_v52 }
 0xe86   :  { %1155 = vmatpush.bf16.msra.mxu0 %v6996_v47 }
 0xefe   :  { %v891_v14 = vpop.f32.mrf.mxu0 }
 0xeff   :  { %v892_v25 = vadd.f32 %v7018_v35, %v891_v14 }
 0xf01   :  { %v898_v34 = vmul.f32 1.442695, %v892_v25  ;;  %vm896_vm6 = vcmp.gt.f32.partialorder %v892_v25, 0.0 }
 0xf03   :  { %6093 = vpow2.f32 %v898_v34 }
 0xf06   :  { %v893_v26 = vpop.f32.mrf.mxu0 }
 0xf07   :  { %v894_v29 = vadd.f32 %v7024_v43, %v893_v26 }
 0xf09   :  { %v900_v32 = vmul.f32 1.442695, %v894_v29  ;;  %v6094_v57 = vpop.eup %6093  ;;  %vm897_vm7 = vcmp.gt.f32.partialorder %v894_v29, 0.0 }
 0xf0a   :  { %v5564_v61 = vadd.f32 -1.0, %v6094_v57 }
 0xf0b   :  { %6095 = vpow2.f32 %v900_v32 }
 0xf0c   :  { %v7068_v39 = vsel %vm896_vm6, %v892_v25, %v5564_v61 }
 0xf11   :  { %v6096_v4 = vpop.eup %6095 }
 0xf12   :  { %v5565_v37 = vadd.f32 -1.0, %v6096_v4 }
 0xf14   :  { %v7070_v40 = vsel %vm897_vm7, %v894_v29, %v5565_v37 }
 0xf15   :  { %v906_v38 = vpack.c.bf16 %v7070_v40, %v7068_v39 }
 0xf17   :  { %5566 = vmatmul.msk.bf16.vlgmr.msra.gmra.mxu1 %vm68_vm2, %v906_v38 }
 0xf18   :  { %1182 = vmatpush.bf16.msra.mxu1 %v7038_v55 }
 0xf1c   :  { %1183 = vmatpush.bf16.msra.mxu1 %v7047_v6 }
 0xf94   :  { %v7077_v11 = vpop.f32.mrf.mxu1 }
 0xf95   :  { %v924_v62 = vmul.f32 0.025, %v7077_v11 }
 0xf97   :  { %v926_v48 = vadd.f32 %v924_v62, %v864_v42 }
 0xf99   :  { %v930_v41 = vmul.f32 1.442695, %v926_v48  ;;  %vm928_vm8 = vcmp.gt.f32.partialorder %v926_v48, 0.0 }
 0xf9b   :  { %6097 = vpow2.f32 %v930_v41 }
 0xf9c   :  { %v7082_v50 = vpop.f32.mrf.mxu1 }
 0xf9d   :  { %v925_v51 = vmul.f32 0.025, %v7082_v50 }
 0xf9f   :  { %v927_v2 = vadd.f32 %v925_v51, %v865_v8 }
 0xfa1   :  { %v932_v53 = vmul.f32 1.442695, %v927_v2  ;;  %v6098_v54 = vpop.eup %6097  ;;  %vm929_vm9 = vcmp.gt.f32.partialorder %v927_v2, 0.0 }
 0xfa2   :  { %v5567_v56 = vadd.f32 -1.0, %v6098_v54 }
 0xfa3   :  { %6099 = vpow2.f32 %v932_v53 }
 0xfa4   :  { %v936_v27 = vsel %vm928_vm8, %v926_v48, %v5567_v56 }
 0xfa9   :  { %v6100_v1 = vpop.eup %6099 }
 0xfaa   :  { %v5568_v59 = vadd.f32 -1.0, %v6100_v1 }
 0xfac   :  { %v937_v60 = vsel %vm929_vm9, %v927_v2, %v5568_v59  ;;  %v866_v59 = vadd.f32 %v7052_v19, %v6823_v44 }
 0xfad   :  { %v938_v63 = vpack.c.bf16 %v937_v60, %v936_v27 }
 0xfaf   :  { %5569 = vmatmul.msk.bf16.vlgmr.msra.gmra.mxu2 %vm68_vm2, %v938_v63 }
 0xfb0   :  { %1214 = vmatpush.bf16.msra.mxu2 %v6990_v52 }
 0xfb4   :  { %1215 = vmatpush.bf16.msra.mxu2 %v6996_v47 }
0x1032   :  { %v951_v5 = vpop.f32.mrf.mxu2 }
0x1033   :  { %v952_v0 = vadd.f32 %v7018_v35, %v951_v5 }
0x1035   :  { %v958_v30 = vmul.f32 1.442695, %v952_v0  ;;  %vm956_vm10 = vcmp.gt.f32.partialorder %v952_v0, 0.0 }
0x1037   :  { %6101 = vpow2.f32 %v958_v30 }
0x103a   :  { %v953_v7 = vpop.f32.mrf.mxu2 }
0x103b   :  { %v954_v9 = vadd.f32 %v7024_v43, %v953_v7 }
0x103d   :  { %v960_v10 = vmul.f32 1.442695, %v954_v9  ;;  %v6102_v15 = vpop.eup %6101  ;;  %vm957_vm11 = vcmp.gt.f32.partialorder %v954_v9, 0.0 }
0x103e   :  { %v5570_v45 = vadd.f32 -1.0, %v6102_v15 }
0x103f   :  { %6103 = vpow2.f32 %v960_v10  ;;  %v867_v10 = vadd.f32 %v7056_v21, %v6828_v49 }
0x1040   :  { %v7092_v17 = vsel %vm956_vm10, %v952_v0, %v5570_v45 }
0x1045   :  { %v6104_v23 = vpop.eup %6103 }
0x1046   :  { %v5571_v16 = vadd.f32 -1.0, %v6104_v23 }
0x1048   :  { %v7094_v18 = vsel %vm957_vm11, %v954_v9, %v5571_v16 }
0x1049   :  { %v966_v3 = vpack.c.bf16 %v7094_v18, %v7092_v17 }
0x104b   :  { %5572 = vmatmul.msk.bf16.vlgmr.msra.gmra.mxu3 %vm68_vm2, %v966_v3 }
0x104c   :  { %1242 = vmatpush.bf16.msra.mxu3 %v7038_v55 }
0x1050   :  { %1243 = vmatpush.bf16.msra.mxu3 %v7047_v6 }
0x10ce   :  { %v979_v28 = vpop.f32.mrf.mxu3 }
0x10cf   :  { %v984_v22 = vmul.f32 0.025, %v979_v28 }
0x10d1   :  { %v986_v46 = vadd.f32 %v984_v22, %v864_v42 }
0x10d3   :  { %v990_v33 = vmul.f32 1.442695, %v986_v46  ;;  %vm988_vm12 = vcmp.gt.f32.partialorder %v986_v46, 0.0 }
0x10d5   :  { %6105 = vpow2.f32 %v990_v33 }
0x10d6   :  { %v7101_v13 = vpop.f32.mrf.mxu3 }
0x10d7   :  { %v985_v24 = vmul.f32 0.025, %v7101_v13 }
0x10d9   :  { %v987_v20 = vadd.f32 %v985_v24, %v865_v8 }
0x10db   :  { %v992_v14 = vmul.f32 1.442695, %v987_v20  ;;  %v6106_v25 = vpop.eup %6105  ;;  %vm989_vm13 = vcmp.gt.f32.partialorder %v987_v20, 0.0 }
0x10dc   :  { %v5573_v34 = vadd.f32 -1.0, %v6106_v25 }
0x10dd   :  { %6107 = vpow2.f32 %v992_v14 }
0x10de   :  { %v996_v32 = vsel %vm988_vm12, %v986_v46, %v5573_v34 }
0x10e3   :  { %v6108_v26 = vpop.eup %6107 }
0x10e4   :  { %v5574_v29 = vadd.f32 -1.0, %v6108_v26 }
0x10e6   :  { %v997_v57 = vsel %vm989_vm13, %v987_v20, %v5574_v29 }
0x10e7   :  { %v998_v61 = vpack.c.bf16 %v997_v57, %v996_v32 }
0x10e9   :  { %5575 = vmatmul.msk.bf16.vlgmr.msrb.gmra.mxu0 %vm68_vm2, %v998_v61 }
0x10ea   :  { %1274 = vmatpush.bf16.msrb.mxu0 %v6990_v52 }
0x10ee   :  { %1275 = vmatpush.bf16.msrb.mxu0 %v6996_v47 }
0x1166   :  { %v1011_v4 = vpop.f32.mrf.mxu0 }
0x1167   :  { %v1012_v37 = vadd.f32 %v7018_v35, %v1011_v4 }
0x1169   :  { %v1018_v38 = vmul.f32 1.442695, %v1012_v37  ;;  %vm1016_vm14 = vcmp.gt.f32.partialorder %v1012_v37, 0.0 }
0x116b   :  { %6109 = vpow2.f32 %v1018_v38 }
0x116e   :  { %v1013_v42 = vpop.f32.mrf.mxu0 }
0x116f   :  { %v1014_v62 = vadd.f32 %v7024_v43, %v1013_v42 }
0x1171   :  { %v1020_v48 = vmul.f32 1.442695, %v1014_v62  ;;  %v6110_v41 = vpop.eup %6109  ;;  %vm1017_vm15 = vcmp.gt.f32.partialorder %v1014_v62, 0.0 }
0x1172   :  { %v5576_v8 = vadd.f32 -1.0, %v6110_v41 }
0x1173   :  { %6111 = vpow2.f32 %v1020_v48 }
0x1174   :  { %v1024_v53 = vsel %vm1016_vm14, %v1012_v37, %v5576_v8 }
0x1175   :  { %v1120_v26 = vadd.f32 %v1024_v53, %v7092_v17 }
0x1177   :  { %v1122_v61 = vmul.f32 2.0, %v1120_v26 }
0x1179   :  { %v6112_v51 = vpop.eup %6111 }
0x117a   :  { %v5577_v2 = vadd.f32 -1.0, %v6112_v51 }
0x117c   :  { %v1025_v54 = vsel %vm1017_vm15, %v1014_v62, %v5577_v2 }
0x117d   :  { %v1026_v56 = vpack.c.bf16 %v1025_v54, %v1024_v53  ;;  %v1121_v42 = vadd.f32 %v1025_v54, %v7094_v18 }
0x117f   :  { %5578 = vmatmul.msk.bf16.vlgmr.msrb.gmra.mxu1 %vm68_vm2, %v1026_v56  ;;  %v1123_v17 = vmul.f32 2.0, %v1121_v42 }
0x1180   :  { %1302 = vmatpush.bf16.msrb.mxu1 %v7038_v55 }
0x1184   :  { %1303 = vmatpush.bf16.msrb.mxu1 %v7047_v6 }
0x11fc   :  { %v1039_v1 = vpop.f32.mrf.mxu1 }
0x11fd   :  { %v1044_v27 = vmul.f32 0.05, %v1039_v1  ;;  %v1104_v60 = vadd.f32 %v1039_v1, %v979_v28 }
0x11ff   :  { %v1046_v63 = vadd.f32 %v1044_v27, %v866_v59  ;;  %v1106_v5 = vmul.f32 2.0, %v1104_v60 }
0x1201   :  { %v1108_v0 = vadd.f32 %v1106_v5, %v7077_v11  ;;  %v1050_v30 = vmul.f32 1.442695, %v1046_v63  ;;  %vm1048_vm0 = vcmp.gt.f32.partialorder %v1046_v63, 0.0 }
0x1203   :  { %v1110_v7 = vmul.f32 0.008333334, %v1108_v0  ;;  %6113 = vpow2.f32 %v1050_v30 }
0x1204   :  { %v1041_v9 = vpop.f32.mrf.mxu1 }
0x1205   :  { %v1045_v15 = vmul.f32 0.05, %v1041_v9  ;;  %v1112_v45 = vadd.f32 %v1110_v7, %v866_v59 }
0x1207   :  { %v1047_v23 = vadd.f32 %v1045_v15, %v867_v10 }
0x1209   :  { %v1052_v16 = vmul.f32 1.442695, %v1047_v23  ;;  %v6114_v3 = vpop.eup %6113  ;;  %vm1049_vm1 = vcmp.gt.f32.partialorder %v1047_v23, 0.0 }
0x120a   :  { %v5579_v19 = vadd.f32 -1.0, %v6114_v3 }
0x120b   :  { %6115 = vpow2.f32 %v1052_v16 }
0x120c   :  { %v1056_v46 = vsel %vm1048_vm0, %v1046_v63, %v5579_v19 }
0x1211   :  { %v6116_v22 = vpop.eup %6115 }
0x1212   :  { %v5580_v28 = vadd.f32 -1.0, %v6116_v22 }
0x1214   :  { %v1057_v11 = vsel %vm1049_vm1, %v1047_v23, %v5580_v28 }
0x1215   :  { %v1058_v33 = vpack.c.bf16 %v1057_v11, %v1056_v46 }
0x1217   :  { %5581 = vmatmul.msk.bf16.vlgmr.msrb.gmra.mxu2 %vm68_vm2, %v1058_v33 }
0x1218   :  { %1334 = vmatpush.bf16.msrb.mxu2 %v6990_v52 }
0x121c   :  { %1335 = vmatpush.bf16.msrb.mxu2 %v6996_v47 }
0x129a   :  { %v1071_v21 = vpop.f32.mrf.mxu2 }
0x129b   :  { %v1072_v24 = vadd.f32 %v7018_v35, %v1071_v21 }
0x129d   :  { %v1078_v20 = vmul.f32 1.442695, %v1072_v24  ;;  %vm1076_vm3 = vcmp.gt.f32.partialorder %v1072_v24, 0.0 }
0x129f   :  { %6117 = vpow2.f32 %v1078_v20 }
0x12a2   :  { %v1073_v14 = vpop.f32.mrf.mxu2 }
0x12a3   :  { %v1074_v25 = vadd.f32 %v7024_v43, %v1073_v14 }
0x12a5   :  { %v6118_v34 = vpop.eup %6117  ;;  %v1080_v29 = vmul.f32 1.442695, %v1074_v25  ;;  %vm1077_vm4 = vcmp.gt.f32.partialorder %v1074_v25, 0.0 }
0x12a6   :  { %v5582_v32 = vadd.f32 -1.0, %v6118_v34 }
0x12a7   :  { %6119 = vpow2.f32 %v1080_v29 }
0x12a8   :  { %v1084_v57 = vsel %vm1076_vm3, %v1072_v24, %v5582_v32 }
0x12a9   :  { %v1118_v4 = vadd.f32 %v1084_v57, %v7068_v39 }
0x12ab   :  { %v1124_v37 = vadd.f32 %v1122_v61, %v1118_v4 }
0x12ad   :  { %v6120_v38 = vpop.eup %6119  ;;  %v1126_v62 = vmul.f32 0.008333334, %v1124_v37 }
0x12ae   :  { %v5583_v48 = vadd.f32 -1.0, %v6120_v38 }
0x12af   :  { %v7126_v41 = vadd.f32 %v1126_v62, %v7031_v58  ;;  %v1105_v58 = vadd.f32 %v1041_v9, %v7101_v13 }
0x12b0   :  { %v1085_v8 = vsel %vm1077_vm4, %v1074_v25, %v5583_v48 }
0x12b1   :  { %v1086_v51 = vpack.c.bf16 %v1085_v8, %v1084_v57  ;;  %v1119_v2 = vadd.f32 %v1085_v8, %v7070_v40  ;;  %v1107_v18 = vmul.f32 2.0, %v1105_v58 }
0x12b3   :  { %v1125_v53 = vadd.f32 %v1123_v17, %v1119_v2  ;;  %5584 = vmatmul.msk.bf16.vlgmr.msrb.gmra.mxu3 %vm68_vm2, %v1086_v51  ;;  %v1109_v1 = vadd.f32 %v1107_v18, %v7082_v50 }
0x12b4   :  { %1362 = vmatpush.bf16.msrb.mxu3 %v7038_v55 }
0x12b5   :  { %v1127_v39 = vmul.f32 0.008333334, %v1125_v53  ;;  %v1111_v40 = vmul.f32 0.008333334, %v1109_v1 }
0x12b7   :  { %v7132_v56 = vadd.f32 %v1127_v39, %v7042_v12  ;;  %v1113_v5 = vadd.f32 %v1111_v40, %v867_v10 }
0x12b8   :  { %1363 = vmatpush.bf16.msrb.mxu3 %v7047_v6 }
0x1336   :  { %v1099_v54 = vpop.f32.mrf.mxu3 }
0x1337   :  { %v1114_v59 = vmul.f32 0.008333334, %v1099_v54 }
0x1339   :  { %v7137_v27 = vadd.f32 %v1114_v59, %v1112_v45 }
0x133b   :  { %v1136_v60 = vmul.f32 1.442695, %v7137_v27  ;;  %vm1134_vm5 = vcmp.gt.f32.partialorder %v7137_v27, 0.0  ;;  %v1130_v34 = vadd.f32 %v7137_v27, %v6777_v31 }
0x133d   :  { %6121 = vpow2.f32 %v1136_v60 }
0x133e   :  { %v1101_v63 = vpop.f32.mrf.mxu3 }
0x133f   :  { %v1115_v0 = vmul.f32 0.008333334, %v1101_v63 }
0x1341   :  { %v7140_v12 = vadd.f32 %v1115_v0, %v1113_v5 }
0x1343   :  { %v1138_v30 = vmul.f32 1.442695, %v7140_v12  ;;  %v6122_v13 = vpop.eup %6121  ;;  %vm1135_vm6 = vcmp.gt.f32.partialorder %v7140_v12, 0.0  ;;  %v1131_v61 = vadd.f32 %v7140_v12, %v6790_v36 }
0x1344   :  { %v5585_v7 = vadd.f32 -1.0, %v6122_v13 }
0x1345   :  { %6123 = vpow2.f32 %v1138_v30 }
0x1346   :  { %v1142_v50 = vsel %vm1134_vm5, %v7137_v27, %v5585_v7 }
0x134b   :  { %v6124_v9 = vpop.eup %6123 }
0x134c   :  { %v5586_v15 = vadd.f32 -1.0, %v6124_v9 }
0x134e   :  { %v1143_v45 = vsel %vm1135_vm6, %v7140_v12, %v5586_v15 }
0x134f   :  { %v1144_v10 = vpack.c.bf16 %v1143_v45, %v1142_v50 }
0x1351   :  { %5587 = vmatmul.msk.bf16.vlgmr.msra.gmra.mxu0 %vm68_vm2, %v1144_v10 }
0x1352   :  { %1420 = vmatpush.bf16.msra.mxu0 %v6990_v52 }
0x1356   :  { %1421 = vmatpush.bf16.msra.mxu0 %v6996_v47 }
0x13ce   :  { %v1157_v23 = vpop.f32.mrf.mxu0 }
0x13cf   :  { %v1158_v16 = vadd.f32 %v7018_v35, %v1157_v23 }
0x13d1   :  { %v1164_v3 = vmul.f32 1.442695, %v1158_v16  ;;  %vm1162_vm7 = vcmp.gt.f32.partialorder %v1158_v16, 0.0 }
0x13d3   :  { %6125 = vpow2.f32 %v1164_v3 }
0x13d6   :  { %v1159_v19 = vpop.f32.mrf.mxu0 }
0x13d7   :  { %v1160_v22 = vadd.f32 %v7024_v43, %v1159_v19 }
0x13d9   :  { %v1166_v28 = vmul.f32 1.442695, %v1160_v22  ;;  %v6126_v46 = vpop.eup %6125  ;;  %vm1163_vm8 = vcmp.gt.f32.partialorder %v1160_v22, 0.0 }
0x13da   :  { %v5588_v11 = vadd.f32 -1.0, %v6126_v46 }
0x13db   :  { %6127 = vpow2.f32 %v1166_v28 }
0x13dc   :  { %v7152_v24 = vsel %vm1162_vm7, %v1158_v16, %v5588_v11 }
0x13e1   :  { %v6128_v33 = vpop.eup %6127 }
0x13e2   :  { %v5589_v21 = vadd.f32 -1.0, %v6128_v33 }
0x13e4   :  { %v7154_v20 = vsel %vm1163_vm8, %v1160_v22, %v5589_v21 }
0x13e5   :  { %v1172_v14 = vpack.c.bf16 %v7154_v20, %v7152_v24 }
0x13e7   :  { %5590 = vmatmul.msk.bf16.vlgmr.msra.gmra.mxu1 %vm68_vm2, %v1172_v14 }
0x13e8   :  { %1448 = vmatpush.bf16.msra.mxu1 %v7038_v55 }
0x13ec   :  { %1449 = vmatpush.bf16.msra.mxu1 %v7047_v6 }
0x1464   :  { %v7161_v25 = vpop.f32.mrf.mxu1 }
0x1465   :  { %v1190_v26 = vmul.f32 0.025, %v7161_v25 }
0x1467   :  { %v1192_v29 = vadd.f32 %v1190_v26, %v1130_v34 }
0x1469   :  { %v1196_v32 = vmul.f32 1.442695, %v1192_v29  ;;  %vm1194_vm9 = vcmp.gt.f32.partialorder %v1192_v29, 0.0 }
0x146b   :  { %6129 = vpow2.f32 %v1196_v32 }
0x146c   :  { %v7166_v57 = vpop.f32.mrf.mxu1 }
0x146d   :  { %v1191_v4 = vmul.f32 0.025, %v7166_v57 }
0x146f   :  { %v1193_v37 = vadd.f32 %v1191_v4, %v1131_v61 }
0x1471   :  { %v1198_v38 = vmul.f32 1.442695, %v1193_v37  ;;  %v6130_v42 = vpop.eup %6129  ;;  %vm1195_vm10 = vcmp.gt.f32.partialorder %v1193_v37, 0.0 }
0x1472   :  { %v5591_v62 = vadd.f32 -1.0, %v6130_v42 }
0x1473   :  { %6131 = vpow2.f32 %v1198_v38 }
0x1474   :  { %v1202_v17 = vsel %vm1194_vm9, %v1192_v29, %v5591_v62 }
0x1479   :  { %v6132_v48 = vpop.eup %6131 }
0x147a   :  { %v5592_v8 = vadd.f32 -1.0, %v6132_v48 }
0x147c   :  { %v1203_v51 = vsel %vm1195_vm10, %v1193_v37, %v5592_v8  ;;  %v1132_v8 = vadd.f32 %v7137_v27, %v6823_v44 }
0x147d   :  { %v1204_v2 = vpack.c.bf16 %v1203_v51, %v1202_v17 }
0x147f   :  { %5593 = vmatmul.msk.bf16.vlgmr.msra.gmra.mxu2 %vm68_vm2, %v1204_v2 }
0x1480   :  { %1480 = vmatpush.bf16.msra.mxu2 %v6990_v52 }
0x1484   :  { %1481 = vmatpush.bf16.msra.mxu2 %v6996_v47 }
0x1502   :  { %v1217_v53 = vpop.f32.mrf.mxu2 }
0x1503   :  { %v1218_v39 = vadd.f32 %v7018_v35, %v1217_v53 }
0x1505   :  { %v1224_v58 = vmul.f32 1.442695, %v1218_v39  ;;  %vm1222_vm11 = vcmp.gt.f32.partialorder %v1218_v39, 0.0 }
0x1507   :  { %6133 = vpow2.f32 %v1224_v58 }
0x150a   :  { %v1219_v18 = vpop.f32.mrf.mxu2 }
0x150b   :  { %v1220_v54 = vadd.f32 %v7024_v43, %v1219_v18 }
0x150d   :  { %v1226_v1 = vmul.f32 1.442695, %v1220_v54  ;;  %v6134_v59 = vpop.eup %6133  ;;  %vm1223_vm12 = vcmp.gt.f32.partialorder %v1220_v54, 0.0 }
0x150e   :  { %v5594_v40 = vadd.f32 -1.0, %v6134_v59 }
0x150f   :  { %6135 = vpow2.f32 %v1226_v1  ;;  %v1133_v1 = vadd.f32 %v7140_v12, %v6828_v49 }
0x1510   :  { %v7176_v5 = vsel %vm1222_vm11, %v1218_v39, %v5594_v40 }
0x1515   :  { %v6136_v60 = vpop.eup %6135 }
0x1516   :  { %v5595_v63 = vadd.f32 -1.0, %v6136_v60 }
0x1518   :  { %v7178_v0 = vsel %vm1223_vm12, %v1220_v54, %v5595_v63 }
0x1519   :  { %v1232_v30 = vpack.c.bf16 %v7178_v0, %v7176_v5 }
0x151b   :  { %5596 = vmatmul.msk.bf16.vlgmr.msra.gmra.mxu3 %vm68_vm2, %v1232_v30 }
0x151c   :  { %1508 = vmatpush.bf16.msra.mxu3 %v7038_v55 }
0x1520   :  { %1509 = vmatpush.bf16.msra.mxu3 %v7047_v6 }
0x159e   :  { %v1245_v13 = vpop.f32.mrf.mxu3 }
0x159f   :  { %v1250_v7 = vmul.f32 0.025, %v1245_v13 }
0x15a1   :  { %v1252_v9 = vadd.f32 %v1250_v7, %v1130_v34 }
0x15a3   :  { %v1256_v15 = vmul.f32 1.442695, %v1252_v9  ;;  %vm1254_vm13 = vcmp.gt.f32.partialorder %v1252_v9, 0.0 }
0x15a5   :  { %6137 = vpow2.f32 %v1256_v15 }
0x15a6   :  { %v7185_v50 = vpop.f32.mrf.mxu3 }
0x15a7   :  { %v1251_v45 = vmul.f32 0.025, %v7185_v50 }
0x15a9   :  { %v1253_v10 = vadd.f32 %v1251_v45, %v1131_v61 }
0x15ab   :  { %v1258_v23 = vmul.f32 1.442695, %v1253_v10  ;;  %v6138_v16 = vpop.eup %6137  ;;  %vm1255_vm14 = vcmp.gt.f32.partialorder %v1253_v10, 0.0 }
0x15ac   :  { %v5597_v3 = vadd.f32 -1.0, %v6138_v16 }
0x15ad   :  { %6139 = vpow2.f32 %v1258_v23 }
0x15ae   :  { %v1262_v28 = vsel %vm1254_vm13, %v1252_v9, %v5597_v3 }
0x15b3   :  { %v6140_v19 = vpop.eup %6139 }
0x15b4   :  { %v5598_v22 = vadd.f32 -1.0, %v6140_v19 }
0x15b6   :  { %v1263_v46 = vsel %vm1255_vm14, %v1253_v10, %v5598_v22 }
0x15b7   :  { %v1264_v11 = vpack.c.bf16 %v1263_v46, %v1262_v28 }
0x15b9   :  { %5599 = vmatmul.msk.bf16.vlgmr.msrb.gmra.mxu0 %vm68_vm2, %v1264_v11 }
0x15ba   :  { %1540 = vmatpush.bf16.msrb.mxu0 %v6990_v52 }
0x15be   :  { %1541 = vmatpush.bf16.msrb.mxu0 %v6996_v47 }
0x1636   :  { %v1277_v33 = vpop.f32.mrf.mxu0 }
0x1637   :  { %v1278_v21 = vadd.f32 %v7018_v35, %v1277_v33 }
0x1639   :  { %v1284_v14 = vmul.f32 1.442695, %v1278_v21  ;;  %vm1282_vm15 = vcmp.gt.f32.partialorder %v1278_v21, 0.0 }
0x163b   :  { %6141 = vpow2.f32 %v1284_v14 }
0x163e   :  { %v1279_v34 = vpop.f32.mrf.mxu0 }
0x163f   :  { %v1280_v26 = vadd.f32 %v7024_v43, %v1279_v34 }
0x1641   :  { %v1286_v29 = vmul.f32 1.442695, %v1280_v26  ;;  %v6142_v32 = vpop.eup %6141  ;;  %vm1283_vm0 = vcmp.gt.f32.partialorder %v1280_v26, 0.0 }
0x1642   :  { %v5600_v61 = vadd.f32 -1.0, %v6142_v32 }
0x1643   :  { %6143 = vpow2.f32 %v1286_v29 }
0x1644   :  { %v1290_v38 = vsel %vm1282_vm15, %v1278_v21, %v5600_v61 }
0x1645   :  { %v1386_v19 = vadd.f32 %v1290_v38, %v7176_v5 }
0x1647   :  { %v1388_v11 = vmul.f32 2.0, %v1386_v19 }
0x1649   :  { %v6144_v4 = vpop.eup %6143 }
0x164a   :  { %v5601_v37 = vadd.f32 -1.0, %v6144_v4 }
0x164c   :  { %v1291_v42 = vsel %vm1283_vm0, %v1280_v26, %v5601_v37 }
0x164d   :  { %v1292_v62 = vpack.c.bf16 %v1291_v42, %v1290_v38  ;;  %v1387_v34 = vadd.f32 %v1291_v42, %v7178_v0 }
0x164f   :  { %5602 = vmatmul.msk.bf16.vlgmr.msrb.gmra.mxu1 %vm68_vm2, %v1292_v62  ;;  %v1389_v5 = vmul.f32 2.0, %v1387_v34 }
0x1650   :  { %1568 = vmatpush.bf16.msrb.mxu1 %v7038_v55 }
0x1654   :  { %1569 = vmatpush.bf16.msrb.mxu1 %v7047_v6 }
0x16cc   :  { %v1305_v48 = vpop.f32.mrf.mxu1 }
0x16cd   :  { %v1310_v17 = vmul.f32 0.05, %v1305_v48  ;;  %v1370_v51 = vadd.f32 %v1305_v48, %v1245_v13 }
0x16cf   :  { %v1312_v2 = vadd.f32 %v1310_v17, %v1132_v8  ;;  %v1372_v53 = vmul.f32 2.0, %v1370_v51 }
0x16d1   :  { %v1374_v39 = vadd.f32 %v1372_v53, %v7161_v25  ;;  %v1316_v58 = vmul.f32 1.442695, %v1312_v2  ;;  %vm1314_vm1 = vcmp.gt.f32.partialorder %v1312_v2, 0.0 }
0x16d3   :  { %v1376_v18 = vmul.f32 0.008333334, %v1374_v39  ;;  %6145 = vpow2.f32 %v1316_v58 }
0x16d4   :  { %v1307_v54 = vpop.f32.mrf.mxu1 }
0x16d5   :  { %v1311_v59 = vmul.f32 0.05, %v1307_v54  ;;  %v1378_v40 = vadd.f32 %v1376_v18, %v1132_v8 }
0x16d7   :  { %v1313_v60 = vadd.f32 %v1311_v59, %v1133_v1 }
0x16d9   :  { %v1318_v63 = vmul.f32 1.442695, %v1313_v60  ;;  %v6146_v30 = vpop.eup %6145  ;;  %vm1315_vm3 = vcmp.gt.f32.partialorder %v1313_v60, 0.0 }
0x16da   :  { %v5603_v27 = vadd.f32 -1.0, %v6146_v30 }
0x16db   :  { %6147 = vpow2.f32 %v1318_v63 }
0x16dc   :  { %v1322_v9 = vsel %vm1314_vm1, %v1312_v2, %v5603_v27 }
0x16e1   :  { %v6148_v7 = vpop.eup %6147 }
0x16e2   :  { %v5604_v13 = vadd.f32 -1.0, %v6148_v7 }
0x16e4   :  { %v1323_v25 = vsel %vm1315_vm3, %v1313_v60, %v5604_v13 }
0x16e5   :  { %v1324_v15 = vpack.c.bf16 %v1323_v25, %v1322_v9 }
0x16e7   :  { %5605 = vmatmul.msk.bf16.vlgmr.msrb.gmra.mxu2 %vm68_vm2, %v1324_v15 }
0x16e8   :  { %1600 = vmatpush.bf16.msrb.mxu2 %v6990_v52 }
0x16ec   :  { %1601 = vmatpush.bf16.msrb.mxu2 %v6996_v47 }
0x176a   :  { %v1337_v12 = vpop.f32.mrf.mxu2 }
0x176b   :  { %v1338_v45 = vadd.f32 %v7018_v35, %v1337_v12 }
0x176d   :  { %v1344_v10 = vmul.f32 1.442695, %v1338_v45  ;;  %vm1342_vm4 = vcmp.gt.f32.partialorder %v1338_v45, 0.0 }
0x176f   :  { %6149 = vpow2.f32 %v1344_v10 }
0x1772   :  { %v1339_v23 = vpop.f32.mrf.mxu2 }
0x1773   :  { %v1340_v16 = vadd.f32 %v7024_v43, %v1339_v23 }
0x1775   :  { %v6150_v3 = vpop.eup %6149  ;;  %v1346_v22 = vmul.f32 1.442695, %v1340_v16  ;;  %vm1343_vm5 = vcmp.gt.f32.partialorder %v1340_v16, 0.0 }
0x1776   :  { %v5606_v28 = vadd.f32 -1.0, %v6150_v3 }
0x1777   :  { %6151 = vpow2.f32 %v1346_v22 }
0x1778   :  { %v1350_v46 = vsel %vm1342_vm4, %v1338_v45, %v5606_v28 }
0x1779   :  { %v1384_v33 = vadd.f32 %v1350_v46, %v7152_v24 }
0x177b   :  { %v1390_v21 = vadd.f32 %v1388_v11, %v1384_v33 }
0x177d   :  { %v6152_v14 = vpop.eup %6151  ;;  %v1392_v26 = vmul.f32 0.008333334, %v1390_v21 }
0x177e   :  { %v5607_v29 = vadd.f32 -1.0, %v6152_v14 }
0x177f   :  { %v7210_v32 = vadd.f32 %v1392_v26, %v7126_v41  ;;  %v1371_v41 = vadd.f32 %v1307_v54, %v7185_v50 }
0x1780   :  { %v1351_v61 = vsel %vm1343_vm5, %v1340_v16, %v5607_v29 }
0x1781   :  { %v1352_v4 = vpack.c.bf16 %v1351_v61, %v1350_v46  ;;  %v1385_v37 = vadd.f32 %v1351_v61, %v7154_v20  ;;  %v1373_v0 = vmul.f32 2.0, %v1371_v41 }
0x1783   :  { %v1391_v38 = vadd.f32 %v1389_v5, %v1385_v37  ;;  %5608 = vmatmul.msk.bf16.vlgmr.msrb.gmra.mxu3 %vm68_vm2, %v1352_v4  ;;  %v1375_v48 = vadd.f32 %v1373_v0, %v7166_v57  ;;  %v7259_v4 = vld [vmem:[%s8649_s1 + $0x8] sm:$0xff]  ;;  %v7265_v37 = vld [vmem:[%s8649_s1] sm:$0xff] }
0x1784   :  { %1628 = vmatpush.bf16.msrb.mxu3 %v7038_v55 }
0x1785   :  { %v1393_v24 = vmul.f32 0.008333334, %v1391_v38  ;;  %v1377_v20 = vmul.f32 0.008333334, %v1375_v48 }
0x1787   :  { %v7216_v62 = vadd.f32 %v1393_v24, %v7132_v56  ;;  %v1379_v53 = vadd.f32 %v1377_v20, %v1133_v1 }
0x1788   :  { %1629 = vmatpush.bf16.msrb.mxu3 %v7047_v6 }
0x1806   :  { %v1365_v42 = vpop.f32.mrf.mxu3 }
0x1807   :  { %v1380_v8 = vmul.f32 0.008333334, %v1365_v42 }
0x1809   :  { %v7221_v17 = vadd.f32 %v1380_v8, %v1378_v40 }
0x180b   :  { %v1402_v51 = vmul.f32 1.442695, %v7221_v17  ;;  %vm1400_vm6 = vcmp.gt.f32.partialorder %v7221_v17, 0.0  ;;  %v1396_v23 = vadd.f32 %v7221_v17, %v6777_v31 }
0x180d   :  { %6153 = vpow2.f32 %v1402_v51 }
0x180e   :  { %v1367_v2 = vpop.f32.mrf.mxu3 }
0x180f   :  { %v1381_v39 = vmul.f32 0.008333334, %v1367_v2 }
0x1811   :  { %v7224_v56 = vadd.f32 %v1381_v39, %v1379_v53 }
0x1813   :  { %v1404_v58 = vmul.f32 1.442695, %v7224_v56  ;;  %v6154_v50 = vpop.eup %6153  ;;  %vm1401_vm7 = vcmp.gt.f32.partialorder %v7224_v56, 0.0  ;;  %v1397_v28 = vadd.f32 %v7224_v56, %v6790_v36 }
0x1814   :  { %v5609_v18 = vadd.f32 -1.0, %v6154_v50 }
0x1815   :  { %6155 = vpow2.f32 %v1404_v58 }
0x1816   :  { %v1408_v57 = vsel %vm1400_vm6, %v7221_v17, %v5609_v18 }
0x181b   :  { %v6156_v54 = vpop.eup %6155 }
0x181c   :  { %v5610_v59 = vadd.f32 -1.0, %v6156_v54 }
0x181e   :  { %v1409_v40 = vsel %vm1401_vm7, %v7224_v56, %v5610_v59 }
0x181f   :  { %v1410_v1 = vpack.c.bf16 %v1409_v40, %v1408_v57 }
0x1821   :  { %5611 = vmatmul.msk.bf16.vlgmr.msra.gmra.mxu0 %vm68_vm2, %v1410_v1 }
0x1822   :  { %1686 = vmatpush.bf16.msra.mxu0 %v6990_v52 }
0x1826   :  { %1687 = vmatpush.bf16.msra.mxu0 %v6996_v47 }
0x189e   :  { %v1423_v60 = vpop.f32.mrf.mxu0 }
0x189f   :  { %v1424_v63 = vadd.f32 %v7018_v35, %v1423_v60 }
0x18a1   :  { %v1430_v30 = vmul.f32 1.442695, %v1424_v63  ;;  %vm1428_vm8 = vcmp.gt.f32.partialorder %v1424_v63, 0.0 }
0x18a3   :  { %6157 = vpow2.f32 %v1430_v30 }
0x18a6   :  { %v1425_v27 = vpop.f32.mrf.mxu0 }
0x18a7   :  { %v1426_v7 = vadd.f32 %v7024_v43, %v1425_v27 }
0x18a9   :  { %v1432_v13 = vmul.f32 1.442695, %v1426_v7  ;;  %v6158_v9 = vpop.eup %6157  ;;  %vm1429_vm9 = vcmp.gt.f32.partialorder %v1426_v7, 0.0 }
0x18aa   :  { %v5612_v25 = vadd.f32 -1.0, %v6158_v9 }
0x18ab   :  { %6159 = vpow2.f32 %v1432_v13  ;;  %v7288_v13 = vld [vmem:[%s8650_s2 + $0x10] sm:$0xff] }
0x18ac   :  { %v7236_v45 = vsel %vm1428_vm8, %v1424_v63, %v5612_v25 }
0x18b1   :  { %v6160_v15 = vpop.eup %6159 }
0x18b2   :  { %v5613_v12 = vadd.f32 -1.0, %v6160_v15 }
0x18b4   :  { %v7238_v52 = vsel %vm1429_vm9, %v1426_v7, %v5613_v12  ;;  %v7294_v12 = vld [vmem:[%s8650_s2 + $0x18] sm:$0xff] }
0x18b5   :  { %v1438_v47 = vpack.c.bf16 %v7238_v52, %v7236_v45 }
0x18b7   :  { %5614 = vmatmul.msk.bf16.vlgmr.msra.gmra.mxu1 %vm68_vm2, %v1438_v47 }
0x18b8   :  { %1714 = vmatpush.bf16.msra.mxu1 %v7038_v55 }
0x18bc   :  { %1715 = vmatpush.bf16.msra.mxu1 %v7047_v6 }
0x1934   :  { %v7245_v10 = vpop.f32.mrf.mxu1 }
0x1935   :  { %v1456_v16 = vmul.f32 0.025, %v7245_v10 }
0x1937   :  { %v1458_v3 = vadd.f32 %v1456_v16, %v1396_v23 }
0x1939   :  { %v1462_v19 = vmul.f32 1.442695, %v1458_v3  ;;  %vm1460_vm10 = vcmp.gt.f32.partialorder %v1458_v3, 0.0 }
0x193b   :  { %6161 = vpow2.f32 %v1462_v19 }
0x193c   :  { %v7250_v22 = vpop.f32.mrf.mxu1 }
0x193d   :  { %v1457_v46 = vmul.f32 0.025, %v7250_v22 }
0x193f   :  { %v1459_v11 = vadd.f32 %v1457_v46, %v1397_v28 }
0x1941   :  { %v1464_v33 = vmul.f32 1.442695, %v1459_v11  ;;  %v6162_v21 = vpop.eup %6161  ;;  %vm1461_vm11 = vcmp.gt.f32.partialorder %v1459_v11, 0.0 }
0x1942   :  { %v5615_v14 = vadd.f32 -1.0, %v6162_v21  ;;  %v7301_v21 = vld [vmem:[%s8649_s1 + $0x18] sm:$0xff] }
0x1943   :  { %6163 = vpow2.f32 %v1464_v33 }
0x1944   :  { %v1468_v29 = vsel %vm1460_vm10, %v1458_v3, %v5615_v14  ;;  %v7307_v14 = vld [vmem:[%s8649_s1 + $0x10] sm:$0xff] }
0x1949   :  { %v6164_v34 = vpop.eup %6163 }
0x194a   :  { %v5616_v26 = vadd.f32 -1.0, %v6164_v34 }
0x194c   :  { %v1469_v61 = vsel %vm1461_vm11, %v1459_v11, %v5616_v26  ;;  %v1398_v26 = vadd.f32 %v7221_v17, %v6823_v44 }
0x194d   :  { %v1470_v5 = vpack.c.bf16 %v1469_v61, %v1468_v29 }
0x194f   :  { %5617 = vmatmul.msk.bf16.vlgmr.msra.gmra.mxu2 %vm68_vm2, %v1470_v5 }
0x1950   :  { %1746 = vmatpush.bf16.msra.mxu2 %v7259_v4 }
0x1954   :  { %1747 = vmatpush.bf16.msra.mxu2 %v7265_v37 }
0x19d2   :  { %v1483_v38 = vpop.f32.mrf.mxu2 }
0x19d3   :  { %v1484_v24 = vadd.f32 %v7018_v35, %v1483_v38 }
0x19d5   :  { %v1490_v41 = vmul.f32 1.442695, %v1484_v24  ;;  %vm1488_vm12 = vcmp.gt.f32.partialorder %v1484_v24, 0.0 }
0x19d7   :  { %6165 = vpow2.f32 %v1490_v41 }
0x19da   :  { %v1485_v0 = vpop.f32.mrf.mxu2 }
0x19db   :  { %v1486_v42 = vadd.f32 %v7024_v43, %v1485_v0 }
0x19dd   :  { %v1492_v48 = vmul.f32 1.442695, %v1486_v42  ;;  %v6166_v8 = vpop.eup %6165  ;;  %vm1489_vm13 = vcmp.gt.f32.partialorder %v1486_v42, 0.0 }
0x19de   :  { %v5618_v20 = vadd.f32 -1.0, %v6166_v8 }
0x19df   :  { %6167 = vpow2.f32 %v1492_v48  ;;  %v1399_v48 = vadd.f32 %v7224_v56, %v6828_v49 }
0x19e0   :  { %v7270_v53 = vsel %vm1488_vm12, %v1484_v24, %v5618_v20 }
0x19e5   :  { %v6168_v51 = vpop.eup %6167 }
0x19e6   :  { %v5619_v2 = vadd.f32 -1.0, %v6168_v51 }
0x19e8   :  { %v7272_v39 = vsel %vm1489_vm13, %v1486_v42, %v5619_v2 }
0x19e9   :  { %v1498_v35 = vpack.c.bf16 %v7272_v39, %v7270_v53 }
0x19eb   :  { %5620 = vmatmul.msk.bf16.vlgmr.msra.gmra.mxu3 %vm68_vm2, %v1498_v35 }
0x19ec   :  { %1774 = vmatpush.bf16.msra.mxu3 %v7038_v55 }
0x19f0   :  { %1775 = vmatpush.bf16.msra.mxu3 %v7047_v6 }
0x1a6e   :  { %v1511_v43 = vpop.f32.mrf.mxu3 }
0x1a6f   :  { %v1516_v58 = vmul.f32 0.025, %v1511_v43 }
0x1a71   :  { %v1518_v50 = vadd.f32 %v1516_v58, %v1396_v23 }
0x1a73   :  { %v1522_v18 = vmul.f32 1.442695, %v1518_v50  ;;  %vm1520_vm14 = vcmp.gt.f32.partialorder %v1518_v50, 0.0 }
0x1a75   :  { %6169 = vpow2.f32 %v1522_v18 }
0x1a76   :  { %v7279_v54 = vpop.f32.mrf.mxu3 }
0x1a77   :  { %v1517_v59 = vmul.f32 0.025, %v7279_v54 }
0x1a79   :  { %v1519_v57 = vadd.f32 %v1517_v59, %v1397_v28 }
0x1a7b   :  { %v1524_v40 = vmul.f32 1.442695, %v1519_v57  ;;  %v6170_v1 = vpop.eup %6169  ;;  %vm1521_vm15 = vcmp.gt.f32.partialorder %v1519_v57, 0.0 }
0x1a7c   :  { %v5621_v60 = vadd.f32 -1.0, %v6170_v1 }
0x1a7d   :  { %6171 = vpow2.f32 %v1524_v40 }
0x1a7e   :  { %v1528_v55 = vsel %vm1520_vm14, %v1518_v50, %v5621_v60 }
0x1a83   :  { %v6172_v63 = vpop.eup %6171 }
0x1a84   :  { %v5622_v30 = vadd.f32 -1.0, %v6172_v63 }
0x1a86   :  { %v1529_v6 = vsel %vm1521_vm15, %v1519_v57, %v5622_v30 }
0x1a87   :  { %v1530_v27 = vpack.c.bf16 %v1529_v6, %v1528_v55 }
0x1a89   :  { %5623 = vmatmul.msk.bf16.vlgmr.msrb.gmra.mxu0 %vm68_vm2, %v1530_v27 }
0x1a8a   :  { %1806 = vmatpush.bf16.msrb.mxu0 %v7259_v4 }
0x1a8e   :  { %1807 = vmatpush.bf16.msrb.mxu0 %v7265_v37 }
0x1b06   :  { %v1543_v7 = vpop.f32.mrf.mxu0 }
0x1b07   :  { %v1544_v9 = vadd.f32 %v7288_v13, %v1543_v7 }
0x1b09   :  { %v1550_v25 = vmul.f32 1.442695, %v1544_v9  ;;  %vm1548_vm0 = vcmp.gt.f32.partialorder %v1544_v9, 0.0 }
0x1b0b   :  { %6173 = vpow2.f32 %v1550_v25 }
0x1b0e   :  { %v1545_v15 = vpop.f32.mrf.mxu0 }
0x1b0f   :  { %v1546_v47 = vadd.f32 %v7294_v12, %v1545_v15 }
0x1b11   :  { %v1552_v23 = vmul.f32 1.442695, %v1546_v47  ;;  %v6174_v16 = vpop.eup %6173  ;;  %vm1549_vm1 = vcmp.gt.f32.partialorder %v1546_v47, 0.0 }
0x1b12   :  { %v5624_v3 = vadd.f32 -1.0, %v6174_v16 }
0x1b13   :  { %6175 = vpow2.f32 %v1552_v23 }
0x1b14   :  { %v1556_v46 = vsel %vm1548_vm0, %v1544_v9, %v5624_v3 }
0x1b15   :  { %v1652_v63 = vadd.f32 %v1556_v46, %v7270_v53 }
0x1b17   :  { %v1654_v27 = vmul.f32 2.0, %v1652_v63 }
0x1b19   :  { %v6176_v19 = vpop.eup %6175 }
0x1b1a   :  { %v5625_v28 = vadd.f32 -1.0, %v6176_v19 }
0x1b1c   :  { %v1557_v11 = vsel %vm1549_vm1, %v1546_v47, %v5625_v28 }
0x1b1d   :  { %v1558_v33 = vpack.c.bf16 %v1557_v11, %v1556_v46  ;;  %v1653_v15 = vadd.f32 %v1557_v11, %v7272_v39 }
0x1b1f   :  { %5626 = vmatmul.msk.bf16.vlgmr.msrb.gmra.mxu1 %vm68_vm2, %v1558_v33  ;;  %v1655_v53 = vmul.f32 2.0, %v1653_v15 }
0x1b20   :  { %1834 = vmatpush.bf16.msrb.mxu1 %v7301_v21 }
0x1b24   :  { %1835 = vmatpush.bf16.msrb.mxu1 %v7307_v14 }
0x1b9c   :  { %v1571_v34 = vpop.f32.mrf.mxu1 }
0x1b9d   :  { %v1576_v29 = vmul.f32 0.05, %v1571_v34  ;;  %v1636_v61 = vadd.f32 %v1571_v34, %v1511_v43 }
0x1b9f   :  { %v1578_v5 = vadd.f32 %v1576_v29, %v1398_v26  ;;  %v1638_v38 = vmul.f32 2.0, %v1636_v61 }
0x1ba1   :  { %v1640_v24 = vadd.f32 %v1638_v38, %v7245_v10  ;;  %v1582_v41 = vmul.f32 1.442695, %v1578_v5  ;;  %vm1580_vm3 = vcmp.gt.f32.partialorder %v1578_v5, 0.0 }
0x1ba3   :  { %v1642_v0 = vmul.f32 0.008333334, %v1640_v24  ;;  %6177 = vpow2.f32 %v1582_v41 }
0x1ba4   :  { %v1573_v42 = vpop.f32.mrf.mxu1 }
0x1ba5   :  { %v1577_v8 = vmul.f32 0.05, %v1573_v42  ;;  %v1644_v20 = vadd.f32 %v1642_v0, %v1398_v26 }
0x1ba7   :  { %v1579_v51 = vadd.f32 %v1577_v8, %v1399_v48 }
0x1ba9   :  { %v1584_v2 = vmul.f32 1.442695, %v1579_v51  ;;  %v6178_v35 = vpop.eup %6177  ;;  %vm1581_vm4 = vcmp.gt.f32.partialorder %v1579_v51, 0.0 }
0x1baa   :  { %v5627_v17 = vadd.f32 -1.0, %v6178_v35 }
0x1bab   :  { %6179 = vpow2.f32 %v1584_v2 }
0x1bac   :  { %v1588_v50 = vsel %vm1580_vm3, %v1578_v5, %v5627_v17 }
0x1bb1   :  { %v6180_v58 = vpop.eup %6179 }
0x1bb2   :  { %v5628_v43 = vadd.f32 -1.0, %v6180_v58 }
0x1bb4   :  { %v1589_v10 = vsel %vm1581_vm4, %v1579_v51, %v5628_v43 }
0x1bb5   :  { %v1590_v18 = vpack.c.bf16 %v1589_v10, %v1588_v50 }
0x1bb7   :  { %5629 = vmatmul.msk.bf16.vlgmr.msrb.gmra.mxu2 %vm68_vm2, %v1590_v18 }
0x1bb8   :  { %1866 = vmatpush.bf16.msrb.mxu2 %v7259_v4 }
0x1bbc   :  { %1867 = vmatpush.bf16.msrb.mxu2 %v7265_v37 }
0x1c3a   :  { %v1603_v56 = vpop.f32.mrf.mxu2 }
0x1c3b   :  { %v1604_v59 = vadd.f32 %v7288_v13, %v1603_v56 }
0x1c3d   :  { %v1610_v57 = vmul.f32 1.442695, %v1604_v59  ;;  %vm1608_vm5 = vcmp.gt.f32.partialorder %v1604_v59, 0.0 }
0x1c3f   :  { %6181 = vpow2.f32 %v1610_v57 }
0x1c42   :  { %v1605_v40 = vpop.f32.mrf.mxu2 }
0x1c43   :  { %v1606_v1 = vadd.f32 %v7294_v12, %v1605_v40 }
0x1c45   :  { %v6182_v60 = vpop.eup %6181  ;;  %v1612_v30 = vmul.f32 1.442695, %v1606_v1  ;;  %vm1609_vm6 = vcmp.gt.f32.partialorder %v1606_v1, 0.0 }
0x1c46   :  { %v5630_v55 = vadd.f32 -1.0, %v6182_v60 }
0x1c47   :  { %6183 = vpow2.f32 %v1612_v30 }
0x1c48   :  { %v1616_v6 = vsel %vm1608_vm5, %v1604_v59, %v5630_v55 }
0x1c49   :  { %v1650_v7 = vadd.f32 %v1616_v6, %v7236_v45 }
0x1c4b   :  { %v1656_v9 = vadd.f32 %v1654_v27, %v1650_v7 }
0x1c4d   :  { %v6184_v25 = vpop.eup %6183  ;;  %v1658_v47 = vmul.f32 0.008333334, %v1656_v9 }
0x1c4e   :  { %v5631_v23 = vadd.f32 -1.0, %v6184_v25 }
0x1c4f   :  { %v7324_v16 = vadd.f32 %v1658_v47, %v7210_v32  ;;  %v1637_v32 = vadd.f32 %v1573_v42, %v7279_v54 }
0x1c50   :  { %v1617_v3 = vsel %vm1609_vm6, %v1606_v1, %v5631_v23 }
0x1c51   :  { %v1618_v19 = vpack.c.bf16 %v1617_v3, %v1616_v6  ;;  %v1651_v28 = vadd.f32 %v1617_v3, %v7238_v52  ;;  %v1639_v39 = vmul.f32 2.0, %v1637_v32 }
0x1c53   :  { %v1657_v46 = vadd.f32 %v1655_v53, %v1651_v28  ;;  %5632 = vmatmul.msk.bf16.vlgmr.msrb.gmra.mxu3 %vm68_vm2, %v1618_v19  ;;  %v1641_v34 = vadd.f32 %v1639_v39, %v7250_v22 }
0x1c54   :  { %1894 = vmatpush.bf16.msrb.mxu3 %v7301_v21 }
0x1c55   :  { %v1659_v45 = vmul.f32 0.008333334, %v1657_v46  ;;  %v1643_v52 = vmul.f32 0.008333334, %v1641_v34 }
0x1c57   :  { %v7330_v33 = vadd.f32 %v1659_v45, %v7216_v62  ;;  %v1645_v38 = vadd.f32 %v1643_v52, %v1399_v48 }
0x1c58   :  { %1895 = vmatpush.bf16.msrb.mxu3 %v7307_v14 }
0x1cd6   :  { %v1631_v11 = vpop.f32.mrf.mxu3 }
0x1cd7   :  { %v1646_v26 = vmul.f32 0.008333334, %v1631_v11 }
0x1cd9   :  { %v7335_v29 = vadd.f32 %v1646_v26, %v1644_v20 }
0x1cdb   :  { %v1668_v61 = vmul.f32 1.442695, %v7335_v29  ;;  %vm1666_vm7 = vcmp.gt.f32.partialorder %v7335_v29, 0.0  ;;  %v1662_v60 = vadd.f32 %v7335_v29, %v6777_v31 }
0x1cdd   :  { %6185 = vpow2.f32 %v1668_v61 }
0x1cde   :  { %v1633_v5 = vpop.f32.mrf.mxu3 }
0x1cdf   :  { %v1647_v24 = vmul.f32 0.008333334, %v1633_v5 }
0x1ce1   :  { %v7338_v62 = vadd.f32 %v1647_v24, %v1645_v38 }
0x1ce3   :  { %v1670_v41 = vmul.f32 1.442695, %v7338_v62  ;;  %v6186_v54 = vpop.eup %6185  ;;  %vm1667_vm8 = vcmp.gt.f32.partialorder %v7338_v62, 0.0  ;;  %v1663_v27 = vadd.f32 %v7338_v62, %v6790_v36 }
0x1ce4   :  { %v5633_v0 = vadd.f32 -1.0, %v6186_v54 }
0x1ce5   :  { %6187 = vpow2.f32 %v1670_v41 }
0x1ce6   :  { %v1674_v22 = vsel %vm1666_vm7, %v7335_v29, %v5633_v0 }
0x1ceb   :  { %v6188_v42 = vpop.eup %6187 }
0x1cec   :  { %v5634_v8 = vadd.f32 -1.0, %v6188_v42 }
0x1cee   :  { %v1675_v20 = vsel %vm1667_vm8, %v7338_v62, %v5634_v8 }
0x1cef   :  { %v1676_v48 = vpack.c.bf16 %v1675_v20, %v1674_v22 }
0x1cf1   :  { %5635 = vmatmul.msk.bf16.vlgmr.msra.gmra.mxu0 %vm68_vm2, %v1676_v48 }
0x1cf2   :  { %1952 = vmatpush.bf16.msra.mxu0 %v7259_v4 }
0x1cf6   :  { %1953 = vmatpush.bf16.msra.mxu0 %v7265_v37 }
0x1d6e   :  { %v1689_v51 = vpop.f32.mrf.mxu0 }
0x1d6f   :  { %v1690_v2 = vadd.f32 %v7288_v13, %v1689_v51 }
0x1d71   :  { %v1696_v35 = vmul.f32 1.442695, %v1690_v2  ;;  %vm1694_vm9 = vcmp.gt.f32.partialorder %v1690_v2, 0.0 }
0x1d73   :  { %6189 = vpow2.f32 %v1696_v35 }
0x1d76   :  { %v1691_v17 = vpop.f32.mrf.mxu0 }
0x1d77   :  { %v1692_v58 = vadd.f32 %v7294_v12, %v1691_v17 }
0x1d79   :  { %v1698_v43 = vmul.f32 1.442695, %v1692_v58  ;;  %v6190_v50 = vpop.eup %6189  ;;  %vm1695_vm10 = vcmp.gt.f32.partialorder %v1692_v58, 0.0 }
0x1d7a   :  { %v5636_v10 = vadd.f32 -1.0, %v6190_v50 }
0x1d7b   :  { %6191 = vpow2.f32 %v1698_v43 }
0x1d7c   :  { %v7350_v59 = vsel %vm1694_vm9, %v1690_v2, %v5636_v10 }
0x1d81   :  { %v6192_v18 = vpop.eup %6191 }
0x1d82   :  { %v5637_v56 = vadd.f32 -1.0, %v6192_v18 }
0x1d84   :  { %v7352_v57 = vsel %vm1695_vm10, %v1692_v58, %v5637_v56 }
0x1d85   :  { %v1704_v40 = vpack.c.bf16 %v7352_v57, %v7350_v59 }
0x1d87   :  { %5638 = vmatmul.msk.bf16.vlgmr.msra.gmra.mxu1 %vm68_vm2, %v1704_v40 }
0x1d88   :  { %1980 = vmatpush.bf16.msra.mxu1 %v7301_v21 }
0x1d8c   :  { %1981 = vmatpush.bf16.msra.mxu1 %v7307_v14 }
0x1e04   :  { %v7359_v1 = vpop.f32.mrf.mxu1 }
0x1e05   :  { %v1722_v63 = vmul.f32 0.025, %v7359_v1 }
0x1e07   :  { %v1724_v30 = vadd.f32 %v1722_v63, %v1662_v60 }
0x1e09   :  { %v1728_v55 = vmul.f32 1.442695, %v1724_v30  ;;  %vm1726_vm11 = vcmp.gt.f32.partialorder %v1724_v30, 0.0 }
0x1e0b   :  { %6193 = vpow2.f32 %v1728_v55 }
0x1e0c   :  { %v7364_v6 = vpop.f32.mrf.mxu1 }
0x1e0d   :  { %v1723_v7 = vmul.f32 0.025, %v7364_v6 }
0x1e0f   :  { %v1725_v9 = vadd.f32 %v1723_v7, %v1663_v27 }
0x1e11   :  { %v1730_v25 = vmul.f32 1.442695, %v1725_v9  ;;  %v6194_v15 = vpop.eup %6193  ;;  %vm1727_vm12 = vcmp.gt.f32.partialorder %v1725_v9, 0.0 }
0x1e12   :  { %v5639_v47 = vadd.f32 -1.0, %v6194_v15 }
0x1e13   :  { %6195 = vpow2.f32 %v1730_v25 }
0x1e14   :  { %v1734_v53 = vsel %vm1726_vm11, %v1724_v30, %v5639_v47 }
0x1e19   :  { %v6196_v23 = vpop.eup %6195 }
0x1e1a   :  { %v5640_v3 = vadd.f32 -1.0, %v6196_v23 }
0x1e1c   :  { %v1735_v19 = vsel %vm1727_vm12, %v1725_v9, %v5640_v3  ;;  %v1664_v3 = vadd.f32 %v7335_v29, %v6823_v44 }
0x1e1d   :  { %v1736_v28 = vpack.c.bf16 %v1735_v19, %v1734_v53 }
0x1e1f   :  { %5641 = vmatmul.msk.bf16.vlgmr.msra.gmra.mxu2 %vm68_vm2, %v1736_v28 }
0x1e20   :  { %2012 = vmatpush.bf16.msra.mxu2 %v7259_v4 }
0x1e24   :  { %2013 = vmatpush.bf16.msra.mxu2 %v7265_v37 }
0x1ea2   :  { %v1749_v46 = vpop.f32.mrf.mxu2 }
0x1ea3   :  { %v1750_v45 = vadd.f32 %v7288_v13, %v1749_v46 }
0x1ea5   :  { %v1756_v32 = vmul.f32 1.442695, %v1750_v45  ;;  %vm1754_vm13 = vcmp.gt.f32.partialorder %v1750_v45, 0.0 }
0x1ea7   :  { %6197 = vpow2.f32 %v1756_v32 }
0x1eaa   :  { %v1751_v39 = vpop.f32.mrf.mxu2 }
0x1eab   :  { %v1752_v11 = vadd.f32 %v7294_v12, %v1751_v39 }
0x1ead   :  { %v1758_v34 = vmul.f32 1.442695, %v1752_v11  ;;  %v6198_v26 = vpop.eup %6197  ;;  %vm1755_vm14 = vcmp.gt.f32.partialorder %v1752_v11, 0.0 }
0x1eae   :  { %v5642_v52 = vadd.f32 -1.0, %v6198_v26 }
0x1eaf   :  { %6199 = vpow2.f32 %v1758_v34  ;;  %v1665_v34 = vadd.f32 %v7338_v62, %v6828_v49 }
0x1eb0   :  { %v7374_v38 = vsel %vm1754_vm13, %v1750_v45, %v5642_v52 }
0x1eb5   :  { %v6200_v61 = vpop.eup %6199 }
0x1eb6   :  { %v5643_v5 = vadd.f32 -1.0, %v6200_v61 }
0x1eb8   :  { %v7376_v24 = vsel %vm1755_vm14, %v1752_v11, %v5643_v5 }
0x1eb9   :  { %v1764_v41 = vpack.c.bf16 %v7376_v24, %v7374_v38 }
0x1ebb   :  { %5644 = vmatmul.msk.bf16.vlgmr.msra.gmra.mxu3 %vm68_vm2, %v1764_v41 }
0x1ebc   :  { %2040 = vmatpush.bf16.msra.mxu3 %v7301_v21 }
0x1ec0   :  { %2041 = vmatpush.bf16.msra.mxu3 %v7307_v14 }
0x1f3e   :  { %v1777_v54 = vpop.f32.mrf.mxu3 }
0x1f3f   :  { %v1782_v0 = vmul.f32 0.025, %v1777_v54 }
0x1f41   :  { %v1784_v42 = vadd.f32 %v1782_v0, %v1662_v60 }
0x1f43   :  { %v1788_v8 = vmul.f32 1.442695, %v1784_v42  ;;  %vm1786_vm15 = vcmp.gt.f32.partialorder %v1784_v42, 0.0 }
0x1f45   :  { %6201 = vpow2.f32 %v1788_v8 }
0x1f46   :  { %v7383_v22 = vpop.f32.mrf.mxu3 }
0x1f47   :  { %v1783_v20 = vmul.f32 0.025, %v7383_v22 }
0x1f49   :  { %v1785_v48 = vadd.f32 %v1783_v20, %v1663_v27 }
0x1f4b   :  { %v1790_v51 = vmul.f32 1.442695, %v1785_v48  ;;  %v6202_v2 = vpop.eup %6201  ;;  %vm1787_vm0 = vcmp.gt.f32.partialorder %v1785_v48, 0.0 }
0x1f4c   :  { %v5645_v35 = vadd.f32 -1.0, %v6202_v2 }
0x1f4d   :  { %6203 = vpow2.f32 %v1790_v51 }
0x1f4e   :  { %v1794_v43 = vsel %vm1786_vm15, %v1784_v42, %v5645_v35 }
0x1f53   :  { %v6204_v17 = vpop.eup %6203 }
0x1f54   :  { %v5646_v58 = vadd.f32 -1.0, %v6204_v17 }
0x1f56   :  { %v1795_v50 = vsel %vm1787_vm0, %v1785_v48, %v5646_v58 }
0x1f57   :  { %v1796_v10 = vpack.c.bf16 %v1795_v50, %v1794_v43 }
0x1f59   :  { %5647 = vmatmul.msk.bf16.vlgmr.msrb.gmra.mxu0 %vm68_vm2, %v1796_v10 }
0x1f5a   :  { %2072 = vmatpush.bf16.msrb.mxu0 %v7259_v4 }
0x1f5e   :  { %2073 = vmatpush.bf16.msrb.mxu0 %v7265_v37 }
0x1fd6   :  { %v1809_v18 = vpop.f32.mrf.mxu0 }
0x1fd7   :  { %v1810_v56 = vadd.f32 %v7288_v13, %v1809_v18 }
0x1fd9   :  { %v1816_v40 = vmul.f32 1.442695, %v1810_v56  ;;  %vm1814_vm1 = vcmp.gt.f32.partialorder %v1810_v56, 0.0 }
0x1fdb   :  { %6205 = vpow2.f32 %v1816_v40 }
0x1fde   :  { %v1811_v60 = vpop.f32.mrf.mxu0 }
0x1fdf   :  { %v1812_v63 = vadd.f32 %v7294_v12, %v1811_v60 }
0x1fe1   :  { %v1818_v30 = vmul.f32 1.442695, %v1812_v63  ;;  %v6206_v55 = vpop.eup %6205  ;;  %vm1815_vm3 = vcmp.gt.f32.partialorder %v1812_v63, 0.0 }
0x1fe2   :  { %v5648_v27 = vadd.f32 -1.0, %v6206_v55 }
0x1fe3   :  { %6207 = vpow2.f32 %v1818_v30 }
0x1fe4   :  { %v1822_v25 = vsel %vm1814_vm1, %v1810_v56, %v5648_v27 }
0x1fe5   :  { %v1918_v17 = vadd.f32 %v1822_v25, %v7374_v38 }
0x1fe7   :  { %v1920_v10 = vmul.f32 2.0, %v1918_v17 }
0x1fe9   :  { %v6208_v7 = vpop.eup %6207 }
0x1fea   :  { %v5649_v9 = vadd.f32 -1.0, %v6208_v7 }
0x1fec   :  { %v1823_v15 = vsel %vm1815_vm3, %v1812_v63, %v5649_v9 }
0x1fed   :  { %v1824_v47 = vpack.c.bf16 %v1823_v15, %v1822_v25  ;;  %v1919_v60 = vadd.f32 %v1823_v15, %v7376_v24 }
0x1fef   :  { %5650 = vmatmul.msk.bf16.vlgmr.msrb.gmra.mxu1 %vm68_vm2, %v1824_v47  ;;  %v1921_v38 = vmul.f32 2.0, %v1919_v60 }
0x1ff0   :  { %2100 = vmatpush.bf16.msrb.mxu1 %v7301_v21 }
0x1ff4   :  { %2101 = vmatpush.bf16.msrb.mxu1 %v7307_v14 }
0x206c   :  { %v1837_v23 = vpop.f32.mrf.mxu1 }
0x206d   :  { %v1842_v53 = vmul.f32 0.05, %v1837_v23  ;;  %v1902_v19 = vadd.f32 %v1837_v23, %v1777_v54 }
0x206f   :  { %v1844_v28 = vadd.f32 %v1842_v53, %v1664_v3  ;;  %v1904_v46 = vmul.f32 2.0, %v1902_v19 }
0x2071   :  { %v1906_v45 = vadd.f32 %v1904_v46, %v7359_v1  ;;  %v1848_v32 = vmul.f32 1.442695, %v1844_v28  ;;  %vm1846_vm4 = vcmp.gt.f32.partialorder %v1844_v28, 0.0 }
0x2073   :  { %v1908_v39 = vmul.f32 0.008333334, %v1906_v45  ;;  %6209 = vpow2.f32 %v1848_v32 }
0x2074   :  { %v1839_v11 = vpop.f32.mrf.mxu1 }
0x2075   :  { %v1843_v26 = vmul.f32 0.05, %v1839_v11  ;;  %v1910_v52 = vadd.f32 %v1908_v39, %v1664_v3 }
0x2077   :  { %v1845_v61 = vadd.f32 %v1843_v26, %v1665_v34 }
0x2079   :  { %v1850_v5 = vmul.f32 1.442695, %v1845_v61  ;;  %v6210_v41 = vpop.eup %6209  ;;  %vm1847_vm5 = vcmp.gt.f32.partialorder %v1845_v61, 0.0 }
0x207a   :  { %v5651_v29 = vadd.f32 -1.0, %v6210_v41 }
0x207b   :  { %6211 = vpow2.f32 %v1850_v5 }
0x207c   :  { %v1854_v42 = vsel %vm1846_vm4, %v1844_v28, %v5651_v29 }
0x2081   :  { %v6212_v0 = vpop.eup %6211 }
0x2082   :  { %v5652_v54 = vadd.f32 -1.0, %v6212_v0 }
0x2084   :  { %v1855_v1 = vsel %vm1847_vm5, %v1845_v61, %v5652_v54 }
0x2085   :  { %v1856_v8 = vpack.c.bf16 %v1855_v1, %v1854_v42 }
0x2087   :  { %5653 = vmatmul.msk.bf16.vlgmr.msrb.gmra.mxu2 %vm68_vm2, %v1856_v8 }
0x2088   :  { %2132 = vmatpush.bf16.msrb.mxu2 %v7259_v4 }
0x208c   :  { %2133 = vmatpush.bf16.msrb.mxu2 %v7265_v37 }
0x210a   :  { %v1869_v62 = vpop.f32.mrf.mxu2 }
0x210b   :  { %v1870_v20 = vadd.f32 %v7288_v13, %v1869_v62 }
0x210d   :  { %v1876_v48 = vmul.f32 1.442695, %v1870_v20  ;;  %vm1874_vm6 = vcmp.gt.f32.partialorder %v1870_v20, 0.0 }
0x210f   :  { %6213 = vpow2.f32 %v1876_v48 }
0x2112   :  { %v1871_v51 = vpop.f32.mrf.mxu2 }
0x2113   :  { %v1872_v2 = vadd.f32 %v7294_v12, %v1871_v51 }
0x2115   :  { %v6214_v35 = vpop.eup %6213  ;;  %v1878_v58 = vmul.f32 1.442695, %v1872_v2  ;;  %vm1875_vm7 = vcmp.gt.f32.partialorder %v1872_v2, 0.0 }
0x2116   :  { %v5654_v43 = vadd.f32 -1.0, %v6214_v35 }
0x2117   :  { %6215 = vpow2.f32 %v1878_v58 }
0x2118   :  { %v1882_v50 = vsel %vm1874_vm6, %v1870_v20, %v5654_v43 }
0x2119   :  { %v1916_v18 = vadd.f32 %v1882_v50, %v7350_v59 }
0x211b   :  { %v1922_v56 = vadd.f32 %v1920_v10, %v1916_v18 }
0x211d   :  { %v6216_v40 = vpop.eup %6215  ;;  %v1924_v63 = vmul.f32 0.008333334, %v1922_v56 }
0x211e   :  { %v5655_v30 = vadd.f32 -1.0, %v6216_v40 }
0x211f   :  { %v7408_v55 = vadd.f32 %v1924_v63, %v7324_v16  ;;  %v1903_v16 = vadd.f32 %v1839_v11, %v7383_v22 }
0x2120   :  { %v1883_v27 = vsel %vm1875_vm7, %v1872_v2, %v5655_v30 }
0x2121   :  { %v1884_v7 = vpack.c.bf16 %v1883_v27, %v1882_v50  ;;  %v1917_v9 = vadd.f32 %v1883_v27, %v7352_v57  ;;  %v1905_v24 = vmul.f32 2.0, %v1903_v16 }
0x2123   :  { %v1923_v25 = vadd.f32 %v1921_v38, %v1917_v9  ;;  %5656 = vmatmul.msk.bf16.vlgmr.msrb.gmra.mxu3 %vm68_vm2, %v1884_v7  ;;  %v1907_v23 = vadd.f32 %v1905_v24, %v7364_v6 }
0x2124   :  { %2160 = vmatpush.bf16.msrb.mxu3 %v7301_v21 }
0x2125   :  { %v1925_v59 = vmul.f32 0.008333334, %v1923_v25  ;;  %v1909_v57 = vmul.f32 0.008333334, %v1907_v23 }
0x2127   :  { %v7414_v47 = vadd.f32 %v1925_v59, %v7330_v33  ;;  %v1911_v46 = vadd.f32 %v1909_v57, %v1665_v34 }
0x2128   :  { %2161 = vmatpush.bf16.msrb.mxu3 %v7307_v14 }
0x21a6   :  { %v1897_v15 = vpop.f32.mrf.mxu3 }
0x21a7   :  { %v1912_v3 = vmul.f32 0.008333334, %v1897_v15 }
0x21a9   :  { %v7419_v53 = vadd.f32 %v1912_v3, %v1910_v52 }
0x21ab   :  { %v1934_v19 = vmul.f32 1.442695, %v7419_v53  ;;  %vm1932_vm8 = vcmp.gt.f32.partialorder %v7419_v53, 0.0  ;;  %v1928_v35 = vadd.f32 %v7419_v53, %v6777_v31 }
0x21ad   :  { %6217 = vpow2.f32 %v1934_v19 }
0x21ae   :  { %v1899_v28 = vpop.f32.mrf.mxu3 }
0x21af   :  { %v1913_v45 = vmul.f32 0.008333334, %v1899_v28 }
0x21b1   :  { %v7422_v33 = vadd.f32 %v1913_v45, %v1911_v46 }
0x21b3   :  { %v1936_v32 = vmul.f32 1.442695, %v7422_v33  ;;  %v6218_v22 = vpop.eup %6217  ;;  %vm1933_vm9 = vcmp.gt.f32.partialorder %v7422_v33, 0.0  ;;  %v1929_v10 = vadd.f32 %v7422_v33, %v6790_v36 }
0x21b4   :  { %v5657_v39 = vadd.f32 -1.0, %v6218_v22 }
0x21b5   :  { %6219 = vpow2.f32 %v1936_v32 }
0x21b6   :  { %v1940_v6 = vsel %vm1932_vm8, %v7419_v53, %v5657_v39 }
0x21bb   :  { %v6220_v11 = vpop.eup %6219 }
0x21bc   :  { %v5658_v26 = vadd.f32 -1.0, %v6220_v11 }
0x21be   :  { %v1941_v52 = vsel %vm1933_vm9, %v7422_v33, %v5658_v26 }
0x21bf   :  { %v1942_v34 = vpack.c.bf16 %v1941_v52, %v1940_v6 }
0x21c1   :  { %5659 = vmatmul.msk.bf16.vlgmr.msra.gmra.mxu0 %vm68_vm2, %v1942_v34 }
0x21c2   :  { %2218 = vmatpush.bf16.msra.mxu0 %v7259_v4 }
0x21c6   :  { %2219 = vmatpush.bf16.msra.mxu0 %v7265_v37 }
0x223e   :  { %v1955_v61 = vpop.f32.mrf.mxu0 }
0x223f   :  { %v1956_v5 = vadd.f32 %v7288_v13, %v1955_v61 }
0x2241   :  { %v1962_v41 = vmul.f32 1.442695, %v1956_v5  ;;  %vm1960_vm10 = vcmp.gt.f32.partialorder %v1956_v5, 0.0 }
0x2243   :  { %6221 = vpow2.f32 %v1962_v41 }
0x2246   :  { %v1957_v29 = vpop.f32.mrf.mxu0 }
0x2247   :  { %v1958_v0 = vadd.f32 %v7294_v12, %v1957_v29 }
0x2249   :  { %v1964_v54 = vmul.f32 1.442695, %v1958_v0  ;;  %v6222_v42 = vpop.eup %6221  ;;  %vm1961_vm11 = vcmp.gt.f32.partialorder %v1958_v0, 0.0 }
0x224a   :  { %v5660_v1 = vadd.f32 -1.0, %v6222_v42 }
0x224b   :  { %6223 = vpow2.f32 %v1964_v54 }
0x224c   :  { %v7434_v20 = vsel %vm1960_vm10, %v1956_v5, %v5660_v1 }
0x2251   :  { %v6224_v8 = vpop.eup %6223 }
0x2252   :  { %v5661_v62 = vadd.f32 -1.0, %v6224_v8 }
0x2254   :  { %v7436_v48 = vsel %vm1961_vm11, %v1958_v0, %v5661_v62 }
0x2255   :  { %v1970_v51 = vpack.c.bf16 %v7436_v48, %v7434_v20 }
0x2257   :  { %5662 = vmatmul.msk.bf16.vlgmr.msra.gmra.mxu1 %vm68_vm2, %v1970_v51 }
0x2258   :  { %2246 = vmatpush.bf16.msra.mxu1 %v7301_v21 }
0x225c   :  { %2247 = vmatpush.bf16.msra.mxu1 %v7307_v14 }
0x22d4   :  { %v7443_v2 = vpop.f32.mrf.mxu1 }
0x22d5   :  { %v1988_v17 = vmul.f32 0.025, %v7443_v2 }
0x22d7   :  { %v1990_v58 = vadd.f32 %v1988_v17, %v1928_v35 }
0x22d9   :  { %v1994_v43 = vmul.f32 1.442695, %v1990_v58  ;;  %vm1992_vm12 = vcmp.gt.f32.partialorder %v1990_v58, 0.0 }
0x22db   :  { %6225 = vpow2.f32 %v1994_v43 }
0x22dc   :  { %v7448_v50 = vpop.f32.mrf.mxu1 }
0x22dd   :  { %v1989_v18 = vmul.f32 0.025, %v7448_v50 }
0x22df   :  { %v1991_v56 = vadd.f32 %v1989_v18, %v1929_v10 }
0x22e1   :  { %v1996_v40 = vmul.f32 1.442695, %v1991_v56  ;;  %v6226_v60 = vpop.eup %6225  ;;  %vm1993_vm13 = vcmp.gt.f32.partialorder %v1991_v56, 0.0 }
0x22e2   :  { %v5663_v63 = vadd.f32 -1.0, %v6226_v60 }
0x22e3   :  { %6227 = vpow2.f32 %v1996_v40 }
0x22e4   :  { %v2000_v38 = vsel %vm1992_vm12, %v1990_v58, %v5663_v63 }
0x22e9   :  { %v6228_v30 = vpop.eup %6227 }
0x22ea   :  { %v5664_v27 = vadd.f32 -1.0, %v6228_v30 }
0x22ec   :  { %v2001_v7 = vsel %vm1993_vm13, %v1991_v56, %v5664_v27  ;;  %v1930_v27 = vadd.f32 %v7419_v53, %v6823_v44 }
0x22ed   :  { %v2002_v9 = vpack.c.bf16 %v2001_v7, %v2000_v38 }
0x22ef   :  { %5665 = vmatmul.msk.bf16.vlgmr.msra.gmra.mxu2 %vm68_vm2, %v2002_v9 }
0x22f0   :  { %2278 = vmatpush.bf16.msra.mxu2 %v7259_v4 }
0x22f4   :  { %2279 = vmatpush.bf16.msra.mxu2 %v7265_v37 }
0x2372   :  { %v2015_v25 = vpop.f32.mrf.mxu2 }
0x2373   :  { %v2016_v59 = vadd.f32 %v7288_v13, %v2015_v25 }
0x2375   :  { %v2022_v16 = vmul.f32 1.442695, %v2016_v59  ;;  %vm2020_vm14 = vcmp.gt.f32.partialorder %v2016_v59, 0.0 }
0x2377   :  { %6229 = vpow2.f32 %v2022_v16 }
0x237a   :  { %v2017_v24 = vpop.f32.mrf.mxu2 }
0x237b   :  { %v2018_v15 = vadd.f32 %v7294_v12, %v2017_v24 }
0x237d   :  { %v2024_v23 = vmul.f32 1.442695, %v2018_v15  ;;  %v6230_v3 = vpop.eup %6229  ;;  %vm2021_vm15 = vcmp.gt.f32.partialorder %v2018_v15, 0.0 }
0x237e   :  { %v5666_v57 = vadd.f32 -1.0, %v6230_v3 }
0x237f   :  { %6231 = vpow2.f32 %v2024_v23  ;;  %v1931_v23 = vadd.f32 %v7422_v33, %v6828_v49 }
0x2380   :  { %v7458_v46 = vsel %vm2020_vm14, %v2016_v59, %v5666_v57 }
0x2385   :  { %v6232_v19 = vpop.eup %6231 }
0x2386   :  { %v5667_v28 = vadd.f32 -1.0, %v6232_v19 }
0x2388   :  { %v7460_v45 = vsel %vm2021_vm15, %v2018_v15, %v5667_v28 }
0x2389   :  { %v2030_v32 = vpack.c.bf16 %v7460_v45, %v7458_v46 }
0x238b   :  { %5668 = vmatmul.msk.bf16.vlgmr.msra.gmra.mxu3 %vm68_vm2, %v2030_v32 }
0x238c   :  { %2306 = vmatpush.bf16.msra.mxu3 %v7301_v21 }
0x2390   :  { %2307 = vmatpush.bf16.msra.mxu3 %v7307_v14 }
0x240e   :  { %v2043_v22 = vpop.f32.mrf.mxu3 }
0x240f   :  { %v2048_v39 = vmul.f32 0.025, %v2043_v22 }
0x2411   :  { %v2050_v11 = vadd.f32 %v2048_v39, %v1928_v35 }
0x2413   :  { %v2054_v26 = vmul.f32 1.442695, %v2050_v11  ;;  %vm2052_vm0 = vcmp.gt.f32.partialorder %v2050_v11, 0.0 }
0x2415   :  { %6233 = vpow2.f32 %v2054_v26 }
0x2416   :  { %v7467_v6 = vpop.f32.mrf.mxu3 }
0x2417   :  { %v2049_v52 = vmul.f32 0.025, %v7467_v6 }
0x2419   :  { %v2051_v34 = vadd.f32 %v2049_v52, %v1929_v10 }
0x241b   :  { %v2056_v61 = vmul.f32 1.442695, %v2051_v34  ;;  %v6234_v5 = vpop.eup %6233  ;;  %vm2053_vm1 = vcmp.gt.f32.partialorder %v2051_v34, 0.0 }
0x241c   :  { %v5669_v41 = vadd.f32 -1.0, %v6234_v5 }
0x241d   :  { %6235 = vpow2.f32 %v2056_v61 }
0x241e   :  { %v2060_v54 = vsel %vm2052_vm0, %v2050_v11, %v5669_v41 }
0x2423   :  { %v6236_v29 = vpop.eup %6235 }
0x2424   :  { %v5670_v0 = vadd.f32 -1.0, %v6236_v29 }
0x2426   :  { %v2061_v42 = vsel %vm2053_vm1, %v2051_v34, %v5670_v0 }
0x2427   :  { %v2062_v1 = vpack.c.bf16 %v2061_v42, %v2060_v54 }
0x2429   :  { %5671 = vmatmul.msk.bf16.vlgmr.msrb.gmra.mxu0 %vm68_vm2, %v2062_v1 }
0x242a   :  { %2338 = vmatpush.bf16.msrb.mxu0 %v7259_v4 }
0x242e   :  { %2339 = vmatpush.bf16.msrb.mxu0 %v7265_v37 }
0x24a6   :  { %v2075_v8 = vpop.f32.mrf.mxu0 }
0x24a7   :  { %v2076_v62 = vadd.f32 %v7288_v13, %v2075_v8 }
0x24a9   :  { %v2082_v51 = vmul.f32 1.442695, %v2076_v62  ;;  %vm2080_vm3 = vcmp.gt.f32.partialorder %v2076_v62, 0.0 }
0x24ab   :  { %6237 = vpow2.f32 %v2082_v51 }
0x24ae   :  { %v2077_v35 = vpop.f32.mrf.mxu0 }
0x24af   :  { %v2078_v17 = vadd.f32 %v7294_v12, %v2077_v35 }
0x24b1   :  { %v2084_v58 = vmul.f32 1.442695, %v2078_v17  ;;  %v6238_v43 = vpop.eup %6237  ;;  %vm2081_vm4 = vcmp.gt.f32.partialorder %v2078_v17, 0.0 }
0x24b2   :  { %v5672_v10 = vadd.f32 -1.0, %v6238_v43 }
0x24b3   :  { %6239 = vpow2.f32 %v2084_v58 }
0x24b4   :  { %v2088_v40 = vsel %vm2080_vm3, %v2076_v62, %v5672_v10 }
0x24b5   :  { %v2184_v29 = vadd.f32 %v2088_v40, %v7458_v46 }
0x24b7   :  { %v2186_v1 = vmul.f32 2.0, %v2184_v29 }
0x24b9   :  { %v6240_v18 = vpop.eup %6239 }
0x24ba   :  { %v5673_v56 = vadd.f32 -1.0, %v6240_v18 }
0x24bc   :  { %v2089_v60 = vsel %vm2081_vm4, %v2078_v17, %v5673_v56 }
0x24bd   :  { %v2090_v63 = vpack.c.bf16 %v2089_v60, %v2088_v40  ;;  %v2185_v62 = vadd.f32 %v2089_v60, %v7460_v45 }
0x24bf   :  { %5674 = vmatmul.msk.bf16.vlgmr.msrb.gmra.mxu1 %vm68_vm2, %v2090_v63  ;;  %v2187_v46 = vmul.f32 2.0, %v2185_v62 }
0x24c0   :  { %2366 = vmatpush.bf16.msrb.mxu1 %v7301_v21 }
0x24c4   :  { %2367 = vmatpush.bf16.msrb.mxu1 %v7307_v14 }
0x253c   :  { %v2103_v30 = vpop.f32.mrf.mxu1 }
0x253d   :  { %v2108_v38 = vmul.f32 0.05, %v2103_v30  ;;  %v2168_v7 = vadd.f32 %v2103_v30, %v2043_v22 }
0x253f   :  { %v2110_v9 = vadd.f32 %v2108_v38, %v1930_v27  ;;  %v2170_v25 = vmul.f32 2.0, %v2168_v7 }
0x2541   :  { %v2172_v59 = vadd.f32 %v2170_v25, %v7443_v2  ;;  %v2114_v16 = vmul.f32 1.442695, %v2110_v9  ;;  %vm2112_vm5 = vcmp.gt.f32.partialorder %v2110_v9, 0.0 }
0x2543   :  { %v2174_v24 = vmul.f32 0.008333334, %v2172_v59  ;;  %6241 = vpow2.f32 %v2114_v16 }
0x2544   :  { %v2105_v15 = vpop.f32.mrf.mxu1 }
0x2545   :  { %v2109_v3 = vmul.f32 0.05, %v2105_v15  ;;  %v2176_v57 = vadd.f32 %v2174_v24, %v1930_v27 }
0x2547   :  { %v2111_v19 = vadd.f32 %v2109_v3, %v1931_v23  ;;  %v7517_v3 = vld [vmem:[%s8649_s1 + $0x8] sm:$0xff] }
0x2549   :  { %v2116_v28 = vmul.f32 1.442695, %v2111_v19  ;;  %v6242_v32 = vpop.eup %6241  ;;  %vm2113_vm6 = vcmp.gt.f32.partialorder %v2111_v19, 0.0 }
0x254a   :  { %v5675_v53 = vadd.f32 -1.0, %v6242_v32 }
0x254b   :  { %6243 = vpow2.f32 %v2116_v28 }
0x254c   :  { %v2120_v11 = vsel %vm2112_vm5, %v2110_v9, %v5675_v53 }
0x2551   :  { %v6244_v39 = vpop.eup %6243 }
0x2552   :  { %v5676_v22 = vadd.f32 -1.0, %v6244_v39 }
0x2554   :  { %v2121_v2 = vsel %vm2113_vm6, %v2111_v19, %v5676_v22 }
0x2555   :  { %v2122_v26 = vpack.c.bf16 %v2121_v2, %v2120_v11 }
0x2557   :  { %5677 = vmatmul.msk.bf16.vlgmr.msrb.gmra.mxu2 %vm68_vm2, %v2122_v26 }
0x2558   :  { %2398 = vmatpush.bf16.msrb.mxu2 %v7259_v4 }
0x255c   :  { %2399 = vmatpush.bf16.msrb.mxu2 %v7265_v37 }
0x25da   :  { %v2135_v33 = vpop.f32.mrf.mxu2 }
0x25db   :  { %v2136_v52 = vadd.f32 %v7288_v13, %v2135_v33 }
0x25dd   :  { %v2142_v34 = vmul.f32 1.442695, %v2136_v52  ;;  %vm2140_vm7 = vcmp.gt.f32.partialorder %v2136_v52, 0.0 }
0x25df   :  { %6245 = vpow2.f32 %v2142_v34 }
0x25e2   :  { %v2137_v61 = vpop.f32.mrf.mxu2 }
0x25e3   :  { %v2138_v5 = vadd.f32 %v7294_v12, %v2137_v61 }
0x25e5   :  { %v6246_v41 = vpop.eup %6245  ;;  %v2144_v0 = vmul.f32 1.442695, %v2138_v5  ;;  %vm2141_vm8 = vcmp.gt.f32.partialorder %v2138_v5, 0.0 }
0x25e6   :  { %v5678_v54 = vadd.f32 -1.0, %v6246_v41 }
0x25e7   :  { %6247 = vpow2.f32 %v2144_v0 }
0x25e8   :  { %v2148_v42 = vsel %vm2140_vm7, %v2136_v52, %v5678_v54 }
0x25e9   :  { %v2182_v4 = vadd.f32 %v2148_v42, %v7434_v20 }
0x25eb   :  { %v2188_v37 = vadd.f32 %v2186_v1, %v2182_v4 }
0x25ed   :  { %v6248_v8 = vpop.eup %6247  ;;  %v2190_v51 = vmul.f32 0.008333334, %v2188_v37 }
0x25ee   :  { %v5679_v35 = vadd.f32 -1.0, %v6248_v8 }
0x25ef   :  { %v7492_v17 = vadd.f32 %v2190_v51, %v7408_v55  ;;  %v2169_v55 = vadd.f32 %v2105_v15, %v7467_v6 }
0x25f0   :  { %v2149_v58 = vsel %vm2141_vm8, %v2138_v5, %v5679_v35 }
0x25f1   :  { %v2150_v43 = vpack.c.bf16 %v2149_v58, %v2148_v42  ;;  %v2183_v10 = vadd.f32 %v2149_v58, %v7436_v48  ;;  %v2171_v45 = vmul.f32 2.0, %v2169_v55 }
0x25f3   :  { %v2189_v18 = vadd.f32 %v2187_v46, %v2183_v10  ;;  %5680 = vmatmul.msk.bf16.vlgmr.msrb.gmra.mxu3 %vm68_vm2, %v2150_v43  ;;  %v2173_v60 = vadd.f32 %v2171_v45, %v7448_v50  ;;  %v7553_v46 = vld [vmem:[%s8650_s2 + $0x10] sm:$0xff] }
0x25f4   :  { %2426 = vmatpush.bf16.msrb.mxu3 %v7301_v21 }
0x25f5   :  { %v2191_v20 = vmul.f32 0.008333334, %v2189_v18  ;;  %v2175_v48 = vmul.f32 0.008333334, %v2173_v60 }
0x25f7   :  { %v7498_v56 = vadd.f32 %v2191_v20, %v7414_v47  ;;  %v2177_v7 = vadd.f32 %v2175_v48, %v1931_v23  ;;  %v7559_v20 = vld [vmem:[%s8650_s2 + $0x18] sm:$0xff] }
0x25f8   :  { %2427 = vmatpush.bf16.msrb.mxu3 %v7307_v14 }
0x2676   :  { %v2163_v40 = vpop.f32.mrf.mxu3 }
0x2677   :  { %v2178_v63 = vmul.f32 0.008333334, %v2163_v40 }
0x2679   :  { %v7503_v30 = vadd.f32 %v2178_v63, %v2176_v57  ;;  %v7523_v57 = vld [vmem:[%s8649_s1] sm:$0xff] }
0x267b   :  { %v2200_v27 = vmul.f32 1.442695, %v7503_v30  ;;  %vm2198_vm9 = vcmp.gt.f32.partialorder %v7503_v30, 0.0  ;;  %v2194_v61 = vadd.f32 %v7503_v30, %v6777_v31 }
0x267d   :  { %6249 = vpow2.f32 %v2200_v27 }
0x267e   :  { %v2165_v38 = vpop.f32.mrf.mxu3 }
0x267f   :  { %v2179_v9 = vmul.f32 0.008333334, %v2165_v38 }
0x2681   :  { %v7506_v47 = vadd.f32 %v2179_v9, %v2177_v7  ;;  %v7572_v9 = vld [vmem:[%s8649_s1 + $0x18] sm:$0xff] }
0x2683   :  { %v2202_v25 = vmul.f32 1.442695, %v7506_v47  ;;  %v6250_v6 = vpop.eup %6249  ;;  %vm2199_vm10 = vcmp.gt.f32.partialorder %v7506_v47, 0.0  ;;  %v2195_v54 = vadd.f32 %v7506_v47, %v6790_v36 }
0x2684   :  { %v5681_v59 = vadd.f32 -1.0, %v6250_v6 }
0x2685   :  { %6251 = vpow2.f32 %v2202_v25  ;;  %v7578_v25 = vld [vmem:[%s8649_s1 + $0x10] sm:$0xff] }
0x2686   :  { %v2206_v50 = vsel %vm2198_vm9, %v7503_v30, %v5681_v59 }
0x268b   :  { %v6252_v16 = vpop.eup %6251 }
0x268c   :  { %v5682_v24 = vadd.f32 -1.0, %v6252_v16 }
0x268e   :  { %v2207_v15 = vsel %vm2199_vm10, %v7506_v47, %v5682_v24 }
0x268f   :  { %v2208_v23 = vpack.c.bf16 %v2207_v15, %v2206_v50 }
0x2691   :  { %5683 = vmatmul.msk.bf16.vlgmr.msra.gmra.mxu0 %vm68_vm2, %v2208_v23 }
0x2692   :  { %2484 = vmatpush.bf16.msra.mxu0 %v7517_v3 }
0x2696   :  { %2485 = vmatpush.bf16.msra.mxu0 %v7523_v57 }
0x270e   :  { %v2221_v19 = vpop.f32.mrf.mxu0 }
0x270f   :  { %v2222_v28 = vadd.f32 %v7288_v13, %v2221_v19 }
0x2711   :  { %v2228_v32 = vmul.f32 1.442695, %v2222_v28  ;;  %vm2226_vm11 = vcmp.gt.f32.partialorder %v2222_v28, 0.0 }
0x2713   :  { %6253 = vpow2.f32 %v2228_v32 }
0x2716   :  { %v2223_v53 = vpop.f32.mrf.mxu0 }
0x2717   :  { %v2224_v39 = vadd.f32 %v7294_v12, %v2223_v53 }
0x2719   :  { %v2230_v22 = vmul.f32 1.442695, %v2224_v39  ;;  %v6254_v11 = vpop.eup %6253  ;;  %vm2227_vm12 = vcmp.gt.f32.partialorder %v2224_v39, 0.0 }
0x271a   :  { %v5684_v2 = vadd.f32 -1.0, %v6254_v11 }
0x271b   :  { %6255 = vpow2.f32 %v2230_v22 }
0x271c   :  { %v7528_v52 = vsel %vm2226_vm11, %v2222_v28, %v5684_v2 }
0x2721   :  { %v6256_v26 = vpop.eup %6255 }
0x2722   :  { %v5685_v33 = vadd.f32 -1.0, %v6256_v26 }
0x2724   :  { %v7530_v34 = vsel %vm2227_vm12, %v2224_v39, %v5685_v33 }
0x2725   :  { %v2236_v13 = vpack.c.bf16 %v7530_v34, %v7528_v52 }
0x2727   :  { %5686 = vmatmul.msk.bf16.vlgmr.msra.gmra.mxu1 %vm68_vm2, %v2236_v13 }
0x2728   :  { %2512 = vmatpush.bf16.msra.mxu1 %v7301_v21 }
0x272c   :  { %2513 = vmatpush.bf16.msra.mxu1 %v7307_v14 }
0x27a4   :  { %v7537_v12 = vpop.f32.mrf.mxu1 }
0x27a5   :  { %v2254_v5 = vmul.f32 0.025, %v7537_v12 }
0x27a7   :  { %v2256_v41 = vadd.f32 %v2254_v5, %v2194_v61 }
0x27a9   :  { %v2260_v29 = vmul.f32 1.442695, %v2256_v41  ;;  %vm2258_vm13 = vcmp.gt.f32.partialorder %v2256_v41, 0.0 }
0x27ab   :  { %6257 = vpow2.f32 %v2260_v29 }
0x27ac   :  { %v7542_v0 = vpop.f32.mrf.mxu1 }
0x27ad   :  { %v2255_v42 = vmul.f32 0.025, %v7542_v0 }
0x27af   :  { %v2257_v21 = vadd.f32 %v2255_v42, %v2195_v54 }
0x27b1   :  { %v2262_v1 = vmul.f32 1.442695, %v2257_v21  ;;  %v6258_v14 = vpop.eup %6257  ;;  %vm2259_vm14 = vcmp.gt.f32.partialorder %v2257_v21, 0.0 }
0x27b2   :  { %v5687_v4 = vadd.f32 -1.0, %v6258_v14 }
0x27b3   :  { %6259 = vpow2.f32 %v2262_v1 }
0x27b4   :  { %v2266_v62 = vsel %vm2258_vm13, %v2256_v41, %v5687_v4 }
0x27b9   :  { %v6260_v37 = vpop.eup %6259 }
0x27ba   :  { %v5688_v8 = vadd.f32 -1.0, %v6260_v37 }
0x27bc   :  { %v2267_v51 = vsel %vm2259_vm14, %v2257_v21, %v5688_v8  ;;  %v2196_v8 = vadd.f32 %v7503_v30, %v6823_v44 }
0x27bd   :  { %v2268_v35 = vpack.c.bf16 %v2267_v51, %v2266_v62 }
0x27bf   :  { %5689 = vmatmul.msk.bf16.vlgmr.msra.gmra.mxu2 %vm68_vm2, %v2268_v35 }
0x27c0   :  { %2544 = vmatpush.bf16.msra.mxu2 %v7517_v3 }
0x27c4   :  { %2545 = vmatpush.bf16.msra.mxu2 %v7523_v57 }
0x2842   :  { %v2281_v58 = vpop.f32.mrf.mxu2 }
0x2843   :  { %v2282_v43 = vadd.f32 %v7553_v46, %v2281_v58 }
0x2845   :  { %v2288_v10 = vmul.f32 1.442695, %v2282_v43  ;;  %vm2286_vm15 = vcmp.gt.f32.partialorder %v2282_v43, 0.0 }
0x2847   :  { %6261 = vpow2.f32 %v2288_v10 }
0x284a   :  { %v2283_v18 = vpop.f32.mrf.mxu2 }
0x284b   :  { %v2284_v55 = vadd.f32 %v7559_v20, %v2283_v18 }
0x284d   :  { %v2290_v45 = vmul.f32 1.442695, %v2284_v55  ;;  %v6262_v40 = vpop.eup %6261  ;;  %vm2287_vm0 = vcmp.gt.f32.partialorder %v2284_v55, 0.0 }
0x284e   :  { %v5690_v60 = vadd.f32 -1.0, %v6262_v40 }
0x284f   :  { %6263 = vpow2.f32 %v2290_v45  ;;  %v2197_v45 = vadd.f32 %v7506_v47, %v6828_v49 }
0x2850   :  { %v7562_v27 = vsel %vm2286_vm15, %v2282_v43, %v5690_v60 }
0x2855   :  { %v6264_v63 = vpop.eup %6263 }
0x2856   :  { %v5691_v48 = vadd.f32 -1.0, %v6264_v63 }
0x2858   :  { %v7564_v38 = vsel %vm2287_vm0, %v2284_v55, %v5691_v48 }
0x2859   :  { %v2296_v7 = vpack.c.bf16 %v7564_v38, %v7562_v27 }
0x285b   :  { %5692 = vmatmul.msk.bf16.vlgmr.msra.gmra.mxu3 %vm68_vm2, %v2296_v7 }
0x285c   :  { %2572 = vmatpush.bf16.msra.mxu3 %v7572_v9 }
0x2860   :  { %2573 = vmatpush.bf16.msra.mxu3 %v7578_v25 }
0x28de   :  { %v2309_v6 = vpop.f32.mrf.mxu3 }
0x28df   :  { %v2314_v59 = vmul.f32 0.025, %v2309_v6 }
0x28e1   :  { %v2316_v16 = vadd.f32 %v2314_v59, %v2194_v61 }
0x28e3   :  { %v2320_v24 = vmul.f32 1.442695, %v2316_v16  ;;  %vm2318_vm1 = vcmp.gt.f32.partialorder %v2316_v16, 0.0 }
0x28e5   :  { %6265 = vpow2.f32 %v2320_v24 }
0x28e6   :  { %v7581_v50 = vpop.f32.mrf.mxu3 }
0x28e7   :  { %v2315_v15 = vmul.f32 0.025, %v7581_v50 }
0x28e9   :  { %v2317_v23 = vadd.f32 %v2315_v15, %v2195_v54 }
0x28eb   :  { %v2322_v19 = vmul.f32 1.442695, %v2317_v23  ;;  %v6266_v28 = vpop.eup %6265  ;;  %vm2319_vm3 = vcmp.gt.f32.partialorder %v2317_v23, 0.0 }
0x28ec   :  { %v5693_v32 = vadd.f32 -1.0, %v6266_v28 }
0x28ed   :  { %6267 = vpow2.f32 %v2322_v19 }
0x28ee   :  { %v2326_v22 = vsel %vm2318_vm1, %v2316_v16, %v5693_v32 }
0x28f3   :  { %v6268_v53 = vpop.eup %6267 }
0x28f4   :  { %v5694_v39 = vadd.f32 -1.0, %v6268_v53 }
0x28f6   :  { %v2327_v11 = vsel %vm2319_vm3, %v2317_v23, %v5694_v39 }
0x28f7   :  { %v2328_v2 = vpack.c.bf16 %v2327_v11, %v2326_v22 }
0x28f9   :  { %5695 = vmatmul.msk.bf16.vlgmr.msrb.gmra.mxu0 %vm68_vm2, %v2328_v2 }
0x28fa   :  { %2604 = vmatpush.bf16.msrb.mxu0 %v7517_v3 }
0x28fe   :  { %2605 = vmatpush.bf16.msrb.mxu0 %v7523_v57 }
0x2976   :  { %v2341_v26 = vpop.f32.mrf.mxu0 }
0x2977   :  { %v2342_v33 = vadd.f32 %v7553_v46, %v2341_v26 }
0x2979   :  { %v2348_v13 = vmul.f32 1.442695, %v2342_v33  ;;  %vm2346_vm4 = vcmp.gt.f32.partialorder %v2342_v33, 0.0 }
0x297b   :  { %6269 = vpow2.f32 %v2348_v13 }
0x297e   :  { %v2343_v61 = vpop.f32.mrf.mxu0 }
0x297f   :  { %v2344_v5 = vadd.f32 %v7559_v20, %v2343_v61 }
0x2981   :  { %v2350_v41 = vmul.f32 1.442695, %v2344_v5  ;;  %v6270_v29 = vpop.eup %6269  ;;  %vm2347_vm5 = vcmp.gt.f32.partialorder %v2344_v5, 0.0 }
0x2982   :  { %v5696_v54 = vadd.f32 -1.0, %v6270_v29 }
0x2983   :  { %6271 = vpow2.f32 %v2350_v41 }
0x2984   :  { %v2354_v1 = vsel %vm2346_vm4, %v2342_v33, %v5696_v54 }
0x2985   :  { %v2450_v53 = vadd.f32 %v2354_v1, %v7562_v27 }
0x2987   :  { %v2452_v2 = vmul.f32 2.0, %v2450_v53 }
0x2989   :  { %v6272_v42 = vpop.eup %6271 }
0x298a   :  { %v5697_v21 = vadd.f32 -1.0, %v6272_v42 }
0x298c   :  { %v2355_v14 = vsel %vm2347_vm5, %v2344_v5, %v5697_v21 }
0x298d   :  { %v2356_v4 = vpack.c.bf16 %v2355_v14, %v2354_v1  ;;  %v2451_v61 = vadd.f32 %v2355_v14, %v7564_v38 }
0x298f   :  { %5698 = vmatmul.msk.bf16.vlgmr.msrb.gmra.mxu1 %vm68_vm2, %v2356_v4  ;;  %v2453_v27 = vmul.f32 2.0, %v2451_v61 }
0x2990   :  { %2632 = vmatpush.bf16.msrb.mxu1 %v7572_v9 }
0x2994   :  { %2633 = vmatpush.bf16.msrb.mxu1 %v7578_v25 }
0x2a0c   :  { %v2369_v37 = vpop.f32.mrf.mxu1 }
0x2a0d   :  { %v2374_v62 = vmul.f32 0.05, %v2369_v37  ;;  %v2434_v51 = vadd.f32 %v2369_v37, %v2309_v6 }
0x2a0f   :  { %v2376_v35 = vadd.f32 %v2374_v62, %v2196_v8  ;;  %v2436_v58 = vmul.f32 2.0, %v2434_v51 }
0x2a11   :  { %v2438_v43 = vadd.f32 %v2436_v58, %v7537_v12  ;;  %v2380_v10 = vmul.f32 1.442695, %v2376_v35  ;;  %vm2378_vm6 = vcmp.gt.f32.partialorder %v2376_v35, 0.0 }
0x2a13   :  { %v2440_v18 = vmul.f32 0.008333334, %v2438_v43  ;;  %6273 = vpow2.f32 %v2380_v10 }
0x2a14   :  { %v2371_v55 = vpop.f32.mrf.mxu1 }
0x2a15   :  { %v2375_v40 = vmul.f32 0.05, %v2371_v55  ;;  %v2442_v60 = vadd.f32 %v2440_v18, %v2196_v8 }
0x2a17   :  { %v2377_v63 = vadd.f32 %v2375_v40, %v2197_v45 }
0x2a19   :  { %v2382_v48 = vmul.f32 1.442695, %v2377_v63  ;;  %v6274_v7 = vpop.eup %6273  ;;  %vm2379_vm7 = vcmp.gt.f32.partialorder %v2377_v63, 0.0 }
0x2a1a   :  { %v5699_v30 = vadd.f32 -1.0, %v6274_v7 }
0x2a1b   :  { %6275 = vpow2.f32 %v2382_v48 }
0x2a1c   :  { %v2386_v16 = vsel %vm2378_vm6, %v2376_v35, %v5699_v30 }
0x2a21   :  { %v6276_v59 = vpop.eup %6275 }
0x2a22   :  { %v5700_v6 = vadd.f32 -1.0, %v6276_v59 }
0x2a24   :  { %v2387_v12 = vsel %vm2379_vm7, %v2377_v63, %v5700_v6 }
0x2a25   :  { %v2388_v24 = vpack.c.bf16 %v2387_v12, %v2386_v16 }
0x2a27   :  { %5701 = vmatmul.msk.bf16.vlgmr.msrb.gmra.mxu2 %vm68_vm2, %v2388_v24 }
0x2a28   :  { %2664 = vmatpush.bf16.msrb.mxu2 %v7517_v3 }
0x2a2c   :  { %2665 = vmatpush.bf16.msrb.mxu2 %v7523_v57 }
0x2aaa   :  { %v2401_v47 = vpop.f32.mrf.mxu2 }
0x2aab   :  { %v2402_v15 = vadd.f32 %v7553_v46, %v2401_v47 }
0x2aad   :  { %v2408_v23 = vmul.f32 1.442695, %v2402_v15  ;;  %vm2406_vm8 = vcmp.gt.f32.partialorder %v2402_v15, 0.0 }
0x2aaf   :  { %6277 = vpow2.f32 %v2408_v23 }
0x2ab2   :  { %v2403_v19 = vpop.f32.mrf.mxu2 }
0x2ab3   :  { %v2404_v28 = vadd.f32 %v7559_v20, %v2403_v19 }
0x2ab5   :  { %v6278_v32 = vpop.eup %6277  ;;  %v2410_v39 = vmul.f32 1.442695, %v2404_v28  ;;  %vm2407_vm9 = vcmp.gt.f32.partialorder %v2404_v28, 0.0 }
0x2ab6   :  { %v5702_v22 = vadd.f32 -1.0, %v6278_v32 }
0x2ab7   :  { %6279 = vpow2.f32 %v2410_v39 }
0x2ab8   :  { %v2414_v11 = vsel %vm2406_vm8, %v2402_v15, %v5702_v22 }
0x2ab9   :  { %v2448_v26 = vadd.f32 %v2414_v11, %v7528_v52 }
0x2abb   :  { %v2454_v33 = vadd.f32 %v2452_v2, %v2448_v26 }
0x2abd   :  { %v6280_v13 = vpop.eup %6279  ;;  %v2456_v5 = vmul.f32 0.008333334, %v2454_v33 }
0x2abe   :  { %v5703_v41 = vadd.f32 -1.0, %v6280_v13 }
0x2abf   :  { %v7606_v29 = vadd.f32 %v2456_v5, %v7492_v17  ;;  %v2435_v17 = vadd.f32 %v2371_v55, %v7581_v50 }
0x2ac0   :  { %v2415_v54 = vsel %vm2407_vm9, %v2404_v28, %v5703_v41 }
0x2ac1   :  { %v2416_v42 = vpack.c.bf16 %v2415_v54, %v2414_v11  ;;  %v2449_v21 = vadd.f32 %v2415_v54, %v7530_v34  ;;  %v2437_v38 = vmul.f32 2.0, %v2435_v17 }
0x2ac3   :  { %v2455_v1 = vadd.f32 %v2453_v27, %v2449_v21  ;;  %5704 = vmatmul.msk.bf16.vlgmr.msrb.gmra.mxu3 %vm68_vm2, %v2416_v42  ;;  %v2439_v37 = vadd.f32 %v2437_v38, %v7542_v0 }
0x2ac4   :  { %2692 = vmatpush.bf16.msrb.mxu3 %v7572_v9 }
0x2ac5   :  { %v2457_v52 = vmul.f32 0.008333334, %v2455_v1  ;;  %v2441_v34 = vmul.f32 0.008333334, %v2439_v37 }
0x2ac7   :  { %v7612_v4 = vadd.f32 %v2457_v52, %v7498_v56  ;;  %v2443_v58 = vadd.f32 %v2441_v34, %v2197_v45 }
0x2ac8   :  { %2693 = vmatpush.bf16.msrb.mxu3 %v7578_v25 }
0x2b46   :  { %v2429_v14 = vpop.f32.mrf.mxu3 }
0x2b47   :  { %v2444_v8 = vmul.f32 0.008333334, %v2429_v14 }
0x2b49   :  { %v7617_v62 = vadd.f32 %v2444_v8, %v2442_v60 }
0x2b4b   :  { %v2466_v51 = vmul.f32 1.442695, %v7617_v62  ;;  %vm2464_vm10 = vcmp.gt.f32.partialorder %v7617_v62, 0.0  ;;  %v2460_v32 = vadd.f32 %v7617_v62, %v6777_v31 }
0x2b4d   :  { %6281 = vpow2.f32 %v2466_v51 }
0x2b4e   :  { %v2431_v35 = vpop.f32.mrf.mxu3 }
0x2b4f   :  { %v2445_v43 = vmul.f32 0.008333334, %v2431_v35 }
0x2b51   :  { %v7620_v56 = vadd.f32 %v2445_v43, %v2443_v58 }
0x2b53   :  { %v2468_v10 = vmul.f32 1.442695, %v7620_v56  ;;  %v6282_v50 = vpop.eup %6281  ;;  %vm2465_vm11 = vcmp.gt.f32.partialorder %v7620_v56, 0.0  ;;  %v2461_v2 = vadd.f32 %v7620_v56, %v6790_v36 }
0x2b54   :  { %v5705_v18 = vadd.f32 -1.0, %v6282_v50 }
0x2b55   :  { %6283 = vpow2.f32 %v2468_v10 }
0x2b56   :  { %v2472_v0 = vsel %vm2464_vm10, %v7617_v62, %v5705_v18 }
0x2b5b   :  { %v6284_v55 = vpop.eup %6283 }
0x2b5c   :  { %v5706_v40 = vadd.f32 -1.0, %v6284_v55 }
0x2b5e   :  { %v2473_v60 = vsel %vm2465_vm11, %v7620_v56, %v5706_v40 }
0x2b5f   :  { %v2474_v45 = vpack.c.bf16 %v2473_v60, %v2472_v0 }
0x2b61   :  { %5707 = vmatmul.msk.bf16.vlgmr.msra.gmra.mxu0 %vm68_vm2, %v2474_v45 }
0x2b62   :  { %2750 = vmatpush.bf16.msra.mxu0 %v7517_v3 }
0x2b66   :  { %2751 = vmatpush.bf16.msra.mxu0 %v7523_v57 }
0x2bde   :  { %v2487_v63 = vpop.f32.mrf.mxu0 }
0x2bdf   :  { %v2488_v48 = vadd.f32 %v7553_v46, %v2487_v63 }
0x2be1   :  { %v2494_v7 = vmul.f32 1.442695, %v2488_v48  ;;  %vm2492_vm12 = vcmp.gt.f32.partialorder %v2488_v48, 0.0 }
0x2be3   :  { %6285 = vpow2.f32 %v2494_v7 }
0x2be6   :  { %v2489_v30 = vpop.f32.mrf.mxu0 }
0x2be7   :  { %v2490_v59 = vadd.f32 %v7559_v20, %v2489_v30 }
0x2be9   :  { %v2496_v6 = vmul.f32 1.442695, %v2490_v59  ;;  %v6286_v16 = vpop.eup %6285  ;;  %vm2493_vm13 = vcmp.gt.f32.partialorder %v2490_v59, 0.0 }
0x2bea   :  { %v5708_v12 = vadd.f32 -1.0, %v6286_v16 }
0x2beb   :  { %6287 = vpow2.f32 %v2496_v6 }
0x2bec   :  { %v7632_v15 = vsel %vm2492_vm12, %v2488_v48, %v5708_v12 }
0x2bf1   :  { %v6288_v24 = vpop.eup %6287 }
0x2bf2   :  { %v5709_v47 = vadd.f32 -1.0, %v6288_v24 }
0x2bf4   :  { %v7634_v23 = vsel %vm2493_vm13, %v2490_v59, %v5709_v47 }
0x2bf5   :  { %v2502_v19 = vpack.c.bf16 %v7634_v23, %v7632_v15 }
0x2bf7   :  { %5710 = vmatmul.msk.bf16.vlgmr.msra.gmra.mxu1 %vm68_vm2, %v2502_v19 }
0x2bf8   :  { %2778 = vmatpush.bf16.msra.mxu1 %v7572_v9 }
0x2bfc   :  { %2779 = vmatpush.bf16.msra.mxu1 %v7578_v25 }
0x2c74   :  { %v7641_v28 = vpop.f32.mrf.mxu1 }
0x2c75   :  { %v2520_v53 = vmul.f32 0.025, %v7641_v28 }
0x2c77   :  { %v2522_v39 = vadd.f32 %v2520_v53, %v2460_v32 }
0x2c79   :  { %v2526_v22 = vmul.f32 1.442695, %v2522_v39  ;;  %vm2524_vm14 = vcmp.gt.f32.partialorder %v2522_v39, 0.0 }
0x2c7b   :  { %6289 = vpow2.f32 %v2526_v22 }
0x2c7c   :  { %v7646_v11 = vpop.f32.mrf.mxu1 }
0x2c7d   :  { %v2521_v26 = vmul.f32 0.025, %v7646_v11 }
0x2c7f   :  { %v2523_v33 = vadd.f32 %v2521_v26, %v2461_v2 }
0x2c81   :  { %v2528_v13 = vmul.f32 1.442695, %v2523_v33  ;;  %v6290_v61 = vpop.eup %6289  ;;  %vm2525_vm15 = vcmp.gt.f32.partialorder %v2523_v33, 0.0 }
0x2c82   :  { %v5711_v5 = vadd.f32 -1.0, %v6290_v61 }
0x2c83   :  { %6291 = vpow2.f32 %v2528_v13 }
0x2c84   :  { %v2532_v27 = vsel %vm2524_vm14, %v2522_v39, %v5711_v5 }
0x2c89   :  { %v6292_v41 = vpop.eup %6291 }
0x2c8a   :  { %v5712_v54 = vadd.f32 -1.0, %v6292_v41 }
0x2c8c   :  { %v2533_v42 = vsel %vm2525_vm15, %v2523_v33, %v5712_v54  ;;  %v2462_v54 = vadd.f32 %v7617_v62, %v6823_v44 }
0x2c8d   :  { %v2534_v21 = vpack.c.bf16 %v2533_v42, %v2532_v27 }
0x2c8f   :  { %5713 = vmatmul.msk.bf16.vlgmr.msra.gmra.mxu2 %vm68_vm2, %v2534_v21 }
0x2c90   :  { %2810 = vmatpush.bf16.msra.mxu2 %v7517_v3 }
0x2c94   :  { %2811 = vmatpush.bf16.msra.mxu2 %v7523_v57 }
0x2d12   :  { %v2547_v1 = vpop.f32.mrf.mxu2 }
0x2d13   :  { %v2548_v52 = vadd.f32 %v7553_v46, %v2547_v1 }
0x2d15   :  { %v2554_v17 = vmul.f32 1.442695, %v2548_v52  ;;  %vm2552_vm0 = vcmp.gt.f32.partialorder %v2548_v52, 0.0 }
0x2d17   :  { %6293 = vpow2.f32 %v2554_v17 }
0x2d1a   :  { %v2549_v38 = vpop.f32.mrf.mxu2 }
0x2d1b   :  { %v2550_v14 = vadd.f32 %v7559_v20, %v2549_v38 }
0x2d1d   :  { %v2556_v37 = vmul.f32 1.442695, %v2550_v14  ;;  %v6294_v8 = vpop.eup %6293  ;;  %vm2553_vm1 = vcmp.gt.f32.partialorder %v2550_v14, 0.0 }
0x2d1e   :  { %v5714_v34 = vadd.f32 -1.0, %v6294_v8 }
0x2d1f   :  { %6295 = vpow2.f32 %v2556_v37  ;;  %v2463_v37 = vadd.f32 %v7620_v56, %v6828_v49 }
0x2d20   :  { %v7656_v58 = vsel %vm2552_vm0, %v2548_v52, %v5714_v34 }
0x2d25   :  { %v6296_v51 = vpop.eup %6295 }
0x2d26   :  { %v5715_v35 = vadd.f32 -1.0, %v6296_v51 }
0x2d28   :  { %v7658_v43 = vsel %vm2553_vm1, %v2550_v14, %v5715_v35 }
0x2d29   :  { %v2562_v10 = vpack.c.bf16 %v7658_v43, %v7656_v58 }
0x2d2b   :  { %5716 = vmatmul.msk.bf16.vlgmr.msra.gmra.mxu3 %vm68_vm2, %v2562_v10 }
0x2d2c   :  { %2838 = vmatpush.bf16.msra.mxu3 %v7572_v9 }
0x2d30   :  { %2839 = vmatpush.bf16.msra.mxu3 %v7578_v25 }
0x2dae   :  { %v2575_v50 = vpop.f32.mrf.mxu3 }
0x2daf   :  { %v2580_v18 = vmul.f32 0.025, %v2575_v50 }
0x2db1   :  { %v2582_v55 = vadd.f32 %v2580_v18, %v2460_v32 }
0x2db3   :  { %v2586_v40 = vmul.f32 1.442695, %v2582_v55  ;;  %vm2584_vm3 = vcmp.gt.f32.partialorder %v2582_v55, 0.0 }
0x2db5   :  { %6297 = vpow2.f32 %v2586_v40 }
0x2db6   :  { %v7665_v0 = vpop.f32.mrf.mxu3 }
0x2db7   :  { %v2581_v60 = vmul.f32 0.025, %v7665_v0 }
0x2db9   :  { %v2583_v45 = vadd.f32 %v2581_v60, %v2461_v2 }
0x2dbb   :  { %v2588_v63 = vmul.f32 1.442695, %v2583_v45  ;;  %v6298_v48 = vpop.eup %6297  ;;  %vm2585_vm4 = vcmp.gt.f32.partialorder %v2583_v45, 0.0 }
0x2dbc   :  { %v5717_v7 = vadd.f32 -1.0, %v6298_v48 }
0x2dbd   :  { %6299 = vpow2.f32 %v2588_v63 }
0x2dbe   :  { %v2592_v6 = vsel %vm2584_vm3, %v2582_v55, %v5717_v7 }
0x2dc3   :  { %v6300_v30 = vpop.eup %6299 }
0x2dc4   :  { %v5718_v59 = vadd.f32 -1.0, %v6300_v30 }
0x2dc6   :  { %v2593_v16 = vsel %vm2585_vm4, %v2583_v45, %v5718_v59 }
0x2dc7   :  { %v2594_v12 = vpack.c.bf16 %v2593_v16, %v2592_v6 }
0x2dc9   :  { %5719 = vmatmul.msk.bf16.vlgmr.msrb.gmra.mxu0 %vm68_vm2, %v2594_v12 }
0x2dca   :  { %2870 = vmatpush.bf16.msrb.mxu0 %v7517_v3 }
0x2dce   :  { %2871 = vmatpush.bf16.msrb.mxu0 %v7523_v57 }
0x2e46   :  { %v2607_v24 = vpop.f32.mrf.mxu0 }
0x2e47   :  { %v2608_v47 = vadd.f32 %v7553_v46, %v2607_v24 }
0x2e49   :  { %v2614_v19 = vmul.f32 1.442695, %v2608_v47  ;;  %vm2612_vm5 = vcmp.gt.f32.partialorder %v2608_v47, 0.0 }
0x2e4b   :  { %6301 = vpow2.f32 %v2614_v19 }
0x2e4e   :  { %v2609_v32 = vpop.f32.mrf.mxu0 }
0x2e4f   :  { %v2610_v53 = vadd.f32 %v7559_v20, %v2609_v32 }
0x2e51   :  { %v2616_v39 = vmul.f32 1.442695, %v2610_v53  ;;  %v6302_v22 = vpop.eup %6301  ;;  %vm2613_vm6 = vcmp.gt.f32.partialorder %v2610_v53, 0.0 }
0x2e52   :  { %v5720_v2 = vadd.f32 -1.0, %v6302_v22 }
0x2e53   :  { %6303 = vpow2.f32 %v2616_v39 }
0x2e54   :  { %v2620_v13 = vsel %vm2612_vm5, %v2608_v47, %v5720_v2 }
0x2e55   :  { %v2716_v30 = vadd.f32 %v2620_v13, %v7656_v58 }
0x2e57   :  { %v2718_v12 = vmul.f32 2.0, %v2716_v30 }
0x2e59   :  { %v6304_v26 = vpop.eup %6303 }
0x2e5a   :  { %v5721_v33 = vadd.f32 -1.0, %v6304_v26 }
0x2e5c   :  { %v2621_v61 = vsel %vm2613_vm6, %v2610_v53, %v5721_v33 }
0x2e5d   :  { %v2622_v5 = vpack.c.bf16 %v2621_v61, %v2620_v13  ;;  %v2717_v32 = vadd.f32 %v2621_v61, %v7658_v43 }
0x2e5f   :  { %5722 = vmatmul.msk.bf16.vlgmr.msrb.gmra.mxu1 %vm68_vm2, %v2622_v5  ;;  %v2719_v58 = vmul.f32 2.0, %v2717_v32 }
0x2e60   :  { %2898 = vmatpush.bf16.msrb.mxu1 %v7572_v9 }
0x2e64   :  { %2899 = vmatpush.bf16.msrb.mxu1 %v7578_v25 }
0x2edc   :  { %v2635_v41 = vpop.f32.mrf.mxu1 }
0x2edd   :  { %v2640_v27 = vmul.f32 0.05, %v2635_v41  ;;  %v2700_v42 = vadd.f32 %v2635_v41, %v2575_v50 }
0x2edf   :  { %v2642_v21 = vadd.f32 %v2640_v27, %v2462_v54  ;;  %v2702_v1 = vmul.f32 2.0, %v2700_v42 }
0x2ee1   :  { %v2704_v52 = vadd.f32 %v2702_v1, %v7641_v28  ;;  %v2646_v17 = vmul.f32 1.442695, %v2642_v21  ;;  %vm2644_vm7 = vcmp.gt.f32.partialorder %v2642_v21, 0.0 }
0x2ee3   :  { %v2706_v38 = vmul.f32 0.008333334, %v2704_v52  ;;  %6305 = vpow2.f32 %v2646_v17 }
0x2ee4   :  { %v2637_v14 = vpop.f32.mrf.mxu1 }
0x2ee5   :  { %v2641_v8 = vmul.f32 0.05, %v2637_v14  ;;  %v2708_v34 = vadd.f32 %v2706_v38, %v2462_v54 }
0x2ee7   :  { %v2643_v51 = vadd.f32 %v2641_v8, %v2463_v37 }
0x2ee9   :  { %v2648_v35 = vmul.f32 1.442695, %v2643_v51  ;;  %v6306_v10 = vpop.eup %6305  ;;  %vm2645_vm8 = vcmp.gt.f32.partialorder %v2643_v51, 0.0 }
0x2eea   :  { %v5723_v62 = vadd.f32 -1.0, %v6306_v10 }
0x2eeb   :  { %6307 = vpow2.f32 %v2648_v35 }
0x2eec   :  { %v2652_v55 = vsel %vm2644_vm7, %v2642_v21, %v5723_v62 }
0x2ef1   :  { %v6308_v18 = vpop.eup %6307 }
0x2ef2   :  { %v5724_v50 = vadd.f32 -1.0, %v6308_v18 }
0x2ef4   :  { %v2653_v28 = vsel %vm2645_vm8, %v2643_v51, %v5724_v50 }
0x2ef5   :  { %v2654_v40 = vpack.c.bf16 %v2653_v28, %v2652_v55 }
0x2ef7   :  { %5725 = vmatmul.msk.bf16.vlgmr.msrb.gmra.mxu2 %vm68_vm2, %v2654_v40 }
0x2ef8   :  { %2930 = vmatpush.bf16.msrb.mxu2 %v7517_v3 }
0x2efc   :  { %2931 = vmatpush.bf16.msrb.mxu2 %v7523_v57 }
0x2f7a   :  { %v2667_v56 = vpop.f32.mrf.mxu2 }
0x2f7b   :  { %v2668_v60 = vadd.f32 %v7553_v46, %v2667_v56 }
0x2f7d   :  { %v2674_v45 = vmul.f32 1.442695, %v2668_v60  ;;  %vm2672_vm9 = vcmp.gt.f32.partialorder %v2668_v60, 0.0 }
0x2f7f   :  { %6309 = vpow2.f32 %v2674_v45 }
0x2f82   :  { %v2669_v63 = vpop.f32.mrf.mxu2 }
0x2f83   :  { %v2670_v48 = vadd.f32 %v7559_v20, %v2669_v63 }
0x2f85   :  { %v6310_v7 = vpop.eup %6309  ;;  %v2676_v59 = vmul.f32 1.442695, %v2670_v48  ;;  %vm2673_vm10 = vcmp.gt.f32.partialorder %v2670_v48, 0.0 }
0x2f86   :  { %v5726_v6 = vadd.f32 -1.0, %v6310_v7 }
0x2f87   :  { %6311 = vpow2.f32 %v2676_v59 }
0x2f88   :  { %v2680_v16 = vsel %vm2672_vm9, %v2668_v60, %v5726_v6 }
0x2f89   :  { %v2714_v24 = vadd.f32 %v2680_v16, %v7632_v15 }
0x2f8b   :  { %v2720_v47 = vadd.f32 %v2718_v12, %v2714_v24 }
0x2f8d   :  { %v6312_v19 = vpop.eup %6311  ;;  %v2722_v53 = vmul.f32 0.008333334, %v2720_v47 }
0x2f8e   :  { %v5727_v39 = vadd.f32 -1.0, %v6312_v19 }
0x2f8f   :  { %v7690_v22 = vadd.f32 %v2722_v53, %v7606_v29  ;;  %v2701_v29 = vadd.f32 %v2637_v14, %v7665_v0 }
0x2f90   :  { %v2681_v2 = vsel %vm2673_vm10, %v2670_v48, %v5727_v39 }
0x2f91   :  { %v2682_v26 = vpack.c.bf16 %v2681_v2, %v2680_v16  ;;  %v2715_v33 = vadd.f32 %v2681_v2, %v7634_v23  ;;  %v2703_v43 = vmul.f32 2.0, %v2701_v29 }
0x2f93   :  { %v2721_v13 = vadd.f32 %v2719_v58, %v2715_v33  ;;  %5728 = vmatmul.msk.bf16.vlgmr.msrb.gmra.mxu3 %vm68_vm2, %v2682_v26  ;;  %v2705_v41 = vadd.f32 %v2703_v43, %v7646_v11 }
0x2f94   :  { %2958 = vmatpush.bf16.msrb.mxu3 %v7572_v9 }
0x2f95   :  { %v2723_v15 = vmul.f32 0.008333334, %v2721_v13  ;;  %v2707_v23 = vmul.f32 0.008333334, %v2705_v41 }
0x2f97   :  { %v7696_v5 = vadd.f32 %v2723_v15, %v7612_v4  ;;  %v2709_v1 = vadd.f32 %v2707_v23, %v2463_v37 }
0x2f98   :  { %2959 = vmatpush.bf16.msrb.mxu3 %v7578_v25 }
0x3016   :  { %v2695_v61 = vpop.f32.mrf.mxu3 }
0x3017   :  { %v2710_v54 = vmul.f32 0.008333334, %v2695_v61 }
0x3019   :  { %v7701_v27 = vadd.f32 %v2710_v54, %v2708_v34 }
0x301b   :  { %v2732_v42 = vmul.f32 1.442695, %v7701_v27  ;;  %vm2730_vm11 = vcmp.gt.f32.partialorder %v7701_v27, 0.0  ;;  %v2726_v7 = vadd.f32 %v7701_v27, %v6777_v31 }
0x301d   :  { %6313 = vpow2.f32 %v2732_v42 }
0x301e   :  { %v2697_v21 = vpop.f32.mrf.mxu3 }
0x301f   :  { %v2711_v52 = vmul.f32 0.008333334, %v2697_v21 }
0x3021   :  { %v7704_v4 = vadd.f32 %v2711_v52, %v2709_v1 }
0x3023   :  { %v2734_v17 = vmul.f32 1.442695, %v7704_v4  ;;  %v6314_v0 = vpop.eup %6313  ;;  %vm2731_vm12 = vcmp.gt.f32.partialorder %v7704_v4, 0.0  ;;  %v2727_v12 = vadd.f32 %v7704_v4, %v6790_v36 }
0x3024   :  { %v5729_v38 = vadd.f32 -1.0, %v6314_v0 }
0x3025   :  { %6315 = vpow2.f32 %v2734_v17 }
0x3026   :  { %v2738_v11 = vsel %vm2730_vm11, %v7701_v27, %v5729_v38 }
0x302b   :  { %v6316_v14 = vpop.eup %6315 }
0x302c   :  { %v5730_v8 = vadd.f32 -1.0, %v6316_v14 }
0x302e   :  { %v2739_v34 = vsel %vm2731_vm12, %v7704_v4, %v5730_v8 }
0x302f   :  { %v2740_v37 = vpack.c.bf16 %v2739_v34, %v2738_v11 }
0x3031   :  { %5731 = vmatmul.msk.bf16.vlgmr.msra.gmra.mxu0 %vm68_vm2, %v2740_v37 }
0x3032   :  { %3016 = vmatpush.bf16.msra.mxu0 %v7517_v3 }
0x3036   :  { %3017 = vmatpush.bf16.msra.mxu0 %v7523_v57 }
0x30ae   :  { %v2753_v51 = vpop.f32.mrf.mxu0 }
0x30af   :  { %v2754_v35 = vadd.f32 %v7553_v46, %v2753_v51 }
0x30b1   :  { %v2760_v10 = vmul.f32 1.442695, %v2754_v35  ;;  %vm2758_vm13 = vcmp.gt.f32.partialorder %v2754_v35, 0.0 }
0x30b3   :  { %6317 = vpow2.f32 %v2760_v10 }
0x30b6   :  { %v2755_v62 = vpop.f32.mrf.mxu0 }
0x30b7   :  { %v2756_v18 = vadd.f32 %v7559_v20, %v2755_v62 }
0x30b9   :  { %v2762_v50 = vmul.f32 1.442695, %v2756_v18  ;;  %v6318_v55 = vpop.eup %6317  ;;  %vm2759_vm14 = vcmp.gt.f32.partialorder %v2756_v18, 0.0 }
0x30ba   :  { %v5732_v28 = vadd.f32 -1.0, %v6318_v55 }
0x30bb   :  { %6319 = vpow2.f32 %v2762_v50 }
0x30bc   :  { %v7716_v60 = vsel %vm2758_vm13, %v2754_v35, %v5732_v28 }
0x30c1   :  { %v6320_v40 = vpop.eup %6319 }
0x30c2   :  { %v5733_v56 = vadd.f32 -1.0, %v6320_v40 }
0x30c4   :  { %v7718_v45 = vsel %vm2759_vm14, %v2756_v18, %v5733_v56 }
0x30c5   :  { %v2768_v63 = vpack.c.bf16 %v7718_v45, %v7716_v60 }
0x30c7   :  { %5734 = vmatmul.msk.bf16.vlgmr.msra.gmra.mxu1 %vm68_vm2, %v2768_v63 }
0x30c8   :  { %3044 = vmatpush.bf16.msra.mxu1 %v7572_v9 }
0x30cc   :  { %3045 = vmatpush.bf16.msra.mxu1 %v7578_v25 }
0x3144   :  { %v7725_v48 = vpop.f32.mrf.mxu1 }
0x3145   :  { %v2786_v30 = vmul.f32 0.025, %v7725_v48 }
0x3147   :  { %v2788_v59 = vadd.f32 %v2786_v30, %v2726_v7 }
0x3149   :  { %v2792_v6 = vmul.f32 1.442695, %v2788_v59  ;;  %vm2790_vm15 = vcmp.gt.f32.partialorder %v2788_v59, 0.0 }
0x314b   :  { %6321 = vpow2.f32 %v2792_v6 }
0x314c   :  { %v7730_v16 = vpop.f32.mrf.mxu1 }
0x314d   :  { %v2787_v24 = vmul.f32 0.025, %v7730_v16 }
0x314f   :  { %v2789_v47 = vadd.f32 %v2787_v24, %v2727_v12 }
0x3151   :  { %v2794_v19 = vmul.f32 1.442695, %v2789_v47  ;;  %v6322_v32 = vpop.eup %6321  ;;  %vm2791_vm0 = vcmp.gt.f32.partialorder %v2789_v47, 0.0 }
0x3152   :  { %v5735_v53 = vadd.f32 -1.0, %v6322_v32 }
0x3153   :  { %6323 = vpow2.f32 %v2794_v19 }
0x3154   :  { %v2798_v58 = vsel %vm2790_vm15, %v2788_v59, %v5735_v53  ;;  %v2728_v53 = vadd.f32 %v7701_v27, %v6823_v44 }
0x3159   :  { %v6324_v39 = vpop.eup %6323 }
0x315a   :  { %v5736_v2 = vadd.f32 -1.0, %v6324_v39 }
0x315c   :  { %v2799_v26 = vsel %vm2791_vm0, %v2789_v47, %v5736_v2 }
0x315d   :  { %v2800_v33 = vpack.c.bf16 %v2799_v26, %v2798_v58 }
0x315f   :  { %5737 = vmatmul.msk.bf16.vlgmr.msra.gmra.mxu2 %vm68_vm2, %v2800_v33 }
0x3160   :  { %3076 = vmatpush.bf16.msra.mxu2 %v7517_v3 }
0x3164   :  { %3077 = vmatpush.bf16.msra.mxu2 %v7523_v57 }
0x31e2   :  { %v2813_v13 = vpop.f32.mrf.mxu2 }
0x31e3   :  { %v2814_v15 = vadd.f32 %v7553_v46, %v2813_v13 }
0x31e5   :  { %v2820_v29 = vmul.f32 1.442695, %v2814_v15  ;;  %vm2818_vm1 = vcmp.gt.f32.partialorder %v2814_v15, 0.0 }
0x31e7   :  { %6325 = vpow2.f32 %v2820_v29 }
0x31ea   :  { %v2815_v43 = vpop.f32.mrf.mxu2 }
0x31eb   :  { %v2816_v61 = vadd.f32 %v7559_v20, %v2815_v43  ;;  %v2729_v43 = vadd.f32 %v7704_v4, %v6828_v49  ;;  %v7769_v4 = vld [vmem:[%s8649_s1 + $0x8] sm:$0xff] }
0x31ed   :  { %v2822_v41 = vmul.f32 1.442695, %v2816_v61  ;;  %v6326_v54 = vpop.eup %6325  ;;  %vm2819_vm3 = vcmp.gt.f32.partialorder %v2816_v61, 0.0 }
0x31ee   :  { %v5738_v23 = vadd.f32 -1.0, %v6326_v54 }
0x31ef   :  { %6327 = vpow2.f32 %v2822_v41 }
0x31f0   :  { %v7740_v1 = vsel %vm2818_vm1, %v2814_v15, %v5738_v23 }
0x31f5   :  { %v6328_v42 = vpop.eup %6327 }
0x31f6   :  { %v5739_v21 = vadd.f32 -1.0, %v6328_v42 }
0x31f8   :  { %v7742_v52 = vsel %vm2819_vm3, %v2816_v61, %v5739_v21 }
0x31f9   :  { %v2828_v17 = vpack.c.bf16 %v7742_v52, %v7740_v1 }
0x31fb   :  { %5740 = vmatmul.msk.bf16.vlgmr.msra.gmra.mxu3 %vm68_vm2, %v2828_v17 }
0x31fc   :  { %3104 = vmatpush.bf16.msra.mxu3 %v7572_v9 }
0x3200   :  { %3105 = vmatpush.bf16.msra.mxu3 %v7578_v25 }
0x327e   :  { %v2841_v0 = vpop.f32.mrf.mxu3 }
0x327f   :  { %v2846_v38 = vmul.f32 0.025, %v2841_v0 }
0x3281   :  { %v2848_v14 = vadd.f32 %v2846_v38, %v2726_v7 }
0x3283   :  { %v2852_v8 = vmul.f32 1.442695, %v2848_v14  ;;  %vm2850_vm4 = vcmp.gt.f32.partialorder %v2848_v14, 0.0 }
0x3285   :  { %6329 = vpow2.f32 %v2852_v8 }
0x3286   :  { %v7749_v11 = vpop.f32.mrf.mxu3 }
0x3287   :  { %v2847_v34 = vmul.f32 0.025, %v7749_v11 }
0x3289   :  { %v2849_v37 = vadd.f32 %v2847_v34, %v2727_v12 }
0x328b   :  { %v2854_v51 = vmul.f32 1.442695, %v2849_v37  ;;  %v6330_v35 = vpop.eup %6329  ;;  %vm2851_vm5 = vcmp.gt.f32.partialorder %v2849_v37, 0.0 }
0x328c   :  { %v5741_v10 = vadd.f32 -1.0, %v6330_v35 }
0x328d   :  { %6331 = vpow2.f32 %v2854_v51 }
0x328e   :  { %v2858_v50 = vsel %vm2850_vm4, %v2848_v14, %v5741_v10  ;;  %v7775_v14 = vld [vmem:[%s8649_s1] sm:$0xff] }
0x3293   :  { %v6332_v62 = vpop.eup %6331 }
0x3294   :  { %v5742_v18 = vadd.f32 -1.0, %v6332_v62 }
0x3296   :  { %v2859_v55 = vsel %vm2851_vm5, %v2849_v37, %v5742_v18 }
0x3297   :  { %v2860_v28 = vpack.c.bf16 %v2859_v55, %v2858_v50 }
0x3299   :  { %5743 = vmatmul.msk.bf16.vlgmr.msrb.gmra.mxu0 %vm68_vm2, %v2860_v28 }
0x329a   :  { %3136 = vmatpush.bf16.msrb.mxu0 %v7517_v3 }
0x329e   :  { %3137 = vmatpush.bf16.msrb.mxu0 %v7523_v57 }
0x3316   :  { %v2873_v40 = vpop.f32.mrf.mxu0 }
0x3317   :  { %v2874_v56 = vadd.f32 %v7553_v46, %v2873_v40 }
0x3319   :  { %v2880_v63 = vmul.f32 1.442695, %v2874_v56  ;;  %vm2878_vm6 = vcmp.gt.f32.partialorder %v2874_v56, 0.0 }
0x331b   :  { %6333 = vpow2.f32 %v2880_v63 }
0x331e   :  { %v2875_v7 = vpop.f32.mrf.mxu0 }
0x331f   :  { %v2876_v30 = vadd.f32 %v7559_v20, %v2875_v7 }
0x3321   :  { %v2882_v59 = vmul.f32 1.442695, %v2876_v30  ;;  %v6334_v6 = vpop.eup %6333  ;;  %vm2879_vm7 = vcmp.gt.f32.partialorder %v2876_v30, 0.0 }
0x3322   :  { %v5744_v12 = vadd.f32 -1.0, %v6334_v6 }
0x3323   :  { %6335 = vpow2.f32 %v2882_v59 }
0x3324   :  { %v2886_v19 = vsel %vm2878_vm6, %v2874_v56, %v5744_v12 }
0x3325   :  { %v2982_v62 = vadd.f32 %v2886_v19, %v7740_v1 }
0x3327   :  { %v2984_v28 = vmul.f32 2.0, %v2982_v62 }
0x3329   :  { %v6336_v24 = vpop.eup %6335 }
0x332a   :  { %v5745_v47 = vadd.f32 -1.0, %v6336_v24 }
0x332c   :  { %v2887_v3 = vsel %vm2879_vm7, %v2876_v30, %v5745_v47 }
0x332d   :  { %v2888_v32 = vpack.c.bf16 %v2887_v3, %v2886_v19 }
0x332f   :  { %5746 = vmatmul.msk.bf16.vlgmr.msrb.gmra.mxu1 %vm68_vm2, %v2888_v32 }
0x3330   :  { %3164 = vmatpush.bf16.msrb.mxu1 %v7572_v9 }
0x3334   :  { %3165 = vmatpush.bf16.msrb.mxu1 %v7578_v25 }
0x33ac   :  { %v2901_v57 = vpop.f32.mrf.mxu1 }
0x33ad   :  { %v2906_v39 = vmul.f32 0.05, %v2901_v57  ;;  %v2966_v2 = vadd.f32 %v2901_v57, %v2841_v0 }
0x33af   :  { %v2908_v58 = vadd.f32 %v2906_v39, %v2728_v53  ;;  %v2968_v26 = vmul.f32 2.0, %v2966_v2 }
0x33b1   :  { %v2970_v33 = vadd.f32 %v2968_v26, %v7725_v48  ;;  %v2912_v13 = vmul.f32 1.442695, %v2908_v58  ;;  %vm2910_vm8 = vcmp.gt.f32.partialorder %v2908_v58, 0.0 }
0x33b3   :  { %v2972_v15 = vmul.f32 0.008333334, %v2970_v33  ;;  %6337 = vpow2.f32 %v2912_v13 }
0x33b4   :  { %v2903_v29 = vpop.f32.mrf.mxu1 }
0x33b5   :  { %v2907_v61 = vmul.f32 0.05, %v2903_v29  ;;  %v2974_v41 = vadd.f32 %v2972_v15, %v2728_v53 }
0x33b7   :  { %v2909_v54 = vadd.f32 %v2907_v61, %v2729_v43 }
0x33b9   :  { %v2914_v23 = vmul.f32 1.442695, %v2909_v54  ;;  %v6338_v42 = vpop.eup %6337  ;;  %vm2911_vm9 = vcmp.gt.f32.partialorder %v2909_v54, 0.0 }
0x33ba   :  { %v5747_v27 = vadd.f32 -1.0, %v6338_v42 }
0x33bb   :  { %6339 = vpow2.f32 %v2914_v23  ;;  %v7817_v23 = vld [vmem:[%s8650_s2 + $0x18] sm:$0xff] }
0x33bc   :  { %v2918_v0 = vsel %vm2910_vm8, %v2908_v58, %v5747_v27 }
0x33c1   :  { %v6340_v21 = vpop.eup %6339 }
0x33c2   :  { %v5748_v17 = vadd.f32 -1.0, %v6340_v21 }
0x33c4   :  { %v2919_v48 = vsel %vm2911_vm9, %v2909_v54, %v5748_v17 }
0x33c5   :  { %v2920_v38 = vpack.c.bf16 %v2919_v48, %v2918_v0 }
0x33c7   :  { %5749 = vmatmul.msk.bf16.vlgmr.msrb.gmra.mxu2 %vm68_vm2, %v2920_v38 }
0x33c8   :  { %3196 = vmatpush.bf16.msrb.mxu2 %v7769_v4 }
0x33cc   :  { %3197 = vmatpush.bf16.msrb.mxu2 %v7775_v14 }
0x344a   :  { %v2933_v8 = vpop.f32.mrf.mxu2 }
0x344b   :  { %v2934_v34 = vadd.f32 %v7553_v46, %v2933_v8  ;;  %v2983_v46 = vadd.f32 %v2887_v3, %v7742_v52 }
0x344d   :  { %v2940_v37 = vmul.f32 1.442695, %v2934_v34  ;;  %vm2938_vm10 = vcmp.gt.f32.partialorder %v2934_v34, 0.0  ;;  %v2985_v1 = vmul.f32 2.0, %v2983_v46 }
0x344f   :  { %6341 = vpow2.f32 %v2940_v37  ;;  %v7830_v37 = vld [vmem:[%s8649_s1 + $0x18] sm:$0xff] }
0x3452   :  { %v2935_v51 = vpop.f32.mrf.mxu2 }
0x3453   :  { %v2936_v35 = vadd.f32 %v7559_v20, %v2935_v51  ;;  %v7836_v51 = vld [vmem:[%s8649_s1 + $0x10] sm:$0xff] }
0x3455   :  { %v6342_v10 = vpop.eup %6341  ;;  %v2942_v18 = vmul.f32 1.442695, %v2936_v35  ;;  %vm2939_vm11 = vcmp.gt.f32.partialorder %v2936_v35, 0.0 }
0x3456   :  { %v5750_v50 = vadd.f32 -1.0, %v6342_v10 }
0x3457   :  { %6343 = vpow2.f32 %v2942_v18 }
0x3458   :  { %v2946_v55 = vsel %vm2938_vm10, %v2934_v34, %v5750_v50 }
0x3459   :  { %v2980_v40 = vadd.f32 %v2946_v55, %v7716_v60 }
0x345b   :  { %v2986_v56 = vadd.f32 %v2984_v28, %v2980_v40 }
0x345d   :  { %v6344_v63 = vpop.eup %6343  ;;  %v2988_v7 = vmul.f32 0.008333334, %v2986_v56 }
0x345e   :  { %v5751_v30 = vadd.f32 -1.0, %v6344_v63 }
0x345f   :  { %v7784_v59 = vadd.f32 %v2988_v7, %v7690_v22  ;;  %v2967_v22 = vadd.f32 %v2903_v29, %v7749_v11 }
0x3460   :  { %v2947_v20 = vsel %vm2939_vm11, %v2936_v35, %v5751_v30 }
0x3461   :  { %v2948_v6 = vpack.c.bf16 %v2947_v20, %v2946_v55  ;;  %v2981_v12 = vadd.f32 %v2947_v20, %v7718_v45  ;;  %v2969_v52 = vmul.f32 2.0, %v2967_v22 }
0x3463   :  { %v2987_v24 = vadd.f32 %v2985_v1, %v2981_v12  ;;  %5752 = vmatmul.msk.bf16.vlgmr.msrb.gmra.mxu3 %vm68_vm2, %v2948_v6  ;;  %v2971_v3 = vadd.f32 %v2969_v52, %v7730_v16 }
0x3464   :  { %3224 = vmatpush.bf16.msrb.mxu3 %v7572_v9 }
0x3465   :  { %v2989_v60 = vmul.f32 0.008333334, %v2987_v24  ;;  %v2973_v45 = vmul.f32 0.008333334, %v2971_v3 }
0x3467   :  { %v7790_v47 = vadd.f32 %v2989_v60, %v7696_v5  ;;  %v2975_v9 = vadd.f32 %v2973_v45, %v2729_v43  ;;  %v7811_v43 = vld [vmem:[%s8650_s2 + $0x10] sm:$0xff] }
0x3468   :  { %3225 = vmatpush.bf16.msrb.mxu3 %v7578_v25 }
0x34e6   :  { %v2961_v19 = vpop.f32.mrf.mxu3 }
0x34e7   :  { %v2976_v32 = vmul.f32 0.008333334, %v2961_v19 }
0x34e9   :  { %v7795_v57 = vadd.f32 %v2976_v32, %v2974_v41 }
0x34eb   :  { %v2998_v53 = vmul.f32 1.442695, %v7795_v57  ;;  %vm2996_vm12 = vcmp.gt.f32.partialorder %v7795_v57, 0.0  ;;  %v2992_v10 = vadd.f32 %v7795_v57, %v6777_v31 }
0x34ed   :  { %6345 = vpow2.f32 %v2998_v53 }
0x34ee   :  { %v2963_v39 = vpop.f32.mrf.mxu3 }
0x34ef   :  { %v2977_v2 = vmul.f32 0.008333334, %v2963_v39 }
0x34f1   :  { %v7798_v5 = vadd.f32 %v2977_v2, %v2975_v9 }
0x34f3   :  { %v3000_v25 = vmul.f32 1.442695, %v7798_v5  ;;  %v6346_v11 = vpop.eup %6345  ;;  %vm2997_vm13 = vcmp.gt.f32.partialorder %v7798_v5, 0.0  ;;  %v2993_v28 = vadd.f32 %v7798_v5, %v6790_v36 }
0x34f4   :  { %v5753_v58 = vadd.f32 -1.0, %v6346_v11 }
0x34f5   :  { %6347 = vpow2.f32 %v3000_v25 }
0x34f6   :  { %v3004_v16 = vsel %vm2996_vm12, %v7795_v57, %v5753_v58 }
0x34fb   :  { %v6348_v26 = vpop.eup %6347 }
0x34fc   :  { %v5754_v33 = vadd.f32 -1.0, %v6348_v26 }
0x34fe   :  { %v3005_v13 = vsel %vm2997_vm13, %v7798_v5, %v5754_v33 }
0x34ff   :  { %v3006_v15 = vpack.c.bf16 %v3005_v13, %v3004_v16 }
0x3501   :  { %5755 = vmatmul.msk.bf16.vlgmr.msra.gmra.mxu0 %vm68_vm2, %v3006_v15 }
0x3502   :  { %3282 = vmatpush.bf16.msra.mxu0 %v7769_v4 }
0x3506   :  { %3283 = vmatpush.bf16.msra.mxu0 %v7775_v14 }
0x357e   :  { %v3019_v29 = vpop.f32.mrf.mxu0 }
0x357f   :  { %v3020_v61 = vadd.f32 %v7811_v43, %v3019_v29 }
0x3581   :  { %v3026_v41 = vmul.f32 1.442695, %v3020_v61  ;;  %vm3024_vm14 = vcmp.gt.f32.partialorder %v3020_v61, 0.0 }
0x3583   :  { %6349 = vpow2.f32 %v3026_v41 }
0x3586   :  { %v3021_v54 = vpop.f32.mrf.mxu0 }
0x3587   :  { %v3022_v42 = vadd.f32 %v7817_v23, %v3021_v54 }
0x3589   :  { %v3028_v27 = vmul.f32 1.442695, %v3022_v42  ;;  %v6350_v21 = vpop.eup %6349  ;;  %vm3025_vm15 = vcmp.gt.f32.partialorder %v3022_v42, 0.0 }
0x358a   :  { %v5756_v17 = vadd.f32 -1.0, %v6350_v21 }
0x358b   :  { %6351 = vpow2.f32 %v3028_v27 }
0x358c   :  { %v7820_v38 = vsel %vm3024_vm14, %v3020_v61, %v5756_v17 }
0x3591   :  { %v6352_v0 = vpop.eup %6351 }
0x3592   :  { %v5757_v48 = vadd.f32 -1.0, %v6352_v0 }
0x3594   :  { %v7822_v8 = vsel %vm3025_vm15, %v3022_v42, %v5757_v48 }
0x3595   :  { %v3034_v34 = vpack.c.bf16 %v7822_v8, %v7820_v38 }
0x3597   :  { %5758 = vmatmul.msk.bf16.vlgmr.msra.gmra.mxu1 %vm68_vm2, %v3034_v34 }
0x3598   :  { %3310 = vmatpush.bf16.msra.mxu1 %v7830_v37 }
0x359c   :  { %3311 = vmatpush.bf16.msra.mxu1 %v7836_v51 }
0x3614   :  { %v7839_v35 = vpop.f32.mrf.mxu1 }
0x3615   :  { %v3052_v62 = vmul.f32 0.025, %v7839_v35 }
0x3617   :  { %v3054_v18 = vadd.f32 %v3052_v62, %v2992_v10 }
0x3619   :  { %v3058_v50 = vmul.f32 1.442695, %v3054_v18  ;;  %vm3056_vm0 = vcmp.gt.f32.partialorder %v3054_v18, 0.0 }
0x361b   :  { %6353 = vpow2.f32 %v3058_v50 }
0x361c   :  { %v7844_v55 = vpop.f32.mrf.mxu1 }
0x361d   :  { %v3053_v40 = vmul.f32 0.025, %v7844_v55 }
0x361f   :  { %v3055_v56 = vadd.f32 %v3053_v40, %v2993_v28 }
0x3621   :  { %v3060_v63 = vmul.f32 1.442695, %v3055_v56  ;;  %v6354_v46 = vpop.eup %6353  ;;  %vm3057_vm1 = vcmp.gt.f32.partialorder %v3055_v56, 0.0 }
0x3622   :  { %v5759_v7 = vadd.f32 -1.0, %v6354_v46 }
0x3623   :  { %6355 = vpow2.f32 %v3060_v63 }
0x3624   :  { %v3064_v1 = vsel %vm3056_vm0, %v3054_v18, %v5759_v7 }
0x3629   :  { %v6356_v30 = vpop.eup %6355 }
0x362a   :  { %v5760_v20 = vadd.f32 -1.0, %v6356_v30 }
0x362c   :  { %v3065_v6 = vsel %vm3057_vm1, %v3055_v56, %v5760_v20  ;;  %v2994_v20 = vadd.f32 %v7795_v57, %v6823_v44 }
0x362d   :  { %v3066_v12 = vpack.c.bf16 %v3065_v6, %v3064_v1 }
0x362f   :  { %5761 = vmatmul.msk.bf16.vlgmr.msra.gmra.mxu2 %vm68_vm2, %v3066_v12 }
0x3630   :  { %3342 = vmatpush.bf16.msra.mxu2 %v7769_v4 }
0x3634   :  { %3343 = vmatpush.bf16.msra.mxu2 %v7775_v14 }
0x36b2   :  { %v3079_v24 = vpop.f32.mrf.mxu2 }
0x36b3   :  { %v3080_v60 = vadd.f32 %v7811_v43, %v3079_v24 }
0x36b5   :  { %v3086_v22 = vmul.f32 1.442695, %v3080_v60  ;;  %vm3084_vm3 = vcmp.gt.f32.partialorder %v3080_v60, 0.0 }
0x36b7   :  { %6357 = vpow2.f32 %v3086_v22 }
0x36ba   :  { %v3081_v52 = vpop.f32.mrf.mxu2 }
0x36bb   :  { %v3082_v19 = vadd.f32 %v7817_v23, %v3081_v52 }
0x36bd   :  { %v3088_v3 = vmul.f32 1.442695, %v3082_v19  ;;  %v6358_v32 = vpop.eup %6357  ;;  %vm3085_vm4 = vcmp.gt.f32.partialorder %v3082_v19, 0.0 }
0x36be   :  { %v5762_v45 = vadd.f32 -1.0, %v6358_v32 }
0x36bf   :  { %6359 = vpow2.f32 %v3088_v3  ;;  %v2995_v3 = vadd.f32 %v7798_v5, %v6828_v49 }
0x36c0   :  { %v7854_v9 = vsel %vm3084_vm3, %v3080_v60, %v5762_v45 }
0x36c5   :  { %v6360_v53 = vpop.eup %6359 }
0x36c6   :  { %v5763_v39 = vadd.f32 -1.0, %v6360_v53 }
0x36c8   :  { %v7856_v2 = vsel %vm3085_vm4, %v3082_v19, %v5763_v39 }
0x36c9   :  { %v3094_v25 = vpack.c.bf16 %v7856_v2, %v7854_v9 }
0x36cb   :  { %5764 = vmatmul.msk.bf16.vlgmr.msra.gmra.mxu3 %vm68_vm2, %v3094_v25 }
0x36cc   :  { %3370 = vmatpush.bf16.msra.mxu3 %v7830_v37 }
0x36d0   :  { %3371 = vmatpush.bf16.msra.mxu3 %v7836_v51 }
0x374e   :  { %v3107_v11 = vpop.f32.mrf.mxu3 }
0x374f   :  { %v3112_v58 = vmul.f32 0.025, %v3107_v11 }
0x3751   :  { %v3114_v26 = vadd.f32 %v3112_v58, %v2992_v10 }
0x3753   :  { %v3118_v33 = vmul.f32 1.442695, %v3114_v26  ;;  %vm3116_vm5 = vcmp.gt.f32.partialorder %v3114_v26, 0.0 }
0x3755   :  { %6361 = vpow2.f32 %v3118_v33 }
0x3756   :  { %v7863_v16 = vpop.f32.mrf.mxu3 }
0x3757   :  { %v3113_v13 = vmul.f32 0.025, %v7863_v16 }
0x3759   :  { %v3115_v15 = vadd.f32 %v3113_v13, %v2993_v28 }
0x375b   :  { %v3120_v29 = vmul.f32 1.442695, %v3115_v15  ;;  %v6362_v61 = vpop.eup %6361  ;;  %vm3117_vm6 = vcmp.gt.f32.partialorder %v3115_v15, 0.0 }
0x375c   :  { %v5765_v41 = vadd.f32 -1.0, %v6362_v61 }
0x375d   :  { %6363 = vpow2.f32 %v3120_v29 }
0x375e   :  { %v3124_v27 = vsel %vm3116_vm5, %v3114_v26, %v5765_v41 }
0x3763   :  { %v6364_v54 = vpop.eup %6363 }
0x3764   :  { %v5766_v42 = vadd.f32 -1.0, %v6364_v54 }
0x3766   :  { %v3125_v21 = vsel %vm3117_vm6, %v3115_v15, %v5766_v42 }
0x3767   :  { %v3126_v17 = vpack.c.bf16 %v3125_v21, %v3124_v27 }
0x3769   :  { %5767 = vmatmul.msk.bf16.vlgmr.msrb.gmra.mxu0 %vm68_vm2, %v3126_v17 }
0x376a   :  { %3402 = vmatpush.bf16.msrb.mxu0 %v7769_v4 }
0x376e   :  { %3403 = vmatpush.bf16.msrb.mxu0 %v7775_v14 }
0x37e6   :  { %v3139_v0 = vpop.f32.mrf.mxu0 }
0x37e7   :  { %v3140_v48 = vadd.f32 %v7811_v43, %v3139_v0 }
0x37e9   :  { %v3146_v34 = vmul.f32 1.442695, %v3140_v48  ;;  %vm3144_vm7 = vcmp.gt.f32.partialorder %v3140_v48, 0.0 }
0x37eb   :  { %6365 = vpow2.f32 %v3146_v34 }
0x37ee   :  { %v3141_v10 = vpop.f32.mrf.mxu0 }
0x37ef   :  { %v3142_v62 = vadd.f32 %v7817_v23, %v3141_v10 }
0x37f1   :  { %v3148_v18 = vmul.f32 1.442695, %v3142_v62  ;;  %v6366_v50 = vpop.eup %6365  ;;  %vm3145_vm8 = vcmp.gt.f32.partialorder %v3142_v62, 0.0 }
0x37f2   :  { %v5768_v28 = vadd.f32 -1.0, %v6366_v50 }
0x37f3   :  { %6367 = vpow2.f32 %v3148_v18 }
0x37f4   :  { %v3152_v63 = vsel %vm3144_vm7, %v3140_v48, %v5768_v28 }
0x37f5   :  { %v3248_v54 = vadd.f32 %v3152_v63, %v7854_v9 }
0x37f7   :  { %v3250_v17 = vmul.f32 2.0, %v3248_v54 }
0x37f9   :  { %v6368_v40 = vpop.eup %6367 }
0x37fa   :  { %v5769_v56 = vadd.f32 -1.0, %v6368_v40 }
0x37fc   :  { %v3153_v46 = vsel %vm3145_vm8, %v3142_v62, %v5769_v56 }
0x37fd   :  { %v3154_v7 = vpack.c.bf16 %v3153_v46, %v3152_v63  ;;  %v3249_v10 = vadd.f32 %v3153_v46, %v7856_v2 }
0x37ff   :  { %5770 = vmatmul.msk.bf16.vlgmr.msrb.gmra.mxu1 %vm68_vm2, %v3154_v7  ;;  %v3251_v9 = vmul.f32 2.0, %v3249_v10 }
0x3800   :  { %3430 = vmatpush.bf16.msrb.mxu1 %v7830_v37 }
0x3804   :  { %3431 = vmatpush.bf16.msrb.mxu1 %v7836_v51 }
0x387c   :  { %v3167_v30 = vpop.f32.mrf.mxu1 }
0x387d   :  { %v3172_v1 = vmul.f32 0.05, %v3167_v30  ;;  %v3232_v6 = vadd.f32 %v3167_v30, %v3107_v11 }
0x387f   :  { %v3174_v12 = vadd.f32 %v3172_v1, %v2994_v20  ;;  %v3234_v24 = vmul.f32 2.0, %v3232_v6 }
0x3881   :  { %v3236_v60 = vadd.f32 %v3234_v24, %v7839_v35  ;;  %v3178_v22 = vmul.f32 1.442695, %v3174_v12  ;;  %vm3176_vm9 = vcmp.gt.f32.partialorder %v3174_v12, 0.0 }
0x3883   :  { %v3238_v52 = vmul.f32 0.008333334, %v3236_v60  ;;  %6369 = vpow2.f32 %v3178_v22 }
0x3884   :  { %v3169_v19 = vpop.f32.mrf.mxu1 }
0x3885   :  { %v3173_v32 = vmul.f32 0.05, %v3169_v19  ;;  %v3240_v45 = vadd.f32 %v3238_v52, %v2994_v20 }
0x3887   :  { %v3175_v53 = vadd.f32 %v3173_v32, %v2995_v3 }
0x3889   :  { %v3180_v39 = vmul.f32 1.442695, %v3175_v53  ;;  %v6370_v25 = vpop.eup %6369  ;;  %vm3177_vm10 = vcmp.gt.f32.partialorder %v3175_v53, 0.0 }
0x388a   :  { %v5771_v57 = vadd.f32 -1.0, %v6370_v25 }
0x388b   :  { %6371 = vpow2.f32 %v3180_v39 }
0x388c   :  { %v3184_v26 = vsel %vm3176_vm9, %v3174_v12, %v5771_v57 }
0x3891   :  { %v6372_v58 = vpop.eup %6371 }
0x3892   :  { %v5772_v11 = vadd.f32 -1.0, %v6372_v58 }
0x3894   :  { %v3185_v35 = vsel %vm3177_vm10, %v3175_v53, %v5772_v11 }
0x3895   :  { %v3186_v33 = vpack.c.bf16 %v3185_v35, %v3184_v26 }
0x3897   :  { %5773 = vmatmul.msk.bf16.vlgmr.msrb.gmra.mxu2 %vm68_vm2, %v3186_v33 }
0x3898   :  { %3462 = vmatpush.bf16.msrb.mxu2 %v7769_v4 }
0x389c   :  { %3463 = vmatpush.bf16.msrb.mxu2 %v7775_v14 }
0x391a   :  { %v3199_v5 = vpop.f32.mrf.mxu2 }
0x391b   :  { %v3200_v13 = vadd.f32 %v7811_v43, %v3199_v5 }
0x391d   :  { %v3206_v15 = vmul.f32 1.442695, %v3200_v13  ;;  %vm3204_vm11 = vcmp.gt.f32.partialorder %v3200_v13, 0.0 }
0x391f   :  { %6373 = vpow2.f32 %v3206_v15 }
0x3922   :  { %v3201_v29 = vpop.f32.mrf.mxu2 }
0x3923   :  { %v3202_v61 = vadd.f32 %v7817_v23, %v3201_v29 }
0x3925   :  { %v6374_v41 = vpop.eup %6373  ;;  %v3208_v42 = vmul.f32 1.442695, %v3202_v61  ;;  %vm3205_vm12 = vcmp.gt.f32.partialorder %v3202_v61, 0.0 }
0x3926   :  { %v5774_v27 = vadd.f32 -1.0, %v6374_v41 }
0x3927   :  { %6375 = vpow2.f32 %v3208_v42 }
0x3928   :  { %v3212_v21 = vsel %vm3204_vm11, %v3200_v13, %v5774_v27 }
0x3929   :  { %v3246_v0 = vadd.f32 %v3212_v21, %v7820_v38 }
0x392b   :  { %v3252_v48 = vadd.f32 %v3250_v17, %v3246_v0 }
0x392d   :  { %v6376_v34 = vpop.eup %6375  ;;  %v3254_v62 = vmul.f32 0.008333334, %v3252_v48 }
0x392e   :  { %v5775_v18 = vadd.f32 -1.0, %v6376_v34 }
0x392f   :  { %v7888_v50 = vadd.f32 %v3254_v62, %v7784_v59  ;;  %v3233_v59 = vadd.f32 %v3169_v19, %v7863_v16 }
0x3930   :  { %v3213_v28 = vsel %vm3205_vm12, %v3202_v61, %v5775_v18 }
0x3931   :  { %v3214_v40 = vpack.c.bf16 %v3213_v28, %v3212_v21  ;;  %v3247_v56 = vadd.f32 %v3213_v28, %v7822_v8  ;;  %v3235_v2 = vmul.f32 2.0, %v3233_v59 }
0x3933   :  { %v3253_v63 = vadd.f32 %v3251_v9, %v3247_v56  ;;  %5776 = vmatmul.msk.bf16.vlgmr.msrb.gmra.mxu3 %vm68_vm2, %v3214_v40  ;;  %v3237_v30 = vadd.f32 %v3235_v2, %v7844_v55 }
0x3934   :  { %3490 = vmatpush.bf16.msrb.mxu3 %v7830_v37 }
0x3935   :  { %v3255_v38 = vmul.f32 0.008333334, %v3253_v63  ;;  %v3239_v8 = vmul.f32 0.008333334, %v3237_v30 }
0x3937   :  { %v7894_v7 = vadd.f32 %v3255_v38, %v7790_v47  ;;  %v3241_v24 = vadd.f32 %v3239_v8, %v2995_v3 }
0x3938   :  { %3491 = vmatpush.bf16.msrb.mxu3 %v7836_v51 }
0x39b6   :  { %v3227_v46 = vpop.f32.mrf.mxu3 }
0x39b7   :  { %v3242_v20 = vmul.f32 0.008333334, %v3227_v46 }
0x39b9   :  { %v7899_v1 = vadd.f32 %v3242_v20, %v3240_v45 }
0x39bb   :  { %v3264_v6 = vmul.f32 1.442695, %v7899_v1  ;;  %vm3262_vm13 = vcmp.gt.f32.partialorder %v7899_v1, 0.0  ;;  %v3258_v41 = vadd.f32 %v7899_v1, %v6777_v31 }
0x39bd   :  { %6377 = vpow2.f32 %v3264_v6 }
0x39be   :  { %v3229_v12 = vpop.f32.mrf.mxu3 }
0x39bf   :  { %v3243_v60 = vmul.f32 0.008333334, %v3229_v12 }
0x39c1   :  { %v7902_v47 = vadd.f32 %v3243_v60, %v3241_v24 }
0x39c3   :  { %v3266_v22 = vmul.f32 1.442695, %v7902_v47  ;;  %v6378_v16 = vpop.eup %6377  ;;  %vm3263_vm14 = vcmp.gt.f32.partialorder %v7902_v47, 0.0  ;;  %v3259_v17 = vadd.f32 %v7902_v47, %v6790_v36 }
0x39c4   :  { %v5777_v52 = vadd.f32 -1.0, %v6378_v16 }
0x39c5   :  { %6379 = vpow2.f32 %v3266_v22 }
0x39c6   :  { %v3270_v55 = vsel %vm3262_vm13, %v7899_v1, %v5777_v52 }
0x39cb   :  { %v6380_v19 = vpop.eup %6379 }
0x39cc   :  { %v5778_v32 = vadd.f32 -1.0, %v6380_v19 }
0x39ce   :  { %v3271_v45 = vsel %vm3263_vm14, %v7902_v47, %v5778_v32 }
0x39cf   :  { %v3272_v3 = vpack.c.bf16 %v3271_v45, %v3270_v55 }
0x39d1   :  { %5779 = vmatmul.msk.bf16.vlgmr.msra.gmra.mxu0 %vm68_vm2, %v3272_v3 }
0x39d2   :  { %3548 = vmatpush.bf16.msra.mxu0 %v7769_v4 }
0x39d6   :  { %3549 = vmatpush.bf16.msra.mxu0 %v7775_v14 }
0x3a4e   :  { %v3285_v53 = vpop.f32.mrf.mxu0 }
0x3a4f   :  { %v3286_v39 = vadd.f32 %v7811_v43, %v3285_v53 }
0x3a51   :  { %v3292_v25 = vmul.f32 1.442695, %v3286_v39  ;;  %vm3290_vm15 = vcmp.gt.f32.partialorder %v3286_v39, 0.0 }
0x3a53   :  { %6381 = vpow2.f32 %v3292_v25 }
0x3a56   :  { %v3287_v57 = vpop.f32.mrf.mxu0 }
0x3a57   :  { %v3288_v58 = vadd.f32 %v7817_v23, %v3287_v57 }
0x3a59   :  { %v3294_v11 = vmul.f32 1.442695, %v3288_v58  ;;  %v6382_v26 = vpop.eup %6381  ;;  %vm3291_vm0 = vcmp.gt.f32.partialorder %v3288_v58, 0.0 }
0x3a5a   :  { %v5780_v35 = vadd.f32 -1.0, %v6382_v26 }
0x3a5b   :  { %6383 = vpow2.f32 %v3294_v11 }
0x3a5c   :  { %v7914_v13 = vsel %vm3290_vm15, %v3286_v39, %v5780_v35 }
0x3a61   :  { %v6384_v33 = vpop.eup %6383 }
0x3a62   :  { %v5781_v5 = vadd.f32 -1.0, %v6384_v33 }
0x3a64   :  { %v7916_v15 = vsel %vm3291_vm0, %v3288_v58, %v5781_v5 }
0x3a65   :  { %v3300_v29 = vpack.c.bf16 %v7916_v15, %v7914_v13 }
0x3a67   :  { %5782 = vmatmul.msk.bf16.vlgmr.msra.gmra.mxu1 %vm68_vm2, %v3300_v29 }
0x3a68   :  { %3576 = vmatpush.bf16.msra.mxu1 %v7830_v37 }
0x3a6c   :  { %3577 = vmatpush.bf16.msra.mxu1 %v7836_v51 }
0x3ae4   :  { %v7923_v61 = vpop.f32.mrf.mxu1 }
0x3ae5   :  { %v3318_v54 = vmul.f32 0.025, %v7923_v61 }
0x3ae7   :  { %v3320_v42 = vadd.f32 %v3318_v54, %v3258_v41 }
0x3ae9   :  { %v3324_v27 = vmul.f32 1.442695, %v3320_v42  ;;  %vm3322_vm1 = vcmp.gt.f32.partialorder %v3320_v42, 0.0 }
0x3aeb   :  { %6385 = vpow2.f32 %v3324_v27 }
0x3aec   :  { %v7928_v21 = vpop.f32.mrf.mxu1 }
0x3aed   :  { %v3319_v0 = vmul.f32 0.025, %v7928_v21 }
0x3aef   :  { %v3321_v48 = vadd.f32 %v3319_v0, %v3259_v17 }
0x3af1   :  { %v3326_v34 = vmul.f32 1.442695, %v3321_v48  ;;  %v6386_v10 = vpop.eup %6385  ;;  %vm3323_vm3 = vcmp.gt.f32.partialorder %v3321_v48, 0.0 }
0x3af2   :  { %v5783_v62 = vadd.f32 -1.0, %v6386_v10 }
0x3af3   :  { %6387 = vpow2.f32 %v3326_v34 }
0x3af4   :  { %v3330_v9 = vsel %vm3322_vm1, %v3320_v42, %v5783_v62 }
0x3af9   :  { %v6388_v18 = vpop.eup %6387 }
0x3afa   :  { %v5784_v28 = vadd.f32 -1.0, %v6388_v18 }
0x3afc   :  { %v3331_v40 = vsel %vm3323_vm3, %v3321_v48, %v5784_v28  ;;  %v3260_v28 = vadd.f32 %v7899_v1, %v6823_v44 }
0x3afd   :  { %v3332_v56 = vpack.c.bf16 %v3331_v40, %v3330_v9 }
0x3aff   :  { %5785 = vmatmul.msk.bf16.vlgmr.msra.gmra.mxu2 %vm68_vm2, %v3332_v56 }
0x3b00   :  { %3608 = vmatpush.bf16.msra.mxu2 %v7769_v4 }
0x3b04   :  { %3609 = vmatpush.bf16.msra.mxu2 %v7775_v14 }
0x3b82   :  { %v3345_v63 = vpop.f32.mrf.mxu2 }
0x3b83   :  { %v3346_v38 = vadd.f32 %v7811_v43, %v3345_v63 }
0x3b85   :  { %v3352_v59 = vmul.f32 1.442695, %v3346_v38  ;;  %vm3350_vm4 = vcmp.gt.f32.partialorder %v3346_v38, 0.0 }
0x3b87   :  { %6389 = vpow2.f32 %v3352_v59 }
0x3b8a   :  { %v3347_v2 = vpop.f32.mrf.mxu2 }
0x3b8b   :  { %v3348_v46 = vadd.f32 %v7817_v23, %v3347_v2 }
0x3b8d   :  { %v3354_v30 = vmul.f32 1.442695, %v3348_v46  ;;  %v6390_v20 = vpop.eup %6389  ;;  %vm3351_vm5 = vcmp.gt.f32.partialorder %v3348_v46, 0.0 }
0x3b8e   :  { %v5786_v8 = vadd.f32 -1.0, %v6390_v20 }
0x3b8f   :  { %6391 = vpow2.f32 %v3354_v30  ;;  %v3261_v30 = vadd.f32 %v7902_v47, %v6828_v49 }
0x3b90   :  { %v7938_v24 = vsel %vm3350_vm4, %v3346_v38, %v5786_v8 }
0x3b95   :  { %v6392_v6 = vpop.eup %6391 }
0x3b96   :  { %v5787_v12 = vadd.f32 -1.0, %v6392_v6 }
0x3b98   :  { %v7940_v60 = vsel %vm3351_vm5, %v3348_v46, %v5787_v12 }
0x3b99   :  { %v3360_v22 = vpack.c.bf16 %v7940_v60, %v7938_v24 }
0x3b9b   :  { %5788 = vmatmul.msk.bf16.vlgmr.msra.gmra.mxu3 %vm68_vm2, %v3360_v22 }
0x3b9c   :  { %3636 = vmatpush.bf16.msra.mxu3 %v7830_v37 }
0x3ba0   :  { %3637 = vmatpush.bf16.msra.mxu3 %v7836_v51 }
0x3c1e   :  { %v3373_v16 = vpop.f32.mrf.mxu3 }
0x3c1f   :  { %v3378_v52 = vmul.f32 0.025, %v3373_v16 }
0x3c21   :  { %v3380_v19 = vadd.f32 %v3378_v52, %v3258_v41 }
0x3c23   :  { %v3384_v32 = vmul.f32 1.442695, %v3380_v19  ;;  %vm3382_vm6 = vcmp.gt.f32.partialorder %v3380_v19, 0.0 }
0x3c25   :  { %6393 = vpow2.f32 %v3384_v32 }
0x3c26   :  { %v7947_v55 = vpop.f32.mrf.mxu3 }
0x3c27   :  { %v3379_v45 = vmul.f32 0.025, %v7947_v55 }
0x3c29   :  { %v3381_v3 = vadd.f32 %v3379_v45, %v3259_v17 }
0x3c2b   :  { %v3386_v53 = vmul.f32 1.442695, %v3381_v3  ;;  %v6394_v39 = vpop.eup %6393  ;;  %vm3383_vm7 = vcmp.gt.f32.partialorder %v3381_v3, 0.0 }
0x3c2c   :  { %v5789_v25 = vadd.f32 -1.0, %v6394_v39 }
0x3c2d   :  { %6395 = vpow2.f32 %v3386_v53 }
0x3c2e   :  { %v3390_v11 = vsel %vm3382_vm6, %v3380_v19, %v5789_v25 }
0x3c33   :  { %v6396_v57 = vpop.eup %6395 }
0x3c34   :  { %v5790_v58 = vadd.f32 -1.0, %v6396_v57 }
0x3c36   :  { %v3391_v26 = vsel %vm3383_vm7, %v3381_v3, %v5790_v58 }
0x3c37   :  { %v3392_v35 = vpack.c.bf16 %v3391_v26, %v3390_v11 }
0x3c39   :  { %5791 = vmatmul.msk.bf16.vlgmr.msrb.gmra.mxu0 %vm68_vm2, %v3392_v35 }
0x3c3a   :  { %3668 = vmatpush.bf16.msrb.mxu0 %v7769_v4 }
0x3c3e   :  { %3669 = vmatpush.bf16.msrb.mxu0 %v7775_v14 }
0x3cb6   :  { %v3405_v33 = vpop.f32.mrf.mxu0 }
0x3cb7   :  { %v3406_v5 = vadd.f32 %v7811_v43, %v3405_v33 }
0x3cb9   :  { %v3412_v29 = vmul.f32 1.442695, %v3406_v5  ;;  %vm3410_vm8 = vcmp.gt.f32.partialorder %v3406_v5, 0.0 }
0x3cbb   :  { %6397 = vpow2.f32 %v3412_v29 }
0x3cbe   :  { %v3407_v41 = vpop.f32.mrf.mxu0 }
0x3cbf   :  { %v3408_v54 = vadd.f32 %v7817_v23, %v3407_v41 }
0x3cc1   :  { %v3414_v42 = vmul.f32 1.442695, %v3408_v54  ;;  %v6398_v27 = vpop.eup %6397  ;;  %vm3411_vm9 = vcmp.gt.f32.partialorder %v3408_v54, 0.0 }
0x3cc2   :  { %v5792_v17 = vadd.f32 -1.0, %v6398_v27 }
0x3cc3   :  { %6399 = vpow2.f32 %v3414_v42 }
0x3cc4   :  { %v3418_v34 = vsel %vm3410_vm8, %v3406_v5, %v5792_v17 }
0x3cc5   :  { %v3514_v57 = vadd.f32 %v3418_v34, %v7938_v24 }
0x3cc7   :  { %v3516_v35 = vmul.f32 2.0, %v3514_v57 }
0x3cc9   :  { %v6400_v0 = vpop.eup %6399 }
0x3cca   :  { %v5793_v48 = vadd.f32 -1.0, %v6400_v0 }
0x3ccc   :  { %v3419_v10 = vsel %vm3411_vm9, %v3408_v54, %v5793_v48 }
0x3ccd   :  { %v3420_v62 = vpack.c.bf16 %v3419_v10, %v3418_v34  ;;  %v3515_v41 = vadd.f32 %v3419_v10, %v7940_v60 }
0x3ccf   :  { %5794 = vmatmul.msk.bf16.vlgmr.msrb.gmra.mxu1 %vm68_vm2, %v3420_v62  ;;  %v3517_v24 = vmul.f32 2.0, %v3515_v41 }
0x3cd0   :  { %3696 = vmatpush.bf16.msrb.mxu1 %v7830_v37 }
0x3cd4   :  { %3697 = vmatpush.bf16.msrb.mxu1 %v7836_v51 }
0x3d4c   :  { %v3433_v18 = vpop.f32.mrf.mxu1 }
0x3d4d   :  { %v3438_v9 = vmul.f32 0.05, %v3433_v18  ;;  %v3498_v40 = vadd.f32 %v3433_v18, %v3373_v16 }
0x3d4f   :  { %v3440_v56 = vadd.f32 %v3438_v9, %v3260_v28  ;;  %v3500_v63 = vmul.f32 2.0, %v3498_v40 }
0x3d51   :  { %v3502_v38 = vadd.f32 %v3500_v63, %v7923_v61  ;;  %v3444_v59 = vmul.f32 1.442695, %v3440_v56  ;;  %vm3442_vm10 = vcmp.gt.f32.partialorder %v3440_v56, 0.0 }
0x3d53   :  { %v3504_v2 = vmul.f32 0.008333334, %v3502_v38  ;;  %6401 = vpow2.f32 %v3444_v59 }
0x3d54   :  { %v3435_v46 = vpop.f32.mrf.mxu1 }
0x3d55   :  { %v3439_v20 = vmul.f32 0.05, %v3435_v46  ;;  %v3506_v8 = vadd.f32 %v3504_v2, %v3260_v28 }
0x3d57   :  { %v3441_v6 = vadd.f32 %v3439_v20, %v3261_v30 }
0x3d59   :  { %v3446_v12 = vmul.f32 1.442695, %v3441_v6  ;;  %v6402_v22 = vpop.eup %6401  ;;  %vm3443_vm11 = vcmp.gt.f32.partialorder %v3441_v6, 0.0 }
0x3d5a   :  { %v5795_v1 = vadd.f32 -1.0, %v6402_v22 }
0x3d5b   :  { %6403 = vpow2.f32 %v3446_v12 }
0x3d5c   :  { %v3450_v19 = vsel %vm3442_vm10, %v3440_v56, %v5795_v1 }
0x3d61   :  { %v6404_v52 = vpop.eup %6403 }
0x3d62   :  { %v5796_v16 = vadd.f32 -1.0, %v6404_v52 }
0x3d64   :  { %v3451_v61 = vsel %vm3443_vm11, %v3441_v6, %v5796_v16 }
0x3d65   :  { %v3452_v32 = vpack.c.bf16 %v3451_v61, %v3450_v19 }
0x3d67   :  { %5797 = vmatmul.msk.bf16.vlgmr.msrb.gmra.mxu2 %vm68_vm2, %v3452_v32 }
0x3d68   :  { %3728 = vmatpush.bf16.msrb.mxu2 %v7769_v4 }
0x3d6c   :  { %3729 = vmatpush.bf16.msrb.mxu2 %v7775_v14 }
0x3dea   :  { %v3465_v47 = vpop.f32.mrf.mxu2 }
0x3deb   :  { %v3466_v45 = vadd.f32 %v7811_v43, %v3465_v47 }
0x3ded   :  { %v3472_v3 = vmul.f32 1.442695, %v3466_v45  ;;  %vm3470_vm12 = vcmp.gt.f32.partialorder %v3466_v45, 0.0 }
0x3def   :  { %6405 = vpow2.f32 %v3472_v3 }
0x3df2   :  { %v3467_v53 = vpop.f32.mrf.mxu2 }
0x3df3   :  { %v3468_v39 = vadd.f32 %v7817_v23, %v3467_v53 }
0x3df5   :  { %v6406_v25 = vpop.eup %6405  ;;  %v3474_v58 = vmul.f32 1.442695, %v3468_v39  ;;  %vm3471_vm13 = vcmp.gt.f32.partialorder %v3468_v39, 0.0 }
0x3df6   :  { %v5798_v11 = vadd.f32 -1.0, %v6406_v25 }
0x3df7   :  { %6407 = vpow2.f32 %v3474_v58 }
0x3df8   :  { %v3478_v26 = vsel %vm3470_vm12, %v3466_v45, %v5798_v11 }
0x3df9   :  { %v3512_v33 = vadd.f32 %v3478_v26, %v7914_v13 }
0x3dfb   :  { %v3518_v5 = vadd.f32 %v3516_v35, %v3512_v33 }
0x3dfd   :  { %v6408_v29 = vpop.eup %6407  ;;  %v3520_v54 = vmul.f32 0.008333334, %v3518_v5 }
0x3dfe   :  { %v5799_v42 = vadd.f32 -1.0, %v6408_v29 }
0x3dff   :  { %v7972_v27 = vadd.f32 %v3520_v54, %v7888_v50  ;;  %v3499_v50 = vadd.f32 %v3435_v46, %v7947_v55 }
0x3e00   :  { %v3479_v17 = vsel %vm3471_vm13, %v3468_v39, %v5799_v42 }
0x3e01   :  { %v3480_v0 = vpack.c.bf16 %v3479_v17, %v3478_v26  ;;  %v3513_v48 = vadd.f32 %v3479_v17, %v7916_v15  ;;  %v3501_v60 = vmul.f32 2.0, %v3499_v50 }
0x3e03   :  { %v3519_v34 = vadd.f32 %v3517_v24, %v3513_v48  ;;  %5800 = vmatmul.msk.bf16.vlgmr.msrb.gmra.mxu3 %vm68_vm2, %v3480_v0  ;;  %v3503_v18 = vadd.f32 %v3501_v60, %v7928_v21 }
0x3e04   :  { %3756 = vmatpush.bf16.msrb.mxu3 %v7830_v37 }
0x3e05   :  { %v3521_v13 = vmul.f32 0.008333334, %v3519_v34  ;;  %v3505_v15 = vmul.f32 0.008333334, %v3503_v18 }
0x3e07   :  { %v7978_v62 = vadd.f32 %v3521_v13, %v7894_v7  ;;  %v3507_v63 = vadd.f32 %v3505_v15, %v3261_v30 }
0x3e08   :  { %3757 = vmatpush.bf16.msrb.mxu3 %v7836_v51 }
0x3e86   :  { %v3493_v10 = vpop.f32.mrf.mxu3 }
0x3e87   :  { %v3508_v28 = vmul.f32 0.008333334, %v3493_v10 }
0x3e89   :  { %v7983_v9 = vadd.f32 %v3508_v28, %v3506_v8 }
0x3e8b   :  { %v3530_v40 = vmul.f32 1.442695, %v7983_v9  ;;  %vm3528_vm14 = vcmp.gt.f32.partialorder %v7983_v9, 0.0  ;;  %v3524_v25 = vadd.f32 %v7983_v9, %v6777_v31 }
0x3e8d   :  { %6409 = vpow2.f32 %v3530_v40 }
0x3e8e   :  { %v3495_v56 = vpop.f32.mrf.mxu3 }
0x3e8f   :  { %v3509_v38 = vmul.f32 0.008333334, %v3495_v56 }
0x3e91   :  { %v7986_v7 = vadd.f32 %v3509_v38, %v3507_v63 }
0x3e93   :  { %v3532_v59 = vmul.f32 1.442695, %v7986_v7  ;;  %v6410_v55 = vpop.eup %6409  ;;  %vm3529_vm15 = vcmp.gt.f32.partialorder %v7986_v7, 0.0  ;;  %v3525_v35 = vadd.f32 %v7986_v7, %v6790_v36 }
0x3e94   :  { %v5801_v2 = vadd.f32 -1.0, %v6410_v55 }
0x3e95   :  { %6411 = vpow2.f32 %v3532_v59 }
0x3e96   :  { %v3536_v21 = vsel %vm3528_vm14, %v7983_v9, %v5801_v2 }
0x3e9b   :  { %v6412_v46 = vpop.eup %6411 }
0x3e9c   :  { %v5802_v20 = vadd.f32 -1.0, %v6412_v46 }
0x3e9e   :  { %v3537_v8 = vsel %vm3529_vm15, %v7986_v7, %v5802_v20 }
0x3e9f   :  { %v3538_v30 = vpack.c.bf16 %v3537_v8, %v3536_v21 }
0x3ea1   :  { %5803 = vmatmul.msk.bf16.vlgmr.msra.gmra.mxu0 %vm68_vm2, %v3538_v30 }
0x3ea2   :  { %3814 = vmatpush.bf16.msra.mxu0 %v7769_v4 }
0x3ea6   :  { %3815 = vmatpush.bf16.msra.mxu0 %v7775_v14 }
0x3f1e   :  { %v3551_v6 = vpop.f32.mrf.mxu0 }
0x3f1f   :  { %v3552_v12 = vadd.f32 %v7811_v43, %v3551_v6 }
0x3f21   :  { %v3558_v22 = vmul.f32 1.442695, %v3552_v12  ;;  %vm3556_vm0 = vcmp.gt.f32.partialorder %v3552_v12, 0.0 }
0x3f23   :  { %6413 = vpow2.f32 %v3558_v22 }
0x3f26   :  { %v3553_v1 = vpop.f32.mrf.mxu0 }
0x3f27   :  { %v3554_v52 = vadd.f32 %v7817_v23, %v3553_v1 }
0x3f29   :  { %v3560_v16 = vmul.f32 1.442695, %v3554_v52  ;;  %v6414_v19 = vpop.eup %6413  ;;  %vm3557_vm1 = vcmp.gt.f32.partialorder %v3554_v52, 0.0 }
0x3f2a   :  { %v5804_v61 = vadd.f32 -1.0, %v6414_v19  ;;  %v8038_v19 = vld [vmem:[%s8649_s1 + $0x8] sm:$0xff] }
0x3f2b   :  { %6415 = vpow2.f32 %v3560_v16 }
0x3f2c   :  { %v7998_v45 = vsel %vm3556_vm0, %v3552_v12, %v5804_v61  ;;  %v8044_v61 = vld [vmem:[%s8649_s1] sm:$0xff] }
0x3f31   :  { %v6416_v32 = vpop.eup %6415 }
0x3f32   :  { %v5805_v47 = vadd.f32 -1.0, %v6416_v32 }
0x3f34   :  { %v8000_v3 = vsel %vm3557_vm1, %v3554_v52, %v5805_v47 }
0x3f35   :  { %v3566_v53 = vpack.c.bf16 %v8000_v3, %v7998_v45 }
0x3f37   :  { %5806 = vmatmul.msk.bf16.vlgmr.msra.gmra.mxu1 %vm68_vm2, %v3566_v53 }
0x3f38   :  { %3842 = vmatpush.bf16.msra.mxu1 %v7830_v37 }
0x3f3c   :  { %3843 = vmatpush.bf16.msra.mxu1 %v7836_v51 }
0x3fb4   :  { %v8007_v39 = vpop.f32.mrf.mxu1 }
0x3fb5   :  { %v3584_v57 = vmul.f32 0.025, %v8007_v39 }
0x3fb7   :  { %v3586_v58 = vadd.f32 %v3584_v57, %v3524_v25 }
0x3fb9   :  { %v3590_v11 = vmul.f32 1.442695, %v3586_v58  ;;  %vm3588_vm3 = vcmp.gt.f32.partialorder %v3586_v58, 0.0 }
0x3fbb   :  { %6417 = vpow2.f32 %v3590_v11 }
0x3fbc   :  { %v8012_v26 = vpop.f32.mrf.mxu1 }
0x3fbd   :  { %v3585_v33 = vmul.f32 0.025, %v8012_v26 }
0x3fbf   :  { %v3587_v5 = vadd.f32 %v3585_v33, %v3525_v35 }
0x3fc1   :  { %v3592_v29 = vmul.f32 1.442695, %v3587_v5  ;;  %v6418_v41 = vpop.eup %6417  ;;  %vm3589_vm4 = vcmp.gt.f32.partialorder %v3587_v5, 0.0 }
0x3fc2   :  { %v5807_v54 = vadd.f32 -1.0, %v6418_v41 }
0x3fc3   :  { %6419 = vpow2.f32 %v3592_v29 }
0x3fc4   :  { %v3596_v24 = vsel %vm3588_vm3, %v3586_v58, %v5807_v54 }
0x3fc9   :  { %v6420_v42 = vpop.eup %6419 }
0x3fca   :  { %v5808_v17 = vadd.f32 -1.0, %v6420_v42 }
0x3fcc   :  { %v3597_v0 = vsel %vm3589_vm4, %v3587_v5, %v5808_v17 }
0x3fcd   :  { %v3598_v48 = vpack.c.bf16 %v3597_v0, %v3596_v24 }
0x3fcf   :  { %5809 = vmatmul.msk.bf16.vlgmr.msra.gmra.mxu2 %vm68_vm2, %v3598_v48 }
0x3fd0   :  { %3874 = vmatpush.bf16.msra.mxu2 %v7769_v4 }
0x3fd4   :  { %3875 = vmatpush.bf16.msra.mxu2 %v7775_v14 }
0x4052   :  { %v3611_v34 = vpop.f32.mrf.mxu2 }
0x4053   :  { %v3612_v13 = vadd.f32 %v7811_v43, %v3611_v34 }
0x4055   :  { %v3618_v50 = vmul.f32 1.442695, %v3612_v13  ;;  %vm3616_vm5 = vcmp.gt.f32.partialorder %v3612_v13, 0.0 }
0x4057   :  { %6421 = vpow2.f32 %v3618_v50 }
0x405a   :  { %v3613_v60 = vpop.f32.mrf.mxu2 }
0x405b   :  { %v3614_v10 = vadd.f32 %v7817_v23, %v3613_v60  ;;  %v8057_v60 = vadd.f32 %v7986_v7, %v6828_v49 }
0x405d   :  { %v3620_v18 = vmul.f32 1.442695, %v3614_v10  ;;  %v6422_v28 = vpop.eup %6421  ;;  %vm3617_vm6 = vcmp.gt.f32.partialorder %v3614_v10, 0.0 }
0x405e   :  { %v5810_v15 = vadd.f32 -1.0, %v6422_v28 }
0x405f   :  { %6423 = vpow2.f32 %v3620_v18 }
0x4060   :  { %v8022_v63 = vsel %vm3616_vm5, %v3612_v13, %v5810_v15 }
0x4065   :  { %v6424_v40 = vpop.eup %6423 }
0x4066   :  { %v5811_v56 = vadd.f32 -1.0, %v6424_v40 }
0x4068   :  { %v8024_v4 = vsel %vm3617_vm6, %v3614_v10, %v5811_v56 }
0x4069   :  { %v3626_v14 = vpack.c.bf16 %v8024_v4, %v8022_v63 }
0x406b   :  { %5812 = vmatmul.msk.bf16.vlgmr.msra.gmra.mxu3 %vm68_vm2, %v3626_v14 }
0x406c   :  { %3902 = vmatpush.bf16.msra.mxu3 %v7830_v37 }
0x4070   :  { %3903 = vmatpush.bf16.msra.mxu3 %v7836_v51 }
0x40ee   :  { %v3639_v38 = vpop.f32.mrf.mxu3 }
0x40ef   :  { %v3644_v59 = vmul.f32 0.025, %v3639_v38 }
0x40f1   :  { %v3646_v55 = vadd.f32 %v3644_v59, %v3524_v25 }
0x40f3   :  { %v3650_v2 = vmul.f32 1.442695, %v3646_v55  ;;  %vm3648_vm7 = vcmp.gt.f32.partialorder %v3646_v55, 0.0 }
0x40f5   :  { %6425 = vpow2.f32 %v3650_v2 }
0x40f6   :  { %v8031_v46 = vpop.f32.mrf.mxu3 }
0x40f7   :  { %v3645_v20 = vmul.f32 0.025, %v8031_v46 }
0x40f9   :  { %v3647_v21 = vadd.f32 %v3645_v20, %v3525_v35  ;;  %v8072_v20 = vld [vmem:[%s8650_s2 + $0x18] sm:$0xff] }
0x40fb   :  { %v3652_v8 = vmul.f32 1.442695, %v3647_v21  ;;  %v6426_v30 = vpop.eup %6425  ;;  %vm3649_vm8 = vcmp.gt.f32.partialorder %v3647_v21, 0.0 }
0x40fc   :  { %v5813_v6 = vadd.f32 -1.0, %v6426_v30 }
0x40fd   :  { %6427 = vpow2.f32 %v3652_v8 }
0x40fe   :  { %v3656_v1 = vsel %vm3648_vm7, %v3646_v55, %v5813_v6 }
0x4103   :  { %v6428_v12 = vpop.eup %6427 }
0x4104   :  { %v5814_v22 = vadd.f32 -1.0, %v6428_v12 }
0x4106   :  { %v3657_v52 = vsel %vm3649_vm8, %v3647_v21, %v5814_v22 }
0x4107   :  { %v3658_v16 = vpack.c.bf16 %v3657_v52, %v3656_v1 }
0x4109   :  { %5815 = vmatmul.msk.bf16.vlgmr.msrb.gmra.mxu0 %vm68_vm2, %v3658_v16 }
0x410a   :  { %3934 = vmatpush.bf16.msrb.mxu0 %v8038_v19 }
0x410e   :  { %3935 = vmatpush.bf16.msrb.mxu0 %v8044_v61 }
0x4186   :  { %v3671_v32 = vpop.f32.mrf.mxu0 }
0x4187   :  { %v3672_v47 = vadd.f32 %v7811_v43, %v3671_v32 }
0x4189   :  { %v3678_v53 = vmul.f32 1.442695, %v3672_v47  ;;  %vm3676_vm9 = vcmp.gt.f32.partialorder %v3672_v47, 0.0 }
0x418b   :  { %6429 = vpow2.f32 %v3678_v53 }
0x418e   :  { %v3673_v25 = vpop.f32.mrf.mxu0 }
0x418f   :  { %v3674_v57 = vadd.f32 %v7817_v23, %v3673_v25  ;;  %v3526_v23 = vadd.f32 %v7983_v9, %v6823_v44 }
0x4191   :  { %v3680_v58 = vmul.f32 1.442695, %v3674_v57  ;;  %v6430_v11 = vpop.eup %6429  ;;  %vm3677_vm10 = vcmp.gt.f32.partialorder %v3674_v57, 0.0 }
0x4192   :  { %v5816_v35 = vadd.f32 -1.0, %v6430_v11 }
0x4193   :  { %6431 = vpow2.f32 %v3680_v58 }
0x4194   :  { %v3684_v29 = vsel %vm3676_vm9, %v3672_v47, %v5816_v35 }
0x4195   :  { %v3780_v30 = vadd.f32 %v3684_v29, %v8022_v63 }
0x4197   :  { %v3782_v1 = vmul.f32 2.0, %v3780_v30 }
0x4199   :  { %v6432_v33 = vpop.eup %6431 }
0x419a   :  { %v5817_v5 = vadd.f32 -1.0, %v6432_v33 }
0x419c   :  { %v3685_v41 = vsel %vm3677_vm10, %v3674_v57, %v5817_v5  ;;  %v8095_v5 = vld [vmem:[%s8649_s1 + $0x10] sm:$0xff] }
0x419d   :  { %v3686_v54 = vpack.c.bf16 %v3685_v41, %v3684_v29  ;;  %v3781_v47 = vadd.f32 %v3685_v41, %v8024_v4 }
0x419f   :  { %5818 = vmatmul.msk.bf16.vlgmr.msrb.gmra.mxu1 %vm68_vm2, %v3686_v54  ;;  %v3783_v63 = vmul.f32 2.0, %v3781_v47 }
0x41a0   :  { %3962 = vmatpush.bf16.msrb.mxu1 %v7830_v37 }
0x41a4   :  { %3963 = vmatpush.bf16.msrb.mxu1 %v7836_v51 }
0x421c   :  { %v3699_v43 = vpop.f32.mrf.mxu1 }
0x421d   :  { %v3704_v42 = vmul.f32 0.05, %v3699_v43  ;;  %v3764_v17 = vadd.f32 %v3699_v43, %v3639_v38  ;;  %v8066_v38 = vld [vmem:[%s8650_s2 + $0x10] sm:$0xff] }
0x421f   :  { %v3706_v24 = vadd.f32 %v3704_v42, %v3526_v23  ;;  %v3766_v0 = vmul.f32 2.0, %v3764_v17 }
0x4221   :  { %v3768_v48 = vadd.f32 %v3766_v0, %v8007_v39  ;;  %v3710_v34 = vmul.f32 1.442695, %v3706_v24  ;;  %vm3708_vm11 = vcmp.gt.f32.partialorder %v3706_v24, 0.0 }
0x4223   :  { %v3770_v13 = vmul.f32 0.008333334, %v3768_v48  ;;  %6433 = vpow2.f32 %v3710_v34 }
0x4224   :  { %v3701_v50 = vpop.f32.mrf.mxu1 }
0x4225   :  { %v3705_v37 = vmul.f32 0.05, %v3701_v50  ;;  %v3772_v10 = vadd.f32 %v3770_v13, %v3526_v23 }
0x4227   :  { %v3707_v51 = vadd.f32 %v3705_v37, %v8057_v60 }
0x4229   :  { %v3712_v18 = vmul.f32 1.442695, %v3707_v51  ;;  %v6434_v9 = vpop.eup %6433  ;;  %vm3709_vm12 = vcmp.gt.f32.partialorder %v3707_v51, 0.0 }
0x422a   :  { %v5819_v28 = vadd.f32 -1.0, %v6434_v9 }
0x422b   :  { %6435 = vpow2.f32 %v3712_v18 }
0x422c   :  { %v3716_v39 = vsel %vm3708_vm11, %v3706_v24, %v5819_v28 }
0x4231   :  { %v6436_v15 = vpop.eup %6435 }
0x4232   :  { %v5820_v40 = vadd.f32 -1.0, %v6436_v15 }
0x4234   :  { %v3717_v56 = vsel %vm3709_vm12, %v3707_v51, %v5820_v40 }
0x4235   :  { %v3718_v14 = vpack.c.bf16 %v3717_v56, %v3716_v39 }
0x4237   :  { %5821 = vmatmul.msk.bf16.vlgmr.msrb.gmra.mxu2 %vm68_vm2, %v3718_v14 }
0x4238   :  { %3994 = vmatpush.bf16.msrb.mxu2 %v8038_v19 }
0x423c   :  { %3995 = vmatpush.bf16.msrb.mxu2 %v8044_v61 }
0x42ba   :  { %v3731_v7 = vpop.f32.mrf.mxu2 }
0x42bb   :  { %v3732_v59 = vadd.f32 %v8066_v38, %v3731_v7 }
0x42bd   :  { %v3738_v55 = vmul.f32 1.442695, %v3732_v59  ;;  %vm3736_vm13 = vcmp.gt.f32.partialorder %v3732_v59, 0.0 }
0x42bf   :  { %6437 = vpow2.f32 %v3738_v55 }
0x42c2   :  { %v3733_v2 = vpop.f32.mrf.mxu2 }
0x42c3   :  { %v3734_v21 = vadd.f32 %v8072_v20, %v3733_v2 }
0x42c5   :  { %v6438_v8 = vpop.eup %6437  ;;  %v3740_v6 = vmul.f32 1.442695, %v3734_v21  ;;  %vm3737_vm14 = vcmp.gt.f32.partialorder %v3734_v21, 0.0 }
0x42c6   :  { %v5822_v12 = vadd.f32 -1.0, %v6438_v8 }
0x42c7   :  { %6439 = vpow2.f32 %v3740_v6 }
0x42c8   :  { %v3744_v22 = vsel %vm3736_vm13, %v3732_v59, %v5822_v12 }
0x42c9   :  { %v3778_v52 = vadd.f32 %v3744_v22, %v7998_v45  ;;  %v8086_v45 = vld [vmem:[%s8649_s1 + $0x18] sm:$0xff] }
0x42cb   :  { %v3784_v16 = vadd.f32 %v3782_v1, %v3778_v52 }
0x42cd   :  { %v6440_v32 = vpop.eup %6439  ;;  %v3786_v53 = vmul.f32 0.008333334, %v3784_v16 }
0x42ce   :  { %v5823_v25 = vadd.f32 -1.0, %v6440_v32 }
0x42cf   :  { %v8079_v57 = vadd.f32 %v3786_v53, %v7972_v27 }
0x42d0   :  { %v3745_v58 = vsel %vm3737_vm14, %v3734_v21, %v5823_v25 }
0x42d1   :  { %v3746_v11 = vpack.c.bf16 %v3745_v58, %v3744_v22  ;;  %v3779_v35 = vadd.f32 %v3745_v58, %v8000_v3  ;;  %v3765_v3 = vadd.f32 %v3701_v50, %v8031_v46 }
0x42d3   :  { %v3785_v33 = vadd.f32 %v3783_v63, %v3779_v35  ;;  %5824 = vmatmul.msk.bf16.vlgmr.msrb.gmra.mxu3 %vm68_vm2, %v3746_v11  ;;  %v3767_v29 = vmul.f32 2.0, %v3765_v3 }
0x42d4   :  { %4022 = vmatpush.bf16.msrb.mxu3 %v8086_v45 }
0x42d5   :  { %v3787_v4 = vmul.f32 0.008333334, %v3785_v33  ;;  %v3769_v54 = vadd.f32 %v3767_v29, %v8012_v26 }
0x42d7   :  { %v8090_v27 = vadd.f32 %v3787_v4, %v7978_v62  ;;  %v3771_v42 = vmul.f32 0.008333334, %v3769_v54 }
0x42d8   :  { %4023 = vmatpush.bf16.msrb.mxu3 %v8095_v5 }
0x42d9   :  { %v3773_v24 = vadd.f32 %v3771_v42, %v8057_v60 }
0x4356   :  { %v3759_v41 = vpop.f32.mrf.mxu3 }
0x4357   :  { %v3774_v43 = vmul.f32 0.008333334, %v3759_v41 }
0x4359   :  { %v8100_v23 = vadd.f32 %v3774_v43, %v3772_v10 }
0x435b   :  { %v3796_v62 = vmul.f32 1.442695, %v8100_v23  ;;  %vm3794_vm15 = vcmp.gt.f32.partialorder %v8100_v23, 0.0  ;;  %v3790_v8 = vadd.f32 %v8100_v23, %v6777_v31 }
0x435d   :  { %6441 = vpow2.f32 %v3796_v62 }
0x435e   :  { %v3761_v17 = vpop.f32.mrf.mxu3 }
0x435f   :  { %v3775_v0 = vmul.f32 0.008333334, %v3761_v17 }
0x4361   :  { %v8104_v48 = vadd.f32 %v3775_v0, %v3773_v24 }
0x4363   :  { %v3798_v34 = vmul.f32 1.442695, %v8104_v48  ;;  %v6442_v46 = vpop.eup %6441  ;;  %vm3795_vm0 = vcmp.gt.f32.partialorder %v8104_v48, 0.0  ;;  %v3791_v1 = vadd.f32 %v8104_v48, %v6790_v36 }
0x4364   :  { %v5825_v13 = vadd.f32 -1.0, %v6442_v46 }
0x4365   :  { %6443 = vpow2.f32 %v3798_v34 }
0x4366   :  { %v3802_v37 = vsel %vm3794_vm15, %v8100_v23, %v5825_v13 }
0x436b   :  { %v6444_v50 = vpop.eup %6443 }
0x436c   :  { %v5826_v26 = vadd.f32 -1.0, %v6444_v50 }
0x436e   :  { %v3803_v10 = vsel %vm3795_vm0, %v8104_v48, %v5826_v26 }
0x436f   :  { %v3804_v60 = vpack.c.bf16 %v3803_v10, %v3802_v37 }
0x4371   :  { %5827 = vmatmul.msk.bf16.vlgmr.msra.gmra.mxu0 %vm68_vm2, %v3804_v60 }
0x4372   :  { %4080 = vmatpush.bf16.msra.mxu0 %v8038_v19 }
0x4376   :  { %4081 = vmatpush.bf16.msra.mxu0 %v8044_v61 }
0x43ee   :  { %v3817_v51 = vpop.f32.mrf.mxu0 }
0x43ef   :  { %v3818_v18 = vadd.f32 %v8066_v38, %v3817_v51 }
0x43f1   :  { %v3824_v9 = vmul.f32 1.442695, %v3818_v18  ;;  %vm3822_vm1 = vcmp.gt.f32.partialorder %v3818_v18, 0.0 }
0x43f3   :  { %6445 = vpow2.f32 %v3824_v9 }
0x43f6   :  { %v3819_v28 = vpop.f32.mrf.mxu0 }
0x43f7   :  { %v3820_v15 = vadd.f32 %v8072_v20, %v3819_v28 }
0x43f9   :  { %v3826_v40 = vmul.f32 1.442695, %v3820_v15  ;;  %v6446_v39 = vpop.eup %6445  ;;  %vm3823_vm3 = vcmp.gt.f32.partialorder %v3820_v15, 0.0 }
0x43fa   :  { %v5828_v56 = vadd.f32 -1.0, %v6446_v39 }
0x43fb   :  { %6447 = vpow2.f32 %v3826_v40 }
0x43fc   :  { %v8116_v59 = vsel %vm3822_vm1, %v3818_v18, %v5828_v56 }
0x4401   :  { %v6448_v14 = vpop.eup %6447 }
0x4402   :  { %v5829_v7 = vadd.f32 -1.0, %v6448_v14 }
0x4404   :  { %v8118_v55 = vsel %vm3823_vm3, %v3820_v15, %v5829_v7 }
0x4405   :  { %v3832_v2 = vpack.c.bf16 %v8118_v55, %v8116_v59 }
0x4407   :  { %5830 = vmatmul.msk.bf16.vlgmr.msra.gmra.mxu1 %vm68_vm2, %v3832_v2 }
0x4408   :  { %4108 = vmatpush.bf16.msra.mxu1 %v8086_v45 }
0x440c   :  { %4109 = vmatpush.bf16.msra.mxu1 %v8095_v5 }
0x4484   :  { %v8125_v21 = vpop.f32.mrf.mxu1 }
0x4485   :  { %v3850_v30 = vmul.f32 0.025, %v8125_v21 }
0x4487   :  { %v3852_v6 = vadd.f32 %v3850_v30, %v3790_v8 }
0x4489   :  { %v3856_v12 = vmul.f32 1.442695, %v3852_v6  ;;  %vm3854_vm4 = vcmp.gt.f32.partialorder %v3852_v6, 0.0 }
0x448b   :  { %6449 = vpow2.f32 %v3856_v12 }
0x448c   :  { %v8130_v22 = vpop.f32.mrf.mxu1 }
0x448d   :  { %v3851_v52 = vmul.f32 0.025, %v8130_v22 }
0x448f   :  { %v3853_v16 = vadd.f32 %v3851_v52, %v3791_v1 }
0x4491   :  { %v3858_v32 = vmul.f32 1.442695, %v3853_v16  ;;  %v6450_v47 = vpop.eup %6449  ;;  %vm3855_vm5 = vcmp.gt.f32.partialorder %v3853_v16, 0.0 }
0x4492   :  { %v5831_v53 = vadd.f32 -1.0, %v6450_v47 }
0x4493   :  { %6451 = vpow2.f32 %v3858_v32 }
0x4494   :  { %v3862_v63 = vsel %vm3854_vm4, %v3852_v6, %v5831_v53 }
0x4499   :  { %v6452_v25 = vpop.eup %6451 }
0x449a   :  { %v5832_v58 = vadd.f32 -1.0, %v6452_v25 }
0x449c   :  { %v3863_v11 = vsel %vm3855_vm5, %v3853_v16, %v5832_v58  ;;  %v3792_v58 = vadd.f32 %v8100_v23, %v6823_v44 }
0x449d   :  { %v3864_v35 = vpack.c.bf16 %v3863_v11, %v3862_v63 }
0x449f   :  { %5833 = vmatmul.msk.bf16.vlgmr.msra.gmra.mxu2 %vm68_vm2, %v3864_v35 }
0x44a0   :  { %4140 = vmatpush.bf16.msra.mxu2 %v8038_v19 }
0x44a4   :  { %4141 = vmatpush.bf16.msra.mxu2 %v8044_v61 }
0x4522   :  { %v3877_v33 = vpop.f32.mrf.mxu2 }
0x4523   :  { %v3878_v4 = vadd.f32 %v8066_v38, %v3877_v33 }
0x4525   :  { %v3884_v3 = vmul.f32 1.442695, %v3878_v4  ;;  %vm3882_vm6 = vcmp.gt.f32.partialorder %v3878_v4, 0.0 }
0x4527   :  { %6453 = vpow2.f32 %v3884_v3 }
0x452a   :  { %v3879_v29 = vpop.f32.mrf.mxu2 }
0x452b   :  { %v3880_v41 = vadd.f32 %v8072_v20, %v3879_v29 }
0x452d   :  { %v3886_v54 = vmul.f32 1.442695, %v3880_v41  ;;  %v6454_v43 = vpop.eup %6453  ;;  %vm3883_vm7 = vcmp.gt.f32.partialorder %v3880_v41, 0.0 }
0x452e   :  { %v5834_v42 = vadd.f32 -1.0, %v6454_v43 }
0x452f   :  { %6455 = vpow2.f32 %v3886_v54  ;;  %v3793_v54 = vadd.f32 %v8104_v48, %v6828_v49 }
0x4530   :  { %v8140_v24 = vsel %vm3882_vm6, %v3878_v4, %v5834_v42 }
0x4535   :  { %v6456_v62 = vpop.eup %6455 }
0x4536   :  { %v5835_v17 = vadd.f32 -1.0, %v6456_v62 }
0x4538   :  { %v8142_v0 = vsel %vm3883_vm7, %v3880_v41, %v5835_v17 }
0x4539   :  { %v3892_v34 = vpack.c.bf16 %v8142_v0, %v8140_v24 }
0x453b   :  { %5836 = vmatmul.msk.bf16.vlgmr.msra.gmra.mxu3 %vm68_vm2, %v3892_v34 }
0x453c   :  { %4168 = vmatpush.bf16.msra.mxu3 %v8086_v45 }
0x4540   :  { %4169 = vmatpush.bf16.msra.mxu3 %v8095_v5 }
0x45be   :  { %v3905_v46 = vpop.f32.mrf.mxu3 }
0x45bf   :  { %v3910_v13 = vmul.f32 0.025, %v3905_v46 }
0x45c1   :  { %v3912_v50 = vadd.f32 %v3910_v13, %v3790_v8 }
0x45c3   :  { %v3916_v26 = vmul.f32 1.442695, %v3912_v50  ;;  %vm3914_vm8 = vcmp.gt.f32.partialorder %v3912_v50, 0.0 }
0x45c5   :  { %6457 = vpow2.f32 %v3916_v26 }
0x45c6   :  { %v8149_v37 = vpop.f32.mrf.mxu3 }
0x45c7   :  { %v3911_v10 = vmul.f32 0.025, %v8149_v37 }
0x45c9   :  { %v3913_v60 = vadd.f32 %v3911_v10, %v3791_v1 }
0x45cb   :  { %v3918_v51 = vmul.f32 1.442695, %v3913_v60  ;;  %v6458_v18 = vpop.eup %6457  ;;  %vm3915_vm9 = vcmp.gt.f32.partialorder %v3913_v60, 0.0 }
0x45cc   :  { %v5837_v9 = vadd.f32 -1.0, %v6458_v18 }
0x45cd   :  { %6459 = vpow2.f32 %v3918_v51 }
0x45ce   :  { %v3922_v40 = vsel %vm3914_vm8, %v3912_v50, %v5837_v9 }
0x45d3   :  { %v6460_v28 = vpop.eup %6459 }
0x45d4   :  { %v5838_v15 = vadd.f32 -1.0, %v6460_v28 }
0x45d6   :  { %v3923_v39 = vsel %vm3915_vm9, %v3913_v60, %v5838_v15 }
0x45d7   :  { %v3924_v56 = vpack.c.bf16 %v3923_v39, %v3922_v40 }
0x45d9   :  { %5839 = vmatmul.msk.bf16.vlgmr.msrb.gmra.mxu0 %vm68_vm2, %v3924_v56 }
0x45da   :  { %4200 = vmatpush.bf16.msrb.mxu0 %v8038_v19 }
0x45de   :  { %4201 = vmatpush.bf16.msrb.mxu0 %v8044_v61 }
0x4656   :  { %v3937_v14 = vpop.f32.mrf.mxu0 }
0x4657   :  { %v3938_v7 = vadd.f32 %v8066_v38, %v3937_v14 }
0x4659   :  { %v3944_v2 = vmul.f32 1.442695, %v3938_v7  ;;  %vm3942_vm10 = vcmp.gt.f32.partialorder %v3938_v7, 0.0 }
0x465b   :  { %6461 = vpow2.f32 %v3944_v2 }
0x465e   :  { %v3939_v8 = vpop.f32.mrf.mxu0 }
0x465f   :  { %v3940_v30 = vadd.f32 %v8072_v20, %v3939_v8 }
0x4661   :  { %v3946_v6 = vmul.f32 1.442695, %v3940_v30  ;;  %v6462_v12 = vpop.eup %6461  ;;  %vm3943_vm11 = vcmp.gt.f32.partialorder %v3940_v30, 0.0 }
0x4662   :  { %v5840_v1 = vadd.f32 -1.0, %v6462_v12 }
0x4663   :  { %6463 = vpow2.f32 %v3946_v6 }
0x4664   :  { %v3950_v32 = vsel %vm3942_vm10, %v3938_v7, %v5840_v1 }
0x4665   :  { %v4046_v28 = vadd.f32 %v3950_v32, %v8140_v24 }
0x4667   :  { %v4048_v56 = vmul.f32 2.0, %v4046_v28 }
0x4669   :  { %v6464_v52 = vpop.eup %6463 }
0x466a   :  { %v5841_v16 = vadd.f32 -1.0, %v6464_v52 }
0x466c   :  { %v3951_v47 = vsel %vm3943_vm11, %v3940_v30, %v5841_v16 }
0x466d   :  { %v3952_v53 = vpack.c.bf16 %v3951_v47, %v3950_v32  ;;  %v4047_v8 = vadd.f32 %v3951_v47, %v8142_v0 }
0x466f   :  { %5842 = vmatmul.msk.bf16.vlgmr.msrb.gmra.mxu1 %vm68_vm2, %v3952_v53  ;;  %v4049_v24 = vmul.f32 2.0, %v4047_v8 }
0x4670   :  { %4228 = vmatpush.bf16.msrb.mxu1 %v8086_v45 }
0x4674   :  { %4229 = vmatpush.bf16.msrb.mxu1 %v8095_v5 }
0x46ec   :  { %v3965_v25 = vpop.f32.mrf.mxu1 }
0x46ed   :  { %v3970_v63 = vmul.f32 0.05, %v3965_v25  ;;  %v4030_v11 = vadd.f32 %v3965_v25, %v3905_v46 }
0x46ef   :  { %v3972_v35 = vadd.f32 %v3970_v63, %v3792_v58  ;;  %v4032_v33 = vmul.f32 2.0, %v4030_v11 }
0x46f1   :  { %v4034_v4 = vadd.f32 %v4032_v33, %v8125_v21  ;;  %v3976_v3 = vmul.f32 1.442695, %v3972_v35  ;;  %vm3974_vm12 = vcmp.gt.f32.partialorder %v3972_v35, 0.0 }
0x46f3   :  { %v4036_v29 = vmul.f32 0.008333334, %v4034_v4  ;;  %6465 = vpow2.f32 %v3976_v3 }
0x46f4   :  { %v3967_v41 = vpop.f32.mrf.mxu1 }
0x46f5   :  { %v3971_v43 = vmul.f32 0.05, %v3967_v41  ;;  %v4038_v42 = vadd.f32 %v4036_v29, %v3792_v58 }
0x46f7   :  { %v3973_v62 = vadd.f32 %v3971_v43, %v3793_v54 }
0x46f9   :  { %v3978_v17 = vmul.f32 1.442695, %v3973_v62  ;;  %v6466_v34 = vpop.eup %6465  ;;  %vm3975_vm13 = vcmp.gt.f32.partialorder %v3973_v62, 0.0 }
0x46fa   :  { %v5843_v23 = vadd.f32 -1.0, %v6466_v34 }
0x46fb   :  { %6467 = vpow2.f32 %v3978_v17 }
0x46fc   :  { %v3982_v50 = vsel %vm3974_vm12, %v3972_v35, %v5843_v23 }
0x4701   :  { %v6468_v13 = vpop.eup %6467 }
0x4702   :  { %v5844_v46 = vadd.f32 -1.0, %v6468_v13 }
0x4704   :  { %v3983_v21 = vsel %vm3975_vm13, %v3973_v62, %v5844_v46 }
0x4705   :  { %v3984_v26 = vpack.c.bf16 %v3983_v21, %v3982_v50 }
0x4707   :  { %5845 = vmatmul.msk.bf16.vlgmr.msrb.gmra.mxu2 %vm68_vm2, %v3984_v26 }
0x4708   :  { %4260 = vmatpush.bf16.msrb.mxu2 %v8038_v19 }
0x470c   :  { %4261 = vmatpush.bf16.msrb.mxu2 %v8044_v61 }
0x478a   :  { %v3997_v48 = vpop.f32.mrf.mxu2 }
0x478b   :  { %v3998_v10 = vadd.f32 %v8066_v38, %v3997_v48 }
0x478d   :  { %v4004_v60 = vmul.f32 1.442695, %v3998_v10  ;;  %vm4002_vm14 = vcmp.gt.f32.partialorder %v3998_v10, 0.0 }
0x478f   :  { %6469 = vpow2.f32 %v4004_v60 }
0x4792   :  { %v3999_v51 = vpop.f32.mrf.mxu2 }
0x4793   :  { %v4000_v18 = vadd.f32 %v8072_v20, %v3999_v51 }
0x4795   :  { %v6470_v9 = vpop.eup %6469  ;;  %v4006_v15 = vmul.f32 1.442695, %v4000_v18  ;;  %vm4003_vm15 = vcmp.gt.f32.partialorder %v4000_v18, 0.0 }
0x4796   :  { %v5846_v40 = vadd.f32 -1.0, %v6470_v9 }
0x4797   :  { %6471 = vpow2.f32 %v4006_v15 }
0x4798   :  { %v4010_v39 = vsel %vm4002_vm14, %v3998_v10, %v5846_v40 }
0x4799   :  { %v4044_v14 = vadd.f32 %v4010_v39, %v8116_v59 }
0x479b   :  { %v4050_v7 = vadd.f32 %v4048_v56, %v4044_v14 }
0x479d   :  { %v6472_v2 = vpop.eup %6471  ;;  %v4052_v30 = vmul.f32 0.008333334, %v4050_v7 }
0x479e   :  { %v5847_v6 = vadd.f32 -1.0, %v6472_v2 }
0x479f   :  { %v8174_v12 = vadd.f32 %v4052_v30, %v8079_v57  ;;  %v4031_v57 = vadd.f32 %v3967_v41, %v8149_v37 }
0x47a0   :  { %v4011_v1 = vsel %vm4003_vm15, %v4000_v18, %v5847_v6 }
0x47a1   :  { %v4012_v52 = vpack.c.bf16 %v4011_v1, %v4010_v39  ;;  %v4045_v16 = vadd.f32 %v4011_v1, %v8118_v55  ;;  %v4033_v0 = vmul.f32 2.0, %v4031_v57 }
0x47a3   :  { %v4051_v32 = vadd.f32 %v4049_v24, %v4045_v16  ;;  %5848 = vmatmul.msk.bf16.vlgmr.msrb.gmra.mxu3 %vm68_vm2, %v4012_v52  ;;  %v4035_v25 = vadd.f32 %v4033_v0, %v8130_v22 }
0x47a4   :  { %4288 = vmatpush.bf16.msrb.mxu3 %v8086_v45 }
0x47a5   :  { %v4053_v59 = vmul.f32 0.008333334, %v4051_v32  ;;  %v4037_v55 = vmul.f32 0.008333334, %v4035_v25 }
0x47a7   :  { %v8180_v53 = vadd.f32 %v4053_v59, %v8090_v27  ;;  %v4039_v33 = vadd.f32 %v4037_v55, %v3793_v54 }
0x47a8   :  { %4289 = vmatpush.bf16.msrb.mxu3 %v8095_v5 }
0x4826   :  { %v4025_v47 = vpop.f32.mrf.mxu3 }
0x4827   :  { %v4040_v58 = vmul.f32 0.008333334, %v4025_v47 }
0x4829   :  { %v8185_v63 = vadd.f32 %v4040_v58, %v4038_v42 }
0x482b   :  { %v4062_v11 = vmul.f32 1.442695, %v8185_v63  ;;  %vm4060_vm0 = vcmp.gt.f32.partialorder %v8185_v63, 0.0  ;;  %v4056_v9 = vadd.f32 %v8185_v63, %v6777_v31 }
0x482d   :  { %6473 = vpow2.f32 %v4062_v11 }
0x482e   :  { %v4027_v35 = vpop.f32.mrf.mxu3 }
0x482f   :  { %v4041_v4 = vmul.f32 0.008333334, %v4027_v35 }
0x4831   :  { %v8188_v27 = vadd.f32 %v4041_v4, %v4039_v33 }
0x4833   :  { %v4064_v3 = vmul.f32 1.442695, %v8188_v27  ;;  %v6474_v37 = vpop.eup %6473  ;;  %vm4061_vm1 = vcmp.gt.f32.partialorder %v8188_v27, 0.0  ;;  %v4057_v56 = vadd.f32 %v8188_v27, %v6790_v36 }
0x4834   :  { %v5849_v29 = vadd.f32 -1.0, %v6474_v37 }
0x4835   :  { %6475 = vpow2.f32 %v4064_v3 }
0x4836   :  { %v4068_v22 = vsel %vm4060_vm0, %v8185_v63, %v5849_v29 }
0x483b   :  { %v6476_v41 = vpop.eup %6475 }
0x483c   :  { %v5850_v43 = vadd.f32 -1.0, %v6476_v41 }
0x483e   :  { %v4069_v42 = vsel %vm4061_vm1, %v8188_v27, %v5850_v43 }
0x483f   :  { %v4070_v54 = vpack.c.bf16 %v4069_v42, %v4068_v22 }
0x4841   :  { %5851 = vmatmul.msk.bf16.vlgmr.msra.gmra.mxu0 %vm68_vm2, %v4070_v54 }
0x4842   :  { %4346 = vmatpush.bf16.msra.mxu0 %v8038_v19 }
0x4846   :  { %4347 = vmatpush.bf16.msra.mxu0 %v8044_v61 }
0x48be   :  { %v4083_v62 = vpop.f32.mrf.mxu0 }
0x48bf   :  { %v4084_v17 = vadd.f32 %v8066_v38, %v4083_v62 }
0x48c1   :  { %v4090_v34 = vmul.f32 1.442695, %v4084_v17  ;;  %vm4088_vm3 = vcmp.gt.f32.partialorder %v4084_v17, 0.0 }
0x48c3   :  { %6477 = vpow2.f32 %v4090_v34 }
0x48c6   :  { %v4085_v23 = vpop.f32.mrf.mxu0 }
0x48c7   :  { %v4086_v13 = vadd.f32 %v8072_v20, %v4085_v23 }
0x48c9   :  { %v4092_v46 = vmul.f32 1.442695, %v4086_v13  ;;  %v6478_v50 = vpop.eup %6477  ;;  %vm4089_vm4 = vcmp.gt.f32.partialorder %v4086_v13, 0.0 }
0x48ca   :  { %v5852_v21 = vadd.f32 -1.0, %v6478_v50 }
0x48cb   :  { %6479 = vpow2.f32 %v4092_v46 }
0x48cc   :  { %v8200_v10 = vsel %vm4088_vm3, %v4084_v17, %v5852_v21 }
0x48d1   :  { %v6480_v26 = vpop.eup %6479 }
0x48d2   :  { %v5853_v48 = vadd.f32 -1.0, %v6480_v26 }
0x48d4   :  { %v8202_v60 = vsel %vm4089_vm4, %v4086_v13, %v5853_v48 }
0x48d5   :  { %v4098_v51 = vpack.c.bf16 %v8202_v60, %v8200_v10 }
0x48d7   :  { %5854 = vmatmul.msk.bf16.vlgmr.msra.gmra.mxu1 %vm68_vm2, %v4098_v51 }
0x48d8   :  { %4374 = vmatpush.bf16.msra.mxu1 %v8086_v45 }
0x48dc   :  { %4375 = vmatpush.bf16.msra.mxu1 %v8095_v5 }
0x4954   :  { %v8209_v18 = vpop.f32.mrf.mxu1 }
0x4955   :  { %v4116_v28 = vmul.f32 0.025, %v8209_v18 }
0x4957   :  { %v4118_v15 = vadd.f32 %v4116_v28, %v4056_v9 }
0x4959   :  { %v4122_v40 = vmul.f32 1.442695, %v4118_v15  ;;  %vm4120_vm5 = vcmp.gt.f32.partialorder %v4118_v15, 0.0 }
0x495b   :  { %6481 = vpow2.f32 %v4122_v40 }
0x495c   :  { %v8214_v39 = vpop.f32.mrf.mxu1 }
0x495d   :  { %v4117_v14 = vmul.f32 0.025, %v8214_v39 }
0x495f   :  { %v4119_v7 = vadd.f32 %v4117_v14, %v4057_v56 }
0x4961   :  { %v4124_v2 = vmul.f32 1.442695, %v4119_v7  ;;  %v6482_v8 = vpop.eup %6481  ;;  %vm4121_vm6 = vcmp.gt.f32.partialorder %v4119_v7, 0.0 }
0x4962   :  { %v5855_v30 = vadd.f32 -1.0, %v6482_v8 }
0x4963   :  { %6483 = vpow2.f32 %v4124_v2 }
0x4964   :  { %v4128_v24 = vsel %vm4120_vm5, %v4118_v15, %v5855_v30 }
0x4969   :  { %v6484_v6 = vpop.eup %6483 }
0x496a   :  { %v5856_v1 = vadd.f32 -1.0, %v6484_v6 }
0x496c   :  { %v4129_v52 = vsel %vm4121_vm6, %v4119_v7, %v5856_v1  ;;  %v4058_v1 = vadd.f32 %v8185_v63, %v6823_v44 }
0x496d   :  { %v4130_v16 = vpack.c.bf16 %v4129_v52, %v4128_v24 }
0x496f   :  { %5857 = vmatmul.msk.bf16.vlgmr.msra.gmra.mxu2 %vm68_vm2, %v4130_v16 }
0x4970   :  { %4406 = vmatpush.bf16.msra.mxu2 %v8038_v19 }
0x4974   :  { %4407 = vmatpush.bf16.msra.mxu2 %v8044_v61 }
0x49f2   :  { %v4143_v32 = vpop.f32.mrf.mxu2 }
0x49f3   :  { %v4144_v59 = vadd.f32 %v8066_v38, %v4143_v32 }
0x49f5   :  { %v4150_v57 = vmul.f32 1.442695, %v4144_v59  ;;  %vm4148_vm7 = vcmp.gt.f32.partialorder %v4144_v59, 0.0 }
0x49f7   :  { %6485 = vpow2.f32 %v4150_v57 }
0x49fa   :  { %v4145_v0 = vpop.f32.mrf.mxu2 }
0x49fb   :  { %v4146_v47 = vadd.f32 %v8072_v20, %v4145_v0 }
0x49fd   :  { %v4152_v25 = vmul.f32 1.442695, %v4146_v47  ;;  %v6486_v58 = vpop.eup %6485  ;;  %vm4149_vm8 = vcmp.gt.f32.partialorder %v4146_v47, 0.0 }
0x49fe   :  { %v5858_v55 = vadd.f32 -1.0, %v6486_v58 }
0x49ff   :  { %6487 = vpow2.f32 %v4152_v25  ;;  %v4059_v25 = vadd.f32 %v8188_v27, %v6828_v49 }
0x4a00   :  { %v8224_v33 = vsel %vm4148_vm7, %v4144_v59, %v5858_v55 }
0x4a05   :  { %v6488_v11 = vpop.eup %6487 }
0x4a06   :  { %v5859_v35 = vadd.f32 -1.0, %v6488_v11 }
0x4a08   :  { %v8226_v4 = vsel %vm4149_vm8, %v4146_v47, %v5859_v35 }
0x4a09   :  { %v4158_v3 = vpack.c.bf16 %v8226_v4, %v8224_v33 }
0x4a0b   :  { %5860 = vmatmul.msk.bf16.vlgmr.msra.gmra.mxu3 %vm68_vm2, %v4158_v3 }
0x4a0c   :  { %4434 = vmatpush.bf16.msra.mxu3 %v8086_v45 }
0x4a10   :  { %4435 = vmatpush.bf16.msra.mxu3 %v8095_v5 }
0x4a8e   :  { %v4171_v37 = vpop.f32.mrf.mxu3 }
0x4a8f   :  { %v4176_v29 = vmul.f32 0.025, %v4171_v37 }
0x4a91   :  { %v4178_v41 = vadd.f32 %v4176_v29, %v4056_v9 }
0x4a93   :  { %v4182_v43 = vmul.f32 1.442695, %v4178_v41  ;;  %vm4180_vm9 = vcmp.gt.f32.partialorder %v4178_v41, 0.0 }
0x4a95   :  { %6489 = vpow2.f32 %v4182_v43 }
0x4a96   :  { %v8233_v22 = vpop.f32.mrf.mxu3 }
0x4a97   :  { %v4177_v42 = vmul.f32 0.025, %v8233_v22 }
0x4a99   :  { %v4179_v54 = vadd.f32 %v4177_v42, %v4057_v56 }
0x4a9b   :  { %v4184_v62 = vmul.f32 1.442695, %v4179_v54  ;;  %v6490_v17 = vpop.eup %6489  ;;  %vm4181_vm10 = vcmp.gt.f32.partialorder %v4179_v54, 0.0 }
0x4a9c   :  { %v5861_v34 = vadd.f32 -1.0, %v6490_v17 }
0x4a9d   :  { %6491 = vpow2.f32 %v4184_v62 }
0x4a9e   :  { %v4188_v46 = vsel %vm4180_vm9, %v4178_v41, %v5861_v34 }
0x4aa3   :  { %v6492_v23 = vpop.eup %6491 }
0x4aa4   :  { %v5862_v13 = vadd.f32 -1.0, %v6492_v23 }
0x4aa6   :  { %v4189_v50 = vsel %vm4181_vm10, %v4179_v54, %v5862_v13 }
0x4aa7   :  { %v4190_v21 = vpack.c.bf16 %v4189_v50, %v4188_v46 }
0x4aa9   :  { %5863 = vmatmul.msk.bf16.vlgmr.msrb.gmra.mxu0 %vm68_vm2, %v4190_v21 }
0x4aaa   :  { %4466 = vmatpush.bf16.msrb.mxu0 %v8038_v19 }
0x4aae   :  { %4467 = vmatpush.bf16.msrb.mxu0 %v8044_v61 }
0x4b26   :  { %v4203_v26 = vpop.f32.mrf.mxu0 }
0x4b27   :  { %v4204_v48 = vadd.f32 %v8066_v38, %v4203_v26 }
0x4b29   :  { %v4210_v51 = vmul.f32 1.442695, %v4204_v48  ;;  %vm4208_vm11 = vcmp.gt.f32.partialorder %v4204_v48, 0.0 }
0x4b2b   :  { %6493 = vpow2.f32 %v4210_v51 }
0x4b2e   :  { %v4205_v9 = vpop.f32.mrf.mxu0 }
0x4b2f   :  { %v4206_v28 = vadd.f32 %v8072_v20, %v4205_v9 }
0x4b31   :  { %v4212_v15 = vmul.f32 1.442695, %v4206_v28  ;;  %v6494_v40 = vpop.eup %6493  ;;  %vm4209_vm12 = vcmp.gt.f32.partialorder %v4206_v28, 0.0 }
0x4b32   :  { %v5864_v56 = vadd.f32 -1.0, %v6494_v40 }
0x4b33   :  { %6495 = vpow2.f32 %v4212_v15 }
0x4b34   :  { %v4216_v2 = vsel %vm4208_vm11, %v4204_v48, %v5864_v56 }
0x4b35   :  { %v4312_v23 = vadd.f32 %v4216_v2, %v8224_v33 }
0x4b37   :  { %v4314_v21 = vmul.f32 2.0, %v4312_v23 }
0x4b39   :  { %v6496_v14 = vpop.eup %6495 }
0x4b3a   :  { %v5865_v7 = vadd.f32 -1.0, %v6496_v14 }
0x4b3c   :  { %v4217_v8 = vsel %vm4209_vm12, %v4206_v28, %v5865_v7 }
0x4b3d   :  { %v4218_v30 = vpack.c.bf16 %v4217_v8, %v4216_v2  ;;  %v4313_v9 = vadd.f32 %v4217_v8, %v8226_v4 }
0x4b3f   :  { %5866 = vmatmul.msk.bf16.vlgmr.msrb.gmra.mxu1 %vm68_vm2, %v4218_v30  ;;  %v4315_v33 = vmul.f32 2.0, %v4313_v9 }
0x4b40   :  { %4494 = vmatpush.bf16.msrb.mxu1 %v8086_v45 }
0x4b44   :  { %4495 = vmatpush.bf16.msrb.mxu1 %v8095_v5 }
0x4bbc   :  { %v4231_v6 = vpop.f32.mrf.mxu1 }
0x4bbd   :  { %v4236_v24 = vmul.f32 0.05, %v4231_v6  ;;  %v4296_v52 = vadd.f32 %v4231_v6, %v4171_v37 }
0x4bbf   :  { %v4238_v16 = vadd.f32 %v4236_v24, %v4058_v1  ;;  %v4298_v32 = vmul.f32 2.0, %v4296_v52 }
0x4bc1   :  { %v4300_v59 = vadd.f32 %v4298_v32, %v8209_v18  ;;  %v4242_v57 = vmul.f32 1.442695, %v4238_v16  ;;  %vm4240_vm13 = vcmp.gt.f32.partialorder %v4238_v16, 0.0 }
0x4bc3   :  { %v4302_v0 = vmul.f32 0.008333334, %v4300_v59  ;;  %6497 = vpow2.f32 %v4242_v57 }
0x4bc4   :  { %v4233_v47 = vpop.f32.mrf.mxu1 }
0x4bc5   :  { %v4237_v58 = vmul.f32 0.05, %v4233_v47  ;;  %v4304_v55 = vadd.f32 %v4302_v0, %v4058_v1 }
0x4bc7   :  { %v4239_v11 = vadd.f32 %v4237_v58, %v4059_v25 }
0x4bc9   :  { %v4244_v35 = vmul.f32 1.442695, %v4239_v11  ;;  %v6498_v3 = vpop.eup %6497  ;;  %vm4241_vm14 = vcmp.gt.f32.partialorder %v4239_v11, 0.0 }
0x4bca   :  { %v5867_v63 = vadd.f32 -1.0, %v6498_v3 }
0x4bcb   :  { %6499 = vpow2.f32 %v4244_v35 }
0x4bcc   :  { %v4248_v41 = vsel %vm4240_vm13, %v4238_v16, %v5867_v63 }
0x4bd1   :  { %v6500_v29 = vpop.eup %6499 }
0x4bd2   :  { %v5868_v37 = vadd.f32 -1.0, %v6500_v29 }
0x4bd4   :  { %v4249_v18 = vsel %vm4241_vm14, %v4239_v11, %v5868_v37 }
0x4bd5   :  { %v4250_v43 = vpack.c.bf16 %v4249_v18, %v4248_v41 }
0x4bd7   :  { %5869 = vmatmul.msk.bf16.vlgmr.msrb.gmra.mxu2 %vm68_vm2, %v4250_v43 }
0x4bd8   :  { %4526 = vmatpush.bf16.msrb.mxu2 %v8038_v19 }
0x4bdc   :  { %4527 = vmatpush.bf16.msrb.mxu2 %v8044_v61 }
0x4c5a   :  { %v4263_v27 = vpop.f32.mrf.mxu2 }
0x4c5b   :  { %v4264_v42 = vadd.f32 %v8066_v38, %v4263_v27 }
0x4c5d   :  { %v4270_v54 = vmul.f32 1.442695, %v4264_v42  ;;  %vm4268_vm15 = vcmp.gt.f32.partialorder %v4264_v42, 0.0 }
0x4c5f   :  { %6501 = vpow2.f32 %v4270_v54 }
0x4c62   :  { %v4265_v62 = vpop.f32.mrf.mxu2 }
0x4c63   :  { %v4266_v17 = vadd.f32 %v8072_v20, %v4265_v62 }
0x4c65   :  { %v6502_v34 = vpop.eup %6501  ;;  %v4272_v13 = vmul.f32 1.442695, %v4266_v17  ;;  %vm4269_vm0 = vcmp.gt.f32.partialorder %v4266_v17, 0.0 }
0x4c66   :  { %v5870_v46 = vadd.f32 -1.0, %v6502_v34 }
0x4c67   :  { %6503 = vpow2.f32 %v4272_v13 }
0x4c68   :  { %v4276_v50 = vsel %vm4268_vm15, %v4264_v42, %v5870_v46 }
0x4c69   :  { %v4310_v26 = vadd.f32 %v4276_v50, %v8200_v10 }
0x4c6b   :  { %v4316_v48 = vadd.f32 %v4314_v21, %v4310_v26 }
0x4c6d   :  { %v6504_v51 = vpop.eup %6503  ;;  %v4318_v28 = vmul.f32 0.008333334, %v4316_v48 }
0x4c6e   :  { %v5871_v15 = vadd.f32 -1.0, %v6504_v51 }
0x4c6f   :  { %v8258_v40 = vadd.f32 %v4318_v28, %v8174_v12  ;;  %v4297_v12 = vadd.f32 %v4233_v47, %v8233_v22 }
0x4c70   :  { %v4277_v56 = vsel %vm4269_vm0, %v4266_v17, %v5871_v15 }
0x4c71   :  { %v4278_v14 = vpack.c.bf16 %v4277_v56, %v4276_v50  ;;  %v4311_v7 = vadd.f32 %v4277_v56, %v8202_v60  ;;  %v4299_v4 = vmul.f32 2.0, %v4297_v12 }
0x4c73   :  { %v4317_v2 = vadd.f32 %v4315_v33, %v4311_v7  ;;  %5872 = vmatmul.msk.bf16.vlgmr.msrb.gmra.mxu3 %vm68_vm2, %v4278_v14  ;;  %v4301_v6 = vadd.f32 %v4299_v4, %v8214_v39  ;;  %v8307_v14 = vld [vmem:[%s8649_s1 + $0x8] sm:$0xff]  ;;  %v8313_v7 = vld [vmem:[%s8649_s1] sm:$0xff] }
0x4c74   :  { %4554 = vmatpush.bf16.msrb.mxu3 %v8086_v45 }
0x4c75   :  { %v4319_v10 = vmul.f32 0.008333334, %v4317_v2  ;;  %v4303_v60 = vmul.f32 0.008333334, %v4301_v6 }
0x4c77   :  { %v8264_v30 = vadd.f32 %v4319_v10, %v8180_v53  ;;  %v4305_v32 = vadd.f32 %v4303_v60, %v4059_v25 }
0x4c78   :  { %4555 = vmatpush.bf16.msrb.mxu3 %v8095_v5 }
0x4cf6   :  { %v4291_v8 = vpop.f32.mrf.mxu3 }
0x4cf7   :  { %v4306_v1 = vmul.f32 0.008333334, %v4291_v8 }
0x4cf9   :  { %v8269_v24 = vadd.f32 %v4306_v1, %v4304_v55 }
0x4cfb   :  { %v4328_v52 = vmul.f32 1.442695, %v8269_v24  ;;  %vm4326_vm1 = vcmp.gt.f32.partialorder %v8269_v24, 0.0  ;;  %v4322_v62 = vadd.f32 %v8269_v24, %v6777_v31 }
0x4cfd   :  { %6505 = vpow2.f32 %v4328_v52 }
0x4cfe   :  { %v4293_v16 = vpop.f32.mrf.mxu3 }
0x4cff   :  { %v4307_v59 = vmul.f32 0.008333334, %v4293_v16 }
0x4d01   :  { %v8272_v53 = vadd.f32 %v4307_v59, %v4305_v32 }
0x4d03   :  { %v4330_v57 = vmul.f32 1.442695, %v8272_v53  ;;  %v6506_v22 = vpop.eup %6505  ;;  %vm4327_vm3 = vcmp.gt.f32.partialorder %v8272_v53, 0.0  ;;  %v4323_v46 = vadd.f32 %v8272_v53, %v6790_v36 }
0x4d04   :  { %v5873_v0 = vadd.f32 -1.0, %v6506_v22 }
0x4d05   :  { %6507 = vpow2.f32 %v4330_v57 }
0x4d06   :  { %v4334_v39 = vsel %vm4326_vm1, %v8269_v24, %v5873_v0 }
0x4d0b   :  { %v6508_v47 = vpop.eup %6507 }
0x4d0c   :  { %v5874_v58 = vadd.f32 -1.0, %v6508_v47 }
0x4d0e   :  { %v4335_v55 = vsel %vm4327_vm3, %v8272_v53, %v5874_v58 }
0x4d0f   :  { %v4336_v25 = vpack.c.bf16 %v4335_v55, %v4334_v39 }
0x4d11   :  { %5875 = vmatmul.msk.bf16.vlgmr.msra.gmra.mxu0 %vm68_vm2, %v4336_v25 }
0x4d12   :  { %4612 = vmatpush.bf16.msra.mxu0 %v8038_v19 }
0x4d16   :  { %4613 = vmatpush.bf16.msra.mxu0 %v8044_v61 }
0x4d8e   :  { %v4349_v11 = vpop.f32.mrf.mxu0 }
0x4d8f   :  { %v4350_v35 = vadd.f32 %v8066_v38, %v4349_v11 }
0x4d91   :  { %v4356_v3 = vmul.f32 1.442695, %v4350_v35  ;;  %vm4354_vm4 = vcmp.gt.f32.partialorder %v4350_v35, 0.0 }
0x4d93   :  { %6509 = vpow2.f32 %v4356_v3 }
0x4d96   :  { %v4351_v63 = vpop.f32.mrf.mxu0 }
0x4d97   :  { %v4352_v29 = vadd.f32 %v8072_v20, %v4351_v63 }
0x4d99   :  { %v4358_v37 = vmul.f32 1.442695, %v4352_v29  ;;  %v6510_v41 = vpop.eup %6509  ;;  %vm4355_vm5 = vcmp.gt.f32.partialorder %v4352_v29, 0.0 }
0x4d9a   :  { %v5876_v18 = vadd.f32 -1.0, %v6510_v41 }
0x4d9b   :  { %6511 = vpow2.f32 %v4358_v37  ;;  %v8336_v37 = vld [vmem:[%s8650_s2 + $0x10] sm:$0xff] }
0x4d9c   :  { %v8284_v42 = vsel %vm4354_vm4, %v4350_v35, %v5876_v18 }
0x4da1   :  { %v6512_v43 = vpop.eup %6511 }
0x4da2   :  { %v5877_v27 = vadd.f32 -1.0, %v6512_v43 }
0x4da4   :  { %v8286_v19 = vsel %vm4355_vm5, %v4352_v29, %v5877_v27  ;;  %v8342_v27 = vld [vmem:[%s8650_s2 + $0x18] sm:$0xff] }
0x4da5   :  { %v4364_v61 = vpack.c.bf16 %v8286_v19, %v8284_v42 }
0x4da7   :  { %5878 = vmatmul.msk.bf16.vlgmr.msra.gmra.mxu1 %vm68_vm2, %v4364_v61 }
0x4da8   :  { %4640 = vmatpush.bf16.msra.mxu1 %v8086_v45 }
0x4dac   :  { %4641 = vmatpush.bf16.msra.mxu1 %v8095_v5 }
0x4e24   :  { %v8293_v54 = vpop.f32.mrf.mxu1 }
0x4e25   :  { %v4382_v17 = vmul.f32 0.025, %v8293_v54 }
0x4e27   :  { %v4384_v34 = vadd.f32 %v4382_v17, %v4322_v62 }
0x4e29   :  { %v4388_v23 = vmul.f32 1.442695, %v4384_v34  ;;  %vm4386_vm6 = vcmp.gt.f32.partialorder %v4384_v34, 0.0 }
0x4e2b   :  { %6513 = vpow2.f32 %v4388_v23 }
0x4e2c   :  { %v8298_v13 = vpop.f32.mrf.mxu1 }
0x4e2d   :  { %v4383_v50 = vmul.f32 0.025, %v8298_v13 }
0x4e2f   :  { %v4385_v21 = vadd.f32 %v4383_v50, %v4323_v46 }
0x4e31   :  { %v4390_v26 = vmul.f32 1.442695, %v4385_v21  ;;  %v6514_v48 = vpop.eup %6513  ;;  %vm4387_vm7 = vcmp.gt.f32.partialorder %v4385_v21, 0.0 }
0x4e32   :  { %v5879_v51 = vadd.f32 -1.0, %v6514_v48  ;;  %v8349_v48 = vld [vmem:[%s8649_s1 + $0x18] sm:$0xff] }
0x4e33   :  { %6515 = vpow2.f32 %v4390_v26 }
0x4e34   :  { %v4394_v15 = vsel %vm4386_vm6, %v4384_v34, %v5879_v51  ;;  %v8355_v51 = vld [vmem:[%s8649_s1 + $0x10] sm:$0xff] }
0x4e39   :  { %v6516_v9 = vpop.eup %6515 }
0x4e3a   :  { %v5880_v28 = vadd.f32 -1.0, %v6516_v9 }
0x4e3c   :  { %v4395_v56 = vsel %vm4387_vm7, %v4385_v21, %v5880_v28  ;;  %v4324_v28 = vadd.f32 %v8269_v24, %v6823_v44 }
0x4e3d   :  { %v4396_v33 = vpack.c.bf16 %v4395_v56, %v4394_v15 }
0x4e3f   :  { %5881 = vmatmul.msk.bf16.vlgmr.msra.gmra.mxu2 %vm68_vm2, %v4396_v33 }
0x4e40   :  { %4672 = vmatpush.bf16.msra.mxu2 %v8307_v14 }
0x4e44   :  { %4673 = vmatpush.bf16.msra.mxu2 %v8313_v7 }
0x4ec2   :  { %v4409_v2 = vpop.f32.mrf.mxu2 }
0x4ec3   :  { %v4410_v10 = vadd.f32 %v8066_v38, %v4409_v2 }
0x4ec5   :  { %v4416_v12 = vmul.f32 1.442695, %v4410_v10  ;;  %vm4414_vm8 = vcmp.gt.f32.partialorder %v4410_v10, 0.0 }
0x4ec7   :  { %6517 = vpow2.f32 %v4416_v12 }
0x4eca   :  { %v4411_v4 = vpop.f32.mrf.mxu2 }
0x4ecb   :  { %v4412_v8 = vadd.f32 %v8072_v20, %v4411_v4 }
0x4ecd   :  { %v4418_v6 = vmul.f32 1.442695, %v4412_v8  ;;  %v6518_v1 = vpop.eup %6517  ;;  %vm4415_vm9 = vcmp.gt.f32.partialorder %v4412_v8, 0.0 }
0x4ece   :  { %v5882_v60 = vadd.f32 -1.0, %v6518_v1 }
0x4ecf   :  { %6519 = vpow2.f32 %v4418_v6  ;;  %v4325_v6 = vadd.f32 %v8272_v53, %v6828_v49 }
0x4ed0   :  { %v8318_v32 = vsel %vm4414_vm8, %v4410_v10, %v5882_v60 }
0x4ed5   :  { %v6520_v52 = vpop.eup %6519 }
0x4ed6   :  { %v5883_v16 = vadd.f32 -1.0, %v6520_v52 }
0x4ed8   :  { %v8320_v59 = vsel %vm4415_vm9, %v4412_v8, %v5883_v16 }
0x4ed9   :  { %v4424_v38 = vpack.c.bf16 %v8320_v59, %v8318_v32 }
0x4edb   :  { %5884 = vmatmul.msk.bf16.vlgmr.msra.gmra.mxu3 %vm68_vm2, %v4424_v38 }
0x4edc   :  { %4700 = vmatpush.bf16.msra.mxu3 %v8086_v45 }
0x4ee0   :  { %4701 = vmatpush.bf16.msra.mxu3 %v8095_v5 }
0x4f5e   :  { %v4437_v20 = vpop.f32.mrf.mxu3 }
0x4f5f   :  { %v4442_v57 = vmul.f32 0.025, %v4437_v20 }
0x4f61   :  { %v4444_v22 = vadd.f32 %v4442_v57, %v4322_v62 }
0x4f63   :  { %v4448_v0 = vmul.f32 1.442695, %v4444_v22  ;;  %vm4446_vm10 = vcmp.gt.f32.partialorder %v4444_v22, 0.0 }
0x4f65   :  { %6521 = vpow2.f32 %v4448_v0 }
0x4f66   :  { %v8327_v47 = vpop.f32.mrf.mxu3 }
0x4f67   :  { %v4443_v58 = vmul.f32 0.025, %v8327_v47 }
0x4f69   :  { %v4445_v39 = vadd.f32 %v4443_v58, %v4323_v46 }
0x4f6b   :  { %v4450_v55 = vmul.f32 1.442695, %v4445_v39  ;;  %v6522_v25 = vpop.eup %6521  ;;  %vm4447_vm11 = vcmp.gt.f32.partialorder %v4445_v39, 0.0 }
0x4f6c   :  { %v5885_v11 = vadd.f32 -1.0, %v6522_v25 }
0x4f6d   :  { %6523 = vpow2.f32 %v4450_v55 }
0x4f6e   :  { %v4454_v45 = vsel %vm4446_vm10, %v4444_v22, %v5885_v11 }
0x4f73   :  { %v6524_v35 = vpop.eup %6523 }
0x4f74   :  { %v5886_v3 = vadd.f32 -1.0, %v6524_v35 }
0x4f76   :  { %v4455_v5 = vsel %vm4447_vm11, %v4445_v39, %v5886_v3 }
0x4f77   :  { %v4456_v63 = vpack.c.bf16 %v4455_v5, %v4454_v45 }
0x4f79   :  { %5887 = vmatmul.msk.bf16.vlgmr.msrb.gmra.mxu0 %vm68_vm2, %v4456_v63 }
0x4f7a   :  { %4732 = vmatpush.bf16.msrb.mxu0 %v8307_v14 }
0x4f7e   :  { %4733 = vmatpush.bf16.msrb.mxu0 %v8313_v7 }
0x4ff6   :  { %v4469_v29 = vpop.f32.mrf.mxu0 }
0x4ff7   :  { %v4470_v41 = vadd.f32 %v8336_v37, %v4469_v29 }
0x4ff9   :  { %v4476_v18 = vmul.f32 1.442695, %v4470_v41  ;;  %vm4474_vm12 = vcmp.gt.f32.partialorder %v4470_v41, 0.0 }
0x4ffb   :  { %6525 = vpow2.f32 %v4476_v18 }
0x4ffe   :  { %v4471_v43 = vpop.f32.mrf.mxu0 }
0x4fff   :  { %v4472_v61 = vadd.f32 %v8342_v27, %v4471_v43 }
0x5001   :  { %v4478_v62 = vmul.f32 1.442695, %v4472_v61  ;;  %v6526_v17 = vpop.eup %6525  ;;  %vm4475_vm13 = vcmp.gt.f32.partialorder %v4472_v61, 0.0 }
0x5002   :  { %v5888_v34 = vadd.f32 -1.0, %v6526_v17 }
0x5003   :  { %6527 = vpow2.f32 %v4478_v62 }
0x5004   :  { %v4482_v50 = vsel %vm4474_vm12, %v4470_v41, %v5888_v34 }
0x5005   :  { %v4578_v35 = vadd.f32 %v4482_v50, %v8318_v32 }
0x5007   :  { %v4580_v63 = vmul.f32 2.0, %v4578_v35 }
0x5009   :  { %v6528_v23 = vpop.eup %6527 }
0x500a   :  { %v5889_v46 = vadd.f32 -1.0, %v6528_v23 }
0x500c   :  { %v4483_v21 = vsel %vm4475_vm13, %v4472_v61, %v5889_v46 }
0x500d   :  { %v4484_v26 = vpack.c.bf16 %v4483_v21, %v4482_v50  ;;  %v4579_v43 = vadd.f32 %v4483_v21, %v8320_v59 }
0x500f   :  { %5890 = vmatmul.msk.bf16.vlgmr.msrb.gmra.mxu1 %vm68_vm2, %v4484_v26  ;;  %v4581_v32 = vmul.f32 2.0, %v4579_v43 }
0x5010   :  { %4760 = vmatpush.bf16.msrb.mxu1 %v8349_v48 }
0x5014   :  { %4761 = vmatpush.bf16.msrb.mxu1 %v8355_v51 }
0x508c   :  { %v4497_v9 = vpop.f32.mrf.mxu1 }
0x508d   :  { %v4502_v15 = vmul.f32 0.05, %v4497_v9  ;;  %v4562_v56 = vadd.f32 %v4497_v9, %v4437_v20 }
0x508f   :  { %v4504_v33 = vadd.f32 %v4502_v15, %v4324_v28  ;;  %v4564_v2 = vmul.f32 2.0, %v4562_v56 }
0x5091   :  { %v4566_v10 = vadd.f32 %v4564_v2, %v8293_v54  ;;  %v4508_v12 = vmul.f32 1.442695, %v4504_v33  ;;  %vm4506_vm14 = vcmp.gt.f32.partialorder %v4504_v33, 0.0 }
0x5093   :  { %v4568_v4 = vmul.f32 0.008333334, %v4566_v10  ;;  %6529 = vpow2.f32 %v4508_v12 }
0x5094   :  { %v4499_v8 = vpop.f32.mrf.mxu1 }
0x5095   :  { %v4503_v1 = vmul.f32 0.05, %v4499_v8  ;;  %v4570_v60 = vadd.f32 %v4568_v4, %v4324_v28 }
0x5097   :  { %v4505_v52 = vadd.f32 %v4503_v1, %v4325_v6 }
0x5099   :  { %v4510_v16 = vmul.f32 1.442695, %v4505_v52  ;;  %v6530_v38 = vpop.eup %6529  ;;  %vm4507_vm15 = vcmp.gt.f32.partialorder %v4505_v52, 0.0 }
0x509a   :  { %v5891_v24 = vadd.f32 -1.0, %v6530_v38 }
0x509b   :  { %6531 = vpow2.f32 %v4510_v16 }
0x509c   :  { %v4514_v22 = vsel %vm4506_vm14, %v4504_v33, %v5891_v24 }
0x50a1   :  { %v6532_v57 = vpop.eup %6531 }
0x50a2   :  { %v5892_v20 = vadd.f32 -1.0, %v6532_v57 }
0x50a4   :  { %v4515_v54 = vsel %vm4507_vm15, %v4505_v52, %v5892_v20 }
0x50a5   :  { %v4516_v0 = vpack.c.bf16 %v4515_v54, %v4514_v22 }
0x50a7   :  { %5893 = vmatmul.msk.bf16.vlgmr.msrb.gmra.mxu2 %vm68_vm2, %v4516_v0 }
0x50a8   :  { %4792 = vmatpush.bf16.msrb.mxu2 %v8307_v14 }
0x50ac   :  { %4793 = vmatpush.bf16.msrb.mxu2 %v8313_v7 }
0x512a   :  { %v4529_v53 = vpop.f32.mrf.mxu2 }
0x512b   :  { %v4530_v58 = vadd.f32 %v8336_v37, %v4529_v53 }
0x512d   :  { %v4536_v39 = vmul.f32 1.442695, %v4530_v58  ;;  %vm4534_vm0 = vcmp.gt.f32.partialorder %v4530_v58, 0.0 }
0x512f   :  { %6533 = vpow2.f32 %v4536_v39 }
0x5132   :  { %v4531_v55 = vpop.f32.mrf.mxu2 }
0x5133   :  { %v4532_v25 = vadd.f32 %v8342_v27, %v4531_v55 }
0x5135   :  { %v6534_v11 = vpop.eup %6533  ;;  %v4538_v3 = vmul.f32 1.442695, %v4532_v25  ;;  %vm4535_vm1 = vcmp.gt.f32.partialorder %v4532_v25, 0.0 }
0x5136   :  { %v5894_v45 = vadd.f32 -1.0, %v6534_v11 }
0x5137   :  { %6535 = vpow2.f32 %v4538_v3 }
0x5138   :  { %v4542_v5 = vsel %vm4534_vm0, %v4530_v58, %v5894_v45 }
0x5139   :  { %v4576_v29 = vadd.f32 %v4542_v5, %v8284_v42 }
0x513b   :  { %v4582_v41 = vadd.f32 %v4580_v63, %v4576_v29 }
0x513d   :  { %v6536_v18 = vpop.eup %6535  ;;  %v4584_v61 = vmul.f32 0.008333334, %v4582_v41 }
0x513e   :  { %v5895_v62 = vadd.f32 -1.0, %v6536_v18 }
0x513f   :  { %v8372_v17 = vadd.f32 %v4584_v61, %v8258_v40  ;;  %v4563_v40 = vadd.f32 %v4499_v8, %v8327_v47 }
0x5140   :  { %v4543_v34 = vsel %vm4535_vm1, %v4532_v25, %v5895_v62 }
0x5141   :  { %v4544_v23 = vpack.c.bf16 %v4543_v34, %v4542_v5  ;;  %v4577_v46 = vadd.f32 %v4543_v34, %v8286_v19  ;;  %v4565_v59 = vmul.f32 2.0, %v4563_v40 }
0x5143   :  { %v4583_v50 = vadd.f32 %v4581_v32, %v4577_v46  ;;  %5896 = vmatmul.msk.bf16.vlgmr.msrb.gmra.mxu3 %vm68_vm2, %v4544_v23  ;;  %v4567_v9 = vadd.f32 %v4565_v59, %v8298_v13 }
0x5144   :  { %4820 = vmatpush.bf16.msrb.mxu3 %v8349_v48 }
0x5145   :  { %v4585_v42 = vmul.f32 0.008333334, %v4583_v50  ;;  %v4569_v19 = vmul.f32 0.008333334, %v4567_v9 }
0x5147   :  { %v8378_v26 = vadd.f32 %v4585_v42, %v8264_v30  ;;  %v4571_v2 = vadd.f32 %v4569_v19, %v4325_v6 }
0x5148   :  { %4821 = vmatpush.bf16.msrb.mxu3 %v8355_v51 }
0x51c6   :  { %v4557_v21 = vpop.f32.mrf.mxu3 }
0x51c7   :  { %v4572_v28 = vmul.f32 0.008333334, %v4557_v21 }
0x51c9   :  { %v8383_v15 = vadd.f32 %v4572_v28, %v4570_v60 }
0x51cb   :  { %v4594_v56 = vmul.f32 1.442695, %v8383_v15  ;;  %vm4592_vm3 = vcmp.gt.f32.partialorder %v8383_v15, 0.0  ;;  %v4588_v11 = vadd.f32 %v8383_v15, %v6777_v31 }
0x51cd   :  { %6537 = vpow2.f32 %v4594_v56 }
0x51ce   :  { %v4559_v33 = vpop.f32.mrf.mxu3 }
0x51cf   :  { %v4573_v10 = vmul.f32 0.008333334, %v4559_v33 }
0x51d1   :  { %v8386_v30 = vadd.f32 %v4573_v10, %v4571_v2 }
0x51d3   :  { %v4596_v12 = vmul.f32 1.442695, %v8386_v30  ;;  %v6538_v47 = vpop.eup %6537  ;;  %vm4593_vm4 = vcmp.gt.f32.partialorder %v8386_v30, 0.0  ;;  %v4589_v63 = vadd.f32 %v8386_v30, %v6790_v36 }
0x51d4   :  { %v5897_v4 = vadd.f32 -1.0, %v6538_v47 }
0x51d5   :  { %6539 = vpow2.f32 %v4596_v12 }
0x51d6   :  { %v4600_v13 = vsel %vm4592_vm3, %v8383_v15, %v5897_v4 }
0x51db   :  { %v6540_v8 = vpop.eup %6539 }
0x51dc   :  { %v5898_v1 = vadd.f32 -1.0, %v6540_v8 }
0x51de   :  { %v4601_v60 = vsel %vm4593_vm4, %v8386_v30, %v5898_v1 }
0x51df   :  { %v4602_v6 = vpack.c.bf16 %v4601_v60, %v4600_v13 }
0x51e1   :  { %5899 = vmatmul.msk.bf16.vlgmr.msra.gmra.mxu0 %vm68_vm2, %v4602_v6 }
0x51e2   :  { %4878 = vmatpush.bf16.msra.mxu0 %v8307_v14 }
0x51e6   :  { %4879 = vmatpush.bf16.msra.mxu0 %v8313_v7 }
0x525e   :  { %v4615_v52 = vpop.f32.mrf.mxu0 }
0x525f   :  { %v4616_v16 = vadd.f32 %v8336_v37, %v4615_v52 }
0x5261   :  { %v4622_v38 = vmul.f32 1.442695, %v4616_v16  ;;  %vm4620_vm5 = vcmp.gt.f32.partialorder %v4616_v16, 0.0 }
0x5263   :  { %6541 = vpow2.f32 %v4622_v38 }
0x5266   :  { %v4617_v24 = vpop.f32.mrf.mxu0 }
0x5267   :  { %v4618_v57 = vadd.f32 %v8342_v27, %v4617_v24 }
0x5269   :  { %v4624_v20 = vmul.f32 1.442695, %v4618_v57  ;;  %v6542_v22 = vpop.eup %6541  ;;  %vm4621_vm6 = vcmp.gt.f32.partialorder %v4618_v57, 0.0 }
0x526a   :  { %v5900_v54 = vadd.f32 -1.0, %v6542_v22 }
0x526b   :  { %6543 = vpow2.f32 %v4624_v20 }
0x526c   :  { %v8398_v58 = vsel %vm4620_vm5, %v4616_v16, %v5900_v54 }
0x5271   :  { %v6544_v0 = vpop.eup %6543 }
0x5272   :  { %v5901_v53 = vadd.f32 -1.0, %v6544_v0 }
0x5274   :  { %v8400_v39 = vsel %vm4621_vm6, %v4618_v57, %v5901_v53 }
0x5275   :  { %v4630_v55 = vpack.c.bf16 %v8400_v39, %v8398_v58 }
0x5277   :  { %5902 = vmatmul.msk.bf16.vlgmr.msra.gmra.mxu1 %vm68_vm2, %v4630_v55 }
0x5278   :  { %4906 = vmatpush.bf16.msra.mxu1 %v8349_v48 }
0x527c   :  { %4907 = vmatpush.bf16.msra.mxu1 %v8355_v51 }
0x52f4   :  { %v8407_v25 = vpop.f32.mrf.mxu1 }
0x52f5   :  { %v4648_v35 = vmul.f32 0.025, %v8407_v25 }
0x52f7   :  { %v4650_v3 = vadd.f32 %v4648_v35, %v4588_v11 }
0x52f9   :  { %v4654_v45 = vmul.f32 1.442695, %v4650_v3  ;;  %vm4652_vm7 = vcmp.gt.f32.partialorder %v4650_v3, 0.0 }
0x52fb   :  { %6545 = vpow2.f32 %v4654_v45 }
0x52fc   :  { %v8412_v5 = vpop.f32.mrf.mxu1 }
0x52fd   :  { %v4649_v29 = vmul.f32 0.025, %v8412_v5 }
0x52ff   :  { %v4651_v41 = vadd.f32 %v4649_v29, %v4589_v63 }
0x5301   :  { %v4656_v18 = vmul.f32 1.442695, %v4651_v41  ;;  %v6546_v43 = vpop.eup %6545  ;;  %vm4653_vm8 = vcmp.gt.f32.partialorder %v4651_v41, 0.0 }
0x5302   :  { %v5903_v61 = vadd.f32 -1.0, %v6546_v43 }
0x5303   :  { %6547 = vpow2.f32 %v4656_v18 }
0x5304   :  { %v4660_v32 = vsel %vm4652_vm7, %v4650_v3, %v5903_v61 }
0x5309   :  { %v6548_v62 = vpop.eup %6547 }
0x530a   :  { %v5904_v34 = vadd.f32 -1.0, %v6548_v62 }
0x530c   :  { %v4661_v23 = vsel %vm4653_vm8, %v4651_v41, %v5904_v34  ;;  %v4590_v34 = vadd.f32 %v8383_v15, %v6823_v44 }
0x530d   :  { %v4662_v46 = vpack.c.bf16 %v4661_v23, %v4660_v32 }
0x530f   :  { %5905 = vmatmul.msk.bf16.vlgmr.msra.gmra.mxu2 %vm68_vm2, %v4662_v46 }
0x5310   :  { %4938 = vmatpush.bf16.msra.mxu2 %v8307_v14 }
0x5314   :  { %4939 = vmatpush.bf16.msra.mxu2 %v8313_v7 }
0x5392   :  { %v4675_v50 = vpop.f32.mrf.mxu2 }
0x5393   :  { %v4676_v42 = vadd.f32 %v8336_v37, %v4675_v50 }
0x5395   :  { %v4682_v40 = vmul.f32 1.442695, %v4676_v42  ;;  %vm4680_vm9 = vcmp.gt.f32.partialorder %v4676_v42, 0.0 }
0x5397   :  { %6549 = vpow2.f32 %v4682_v40 }
0x539a   :  { %v4677_v59 = vpop.f32.mrf.mxu2 }
0x539b   :  { %v4678_v21 = vadd.f32 %v8342_v27, %v4677_v59 }
0x539d   :  { %v4684_v9 = vmul.f32 1.442695, %v4678_v21  ;;  %v6550_v28 = vpop.eup %6549  ;;  %vm4681_vm10 = vcmp.gt.f32.partialorder %v4678_v21, 0.0 }
0x539e   :  { %v5906_v19 = vadd.f32 -1.0, %v6550_v28 }
0x539f   :  { %6551 = vpow2.f32 %v4684_v9  ;;  %v4591_v9 = vadd.f32 %v8386_v30, %v6828_v49 }
0x53a0   :  { %v8422_v2 = vsel %vm4680_vm9, %v4676_v42, %v5906_v19 }
0x53a5   :  { %v6552_v56 = vpop.eup %6551 }
0x53a6   :  { %v5907_v33 = vadd.f32 -1.0, %v6552_v56 }
0x53a8   :  { %v8424_v10 = vsel %vm4681_vm10, %v4678_v21, %v5907_v33 }
0x53a9   :  { %v4690_v12 = vpack.c.bf16 %v8424_v10, %v8422_v2 }
0x53ab   :  { %5908 = vmatmul.msk.bf16.vlgmr.msra.gmra.mxu3 %vm68_vm2, %v4690_v12 }
0x53ac   :  { %4966 = vmatpush.bf16.msra.mxu3 %v8349_v48 }
0x53b0   :  { %4967 = vmatpush.bf16.msra.mxu3 %v8355_v51 }
0x542e   :  { %v4703_v47 = vpop.f32.mrf.mxu3 }
0x542f   :  { %v4708_v4 = vmul.f32 0.025, %v4703_v47 }
0x5431   :  { %v4710_v8 = vadd.f32 %v4708_v4, %v4588_v11 }
0x5433   :  { %v4714_v1 = vmul.f32 1.442695, %v4710_v8  ;;  %vm4712_vm11 = vcmp.gt.f32.partialorder %v4710_v8, 0.0 }
0x5435   :  { %6553 = vpow2.f32 %v4714_v1 }
0x5436   :  { %v8431_v13 = vpop.f32.mrf.mxu3 }
0x5437   :  { %v4709_v60 = vmul.f32 0.025, %v8431_v13 }
0x5439   :  { %v4711_v6 = vadd.f32 %v4709_v60, %v4589_v63 }
0x543b   :  { %v4716_v52 = vmul.f32 1.442695, %v4711_v6  ;;  %v6554_v16 = vpop.eup %6553  ;;  %vm4713_vm12 = vcmp.gt.f32.partialorder %v4711_v6, 0.0 }
0x543c   :  { %v5909_v38 = vadd.f32 -1.0, %v6554_v16 }
0x543d   :  { %6555 = vpow2.f32 %v4716_v52 }
0x543e   :  { %v4720_v20 = vsel %vm4712_vm11, %v4710_v8, %v5909_v38 }
0x5443   :  { %v6556_v24 = vpop.eup %6555 }
0x5444   :  { %v5910_v57 = vadd.f32 -1.0, %v6556_v24 }
0x5446   :  { %v4721_v22 = vsel %vm4713_vm12, %v4711_v6, %v5910_v57 }
0x5447   :  { %v4722_v54 = vpack.c.bf16 %v4721_v22, %v4720_v20 }
0x5449   :  { %5911 = vmatmul.msk.bf16.vlgmr.msrb.gmra.mxu0 %vm68_vm2, %v4722_v54 }
0x544a   :  { %4998 = vmatpush.bf16.msrb.mxu0 %v8307_v14 }
0x544e   :  { %4999 = vmatpush.bf16.msrb.mxu0 %v8313_v7 }
0x54c6   :  { %v4735_v0 = vpop.f32.mrf.mxu0 }
0x54c7   :  { %v4736_v53 = vadd.f32 %v8336_v37, %v4735_v0 }
0x54c9   :  { %v4742_v55 = vmul.f32 1.442695, %v4736_v53  ;;  %vm4740_vm13 = vcmp.gt.f32.partialorder %v4736_v53, 0.0 }
0x54cb   :  { %6557 = vpow2.f32 %v4742_v55 }
0x54ce   :  { %v4737_v11 = vpop.f32.mrf.mxu0 }
0x54cf   :  { %v4738_v35 = vadd.f32 %v8342_v27, %v4737_v11 }
0x54d1   :  { %v4744_v3 = vmul.f32 1.442695, %v4738_v35  ;;  %v6558_v45 = vpop.eup %6557  ;;  %vm4741_vm14 = vcmp.gt.f32.partialorder %v4738_v35, 0.0 }
0x54d2   :  { %v5912_v63 = vadd.f32 -1.0, %v6558_v45 }
0x54d3   :  { %6559 = vpow2.f32 %v4744_v3 }
0x54d4   :  { %v4748_v18 = vsel %vm4740_vm13, %v4736_v53, %v5912_v63 }
0x54d5   :  { %v4844_v24 = vadd.f32 %v4748_v18, %v8422_v2 }
0x54d7   :  { %v4846_v54 = vmul.f32 2.0, %v4844_v24 }
0x54d9   :  { %v6560_v29 = vpop.eup %6559 }
0x54da   :  { %v5913_v41 = vadd.f32 -1.0, %v6560_v29 }
0x54dc   :  { %v4749_v43 = vsel %vm4741_vm14, %v4738_v35, %v5913_v41 }
0x54dd   :  { %v4750_v61 = vpack.c.bf16 %v4749_v43, %v4748_v18  ;;  %v4845_v11 = vadd.f32 %v4749_v43, %v8424_v10 }
0x54df   :  { %5914 = vmatmul.msk.bf16.vlgmr.msrb.gmra.mxu1 %vm68_vm2, %v4750_v61  ;;  %v4847_v2 = vmul.f32 2.0, %v4845_v11 }
0x54e0   :  { %5026 = vmatpush.bf16.msrb.mxu1 %v8349_v48 }
0x54e4   :  { %5027 = vmatpush.bf16.msrb.mxu1 %v8355_v51 }
0x555c   :  { %v4763_v62 = vpop.f32.mrf.mxu1 }
0x555d   :  { %v4768_v32 = vmul.f32 0.05, %v4763_v62  ;;  %v4828_v23 = vadd.f32 %v4763_v62, %v4703_v47 }
0x555f   :  { %v4770_v46 = vadd.f32 %v4768_v32, %v4590_v34  ;;  %v4830_v50 = vmul.f32 2.0, %v4828_v23 }
0x5561   :  { %v4832_v42 = vadd.f32 %v4830_v50, %v8407_v25  ;;  %v4774_v40 = vmul.f32 1.442695, %v4770_v46  ;;  %vm4772_vm15 = vcmp.gt.f32.partialorder %v4770_v46, 0.0 }
0x5563   :  { %v4834_v59 = vmul.f32 0.008333334, %v4832_v42  ;;  %6561 = vpow2.f32 %v4774_v40 }
0x5564   :  { %v4765_v21 = vpop.f32.mrf.mxu1 }
0x5565   :  { %v4769_v28 = vmul.f32 0.05, %v4765_v21  ;;  %v4836_v19 = vadd.f32 %v4834_v59, %v4590_v34 }
0x5567   :  { %v4771_v56 = vadd.f32 %v4769_v28, %v4591_v9 }
0x5569   :  { %v4776_v33 = vmul.f32 1.442695, %v4771_v56  ;;  %v6562_v12 = vpop.eup %6561  ;;  %vm4773_vm0 = vcmp.gt.f32.partialorder %v4771_v56, 0.0 }
0x556a   :  { %v5915_v15 = vadd.f32 -1.0, %v6562_v12 }
0x556b   :  { %6563 = vpow2.f32 %v4776_v33 }
0x556c   :  { %v4780_v8 = vsel %vm4772_vm15, %v4770_v46, %v5915_v15 }
0x5571   :  { %v6564_v4 = vpop.eup %6563 }
0x5572   :  { %v5916_v47 = vadd.f32 -1.0, %v6564_v4 }
0x5574   :  { %v4781_v25 = vsel %vm4773_vm0, %v4771_v56, %v5916_v47 }
0x5575   :  { %v4782_v1 = vpack.c.bf16 %v4781_v25, %v4780_v8 }
0x5577   :  { %5917 = vmatmul.msk.bf16.vlgmr.msrb.gmra.mxu2 %vm68_vm2, %v4782_v1 }
0x5578   :  { %5058 = vmatpush.bf16.msrb.mxu2 %v8307_v14 }
0x557c   :  { %5059 = vmatpush.bf16.msrb.mxu2 %v8313_v7 }
0x55fa   :  { %v4795_v30 = vpop.f32.mrf.mxu2 }
0x55fb   :  { %v4796_v60 = vadd.f32 %v8336_v37, %v4795_v30 }
0x55fd   :  { %v4802_v6 = vmul.f32 1.442695, %v4796_v60  ;;  %vm4800_vm1 = vcmp.gt.f32.partialorder %v4796_v60, 0.0 }
0x55ff   :  { %6565 = vpow2.f32 %v4802_v6 }
0x5602   :  { %v4797_v52 = vpop.f32.mrf.mxu2 }
0x5603   :  { %v4798_v16 = vadd.f32 %v8342_v27, %v4797_v52 }
0x5605   :  { %v6566_v38 = vpop.eup %6565  ;;  %v4804_v57 = vmul.f32 1.442695, %v4798_v16  ;;  %vm4801_vm3 = vcmp.gt.f32.partialorder %v4798_v16, 0.0 }
0x5606   :  { %v5918_v20 = vadd.f32 -1.0, %v6566_v38 }
0x5607   :  { %6567 = vpow2.f32 %v4804_v57 }
0x5608   :  { %v4808_v22 = vsel %vm4800_vm1, %v4796_v60, %v5918_v20 }
0x5609   :  { %v4842_v0 = vadd.f32 %v4808_v22, %v8398_v58 }
0x560b   :  { %v4848_v53 = vadd.f32 %v4846_v54, %v4842_v0 }
0x560d   :  { %v6568_v55 = vpop.eup %6567  ;;  %v4850_v35 = vmul.f32 0.008333334, %v4848_v53 }
0x560e   :  { %v5919_v3 = vadd.f32 -1.0, %v6568_v55 }
0x560f   :  { %v8456_v45 = vadd.f32 %v4850_v35, %v8372_v17  ;;  %v4829_v17 = vadd.f32 %v4765_v21, %v8431_v13 }
0x5610   :  { %v4809_v63 = vsel %vm4801_vm3, %v4798_v16, %v5919_v3 }
0x5611   :  { %v4810_v29 = vpack.c.bf16 %v4809_v63, %v4808_v22  ;;  %v4843_v41 = vadd.f32 %v4809_v63, %v8400_v39  ;;  %v4831_v10 = vmul.f32 2.0, %v4829_v17 }
0x5613   :  { %v4849_v18 = vadd.f32 %v4847_v2, %v4843_v41  ;;  %5920 = vmatmul.msk.bf16.vlgmr.msrb.gmra.mxu3 %vm68_vm2, %v4810_v29  ;;  %v4833_v62 = vadd.f32 %v4831_v10, %v8412_v5 }
0x5614   :  { %5086 = vmatpush.bf16.msrb.mxu3 %v8349_v48 }
0x5615   :  { %v4851_v58 = vmul.f32 0.008333334, %v4849_v18  ;;  %v4835_v39 = vmul.f32 0.008333334, %v4833_v62 }
0x5617   :  { %v8462_v61 = vadd.f32 %v4851_v58, %v8378_v26  ;;  %v4837_v50 = vadd.f32 %v4835_v39, %v4591_v9 }
0x5618   :  { %5087 = vmatpush.bf16.msrb.mxu3 %v8355_v51 }
0x5696   :  { %v4823_v43 = vpop.f32.mrf.mxu3 }
0x5697   :  { %v4838_v34 = vmul.f32 0.008333334, %v4823_v43 }
0x5699   :  { %v8467_v32 = vadd.f32 %v4838_v34, %v4836_v19 }
0x569b   :  { %v4860_v23 = vmul.f32 1.442695, %v8467_v32  ;;  %vm4858_vm4 = vcmp.gt.f32.partialorder %v8467_v32, 0.0  ;;  %v4854_v38 = vadd.f32 %v8467_v32, %v6777_v31 }
0x569d   :  { %6569 = vpow2.f32 %v4860_v23 }
0x569e   :  { %v4825_v46 = vpop.f32.mrf.mxu3 }
0x569f   :  { %v4839_v42 = vmul.f32 0.008333334, %v4825_v46 }
0x56a1   :  { %v8470_v26 = vadd.f32 %v4839_v42, %v4837_v50 }
0x56a3   :  { %v4862_v40 = vmul.f32 1.442695, %v8470_v26  ;;  %v6570_v13 = vpop.eup %6569  ;;  %vm4859_vm5 = vcmp.gt.f32.partialorder %v8470_v26, 0.0  ;;  %v4855_v54 = vadd.f32 %v8470_v26, %v6790_v36 }
0x56a4   :  { %v5921_v59 = vadd.f32 -1.0, %v6570_v13 }
0x56a5   :  { %6571 = vpow2.f32 %v4862_v40 }
0x56a6   :  { %v4866_v5 = vsel %vm4858_vm4, %v8467_v32, %v5921_v59 }
0x56ab   :  { %v6572_v21 = vpop.eup %6571 }
0x56ac   :  { %v5922_v28 = vadd.f32 -1.0, %v6572_v21 }
0x56ae   :  { %v4867_v19 = vsel %vm4859_vm5, %v8470_v26, %v5922_v28 }
0x56af   :  { %v4868_v9 = vpack.c.bf16 %v4867_v19, %v4866_v5 }
0x56b1   :  { %5923 = vmatmul.msk.bf16.vlgmr.msra.gmra.mxu0 %vm68_vm2, %v4868_v9 }
0x56b2   :  { %5144 = vmatpush.bf16.msra.mxu0 %v8307_v14 }
0x56b6   :  { %5145 = vmatpush.bf16.msra.mxu0 %v8313_v7 }
0x572e   :  { %v4881_v56 = vpop.f32.mrf.mxu0 }
0x572f   :  { %v4882_v33 = vadd.f32 %v8336_v37, %v4881_v56 }
0x5731   :  { %v4888_v12 = vmul.f32 1.442695, %v4882_v33  ;;  %vm4886_vm6 = vcmp.gt.f32.partialorder %v4882_v33, 0.0 }
0x5733   :  { %6573 = vpow2.f32 %v4888_v12 }
0x5736   :  { %v4883_v15 = vpop.f32.mrf.mxu0 }
0x5737   :  { %v4884_v4 = vadd.f32 %v8342_v27, %v4883_v15 }
0x5739   :  { %v4890_v47 = vmul.f32 1.442695, %v4884_v4  ;;  %v6574_v8 = vpop.eup %6573  ;;  %vm4887_vm7 = vcmp.gt.f32.partialorder %v4884_v4, 0.0 }
0x573a   :  { %v5924_v25 = vadd.f32 -1.0, %v6574_v8 }
0x573b   :  { %6575 = vpow2.f32 %v4890_v47 }
0x573c   :  { %v8482_v60 = vsel %vm4886_vm6, %v4882_v33, %v5924_v25 }
0x5741   :  { %v6576_v1 = vpop.eup %6575 }
0x5742   :  { %v5925_v30 = vadd.f32 -1.0, %v6576_v1 }
0x5744   :  { %v8484_v6 = vsel %vm4887_vm7, %v4884_v4, %v5925_v30 }
0x5745   :  { %v4896_v52 = vpack.c.bf16 %v8484_v6, %v8482_v60 }
0x5747   :  { %5926 = vmatmul.msk.bf16.vlgmr.msra.gmra.mxu1 %vm68_vm2, %v4896_v52 }
0x5748   :  { %5172 = vmatpush.bf16.msra.mxu1 %v8349_v48 }
0x574c   :  { %5173 = vmatpush.bf16.msra.mxu1 %v8355_v51 }
0x57c4   :  { %v8491_v16 = vpop.f32.mrf.mxu1 }
0x57c5   :  { %v4914_v24 = vmul.f32 0.025, %v8491_v16 }
0x57c7   :  { %v4916_v57 = vadd.f32 %v4914_v24, %v4854_v38 }
0x57c9   :  { %v4920_v20 = vmul.f32 1.442695, %v4916_v57  ;;  %vm4918_vm8 = vcmp.gt.f32.partialorder %v4916_v57, 0.0 }
0x57cb   :  { %6577 = vpow2.f32 %v4920_v20 }
0x57cc   :  { %v8496_v22 = vpop.f32.mrf.mxu1 }
0x57cd   :  { %v4915_v0 = vmul.f32 0.025, %v8496_v22 }
0x57cf   :  { %v4917_v53 = vadd.f32 %v4915_v0, %v4855_v54 }
0x57d1   :  { %v4922_v55 = vmul.f32 1.442695, %v4917_v53  ;;  %v6578_v11 = vpop.eup %6577  ;;  %vm4919_vm9 = vcmp.gt.f32.partialorder %v4917_v53, 0.0 }
0x57d2   :  { %v5927_v35 = vadd.f32 -1.0, %v6578_v11 }
0x57d3   :  { %6579 = vpow2.f32 %v4922_v55 }
0x57d4   :  { %v4926_v2 = vsel %vm4918_vm8, %v4916_v57, %v5927_v35 }
0x57d9   :  { %v6580_v3 = vpop.eup %6579 }
0x57da   :  { %v5928_v63 = vadd.f32 -1.0, %v6580_v3 }
0x57dc   :  { %v4927_v29 = vsel %vm4919_vm9, %v4917_v53, %v5928_v63  ;;  %v4856_v63 = vadd.f32 %v8467_v32, %v6823_v44 }
0x57dd   :  { %v4928_v41 = vpack.c.bf16 %v4927_v29, %v4926_v2 }
0x57df   :  { %5929 = vmatmul.msk.bf16.vlgmr.msra.gmra.mxu2 %vm68_vm2, %v4928_v41 }
0x57e0   :  { %5204 = vmatpush.bf16.msra.mxu2 %v8307_v14 }
0x57e4   :  { %5205 = vmatpush.bf16.msra.mxu2 %v8313_v7 }
0x5862   :  { %v4941_v18 = vpop.f32.mrf.mxu2 }
0x5863   :  { %v4942_v58 = vadd.f32 %v8336_v37, %v4941_v18 }
0x5865   :  { %v4948_v17 = vmul.f32 1.442695, %v4942_v58  ;;  %vm4946_vm10 = vcmp.gt.f32.partialorder %v4942_v58, 0.0 }
0x5867   :  { %6581 = vpow2.f32 %v4948_v17 }
0x586a   :  { %v4943_v10 = vpop.f32.mrf.mxu2 }
0x586b   :  { %v4944_v43 = vadd.f32 %v8342_v27, %v4943_v10 }
0x586d   :  { %v4950_v62 = vmul.f32 1.442695, %v4944_v43  ;;  %v6582_v34 = vpop.eup %6581  ;;  %vm4947_vm11 = vcmp.gt.f32.partialorder %v4944_v43, 0.0 }
0x586e   :  { %v5930_v39 = vadd.f32 -1.0, %v6582_v34 }
0x586f   :  { %6583 = vpow2.f32 %v4950_v62  ;;  %v4857_v62 = vadd.f32 %v8470_v26, %v6828_v49 }
0x5870   :  { %v8506_v50 = vsel %vm4946_vm10, %v4942_v58, %v5930_v39 }
0x5875   :  { %v6584_v23 = vpop.eup %6583 }
0x5876   :  { %v5931_v46 = vadd.f32 -1.0, %v6584_v23 }
0x5878   :  { %v8508_v42 = vsel %vm4947_vm11, %v4944_v43, %v5931_v46 }
0x5879   :  { %v4956_v40 = vpack.c.bf16 %v8508_v42, %v8506_v50 }
0x587b   :  { %5932 = vmatmul.msk.bf16.vlgmr.msra.gmra.mxu3 %vm68_vm2, %v4956_v40 }
0x587c   :  { %5232 = vmatpush.bf16.msra.mxu3 %v8349_v48 }
0x5880   :  { %5233 = vmatpush.bf16.msra.mxu3 %v8355_v51 }
0x58fe   :  { %v4969_v13 = vpop.f32.mrf.mxu3 }
0x58ff   :  { %v4974_v59 = vmul.f32 0.025, %v4969_v13 }
0x5901   :  { %v4976_v21 = vadd.f32 %v4974_v59, %v4854_v38 }
0x5903   :  { %v4980_v28 = vmul.f32 1.442695, %v4976_v21  ;;  %vm4978_vm12 = vcmp.gt.f32.partialorder %v4976_v21, 0.0 }
0x5905   :  { %6585 = vpow2.f32 %v4980_v28 }
0x5906   :  { %v8515_v5 = vpop.f32.mrf.mxu3 }
0x5907   :  { %v4975_v19 = vmul.f32 0.025, %v8515_v5 }
0x5909   :  { %v4977_v9 = vadd.f32 %v4975_v19, %v4855_v54 }
0x590b   :  { %v4982_v56 = vmul.f32 1.442695, %v4977_v9  ;;  %v6586_v33 = vpop.eup %6585  ;;  %vm4979_vm13 = vcmp.gt.f32.partialorder %v4977_v9, 0.0 }
0x590c   :  { %v5933_v12 = vadd.f32 -1.0, %v6586_v33 }
0x590d   :  { %6587 = vpow2.f32 %v4982_v56 }
0x590e   :  { %v4986_v47 = vsel %vm4978_vm12, %v4976_v21, %v5933_v12 }
0x5913   :  { %v6588_v15 = vpop.eup %6587 }
0x5914   :  { %v5934_v4 = vadd.f32 -1.0, %v6588_v15 }
0x5916   :  { %v4987_v8 = vsel %vm4979_vm13, %v4977_v9, %v5934_v4 }
0x5917   :  { %v4988_v25 = vpack.c.bf16 %v4987_v8, %v4986_v47 }
0x5919   :  { %5935 = vmatmul.msk.bf16.vlgmr.msrb.gmra.mxu0 %vm68_vm2, %v4988_v25 }
0x591a   :  { %5264 = vmatpush.bf16.msrb.mxu0 %v8307_v14 }
0x591e   :  { %5265 = vmatpush.bf16.msrb.mxu0 %v8313_v7 }
0x5996   :  { %v5001_v1 = vpop.f32.mrf.mxu0 }
0x5997   :  { %v5002_v30 = vadd.f32 %v8336_v37, %v5001_v1 }
0x5999   :  { %v5008_v52 = vmul.f32 1.442695, %v5002_v30  ;;  %vm5006_vm14 = vcmp.gt.f32.partialorder %v5002_v30, 0.0 }
0x599b   :  { %6589 = vpow2.f32 %v5008_v52 }
0x599e   :  { %v5003_v38 = vpop.f32.mrf.mxu0 }
0x599f   :  { %v5004_v24 = vadd.f32 %v8342_v27, %v5003_v38 }
0x59a1   :  { %v5010_v57 = vmul.f32 1.442695, %v5004_v24  ;;  %v6590_v20 = vpop.eup %6589  ;;  %vm5007_vm15 = vcmp.gt.f32.partialorder %v5004_v24, 0.0 }
0x59a2   :  { %v5936_v54 = vadd.f32 -1.0, %v6590_v20 }
0x59a3   :  { %6591 = vpow2.f32 %v5010_v57 }
0x59a4   :  { %v5014_v55 = vsel %vm5006_vm14, %v5002_v30, %v5936_v54 }
0x59a5   :  { %v5110_v33 = vadd.f32 %v5014_v55, %v8506_v50 }
0x59a7   :  { %v5112_v47 = vmul.f32 2.0, %v5110_v33 }
0x59a9   :  { %v6592_v0 = vpop.eup %6591 }
0x59aa   :  { %v5937_v53 = vadd.f32 -1.0, %v6592_v0 }
0x59ac   :  { %v5015_v11 = vsel %vm5007_vm15, %v5004_v24, %v5937_v53 }
0x59ad   :  { %v5016_v35 = vpack.c.bf16 %v5015_v11, %v5014_v55  ;;  %v5111_v25 = vadd.f32 %v5015_v11, %v8508_v42 }
0x59af   :  { %5938 = vmatmul.msk.bf16.vlgmr.msrb.gmra.mxu1 %vm68_vm2, %v5016_v35  ;;  %v5113_v50 = vmul.f32 2.0, %v5111_v25 }
0x59b0   :  { %5292 = vmatpush.bf16.msrb.mxu1 %v8349_v48 }
0x59b4   :  { %5293 = vmatpush.bf16.msrb.mxu1 %v8355_v51 }
0x5a2c   :  { %v5029_v3 = vpop.f32.mrf.mxu1 }
0x5a2d   :  { %v5034_v2 = vmul.f32 0.05, %v5029_v3  ;;  %v5094_v29 = vadd.f32 %v5029_v3, %v4969_v13 }
0x5a2f   :  { %v5036_v41 = vadd.f32 %v5034_v2, %v4856_v63  ;;  %v5096_v18 = vmul.f32 2.0, %v5094_v29 }
0x5a31   :  { %v5098_v58 = vadd.f32 %v5096_v18, %v8491_v16  ;;  %v5040_v17 = vmul.f32 1.442695, %v5036_v41  ;;  %vm5038_vm0 = vcmp.gt.f32.partialorder %v5036_v41, 0.0 }
0x5a33   :  { %v5100_v10 = vmul.f32 0.008333334, %v5098_v58  ;;  %6593 = vpow2.f32 %v5040_v17 }
0x5a34   :  { %v5031_v43 = vpop.f32.mrf.mxu1 }
0x5a35   :  { %v5035_v34 = vmul.f32 0.05, %v5031_v43  ;;  %v5102_v48 = vadd.f32 %v5100_v10, %v4856_v63  ;;  %v5095_v42 = vadd.f32 %v5031_v43, %v8515_v5 }
0x5a37   :  { %v5037_v51 = vadd.f32 %v5035_v34, %v4857_v62  ;;  %v5097_v0 = vmul.f32 2.0, %v5095_v42 }
0x5a39   :  { %v5042_v39 = vmul.f32 1.442695, %v5037_v51  ;;  %v6594_v23 = vpop.eup %6593  ;;  %vm5039_vm1 = vcmp.gt.f32.partialorder %v5037_v51, 0.0 }
0x5a3a   :  { %v5939_v32 = vadd.f32 -1.0, %v6594_v23 }
0x5a3b   :  { %6595 = vpow2.f32 %v5042_v39 }
0x5a3c   :  { %v5046_v13 = vsel %vm5038_vm0, %v5036_v41, %v5939_v32 }
0x5a41   :  { %v6596_v46 = vpop.eup %6595 }
0x5a42   :  { %v5940_v40 = vadd.f32 -1.0, %v6596_v46 }
0x5a44   :  { %v5047_v16 = vsel %vm5039_vm1, %v5037_v51, %v5940_v40 }
0x5a45   :  { %v5048_v59 = vpack.c.bf16 %v5047_v16, %v5046_v13 }
0x5a47   :  { %5941 = vmatmul.msk.bf16.vlgmr.msrb.gmra.mxu2 %vm68_vm2, %v5048_v59 }
0x5a48   :  { %5324 = vmatpush.bf16.msrb.mxu2 %v8307_v14 }
0x5a4c   :  { %5325 = vmatpush.bf16.msrb.mxu2 %v8313_v7 }
0x5aca   :  { %v5061_v26 = vpop.f32.mrf.mxu2 }
0x5acb   :  { %v5062_v21 = vadd.f32 %v8336_v37, %v5061_v26 }
0x5acd   :  { %v5068_v28 = vmul.f32 1.442695, %v5062_v21  ;;  %vm5066_vm3 = vcmp.gt.f32.partialorder %v5062_v21, 0.0 }
0x5acf   :  { %6597 = vpow2.f32 %v5068_v28 }
0x5ad2   :  { %v5063_v19 = vpop.f32.mrf.mxu2 }
0x5ad3   :  { %v5064_v9 = vadd.f32 %v8342_v27, %v5063_v19 }
0x5ad5   :  { %v6598_v56 = vpop.eup %6597  ;;  %v5070_v12 = vmul.f32 1.442695, %v5064_v9  ;;  %vm5067_vm4 = vcmp.gt.f32.partialorder %v5064_v9, 0.0 }
0x5ad6   :  { %v5942_v15 = vadd.f32 -1.0, %v6598_v56 }
0x5ad7   :  { %6599 = vpow2.f32 %v5070_v12 }
0x5ad8   :  { %v5074_v4 = vsel %vm5066_vm3, %v5062_v21, %v5942_v15 }
0x5ad9   :  { %v5108_v14 = vadd.f32 %v5074_v4, %v8482_v60 }
0x5adb   :  { %v5114_v7 = vadd.f32 %v5112_v47, %v5108_v14 }
0x5add   :  { %v6600_v8 = vpop.eup %6599  ;;  %v5116_v1 = vmul.f32 0.008333334, %v5114_v7 }
0x5ade   :  { %v5943_v30 = vadd.f32 -1.0, %v6600_v8 }
0x5adf   :  { %v8540_v52 = vadd.f32 %v5116_v1, %v8456_v45  ;;  %v5099_v45 = vadd.f32 %v5097_v0, %v8496_v22 }
0x5ae0   :  { %v5075_v38 = vsel %vm5067_vm4, %v5064_v9, %v5943_v30 }
0x5ae1   :  { %v5076_v24 = vpack.c.bf16 %v5075_v38, %v5074_v4  ;;  %v5109_v57 = vadd.f32 %v5075_v38, %v8484_v6  ;;  %v5101_v35 = vmul.f32 0.008333334, %v5099_v45 }
0x5ae3   :  { %v5115_v20 = vadd.f32 %v5113_v50, %v5109_v57  ;;  %5944 = vmatmul.msk.bf16.vlgmr.msrb.gmra.mxu3 %vm68_vm2, %v5076_v24  ;;  %v5103_v63 = vadd.f32 %v5101_v35, %v4857_v62  ;;  %v8583_v50 = vld [vmem:[%s8650_s2 + $0x18] sm:$0xff] }
0x5ae5   :  { %v5117_v54 = vmul.f32 0.008333334, %v5115_v20 }
0x5ae7   :  { %v8545_v60 = vadd.f32 %v5117_v54, %v8462_v61 }
0x5b66   :  { %v5089_v53 = vpop.f32.mrf.mxu3 }
0x5b67   :  { %v5104_v55 = vmul.f32 0.008333334, %v5089_v53 }
0x5b69   :  { %v8549_v11 = vadd.f32 %v5104_v55, %v5102_v48 }
0x5b6b   :  { %v5126_v3 = vmul.f32 1.442695, %v8549_v11  ;;  %vm5124_vm5 = vcmp.gt.f32.partialorder %v8549_v11, 0.0 }
0x5b6d   :  { %6601 = vpow2.f32 %v5126_v3 }
0x5b6e   :  { %v5091_v6 = vpop.f32.mrf.mxu3 }
0x5b6f   :  { %v5105_v2 = vmul.f32 0.008333334, %v5091_v6 }
0x5b71   :  { %v8552_v29 = vadd.f32 %v5105_v2, %v5103_v63 }
0x5b73   :  { %v5128_v61 = vmul.f32 1.442695, %v8552_v29  ;;  %v6602_v5 = vpop.eup %6601  ;;  %vm5125_vm6 = vcmp.gt.f32.partialorder %v8552_v29, 0.0  ;;  %v5121_v9 = vadd.f32 %v8552_v29, %v6790_v36  ;;  %v8577_v36 = vld [vmem:[%s8650_s2 + $0x10] sm:$0xff] }
0x5b74   :  { %v5945_v41 = vadd.f32 -1.0, %v6602_v5 }
0x5b75   :  { %6603 = vpow2.f32 %v5128_v61 }
0x5b76   :  { %v5132_v22 = vsel %vm5124_vm5, %v8549_v11, %v5945_v41 }
0x5b7b   :  { %v6604_v18 = vpop.eup %6603 }
0x5b7c   :  { %v5946_v58 = vadd.f32 -1.0, %v6604_v18 }
0x5b7e   :  { %v5133_v17 = vsel %vm5125_vm6, %v8552_v29, %v5946_v58 }
0x5b7f   :  { %v5134_v10 = vpack.c.bf16 %v5133_v17, %v5132_v22 }
0x5b81   :  { %5947 = vmatmul.msk.bf16.vlgmr.msra.gmra.mxu0 %vm68_vm2, %v5134_v10 }
0x5bfe   :  { %v5147_v43 = vpop.f32.mrf.mxu0 }
0x5bff   :  { %v5148_v62 = vadd.f32 %v8336_v37, %v5147_v43 }
0x5c01   :  { %v5154_v34 = vmul.f32 1.442695, %v5148_v62  ;;  %vm5152_vm7 = vcmp.gt.f32.partialorder %v5148_v62, 0.0 }
0x5c03   :  { %6605 = vpow2.f32 %v5154_v34 }
0x5c06   :  { %v5149_v48 = vpop.f32.mrf.mxu0 }
0x5c07   :  { %v5150_v51 = vadd.f32 %v8342_v27, %v5149_v48  ;;  %v5120_v27 = vadd.f32 %v8549_v11, %v6777_v31 }
0x5c09   :  { %v5156_v39 = vmul.f32 1.442695, %v5150_v51  ;;  %v6606_v23 = vpop.eup %6605  ;;  %vm5153_vm8 = vcmp.gt.f32.partialorder %v5150_v51, 0.0 }
0x5c0a   :  { %v5948_v32 = vadd.f32 -1.0, %v6606_v23 }
0x5c0b   :  { %6607 = vpow2.f32 %v5156_v39 }
0x5c0c   :  { %v8562_v13 = vsel %vm5152_vm7, %v5148_v62, %v5948_v32 }
0x5c11   :  { %v6608_v46 = vpop.eup %6607 }
0x5c12   :  { %v5949_v40 = vadd.f32 -1.0, %v6608_v46 }
0x5c14   :  { %v8564_v16 = vsel %vm5153_vm8, %v5150_v51, %v5949_v40 }
0x5c15   :  { %v5162_v37 = vpack.c.bf16 %v8564_v16, %v8562_v13 }
0x5c17   :  { %5950 = vmatmul.msk.bf16.vlgmr.msra.gmra.mxu1 %vm68_vm2, %v5162_v37 }
0x5c94   :  { %v5175_v59 = vpop.f32.mrf.mxu1 }
0x5c95   :  { %v5180_v26 = vmul.f32 0.025, %v5175_v59 }
0x5c97   :  { %v5182_v21 = vadd.f32 %v5180_v26, %v5120_v27 }
0x5c99   :  { %v5186_v28 = vmul.f32 1.442695, %v5182_v21  ;;  %vm5184_vm9 = vcmp.gt.f32.partialorder %v5182_v21, 0.0 }
0x5c9b   :  { %6609 = vpow2.f32 %v5186_v28 }
0x5c9c   :  { %v5177_v19 = vpop.f32.mrf.mxu1 }
0x5c9d   :  { %v5181_v56 = vmul.f32 0.025, %v5177_v19  ;;  %v5122_v19 = vadd.f32 %v8549_v11, %v6823_v44 }
0x5c9f   :  { %v5183_v33 = vadd.f32 %v5181_v56, %v5121_v9 }
0x5ca1   :  { %v5188_v12 = vmul.f32 1.442695, %v5183_v33  ;;  %v6610_v15 = vpop.eup %6609  ;;  %vm5185_vm10 = vcmp.gt.f32.partialorder %v5183_v33, 0.0 }
0x5ca2   :  { %v5951_v4 = vadd.f32 -1.0, %v6610_v15  ;;  %v5123_v15 = vadd.f32 %v8552_v29, %v6828_v49  ;;  %v5982_v49 = vld [vmem:[%s8649_s1 + $0x28] sm:$0xff]  ;;  %v5981_v29 = vld [vmem:[%s8649_s1 + $0x20] sm:$0xff] }
0x5ca3   :  { %6611 = vpow2.f32 %v5188_v12  ;;  %5376 = vmatpush.bf16.msrb.mxu3 %v5982_v49 }
0x5ca4   :  { %v5192_v7 = vsel %vm5184_vm9, %v5182_v21, %v5951_v4 }
0x5ca7   :  { %5377 = vmatpush.bf16.msrb.mxu3 %v5981_v29 }
0x5ca9   :  { %v6612_v47 = vpop.eup %6611 }
0x5caa   :  { %v5952_v14 = vadd.f32 -1.0, %v6612_v47 }
0x5cac   :  { %v5193_v31 = vsel %vm5185_vm10, %v5183_v33, %v5952_v14 }
0x5cad   :  { %v5194_v8 = vpack.c.bf16 %v5193_v31, %v5192_v7 }
0x5caf   :  { %5953 = vmatmul.msk.bf16.vlgmr.msra.gmra.mxu2 %vm68_vm2, %v5194_v8 }
0x5d32   :  { %v5207_v25 = vpop.f32.mrf.mxu2 }
0x5d33   :  { %v5208_v1 = vadd.f32 %v8577_v36, %v5207_v25 }
0x5d35   :  { %v5214_v30 = vmul.f32 1.442695, %v5208_v1  ;;  %vm5212_vm11 = vcmp.gt.f32.partialorder %v5208_v1, 0.0 }
0x5d37   :  { %6613 = vpow2.f32 %v5214_v30 }
0x5d3a   :  { %v5209_v38 = vpop.f32.mrf.mxu2 }
0x5d3b   :  { %v5210_v24 = vadd.f32 %v8583_v50, %v5209_v38 }
0x5d3d   :  { %v5216_v57 = vmul.f32 1.442695, %v5210_v24  ;;  %v6614_v20 = vpop.eup %6613  ;;  %vm5213_vm12 = vcmp.gt.f32.partialorder %v5210_v24, 0.0 }
0x5d3e   :  { %v5954_v54 = vadd.f32 -1.0, %v6614_v20  ;;  %v6672_v20 = vmov 0  }
0x5d3f   :  { %6615 = vpow2.f32 %v5216_v57  ;;  %v6671_v57 = vmov 1   ;;  %5987 = vset.pattern.permute.xlu0 %v6672_v20 }
0x5d40   :  { %v8586_v53 = vsel %vm5212_vm11, %v5208_v1, %v5954_v54  ;;  %5988 = vset.pattern.permute.xlu2 %v6671_v57 }
0x5d45   :  { %v6616_v42 = vpop.eup %6615 }
0x5d46   :  { %v5955_v0 = vadd.f32 -1.0, %v6616_v42  ;;  %v6673_v42 = vmov 2  }
0x5d47   :  { %5989 = vset.pattern.permute.xlu1 %v6673_v42 }
0x5d48   :  { %v8588_v45 = vsel %vm5213_vm12, %v5210_v24, %v5955_v0  ;;  %v5388_v24 = vld [vmem:[%s8651_s0] sm:$0xff] }
0x5d49   :  { %v5222_v55 = vpack.c.bf16 %v8588_v45, %v8586_v53  ;;  %5410 = vperm.xlu2 %5988, %v5388_v24   ;;  %5393 = vperm.xlu0 %5987, %v5388_v24  }
0x5d4a   :  { %5426 = vperm.xlu1 %5989, %v5388_v24  }
0x5d4b   :  { %5956 = vmatmul.msk.bf16.vlgmr.msra.gmra.mxu3 %vm68_vm2, %v5222_v55 }
0x5dce   :  { %v5235_v35 = vpop.f32.mrf.mxu3 }
0x5dcf   :  { %v5240_v3 = vmul.f32 0.025, %v5235_v35 }
0x5dd1   :  { %v5242_v6 = vadd.f32 %v5240_v3, %v5120_v27 }
0x5dd3   :  { %v5246_v63 = vmul.f32 1.442695, %v5242_v6  ;;  %vm5244_vm13 = vcmp.gt.f32.partialorder %v5242_v6, 0.0 }
0x5dd5   :  { %6617 = vpow2.f32 %v5246_v63 }
0x5dd6   :  { %v5237_v2 = vpop.f32.mrf.mxu3 }
0x5dd7   :  { %v5241_v61 = vmul.f32 0.025, %v5237_v2 }
0x5dd9   :  { %v5243_v5 = vadd.f32 %v5241_v61, %v5121_v9 }
0x5ddb   :  { %v5248_v41 = vmul.f32 1.442695, %v5243_v5  ;;  %v6618_v18 = vpop.eup %6617  ;;  %vm5245_vm14 = vcmp.gt.f32.partialorder %v5243_v5, 0.0 }
0x5ddc   :  { %v5957_v58 = vadd.f32 -1.0, %v6618_v18 }
0x5ddd   :  { %6619 = vpow2.f32 %v5248_v41 }
0x5dde   :  { %v5252_v10 = vsel %vm5244_vm13, %v5242_v6, %v5957_v58 }
0x5de3   :  { %v6620_v22 = vpop.eup %6619 }
0x5de4   :  { %v5958_v17 = vadd.f32 -1.0, %v6620_v22 }
0x5de6   :  { %v5253_v43 = vsel %vm5245_vm14, %v5243_v5, %v5958_v17  ;;  %v6674_v17 = vmov 3   ;;  %vm5457_vm14 = vcmask 7168  }
0x5de7   :  { %v5254_v62 = vpack.c.bf16 %v5253_v43, %v5252_v10 }
0x5de9   :  { %5959 = vmatmul.msk.bf16.vlgmr.msrb.gmra.mxu0 %vm68_vm2, %v5254_v62 }
0x5e66   :  { %v5267_v34 = vpop.f32.mrf.mxu0 }
0x5e67   :  { %v5268_v48 = vadd.f32 %v8577_v36, %v5267_v34 }
0x5e69   :  { %v5274_v51 = vmul.f32 1.442695, %v5268_v48  ;;  %vm5272_vm15 = vcmp.gt.f32.partialorder %v5268_v48, 0.0 }
0x5e6b   :  { %6621 = vpow2.f32 %v5274_v51  ;;  %v5411_v51 = vpop.permute.xlu2 %5410 }
0x5e6e   :  { %v5269_v39 = vpop.f32.mrf.mxu0 }
0x5e6f   :  { %v5270_v23 = vadd.f32 %v8583_v50, %v5269_v39 }
0x5e71   :  { %v5276_v32 = vmul.f32 1.442695, %v5270_v23  ;;  %v6622_v46 = vpop.eup %6621  ;;  %vm5273_vm0 = vcmp.gt.f32.partialorder %v5270_v23, 0.0 }
0x5e72   :  { %v5960_v40 = vadd.f32 -1.0, %v6622_v46  ;;  %v35_v46 = vld [vmem:[%s8650_s2 + $0x40] sm:$0xff] }
0x5e73   :  { %6623 = vpow2.f32 %v5276_v32  ;;  %v5390_v32 = vlaneseq }
0x5e74   :  { %v5280_v27 = vsel %vm5272_vm15, %v5268_v48, %v5960_v40  ;;  %v33_v40 = vld [vmem:[%s8650_s2 + $0x30] sm:$0xff]  ;;  %vm5460_vm15 = vcmask 15360  }
0x5e75   :  { %v5344_v3 = vadd.f32 %v5280_v27, %v8586_v53 }
0x5e77   :  { %v5346_v61 = vmul.f32 2.0, %v5344_v3 }
0x5e79   :  { %v6624_v37 = vpop.eup %6623 }
0x5e7a   :  { %v5961_v59 = vadd.f32 -1.0, %v6624_v37 }
0x5e7c   :  { %v5281_v26 = vsel %vm5273_vm0, %v5270_v23, %v5961_v59  ;;  %vm5463_vm0 = vcmask 23552  }
0x5e7d   :  { %v5282_v21 = vpack.c.bf16 %v5281_v26, %v5280_v27  ;;  %v5345_v58 = vadd.f32 %v5281_v26, %v8588_v45 }
0x5e7f   :  { %5962 = vmatmul.msk.bf16.vlgmr.msrb.gmra.mxu1 %vm68_vm2, %v5282_v21  ;;  %v5347_v43 = vmul.f32 2.0, %v5345_v58 }
0x5efc   :  { %v5295_v28 = vpop.f32.mrf.mxu1 }
0x5efd   :  { %v5300_v9 = vmul.f32 0.05, %v5295_v28 }
0x5eff   :  { %v5302_v56 = vadd.f32 %v5300_v9, %v5122_v19  ;;  %v36_v9 = vld [vmem:[%s8650_s2 + $0x48] sm:$0xff] }
0x5f01   :  { %v5306_v33 = vmul.f32 1.442695, %v5302_v56  ;;  %vm5304_vm1 = vcmp.gt.f32.partialorder %v5302_v56, 0.0 }
0x5f03   :  { %6625 = vpow2.f32 %v5306_v33  ;;  %v34_v33 = vld [vmem:[%s8650_s2 + $0x38] sm:$0xff] }
0x5f04   :  { %v5297_v12 = vpop.f32.mrf.mxu1 }
0x5f05   :  { %v5301_v4 = vmul.f32 0.05, %v5297_v12 }
0x5f07   :  { %v5303_v47 = vadd.f32 %v5301_v4, %v5123_v15 }
0x5f09   :  { %v5308_v14 = vmul.f32 1.442695, %v5303_v47  ;;  %v6626_v7 = vpop.eup %6625  ;;  %vm5305_vm3 = vcmp.gt.f32.partialorder %v5303_v47, 0.0 }
0x5f0a   :  { %v5963_v31 = vadd.f32 -1.0, %v6626_v7 }
0x5f0b   :  { %6627 = vpow2.f32 %v5308_v14 }
0x5f0c   :  { %v5312_v1 = vsel %vm5304_vm1, %v5302_v56, %v5963_v31  ;;  %v5427_v31 = vpop.permute.xlu1 %5426  ;;  %vm5466_vm1 = vcmask 31744  }
0x5f11   :  { %v6628_v8 = vpop.eup %6627 }
0x5f12   :  { %v5964_v25 = vadd.f32 -1.0, %v6628_v8 }
0x5f14   :  { %v5313_v44 = vsel %vm5305_vm3, %v5303_v47, %v5964_v25 }
0x5f15   :  { %v5314_v11 = vpack.c.bf16 %v5313_v44, %v5312_v1 }
0x5f17   :  { %5965 = vmatmul.msk.bf16.vlgmr.msrb.gmra.mxu2 %vm68_vm2, %v5314_v11 }
0x5f9a   :  { %v5327_v30 = vpop.f32.mrf.mxu2 }
0x5f9b   :  { %v5328_v38 = vadd.f32 %v8577_v36, %v5327_v30  ;;  %v5389_v36 = vld [vmem:[%s8651_s0 + $0x8] sm:$0xff] }
0x5f9c   :  { %5413 = vperm.xlu2 %5988, %v5389_v36   ;;  %5396 = vperm.xlu0 %5987, %v5389_v36  }
0x5f9d   :  { %v5334_v54 = vmul.f32 1.442695, %v5328_v38  ;;  %vm5332_vm4 = vcmp.gt.f32.partialorder %v5328_v38, 0.0 }
0x5f9f   :  { %6629 = vpow2.f32 %v5334_v54 }
0x5fa2   :  { %v5329_v0 = vpop.f32.mrf.mxu2 }
0x5fa3   :  { %v5330_v55 = vadd.f32 %v8583_v50, %v5329_v0 }
0x5fa4   :  { %5990 = vset.pattern.permute.xlu2 %v6673_v42  ;;  %5992 = vset.pattern.permute.xlu0 %v6674_v17 }
0x5fa5   :  { %v6630_v35 = vpop.eup %6629  ;;  %v5336_v6 = vmul.f32 1.442695, %v5330_v55  ;;  %5429 = vperm.xlu2 %5990, %v5389_v36   ;;  %vm5333_vm5 = vcmp.gt.f32.partialorder %v5330_v55, 0.0 }
0x5fa6   :  { %v5966_v63 = vadd.f32 -1.0, %v6630_v35 }
0x5fa7   :  { %6631 = vpow2.f32 %v5336_v6 }
0x5fa8   :  { %v5340_v2 = vsel %vm5332_vm4, %v5328_v38, %v5966_v63 }
0x5fa9   :  { %v5342_v5 = vadd.f32 %v5340_v2, %v8562_v13 }
0x5fab   :  { %v5348_v41 = vadd.f32 %v5346_v61, %v5342_v5 }
0x5fad   :  { %v6632_v18 = vpop.eup %6631  ;;  %v5350_v22 = vmul.f32 0.008333334, %v5348_v41  ;;  %5991 = vset.pattern.permute.xlu2 %v6674_v17 }
0x5fae   :  { %v5967_v50 = vadd.f32 -1.0, %v6632_v18  ;;  %5442 = vperm.xlu2 %5991, %v5388_v24  }
0x5faf   :  { %v5352_v53 = vadd.f32 %v5350_v22, %v8540_v52  ;;  %v5394_v52 = vpop.permute.xlu0 %5393 }
0x5fb0   :  { %v5341_v10 = vsel %vm5333_vm5, %v5330_v55, %v5967_v50 }
0x5fb1   :  { %v5343_v62 = vadd.f32 %v5341_v10, %v8564_v16  ;;  %v5391_v16 = vand.u32 127, %v5390_v32 }
0x5fb3   :  { %v5349_v34 = vadd.f32 %v5347_v43, %v5343_v62  ;;  %vm5398_vm6 = vcmp.eq.s32.totalorder %v5394_v52, %v5391_v16  ;;  %vm5415_vm7 = vcmp.eq.s32.totalorder %v5411_v51, %v5391_v16  ;;  %vm5431_vm11 = vcmp.eq.s32.totalorder %v5427_v31, %v5391_v16 }
0x5fb5   :  { %v5351_v48 = vmul.f32 0.008333334, %v5349_v34 }
0x5fb6   :  { %5445 = vperm.xlu2 %5991, %v5389_v36  }
0x5fb7   :  { %v5353_v13 = vadd.f32 %v5351_v48, %v8545_v60 }
0x5fb9   :  { %v5354_v45 = vpack.c.bf16 %v5353_v13, %v5352_v53 }
0x5fbb   :  { %5976 = vmatmul.msk.bf16.vlgmr.msrb.gmra.mxu3 %vm68_vm2, %v5354_v45  ;;  %vm5402_vm2 = vcmask 64512  }
0x5ff6   :  { %v5414_v39 = vpop.permute.xlu2 %5413 }
0x5ff7   :  { %vm5416_vm10 = vcmp.eq.s32.totalorder %v5414_v39, %v5391_v16 }
0x5fff   :  { %v5430_v23 = vpop.permute.xlu2 %5429 }
0x6000   :  { %vm5432_vm12 = vcmp.eq.s32.totalorder %v5430_v23, %v5391_v16 }
0x6008   :  { %v5443_v27 = vpop.permute.xlu2 %5442 }
0x6009   :  { %vm5447_vm8 = vcmp.eq.s32.totalorder %v5443_v27, %v5391_v16 }
0x600e   :  { %v5397_v56 = vpop.permute.xlu0 %5396 }
0x600f   :  { %vm5399_vm9 = vcmp.eq.s32.totalorder %v5397_v56, %v5391_v16 }
0x6010   :  { %v5446_v49 = vpop.permute.xlu2 %5445 }
0x6011   :  { %vm5448_vm13 = vcmp.eq.s32.totalorder %v5446_v49, %v5391_v16 }
0x603e   :  { %v5379_v60 = vpop.f32.mrf.mxu3 }
0x603f   :  { %v5384_v37 = vadd.f32 %v5379_v60, %v35_v46 }
0x6041   :  { %v5386_v59 = vadd.f32 %v5384_v37, %v33_v40 }
0x6043   :  { %v5417_v26 = vsel %vm5415_vm7, %v5386_v59, 0.0  ;;  %v5400_v21 = vsel %vm5398_vm6, %v5386_v59, 0.0  ;;  %v5449_v47 = vsel %vm5447_vm8, %v5386_v59, 0.0  ;;  %v5433_v11 = vsel %vm5431_vm11, %v5386_v59, 0.0 }
0x6044   :  { %v5419_v28 = vsel %vm5402_vm2, %v5417_v26, 0.0  ;;  %v5403_v19 = vsel %vm5402_vm2, %v5400_v21, 0.0  ;;  %v5451_v25 = vsel %vm5402_vm2, %v5449_v47, 0.0  ;;  %v5435_v30 = vsel %vm5402_vm2, %v5433_v11, 0.0 }
0x6045   :  { %5420 = vadd.xlane.f32.xlu0 %v5419_v28  ;;  %5404 = vadd.xlane.f32.xlu1 %v5403_v19 }
0x6046   :  { %v5381_v12 = vpop.f32.mrf.mxu3 }
0x6047   :  { %v5385_v15 = vadd.f32 %v5381_v12, %v36_v9 }
0x6049   :  { %v5387_v4 = vadd.f32 %v5385_v15, %v34_v33 }
0x604b   :  { %v5418_v14 = vsel %vm5416_vm10, %v5387_v4, 0.0  ;;  %v5401_v7 = vsel %vm5399_vm9, %v5387_v4, 0.0  ;;  %v5434_v44 = vsel %vm5432_vm12, %v5387_v4, 0.0  ;;  %v5450_v38 = vsel %vm5448_vm13, %v5387_v4, 0.0 }
0x604c   :  { %v5422_v8 = vsel %vm5402_vm2, %v5418_v14, 0.0  ;;  %v5406_v1 = vsel %vm5402_vm2, %v5401_v7, 0.0  ;;  %v5438_v29 = vsel %vm5402_vm2, %v5434_v44, 0.0  ;;  %v5454_v24 = vsel %vm5402_vm2, %v5450_v38, 0.0 }
0x604d   :  { %5423 = vadd.xlane.f32.xlu2 %v5422_v8  ;;  %5452 = vadd.xlane.f32.xlu0 %v5451_v25 }
0x604e   :  { %5407 = vadd.xlane.f32.xlu1 %v5406_v1 }
0x6055   :  { %5439 = vadd.xlane.f32.xlu0 %v5438_v29 }
0x6056   :  { %5436 = vadd.xlane.f32.xlu1 %v5435_v30 }
0x605d   :  { %5455 = vadd.xlane.f32.xlu0 %v5454_v24 }
0x60b8   :  { %v5405_v57 = vpop.xlane.xlu1 %5404  ;;  %v5421_v20 = vpop.xlane.xlu0 %5420 }
0x60b9   :  { %v5458_v36 = vsel %vm5457_vm14, %v5405_v57, %v5421_v20 }
0x60c0   :  { %v5453_v54 = vpop.xlane.xlu0 %5452  ;;  %v5424_v6 = vpop.xlane.xlu2 %5423 }
0x60c1   :  { %v5408_v42 = vpop.xlane.xlu1 %5407 }
0x60c2   :  { %v5459_v63 = vsel %vm5457_vm14, %v5408_v42, %v5424_v6 }
0x60c8   :  { %v5440_v0 = vpop.xlane.xlu0 %5439 }
0x60c9   :  { %v5437_v55 = vpop.xlane.xlu1 %5436  ;;  %v5462_v2 = vsel %vm5460_vm15, %v5459_v63, %v5440_v0 }
0x60ca   :  { %v5461_v35 = vsel %vm5460_vm15, %v5458_v36, %v5437_v55 }
0x60cb   :  { %v5464_v3 = vsel %vm5463_vm0, %v5461_v35, %v5453_v54 }
0x60cc   :  { %5467 = vst.msk [vmem:[%s8652_s3] sm:$0xff] %vm5466_vm1, %v5464_v3 }
0x60d0   :  { %v5456_v61 = vpop.xlane.xlu0 %5455 }
0x60d1   :  { %v5465_v5 = vsel %vm5463_vm0, %v5462_v2, %v5456_v61 }
0x60d2   :  { %5468 = vst.msk [vmem:[%s8652_s3 + $0x8] sm:$0xff] %vm5466_vm1, %v5465_v5 }

</bundles_post_ra>
